<compile_context>
chip_gen: v5e
topology: v5e:2x2
jax: 0.10.0
libtpu: 0.0.40
codegen_flags: <defaults>
</compile_context>

<pallas_src>
import jax
import jax.numpy as jnp
from jax import lax
from jax.experimental import pallas as pl
from jax.experimental.pallas import tpu as pltpu

LEAK = 0.2
EPS = 1e-5

_COMPILER_PARAMS = pltpu.CompilerParams(
    dimension_semantics=("parallel",),      # batch axis -> 2 TensorCores on v7x
    vmem_limit_bytes=48 * 1024 * 1024,      # headroom under v7x's 64 MiB VMEM
)


def _build_patches(src, patches_ref, H, W, C):
    """Write the 9 shifted 3x3 windows of `src` (H+2, W+2, C) into the
    (H*W, 9*C) im2col scratch, so the whole conv is ONE K=9*C MXU matmul."""
    for dh in range(3):
        for dw in range(3):
            k = dh * 3 + dw
            win = src[dh:dh + H, dw:dw + W, :].reshape(H * W, C)
            patches_ref[:, k * C:(k + 1) * C] = win.astype(patches_ref.dtype)


def _conv1_kernel(xpad_ref, w_ref, y_ref, psum_ref, psq_ref, patches_ref):
    """conv1 (3x3, pad=1) for one batch element + partial BN1 (sum, sum_sq)."""
    _, Hp, Wp, Cin = xpad_ref.shape
    H, W = Hp - 2, Wp - 2
    _build_patches(xpad_ref[0], patches_ref, H, W, Cin)
    acc = jnp.dot(patches_ref[...], w_ref[...],
                  preferred_element_type=jnp.float32)        # (H*W, Cmid) on MXU
    y_ref[0] = acc
    psum_ref[0] = jnp.sum(acc, axis=0, keepdims=True)        # (1, Cmid)
    psq_ref[0] = jnp.sum(acc * acc, axis=0, keepdims=True)   # one-pass stats


def _conv2_kernel(y1_ref, s1_ref, t1_ref, w_ref, y_ref, psum_ref, psq_ref,
                  hpad_ref, patches_ref):
    """Folded BN1 affine + LeakyReLU + conv2 for one batch element + BN2 stats."""
    Hp, Wp, Cmid = hpad_ref.shape
    H, W = Hp - 2, Wp - 2
    # BN1 affine + LeakyReLU in f32 (folded scale/shift precomputed outside).
    h = y1_ref[0] * s1_ref[...] + t1_ref[...]                # (H*W, Cmid)
    h = jnp.where(h >= 0, h, LEAK * h)
    # Zero only the four halo strips; the interior is overwritten every step.
    hpad_ref[0:1, :, :] = jnp.zeros((1, Wp, Cmid), hpad_ref.dtype)
    hpad_ref[H + 1:H + 2, :, :] = jnp.zeros((1, Wp, Cmid), hpad_ref.dtype)
    hpad_ref[:, 0:1, :] = jnp.zeros((Hp, 1, Cmid), hpad_ref.dtype)
    hpad_ref[:, W + 1:W + 2, :] = jnp.zeros((Hp, 1, Cmid), hpad_ref.dtype)
    hpad_ref[1:H + 1, 1:W + 1, :] = h.reshape(H, W, Cmid)
    _build_patches(hpad_ref[...], patches_ref, H, W, Cmid)
    acc = jnp.dot(patches_ref[...], w_ref[...],
                  preferred_element_type=jnp.float32)        # (H*W, Cout)
    y_ref[0] = acc
    psum_ref[0] = jnp.sum(acc, axis=0, keepdims=True)
    psq_ref[0] = jnp.sum(acc * acc, axis=0, keepdims=True)


def _residual_kernel(y2_ref, s2_ref, t2_ref, x_ref, o_ref):
    """Folded BN2 affine + identity residual + LeakyReLU (lane-dense layout)."""
    o = y2_ref[0] * s2_ref[...] + t2_ref[...] + x_ref[0]
    o_ref[0] = jnp.where(o >= 0, o, LEAK * o)


def _fold_bn(psum, psq, count, gamma, beta):
    """Global training-mode batch stats -> folded affine (scale, shift), f32."""
    total = jnp.sum(psum, axis=(0, 1))
    total_sq = jnp.sum(psq, axis=(0, 1))
    mean = total / count
    var = jnp.maximum(total_sq / count - mean * mean, 0.0)   # biased variance
    scale = gamma * lax.rsqrt(var + EPS)
    shift = beta - mean * scale
    return scale.reshape(1, -1), shift.reshape(1, -1)


@jax.jit
def residual_block(x_nchw, params):
    """ResidualBlock forward (inc == outc -> identity skip). NCHW in / NCHW out.

    params use PyTorch layouts: w1 (Cmid,Cin,3,3), g1/b1 (Cmid,),
    w2 (Cout,Cmid,3,3), g2/b2 (Cout,).
    """
    w1, g1, b1 = params["w1"], params["g1"], params["b1"]
    w2, g2, b2 = params["w2"], params["g2"], params["b2"]
    N, Cin, H, W = x_nchw.shape
    Cmid, Cout = w1.shape[0], w2.shape[0]
    assert Cin == Cout, "inc == outc (default config): conv_expand is None"
    # TODO(synk): inc != outc path (1x1 conv_expand on the skip) not implemented.

    Hp, Wp, HW = H + 2, W + 2, H * W
    f32, bf16 = jnp.float32, jnp.bfloat16

    x_nhwc = jnp.transpose(x_nchw, (0, 2, 3, 1)).astype(f32)               # (N,H,W,C)
    xpad = jnp.pad(x_nhwc, ((0, 0), (1, 1), (1, 1), (0, 0))).astype(bf16)  # conv1 in

    # PyTorch conv weight (co,ci,kh,kw) -> (kh,kw,ci,co) -> (9*ci, co), bf16.
    # Column order matches the im2col scratch; used whole (no per-tap slicing).
    w1_2d = jnp.transpose(w1, (2, 3, 1, 0)).reshape(9 * Cin, Cmid).astype(bf16)
    w2_2d = jnp.transpose(w2, (2, 3, 1, 0)).reshape(9 * Cmid, Cout).astype(bf16)

    rep = lambda n: (0, 0)   # replicated (full-array) operands

    # ---- stage 1: conv1 + BN1 partial stats, one batch element per grid step ----
    y1, ps1, pq1 = pl.pallas_call(
        _conv1_kernel,
        grid=(N,),
        in_specs=[
            pl.BlockSpec((1, Hp, Wp, Cin), lambda n: (n, 0, 0, 0)),
            pl.BlockSpec((9 * Cin, Cmid), rep),
        ],
        out_specs=(
            pl.BlockSpec((1, HW, Cmid), lambda n: (n, 0, 0)),
            pl.BlockSpec((1, 1, Cmid), lambda n: (n, 0, 0)),
            pl.BlockSpec((1, 1, Cmid), lambda n: (n, 0, 0)),
        ),
        out_shape=(
            jax.ShapeDtypeStruct((N, HW, Cmid), f32),
            jax.ShapeDtypeStruct((N, 1, Cmid), f32),
            jax.ShapeDtypeStruct((N, 1, Cmid), f32),
        ),
        scratch_shapes=[pltpu.VMEM((HW, 9 * Cin), bf16)],
        compiler_params=_COMPILER_PARAMS,
    )(xpad, w1_2d)

    s1, t1 = _fold_bn(ps1, pq1, N * HW, g1.astype(f32), b1.astype(f32))

    # ---- stage 2: BN1 affine + LeakyReLU + conv2 + BN2 partial stats ----
    y2, ps2, pq2 = pl.pallas_call(
        _conv2_kernel,
        grid=(N,),
        in_specs=[
            pl.BlockSpec((1, HW, Cmid), lambda n: (n, 0, 0)),
            pl.BlockSpec((1, Cmid), rep),
            pl.BlockSpec((1, Cmid), rep),
            pl.BlockSpec((9 * Cmid, Cout), rep),
        ],
        out_specs=(
            pl.BlockSpec((1, HW, Cout), lambda n: (n, 0, 0)),
            pl.BlockSpec((1, 1, Cout), lambda n: (n, 0, 0)),
            pl.BlockSpec((1, 1, Cout), lambda n: (n, 0, 0)),
        ),
        out_shape=(
            jax.ShapeDtypeStruct((N, HW, Cout), f32),
            jax.ShapeDtypeStruct((N, 1, Cout), f32),
            jax.ShapeDtypeStruct((N, 1, Cout), f32),
        ),
        scratch_shapes=[
            pltpu.VMEM((Hp, Wp, Cmid), f32),       # padded mid activation
            pltpu.VMEM((HW, 9 * Cmid), bf16),      # im2col patches
        ],
        compiler_params=_COMPILER_PARAMS,
    )(y1, s1, t1, w2_2d)

    s2, t2 = _fold_bn(ps2, pq2, N * HW, g2.astype(f32), b2.astype(f32))

    # ---- stage 3: BN2 affine + residual + LeakyReLU (lane-dense layout) ----
    # (N, H*W, C) and (N, H, W*C) are the same memory layout -> free reshapes
    # that make every load/store lane-dense (last dim W*C instead of C).
    y2_ld = y2.reshape(N, H, W * Cout)
    x_ld = x_nhwc.reshape(N, H, W * Cout)
    s2_ld = jnp.tile(s2, (1, W))          # per-channel affine repeated across W
    t2_ld = jnp.tile(t2, (1, W))

    out_ld = pl.pallas_call(
        _residual_kernel,
        grid=(N,),
        in_specs=[
            pl.BlockSpec((1, H, W * Cout), lambda n: (n, 0, 0)),
            pl.BlockSpec((1, W * Cout), rep),
            pl.BlockSpec((1, W * Cout), rep),
            pl.BlockSpec((1, H, W * Cout), lambda n: (n, 0, 0)),
        ],
        out_specs=pl.BlockSpec((1, H, W * Cout), lambda n: (n, 0, 0)),
        out_shape=jax.ShapeDtypeStruct((N, H, W * Cout), f32),
        compiler_params=_COMPILER_PARAMS,
    )(y2_ld, s2_ld, t2_ld, x_ld)

    out_nhwc = out_ld.reshape(N, H, W, Cout)
    return jnp.transpose(out_nhwc, (0, 3, 1, 2))               # back to NCHW


def _reference(x, params):
    """Pure-JAX f32 reference of the PyTorch module forward (training-mode BN)."""
    def conv3x3(h, w):
        return lax.conv_general_dilated(h, w, (1, 1), ((1, 1), (1, 1)),
                                        dimension_numbers=("NCHW", "OIHW", "NCHW"))

    def bn(h, g, b):
        mean = jnp.mean(h, axis=(0, 2, 3), keepdims=True)
        var = jnp.mean((h - mean) ** 2, axis=(0, 2, 3), keepdims=True)
        return ((h - mean) * lax.rsqrt(var + EPS) * g.reshape(1, -1, 1, 1)
                + b.reshape(1, -1, 1, 1))

    def lrelu(h):
        return jnp.where(h >= 0, h, LEAK * h)

    out = lrelu(bn(conv3x3(x, params["w1"]), params["g1"], params["b1"]))
    out = bn(conv3x3(out, params["w2"]), params["g2"], params["b2"])
    return lrelu(out + x)


if __name__ == "__main__":
    key = jax.random.PRNGKey(0)
    N, C, H, W = 2, 4, 16, 16          # inc == outc == 4  ->  conv_expand is None
    ks = jax.random.split(key, 7)
    x = jax.random.normal(ks[0], (N, C, H, W), jnp.float32)
    params = dict(
        w1=jax.random.normal(ks[1], (C, C, 3, 3), jnp.float32) * 0.1,
        g1=1.0 + 0.1 * jax.random.normal(ks[2], (C,), jnp.float32),
        b1=0.1 * jax.random.normal(ks[3], (C,), jnp.float32),
        w2=jax.random.normal(ks[4], (C, C, 3, 3), jnp.float32) * 0.1,
        g2=1.0 + 0.1 * jax.random.normal(ks[5], (C,), jnp.float32),
        b2=0.1 * jax.random.normal(ks[6], (C,), jnp.float32),
    )

    out = jax.block_until_ready(residual_block(x, params))
    ref = _reference(x, params)
    assert out.shape == (N, C, H, W)
    # bf16 MXU operands (f32 accumulation) -> ~1e-2-level absolute deviation
    # from the pure-f32 reference is expected.
    max_err = float(jnp.max(jnp.abs(out - ref)))
    assert jnp.allclose(out, ref, atol=5e-2, rtol=5e-2), max_err
    print("KERNEL_OK")
</pallas_src>

<mosaic_0001>
module attributes {stable_mosaic.version = 11 : i64} {
  func.func @_conv1_kernel(%arg0: i32, %arg1: memref<1x18x18x4xbf16, #tpu.memory_space<vmem>>, %arg2: memref<36x4xbf16, #tpu.memory_space<vmem>>, %arg3: memref<1x256x4xf32, #tpu.memory_space<vmem>>, %arg4: memref<1x1x4xf32, #tpu.memory_space<vmem>>, %arg5: memref<1x1x4xf32, #tpu.memory_space<vmem>>, %arg6: memref<256x36xbf16, #tpu.memory_space<vmem>>) attributes {dimension_semantics = [#tpu.dimension_semantics<parallel>], iteration_bounds = array<i64: 2>, scalar_prefetch = 0 : i64, scratch_operands = 1 : i64, tpu.core_type = #tpu.core_type<tc>, window_params = [{transform_indices = @transform_0, window_bounds = array<i64: 1, 18, 18, 4>}, {pipeline_mode = #tpu.pipeline_mode<synchronous>, transform_indices = @transform_1, window_bounds = array<i64: 36, 4>}, {transform_indices = @transform_2, window_bounds = array<i64: 1, 256, 4>}, {transform_indices = @transform_3, window_bounds = array<i64: 1, 1, 4>}, {transform_indices = @transform_4, window_bounds = array<i64: 1, 1, 4>}]} {
    %c0 = arith.constant 0 : index
    %c0_0 = arith.constant 0 : index
    %c0_1 = arith.constant 0 : index
    %c0_2 = arith.constant 0 : index
    %0 = vector.load %arg1[%c0, %c0_0, %c0_1, %c0_2] : memref<1x18x18x4xbf16, #tpu.memory_space<vmem>>, vector<1x18x18x4xbf16>
    %1 = vector.shape_cast %0 : vector<1x18x18x4xbf16> to vector<18x18x4xbf16>
    %2 = vector.extract_strided_slice %1 {offsets = [0, 0, 0], sizes = [16, 16, 4], strides = [1, 1, 1]} : vector<18x18x4xbf16> to vector<16x16x4xbf16>
    %3 = vector.shape_cast %2 : vector<16x16x4xbf16> to vector<256x4xbf16>
    %c0_3 = arith.constant 0 : index
    %c0_4 = arith.constant 0 : index
    %4 = vector.load %arg6[%c0_3, %c0_4] : memref<256x36xbf16, #tpu.memory_space<vmem>>, vector<256x4xbf16>
    tpu.vector_store %arg6[%c0_3, %c0_4], %3 {strides = array<i32>} : memref<256x36xbf16, #tpu.memory_space<vmem>>, vector<256x4xbf16>,
    %5 = vector.extract_strided_slice %1 {offsets = [0, 1, 0], sizes = [16, 16, 4], strides = [1, 1, 1]} : vector<18x18x4xbf16> to vector<16x16x4xbf16>
    %6 = vector.shape_cast %5 : vector<16x16x4xbf16> to vector<256x4xbf16>
    %c0_5 = arith.constant 0 : index
    %c4 = arith.constant 4 : index
    %7 = vector.load %arg6[%c0_5, %c4] : memref<256x36xbf16, #tpu.memory_space<vmem>>, vector<256x4xbf16>
    tpu.vector_store %arg6[%c0_5, %c4], %6 {strides = array<i32>} : memref<256x36xbf16, #tpu.memory_space<vmem>>, vector<256x4xbf16>,
    %8 = vector.extract_strided_slice %1 {offsets = [0, 2, 0], sizes = [16, 16, 4], strides = [1, 1, 1]} : vector<18x18x4xbf16> to vector<16x16x4xbf16>
    %9 = vector.shape_cast %8 : vector<16x16x4xbf16> to vector<256x4xbf16>
    %c0_6 = arith.constant 0 : index
    %c8 = arith.constant 8 : index
    %10 = vector.load %arg6[%c0_6, %c8] : memref<256x36xbf16, #tpu.memory_space<vmem>>, vector<256x4xbf16>
    tpu.vector_store %arg6[%c0_6, %c8], %9 {strides = array<i32>} : memref<256x36xbf16, #tpu.memory_space<vmem>>, vector<256x4xbf16>,
    %11 = vector.extract_strided_slice %1 {offsets = [1, 0, 0], sizes = [16, 16, 4], strides = [1, 1, 1]} : vector<18x18x4xbf16> to vector<16x16x4xbf16>
    %12 = vector.shape_cast %11 : vector<16x16x4xbf16> to vector<256x4xbf16>
    %c0_7 = arith.constant 0 : index
    %c12 = arith.constant 12 : index
    %13 = vector.load %arg6[%c0_7, %c12] : memref<256x36xbf16, #tpu.memory_space<vmem>>, vector<256x4xbf16>
    tpu.vector_store %arg6[%c0_7, %c12], %12 {strides = array<i32>} : memref<256x36xbf16, #tpu.memory_space<vmem>>, vector<256x4xbf16>,
    %14 = vector.extract_strided_slice %1 {offsets = [1, 1, 0], sizes = [16, 16, 4], strides = [1, 1, 1]} : vector<18x18x4xbf16> to vector<16x16x4xbf16>
    %15 = vector.shape_cast %14 : vector<16x16x4xbf16> to vector<256x4xbf16>
    %c0_8 = arith.constant 0 : index
    %c16 = arith.constant 16 : index
    %16 = vector.load %arg6[%c0_8, %c16] : memref<256x36xbf16, #tpu.memory_space<vmem>>, vector<256x4xbf16>
    tpu.vector_store %arg6[%c0_8, %c16], %15 {strides = array<i32>} : memref<256x36xbf16, #tpu.memory_space<vmem>>, vector<256x4xbf16>,
    %17 = vector.extract_strided_slice %1 {offsets = [1, 2, 0], sizes = [16, 16, 4], strides = [1, 1, 1]} : vector<18x18x4xbf16> to vector<16x16x4xbf16>
    %18 = vector.shape_cast %17 : vector<16x16x4xbf16> to vector<256x4xbf16>
    %c0_9 = arith.constant 0 : index
    %c20 = arith.constant 20 : index
    %19 = vector.load %arg6[%c0_9, %c20] : memref<256x36xbf16, #tpu.memory_space<vmem>>, vector<256x4xbf16>
    tpu.vector_store %arg6[%c0_9, %c20], %18 {strides = array<i32>} : memref<256x36xbf16, #tpu.memory_space<vmem>>, vector<256x4xbf16>,
    %20 = vector.extract_strided_slice %1 {offsets = [2, 0, 0], sizes = [16, 16, 4], strides = [1, 1, 1]} : vector<18x18x4xbf16> to vector<16x16x4xbf16>
    %21 = vector.shape_cast %20 : vector<16x16x4xbf16> to vector<256x4xbf16>
    %c0_10 = arith.constant 0 : index
    %c24 = arith.constant 24 : index
    %22 = vector.load %arg6[%c0_10, %c24] : memref<256x36xbf16, #tpu.memory_space<vmem>>, vector<256x4xbf16>
    tpu.vector_store %arg6[%c0_10, %c24], %21 {strides = array<i32>} : memref<256x36xbf16, #tpu.memory_space<vmem>>, vector<256x4xbf16>,
    %23 = vector.extract_strided_slice %1 {offsets = [2, 1, 0], sizes = [16, 16, 4], strides = [1, 1, 1]} : vector<18x18x4xbf16> to vector<16x16x4xbf16>
    %24 = vector.shape_cast %23 : vector<16x16x4xbf16> to vector<256x4xbf16>
    %c0_11 = arith.constant 0 : index
    %c28 = arith.constant 28 : index
    %25 = vector.load %arg6[%c0_11, %c28] : memref<256x36xbf16, #tpu.memory_space<vmem>>, vector<256x4xbf16>
    tpu.vector_store %arg6[%c0_11, %c28], %24 {strides = array<i32>} : memref<256x36xbf16, #tpu.memory_space<vmem>>, vector<256x4xbf16>,
    %26 = vector.extract_strided_slice %1 {offsets = [2, 2, 0], sizes = [16, 16, 4], strides = [1, 1, 1]} : vector<18x18x4xbf16> to vector<16x16x4xbf16>
    %27 = vector.shape_cast %26 : vector<16x16x4xbf16> to vector<256x4xbf16>
    %c0_12 = arith.constant 0 : index
    %c32 = arith.constant 32 : index
    %28 = vector.load %arg6[%c0_12, %c32] : memref<256x36xbf16, #tpu.memory_space<vmem>>, vector<256x4xbf16>
    tpu.vector_store %arg6[%c0_12, %c32], %27 {strides = array<i32>} : memref<256x36xbf16, #tpu.memory_space<vmem>>, vector<256x4xbf16>,
    %c0_13 = arith.constant 0 : index
    %c0_14 = arith.constant 0 : index
    %29 = vector.load %arg6[%c0_13, %c0_14] : memref<256x36xbf16, #tpu.memory_space<vmem>>, vector<256x36xbf16>
    %c0_15 = arith.constant 0 : index
    %c0_16 = arith.constant 0 : index
    %30 = vector.load %arg2[%c0_15, %c0_16] : memref<36x4xbf16, #tpu.memory_space<vmem>>, vector<36x4xbf16>
    %cst = arith.constant dense<0.000000e+00> : vector<256x4xf32>
    %31 = tpu.matmul %29, %30, %cst {dimension_numbers = #tpu.dot_dimension_numbers<[1], [0], [0], [1], [0, 0, 1, 1], [], []>} : vector<256x36xbf16>, vector<36x4xbf16>, vector<256x4xf32> -> vector<256x4xf32>
    %c0_17 = arith.constant 0 : index
    %c0_18 = arith.constant 0 : index
    %c0_19 = arith.constant 0 : index
    %32 = vector.load %arg3[%c0_17, %c0_18, %c0_19] : memref<1x256x4xf32, #tpu.memory_space<vmem>>, vector<1x256x4xf32>
    %33 = vector.shape_cast %32 : vector<1x256x4xf32> to vector<256x4xf32>
    %34 = vector.shape_cast %31 : vector<256x4xf32> to vector<1x256x4xf32>
    tpu.vector_store %arg3[%c0_17, %c0_18, %c0_19], %34 {strides = array<i32>} : memref<1x256x4xf32, #tpu.memory_space<vmem>>, vector<1x256x4xf32>,
    %cst_20 = arith.constant dense<0.000000e+00> : vector<4xf32>
    %35 = vector.multi_reduction <add>, %31, %cst_20 [0] : vector<256x4xf32> to vector<4xf32>
    %36 = vector.shape_cast %35 : vector<4xf32> to vector<1x4xf32>
    %c0_21 = arith.constant 0 : index
    %c0_22 = arith.constant 0 : index
    %c0_23 = arith.constant 0 : index
    %37 = vector.load %arg4[%c0_21, %c0_22, %c0_23] : memref<1x1x4xf32, #tpu.memory_space<vmem>>, vector<1x1x4xf32>
    %38 = vector.shape_cast %37 : vector<1x1x4xf32> to vector<1x4xf32>
    %39 = vector.shape_cast %36 : vector<1x4xf32> to vector<1x1x4xf32>
    tpu.vector_store %arg4[%c0_21, %c0_22, %c0_23], %39 {strides = array<i32>} : memref<1x1x4xf32, #tpu.memory_space<vmem>>, vector<1x1x4xf32>,
    %40 = arith.mulf %31, %31 : vector<256x4xf32>
    %cst_24 = arith.constant dense<0.000000e+00> : vector<4xf32>
    %41 = vector.multi_reduction <add>, %40, %cst_24 [0] : vector<256x4xf32> to vector<4xf32>
    %42 = vector.shape_cast %41 : vector<4xf32> to vector<1x4xf32>
    %c0_25 = arith.constant 0 : index
    %c0_26 = arith.constant 0 : index
    %c0_27 = arith.constant 0 : index
    %43 = vector.load %arg5[%c0_25, %c0_26, %c0_27] : memref<1x1x4xf32, #tpu.memory_space<vmem>>, vector<1x1x4xf32>
    %44 = vector.shape_cast %43 : vector<1x1x4xf32> to vector<1x4xf32>
    %45 = vector.shape_cast %42 : vector<1x4xf32> to vector<1x1x4xf32>
    tpu.vector_store %arg5[%c0_25, %c0_26, %c0_27], %45 {strides = array<i32>} : memref<1x1x4xf32, #tpu.memory_space<vmem>>, vector<1x1x4xf32>,
    return
  }
  func.func @transform_0(%arg0: i32) -> (i32, i32, i32, i32) {
    %c0_i32 = arith.constant 0 : i32
    %c0_i32_0 = arith.constant 0 : i32
    %c0_i32_1 = arith.constant 0 : i32
    %c0_i32_2 = arith.constant 0 : i32
    return %arg0, %c0_i32, %c0_i32_0, %c0_i32_1 : i32, i32, i32, i32
  }
  func.func @transform_1(%arg0: i32) -> (i32, i32) {
    %c0_i32 = arith.constant 0 : i32
    %c0_i32_0 = arith.constant 0 : i32
    %c0_i32_1 = arith.constant 0 : i32
    return %c0_i32, %c0_i32_0 : i32, i32
  }
  func.func @transform_2(%arg0: i32) -> (i32, i32, i32) {
    %c0_i32 = arith.constant 0 : i32
    %c0_i32_0 = arith.constant 0 : i32
    %c0_i32_1 = arith.constant 0 : i32
    return %arg0, %c0_i32, %c0_i32_0 : i32, i32, i32
  }
  func.func @transform_3(%arg0: i32) -> (i32, i32, i32) {
    %c0_i32 = arith.constant 0 : i32
    %c0_i32_0 = arith.constant 0 : i32
    %c0_i32_1 = arith.constant 0 : i32
    return %arg0, %c0_i32, %c0_i32_0 : i32, i32, i32
  }
  func.func @transform_4(%arg0: i32) -> (i32, i32, i32) {
    %c0_i32 = arith.constant 0 : i32
    %c0_i32_0 = arith.constant 0 : i32
    %c0_i32_1 = arith.constant 0 : i32
    return %arg0, %c0_i32, %c0_i32_0 : i32, i32, i32
  }
}

module attributes {stable_mosaic.version = 11 : i64} {
  func.func @_conv2_kernel(%arg0: i32, %arg1: memref<1x256x4xf32, #tpu.memory_space<vmem>>, %arg2: memref<1x4xf32, #tpu.memory_space<vmem>>, %arg3: memref<1x4xf32, #tpu.memory_space<vmem>>, %arg4: memref<36x4xbf16, #tpu.memory_space<vmem>>, %arg5: memref<1x256x4xf32, #tpu.memory_space<vmem>>, %arg6: memref<1x1x4xf32, #tpu.memory_space<vmem>>, %arg7: memref<1x1x4xf32, #tpu.memory_space<vmem>>, %arg8: memref<18x18x4xf32, #tpu.memory_space<vmem>>, %arg9: memref<256x36xbf16, #tpu.memory_space<vmem>>) attributes {dimension_semantics = [#tpu.dimension_semantics<parallel>], iteration_bounds = array<i64: 2>, scalar_prefetch = 0 : i64, scratch_operands = 2 : i64, tpu.core_type = #tpu.core_type<tc>, window_params = [{transform_indices = @transform_0, window_bounds = array<i64: 1, 256, 4>}, {pipeline_mode = #tpu.pipeline_mode<synchronous>, transform_indices = @transform_1, window_bounds = array<i64: 1, 4>}, {pipeline_mode = #tpu.pipeline_mode<synchronous>, transform_indices = @transform_2, window_bounds = array<i64: 1, 4>}, {pipeline_mode = #tpu.pipeline_mode<synchronous>, transform_indices = @transform_3, window_bounds = array<i64: 36, 4>}, {transform_indices = @transform_4, window_bounds = array<i64: 1, 256, 4>}, {transform_indices = @transform_5, window_bounds = array<i64: 1, 1, 4>}, {transform_indices = @transform_6, window_bounds = array<i64: 1, 1, 4>}]} {
    %c0 = arith.constant 0 : index
    %c0_0 = arith.constant 0 : index
    %c0_1 = arith.constant 0 : index
    %0 = vector.load %arg1[%c0, %c0_0, %c0_1] : memref<1x256x4xf32, #tpu.memory_space<vmem>>, vector<1x256x4xf32>
    %1 = vector.shape_cast %0 : vector<1x256x4xf32> to vector<256x4xf32>
    %c0_2 = arith.constant 0 : index
    %c0_3 = arith.constant 0 : index
    %2 = vector.load %arg2[%c0_2, %c0_3] : memref<1x4xf32, #tpu.memory_space<vmem>>, vector<1x4xf32>
    %3 = vector.broadcast %2 : vector<1x4xf32> to vector<256x4xf32>
    %4 = arith.mulf %1, %3 : vector<256x4xf32>
    %c0_4 = arith.constant 0 : index
    %c0_5 = arith.constant 0 : index
    %5 = vector.load %arg3[%c0_4, %c0_5] : memref<1x4xf32, #tpu.memory_space<vmem>>, vector<1x4xf32>
    %6 = vector.broadcast %5 : vector<1x4xf32> to vector<256x4xf32>
    %7 = arith.addf %4, %6 : vector<256x4xf32>
    %cst = arith.constant 0.000000e+00 : f32
    %8 = vector.broadcast %cst : f32 to vector<256x4xf32>
    %9 = arith.cmpf oge, %7, %8 : vector<256x4xf32>
    %cst_6 = arith.constant 2.000000e-01 : f32
    %10 = vector.broadcast %cst_6 : f32 to vector<256x4xf32>
    %11 = arith.mulf %10, %7 : vector<256x4xf32>
    %12 = arith.select %9, %7, %11 : vector<256x4xi1>, vector<256x4xf32>
    %cst_7 = arith.constant 0.000000e+00 : f32
    %13 = vector.broadcast %cst_7 : f32 to vector<1x18x4xf32>
    %c0_8 = arith.constant 0 : index
    %c0_9 = arith.constant 0 : index
    %c0_10 = arith.constant 0 : index
    %14 = vector.load %arg8[%c0_8, %c0_9, %c0_10] : memref<18x18x4xf32, #tpu.memory_space<vmem>>, vector<1x18x4xf32>
    tpu.vector_store %arg8[%c0_8, %c0_9, %c0_10], %13 {strides = array<i32>} : memref<18x18x4xf32, #tpu.memory_space<vmem>>, vector<1x18x4xf32>,
    %cst_11 = arith.constant 0.000000e+00 : f32
    %15 = vector.broadcast %cst_11 : f32 to vector<1x18x4xf32>
    %c17 = arith.constant 17 : index
    %c0_12 = arith.constant 0 : index
    %c0_13 = arith.constant 0 : index
    %16 = vector.load %arg8[%c17, %c0_12, %c0_13] : memref<18x18x4xf32, #tpu.memory_space<vmem>>, vector<1x18x4xf32>
    tpu.vector_store %arg8[%c17, %c0_12, %c0_13], %15 {strides = array<i32>} : memref<18x18x4xf32, #tpu.memory_space<vmem>>, vector<1x18x4xf32>,
    %cst_14 = arith.constant 0.000000e+00 : f32
    %17 = vector.broadcast %cst_14 : f32 to vector<18x1x4xf32>
    %c0_15 = arith.constant 0 : index
    %c0_16 = arith.constant 0 : index
    %c0_17 = arith.constant 0 : index
    %18 = vector.load %arg8[%c0_15, %c0_16, %c0_17] : memref<18x18x4xf32, #tpu.memory_space<vmem>>, vector<18x1x4xf32>
    tpu.vector_store %arg8[%c0_15, %c0_16, %c0_17], %17 {strides = array<i32>} : memref<18x18x4xf32, #tpu.memory_space<vmem>>, vector<18x1x4xf32>,
    %cst_18 = arith.constant 0.000000e+00 : f32
    %19 = vector.broadcast %cst_18 : f32 to vector<18x1x4xf32>
    %c0_19 = arith.constant 0 : index
    %c17_20 = arith.constant 17 : index
    %c0_21 = arith.constant 0 : index
    %20 = vector.load %arg8[%c0_19, %c17_20, %c0_21] : memref<18x18x4xf32, #tpu.memory_space<vmem>>, vector<18x1x4xf32>
    tpu.vector_store %arg8[%c0_19, %c17_20, %c0_21], %19 {strides = array<i32>} : memref<18x18x4xf32, #tpu.memory_space<vmem>>, vector<18x1x4xf32>,
    %21 = vector.shape_cast %12 : vector<256x4xf32> to vector<16x16x4xf32>
    %c1 = arith.constant 1 : index
    %c1_22 = arith.constant 1 : index
    %c0_23 = arith.constant 0 : index
    %22 = vector.load %arg8[%c1, %c1_22, %c0_23] : memref<18x18x4xf32, #tpu.memory_space<vmem>>, vector<16x16x4xf32>
    tpu.vector_store %arg8[%c1, %c1_22, %c0_23], %21 {strides = array<i32>} : memref<18x18x4xf32, #tpu.memory_space<vmem>>, vector<16x16x4xf32>,
    %c0_24 = arith.constant 0 : index
    %c0_25 = arith.constant 0 : index
    %c0_26 = arith.constant 0 : index
    %23 = vector.load %arg8[%c0_24, %c0_25, %c0_26] : memref<18x18x4xf32, #tpu.memory_space<vmem>>, vector<18x18x4xf32>
    %24 = vector.extract_strided_slice %23 {offsets = [0, 0, 0], sizes = [16, 16, 4], strides = [1, 1, 1]} : vector<18x18x4xf32> to vector<16x16x4xf32>
    %25 = vector.shape_cast %24 : vector<16x16x4xf32> to vector<256x4xf32>
    %26 = arith.truncf %25 : vector<256x4xf32> to vector<256x4xbf16>
    %c0_27 = arith.constant 0 : index
    %c0_28 = arith.constant 0 : index
    %27 = vector.load %arg9[%c0_27, %c0_28] : memref<256x36xbf16, #tpu.memory_space<vmem>>, vector<256x4xbf16>
    tpu.vector_store %arg9[%c0_27, %c0_28], %26 {strides = array<i32>} : memref<256x36xbf16, #tpu.memory_space<vmem>>, vector<256x4xbf16>,
    %28 = vector.extract_strided_slice %23 {offsets = [0, 1, 0], sizes = [16, 16, 4], strides = [1, 1, 1]} : vector<18x18x4xf32> to vector<16x16x4xf32>
    %29 = vector.shape_cast %28 : vector<16x16x4xf32> to vector<256x4xf32>
    %30 = arith.truncf %29 : vector<256x4xf32> to vector<256x4xbf16>
    %c0_29 = arith.constant 0 : index
    %c4 = arith.constant 4 : index
    %31 = vector.load %arg9[%c0_29, %c4] : memref<256x36xbf16, #tpu.memory_space<vmem>>, vector<256x4xbf16>
    tpu.vector_store %arg9[%c0_29, %c4], %30 {strides = array<i32>} : memref<256x36xbf16, #tpu.memory_space<vmem>>, vector<256x4xbf16>,
    %32 = vector.extract_strided_slice %23 {offsets = [0, 2, 0], sizes = [16, 16, 4], strides = [1, 1, 1]} : vector<18x18x4xf32> to vector<16x16x4xf32>
    %33 = vector.shape_cast %32 : vector<16x16x4xf32> to vector<256x4xf32>
    %34 = arith.truncf %33 : vector<256x4xf32> to vector<256x4xbf16>
    %c0_30 = arith.constant 0 : index
    %c8 = arith.constant 8 : index
    %35 = vector.load %arg9[%c0_30, %c8] : memref<256x36xbf16, #tpu.memory_space<vmem>>, vector<256x4xbf16>
    tpu.vector_store %arg9[%c0_30, %c8], %34 {strides = array<i32>} : memref<256x36xbf16, #tpu.memory_space<vmem>>, vector<256x4xbf16>,
    %36 = vector.extract_strided_slice %23 {offsets = [1, 0, 0], sizes = [16, 16, 4], strides = [1, 1, 1]} : vector<18x18x4xf32> to vector<16x16x4xf32>
    %37 = vector.shape_cast %36 : vector<16x16x4xf32> to vector<256x4xf32>
    %38 = arith.truncf %37 : vector<256x4xf32> to vector<256x4xbf16>
    %c0_31 = arith.constant 0 : index
    %c12 = arith.constant 12 : index
    %39 = vector.load %arg9[%c0_31, %c12] : memref<256x36xbf16, #tpu.memory_space<vmem>>, vector<256x4xbf16>
    tpu.vector_store %arg9[%c0_31, %c12], %38 {strides = array<i32>} : memref<256x36xbf16, #tpu.memory_space<vmem>>, vector<256x4xbf16>,
    %40 = vector.extract_strided_slice %23 {offsets = [1, 1, 0], sizes = [16, 16, 4], strides = [1, 1, 1]} : vector<18x18x4xf32> to vector<16x16x4xf32>
    %41 = vector.shape_cast %40 : vector<16x16x4xf32> to vector<256x4xf32>
    %42 = arith.truncf %41 : vector<256x4xf32> to vector<256x4xbf16>
    %c0_32 = arith.constant 0 : index
    %c16 = arith.constant 16 : index
    %43 = vector.load %arg9[%c0_32, %c16] : memref<256x36xbf16, #tpu.memory_space<vmem>>, vector<256x4xbf16>
    tpu.vector_store %arg9[%c0_32, %c16], %42 {strides = array<i32>} : memref<256x36xbf16, #tpu.memory_space<vmem>>, vector<256x4xbf16>,
    %44 = vector.extract_strided_slice %23 {offsets = [1, 2, 0], sizes = [16, 16, 4], strides = [1, 1, 1]} : vector<18x18x4xf32> to vector<16x16x4xf32>
    %45 = vector.shape_cast %44 : vector<16x16x4xf32> to vector<256x4xf32>
    %46 = arith.truncf %45 : vector<256x4xf32> to vector<256x4xbf16>
    %c0_33 = arith.constant 0 : index
    %c20 = arith.constant 20 : index
    %47 = vector.load %arg9[%c0_33, %c20] : memref<256x36xbf16, #tpu.memory_space<vmem>>, vector<256x4xbf16>
    tpu.vector_store %arg9[%c0_33, %c20], %46 {strides = array<i32>} : memref<256x36xbf16, #tpu.memory_space<vmem>>, vector<256x4xbf16>,
    %48 = vector.extract_strided_slice %23 {offsets = [2, 0, 0], sizes = [16, 16, 4], strides = [1, 1, 1]} : vector<18x18x4xf32> to vector<16x16x4xf32>
    %49 = vector.shape_cast %48 : vector<16x16x4xf32> to vector<256x4xf32>
    %50 = arith.truncf %49 : vector<256x4xf32> to vector<256x4xbf16>
    %c0_34 = arith.constant 0 : index
    %c24 = arith.constant 24 : index
    %51 = vector.load %arg9[%c0_34, %c24] : memref<256x36xbf16, #tpu.memory_space<vmem>>, vector<256x4xbf16>
    tpu.vector_store %arg9[%c0_34, %c24], %50 {strides = array<i32>} : memref<256x36xbf16, #tpu.memory_space<vmem>>, vector<256x4xbf16>,
    %52 = vector.extract_strided_slice %23 {offsets = [2, 1, 0], sizes = [16, 16, 4], strides = [1, 1, 1]} : vector<18x18x4xf32> to vector<16x16x4xf32>
    %53 = vector.shape_cast %52 : vector<16x16x4xf32> to vector<256x4xf32>
    %54 = arith.truncf %53 : vector<256x4xf32> to vector<256x4xbf16>
    %c0_35 = arith.constant 0 : index
    %c28 = arith.constant 28 : index
    %55 = vector.load %arg9[%c0_35, %c28] : memref<256x36xbf16, #tpu.memory_space<vmem>>, vector<256x4xbf16>
    tpu.vector_store %arg9[%c0_35, %c28], %54 {strides = array<i32>} : memref<256x36xbf16, #tpu.memory_space<vmem>>, vector<256x4xbf16>,
    %56 = vector.extract_strided_slice %23 {offsets = [2, 2, 0], sizes = [16, 16, 4], strides = [1, 1, 1]} : vector<18x18x4xf32> to vector<16x16x4xf32>
    %57 = vector.shape_cast %56 : vector<16x16x4xf32> to vector<256x4xf32>
    %58 = arith.truncf %57 : vector<256x4xf32> to vector<256x4xbf16>
    %c0_36 = arith.constant 0 : index
    %c32 = arith.constant 32 : index
    %59 = vector.load %arg9[%c0_36, %c32] : memref<256x36xbf16, #tpu.memory_space<vmem>>, vector<256x4xbf16>
    tpu.vector_store %arg9[%c0_36, %c32], %58 {strides = array<i32>} : memref<256x36xbf16, #tpu.memory_space<vmem>>, vector<256x4xbf16>,
    %c0_37 = arith.constant 0 : index
    %c0_38 = arith.constant 0 : index
    %60 = vector.load %arg9[%c0_37, %c0_38] : memref<256x36xbf16, #tpu.memory_space<vmem>>, vector<256x36xbf16>
    %c0_39 = arith.constant 0 : index
    %c0_40 = arith.constant 0 : index
    %61 = vector.load %arg4[%c0_39, %c0_40] : memref<36x4xbf16, #tpu.memory_space<vmem>>, vector<36x4xbf16>
    %cst_41 = arith.constant dense<0.000000e+00> : vector<256x4xf32>
    %62 = tpu.matmul %60, %61, %cst_41 {dimension_numbers = #tpu.dot_dimension_numbers<[1], [0], [0], [1], [0, 0, 1, 1], [], []>} : vector<256x36xbf16>, vector<36x4xbf16>, vector<256x4xf32> -> vector<256x4xf32>
    %c0_42 = arith.constant 0 : index
    %c0_43 = arith.constant 0 : index
    %c0_44 = arith.constant 0 : index
    %63 = vector.load %arg5[%c0_42, %c0_43, %c0_44] : memref<1x256x4xf32, #tpu.memory_space<vmem>>, vector<1x256x4xf32>
    %64 = vector.shape_cast %63 : vector<1x256x4xf32> to vector<256x4xf32>
    %65 = vector.shape_cast %62 : vector<256x4xf32> to vector<1x256x4xf32>
    tpu.vector_store %arg5[%c0_42, %c0_43, %c0_44], %65 {strides = array<i32>} : memref<1x256x4xf32, #tpu.memory_space<vmem>>, vector<1x256x4xf32>,
    %cst_45 = arith.constant dense<0.000000e+00> : vector<4xf32>
    %66 = vector.multi_reduction <add>, %62, %cst_45 [0] : vector<256x4xf32> to vector<4xf32>
    %67 = vector.shape_cast %66 : vector<4xf32> to vector<1x4xf32>
    %c0_46 = arith.constant 0 : index
    %c0_47 = arith.constant 0 : index
    %c0_48 = arith.constant 0 : index
    %68 = vector.load %arg6[%c0_46, %c0_47, %c0_48] : memref<1x1x4xf32, #tpu.memory_space<vmem>>, vector<1x1x4xf32>
    %69 = vector.shape_cast %68 : vector<1x1x4xf32> to vector<1x4xf32>
    %70 = vector.shape_cast %67 : vector<1x4xf32> to vector<1x1x4xf32>
    tpu.vector_store %arg6[%c0_46, %c0_47, %c0_48], %70 {strides = array<i32>} : memref<1x1x4xf32, #tpu.memory_space<vmem>>, vector<1x1x4xf32>,
    %71 = arith.mulf %62, %62 : vector<256x4xf32>
    %cst_49 = arith.constant dense<0.000000e+00> : vector<4xf32>
    %72 = vector.multi_reduction <add>, %71, %cst_49 [0] : vector<256x4xf32> to vector<4xf32>
    %73 = vector.shape_cast %72 : vector<4xf32> to vector<1x4xf32>
    %c0_50 = arith.constant 0 : index
    %c0_51 = arith.constant 0 : index
    %c0_52 = arith.constant 0 : index
    %74 = vector.load %arg7[%c0_50, %c0_51, %c0_52] : memref<1x1x4xf32, #tpu.memory_space<vmem>>, vector<1x1x4xf32>
    %75 = vector.shape_cast %74 : vector<1x1x4xf32> to vector<1x4xf32>
    %76 = vector.shape_cast %73 : vector<1x4xf32> to vector<1x1x4xf32>
    tpu.vector_store %arg7[%c0_50, %c0_51, %c0_52], %76 {strides = array<i32>} : memref<1x1x4xf32, #tpu.memory_space<vmem>>, vector<1x1x4xf32>,
    return
  }
  func.func @transform_0(%arg0: i32) -> (i32, i32, i32) {
    %c0_i32 = arith.constant 0 : i32
    %c0_i32_0 = arith.constant 0 : i32
    %c0_i32_1 = arith.constant 0 : i32
    return %arg0, %c0_i32, %c0_i32_0 : i32, i32, i32
  }
  func.func @transform_1(%arg0: i32) -> (i32, i32) {
    %c0_i32 = arith.constant 0 : i32
    %c0_i32_0 = arith.constant 0 : i32
    %c0_i32_1 = arith.constant 0 : i32
    return %c0_i32, %c0_i32_0 : i32, i32
  }
  func.func @transform_2(%arg0: i32) -> (i32, i32) {
    %c0_i32 = arith.constant 0 : i32
    %c0_i32_0 = arith.constant 0 : i32
    %c0_i32_1 = arith.constant 0 : i32
    return %c0_i32, %c0_i32_0 : i32, i32
  }
  func.func @transform_3(%arg0: i32) -> (i32, i32) {
    %c0_i32 = arith.constant 0 : i32
    %c0_i32_0 = arith.constant 0 : i32
    %c0_i32_1 = arith.constant 0 : i32
    return %c0_i32, %c0_i32_0 : i32, i32
  }
  func.func @transform_4(%arg0: i32) -> (i32, i32, i32) {
    %c0_i32 = arith.constant 0 : i32
    %c0_i32_0 = arith.constant 0 : i32
    %c0_i32_1 = arith.constant 0 : i32
    return %arg0, %c0_i32, %c0_i32_0 : i32, i32, i32
  }
  func.func @transform_5(%arg0: i32) -> (i32, i32, i32) {
    %c0_i32 = arith.constant 0 : i32
    %c0_i32_0 = arith.constant 0 : i32
    %c0_i32_1 = arith.constant 0 : i32
    return %arg0, %c0_i32, %c0_i32_0 : i32, i32, i32
  }
  func.func @transform_6(%arg0: i32) -> (i32, i32, i32) {
    %c0_i32 = arith.constant 0 : i32
    %c0_i32_0 = arith.constant 0 : i32
    %c0_i32_1 = arith.constant 0 : i32
    return %arg0, %c0_i32, %c0_i32_0 : i32, i32, i32
  }
}

module attributes {stable_mosaic.version = 11 : i64} {
  func.func @_residual_kernel(%arg0: i32, %arg1: memref<1x16x64xf32, #tpu.memory_space<vmem>>, %arg2: memref<1x64xf32, #tpu.memory_space<vmem>>, %arg3: memref<1x64xf32, #tpu.memory_space<vmem>>, %arg4: memref<1x16x64xf32, #tpu.memory_space<vmem>>, %arg5: memref<1x16x64xf32, #tpu.memory_space<vmem>>) attributes {dimension_semantics = [#tpu.dimension_semantics<parallel>], iteration_bounds = array<i64: 2>, scalar_prefetch = 0 : i64, scratch_operands = 0 : i64, tpu.core_type = #tpu.core_type<tc>, window_params = [{transform_indices = @transform_0, window_bounds = array<i64: 1, 16, 64>}, {pipeline_mode = #tpu.pipeline_mode<synchronous>, transform_indices = @transform_1, window_bounds = array<i64: 1, 64>}, {pipeline_mode = #tpu.pipeline_mode<synchronous>, transform_indices = @transform_2, window_bounds = array<i64: 1, 64>}, {transform_indices = @transform_3, window_bounds = array<i64: 1, 16, 64>}, {transform_indices = @transform_4, window_bounds = array<i64: 1, 16, 64>}]} {
    %c0 = arith.constant 0 : index
    %c0_0 = arith.constant 0 : index
    %c0_1 = arith.constant 0 : index
    %0 = vector.load %arg1[%c0, %c0_0, %c0_1] : memref<1x16x64xf32, #tpu.memory_space<vmem>>, vector<1x16x64xf32>
    %1 = vector.shape_cast %0 : vector<1x16x64xf32> to vector<16x64xf32>
    %c0_2 = arith.constant 0 : index
    %c0_3 = arith.constant 0 : index
    %2 = vector.load %arg2[%c0_2, %c0_3] : memref<1x64xf32, #tpu.memory_space<vmem>>, vector<1x64xf32>
    %3 = vector.broadcast %2 : vector<1x64xf32> to vector<16x64xf32>
    %4 = arith.mulf %1, %3 : vector<16x64xf32>
    %c0_4 = arith.constant 0 : index
    %c0_5 = arith.constant 0 : index
    %5 = vector.load %arg3[%c0_4, %c0_5] : memref<1x64xf32, #tpu.memory_space<vmem>>, vector<1x64xf32>
    %6 = vector.broadcast %5 : vector<1x64xf32> to vector<16x64xf32>
    %7 = arith.addf %4, %6 : vector<16x64xf32>
    %c0_6 = arith.constant 0 : index
    %c0_7 = arith.constant 0 : index
    %c0_8 = arith.constant 0 : index
    %8 = vector.load %arg4[%c0_6, %c0_7, %c0_8] : memref<1x16x64xf32, #tpu.memory_space<vmem>>, vector<1x16x64xf32>
    %9 = vector.shape_cast %8 : vector<1x16x64xf32> to vector<16x64xf32>
    %10 = arith.addf %7, %9 : vector<16x64xf32>
    %cst = arith.constant 0.000000e+00 : f32
    %11 = vector.broadcast %cst : f32 to vector<16x64xf32>
    %12 = arith.cmpf oge, %10, %11 : vector<16x64xf32>
    %cst_9 = arith.constant 2.000000e-01 : f32
    %13 = vector.broadcast %cst_9 : f32 to vector<16x64xf32>
    %14 = arith.mulf %13, %10 : vector<16x64xf32>
    %15 = arith.select %12, %10, %14 : vector<16x64xi1>, vector<16x64xf32>
    %c0_10 = arith.constant 0 : index
    %c0_11 = arith.constant 0 : index
    %c0_12 = arith.constant 0 : index
    %16 = vector.load %arg5[%c0_10, %c0_11, %c0_12] : memref<1x16x64xf32, #tpu.memory_space<vmem>>, vector<1x16x64xf32>
    %17 = vector.shape_cast %16 : vector<1x16x64xf32> to vector<16x64xf32>
    %18 = vector.shape_cast %15 : vector<16x64xf32> to vector<1x16x64xf32>
    tpu.vector_store %arg5[%c0_10, %c0_11, %c0_12], %18 {strides = array<i32>} : memref<1x16x64xf32, #tpu.memory_space<vmem>>, vector<1x16x64xf32>,
    return
  }
  func.func @transform_0(%arg0: i32) -> (i32, i32, i32) {
    %c0_i32 = arith.constant 0 : i32
    %c0_i32_0 = arith.constant 0 : i32
    %c0_i32_1 = arith.constant 0 : i32
    return %arg0, %c0_i32, %c0_i32_0 : i32, i32, i32
  }
  func.func @transform_1(%arg0: i32) -> (i32, i32) {
    %c0_i32 = arith.constant 0 : i32
    %c0_i32_0 = arith.constant 0 : i32
    %c0_i32_1 = arith.constant 0 : i32
    return %c0_i32, %c0_i32_0 : i32, i32
  }
  func.func @transform_2(%arg0: i32) -> (i32, i32) {
    %c0_i32 = arith.constant 0 : i32
    %c0_i32_0 = arith.constant 0 : i32
    %c0_i32_1 = arith.constant 0 : i32
    return %c0_i32, %c0_i32_0 : i32, i32
  }
  func.func @transform_3(%arg0: i32) -> (i32, i32, i32) {
    %c0_i32 = arith.constant 0 : i32
    %c0_i32_0 = arith.constant 0 : i32
    %c0_i32_1 = arith.constant 0 : i32
    return %arg0, %c0_i32, %c0_i32_0 : i32, i32, i32
  }
  func.func @transform_4(%arg0: i32) -> (i32, i32, i32) {
    %c0_i32 = arith.constant 0 : i32
    %c0_i32_0 = arith.constant 0 : i32
    %c0_i32_1 = arith.constant 0 : i32
    return %arg0, %c0_i32, %c0_i32_0 : i32, i32, i32
  }
}

</mosaic_0001>

<bundles_post_ra>
// kernel: residual_block.5
= control target key start
LH: loop header
LB: loop body
LE: loop exit
PB: predicated region body
PF: predicated region fallthrough
CT: control target
= control target key end

     0   :  { %s371_s15 = smov 0   ;;  %s397_s0 = inlined_call_operand.vmem [shape: f32[2,16,64], index: 0, kind: input, shape index: {}]   ;;  %s398_s1 = inlined_call_operand.vmem [shape: f32[1,64], index: 1, kind: input, shape index: {}]   ;;  %s399_s2 = inlined_call_operand.vmem [shape: f32[1,64], index: 2, kind: input, shape index: {}]   ;;  %s400_s3 = inlined_call_operand.vmem [shape: f32[2,16,64], index: 3, kind: input, shape index: {}]   ;;  %s401_s4 = inlined_call_operand.vmem [shape: f32[2,16,64], index: 4, kind: output, shape index: {}]  }
   0x1 LB: > { %s312_s16 = sadd.s32 4294967295, %s344_s15   ;;  %p316_p0 = scmp.ge.s32.totalorder %s344_s15, 1  ;;  %s344_s15 = sphi %s371_s15, %s14_s15  }
   0x2   : > { %p172_p1 = scmp.lt.s32.totalorder %s344_s15, 3 }
   0x4   : > { %p173_p2 = pnand %p316_p0, %p172_p1 }
   0x5   : > { %p203_p3 = scmp.lt.s32.totalorder (!%p173_p2), %s312_s16, 1 }
   0x6   : > { %176 = sbr.rel (%p173_p2) target bundleno = 26 (0x1a), region = 36 }
   0xb   : > { %s403_s16 = smov (!%p203_p3, %s312_s16), 1  ;;  %v336_v0 = vld [vmem:[%s398_s1] ss:$0 sm:$0xff]  ;;  %vm242_vm0 = vcmask 523264  }
   0xc   : > { %s325_s19 = sshll.u32 %s403_s16, 4  ;;  %v337_v1 = vld [vmem:[%s399_s2] ss:$0 sm:$0xff] }
   0xd   : > { %s207_s22 = scalar_lea.vmem %s397_s0, %s325_s19  ;;  %s212_s25 = scalar_lea.vmem %s400_s3, %s325_s19 }
   0xe   : > { %v218_v2 = vld [vmem:[%s207_s22] sm:$0xff]  ;;  %v219_v3 = vld [vmem:[%s207_s22 + $0x8] sm:$0xff]  ;;  %s217_s30 = scalar_lea.vmem %s401_s4, %s325_s19 }
   0xf   : > { %v224_v4 = vmul.f32 %v336_v0, %v218_v2  ;;  %v225_v5 = vmul.f32 %v336_v0, %v219_v3  ;;  %v232_v6 = vld [vmem:[%s212_s25] sm:$0xff]  ;;  %v233_v7 = vld [vmem:[%s212_s25 + $0x8] sm:$0xff] }
  0x11   : > { %v230_v8 = vadd.f32 %v337_v1, %v224_v4  ;;  %v231_v9 = vadd.f32 %v337_v1, %v225_v5 }
  0x13   : > { %v234_v10 = vadd.f32 %v232_v6, %v230_v8  ;;  %v235_v11 = vadd.f32 %v233_v7, %v231_v9 }
  0x15   : > { %vm236_vm1 = vcmp.ge.f32.partialorder %v234_v10, 0.0  ;;  %v238_v12 = vmul.f32 0.2, %v234_v10  ;;  %vm237_vm2 = vcmp.ge.f32.partialorder %v235_v11, 0.0  ;;  %v239_v13 = vmul.f32 0.2, %v235_v11 }
  0x17   : > { %v240_v14 = vsel %vm236_vm1, %v234_v10, %v238_v12  ;;  %v241_v15 = vsel %vm237_vm2, %v235_v11, %v239_v13 }
  0x18   : > { %243 = vst.msk [vmem:[%s217_s30] sm:$0xff] %vm242_vm0, %v240_v14 }
  0x19   : > { %244 = vst.msk [vmem:[%s217_s30 + $0x8] sm:$0xff] %vm242_vm0, %v241_v15 }
  0x1a PF: > { %s14_s15 = sadd.s32 1, %s344_s15  }
  0x1b   : > { %p11_p4 = scmp.ge.s32.totalorder %s14_s15, 4  }
  0x1d   :  { %13 = sbr.rel (!%p11_p4) target bundleno = 1 (0x1), region = 69 }

// kernel: residual_block.4
= control target key start
LH: loop header
LB: loop body
LE: loop exit
PB: predicated region body
PF: predicated region fallthrough
CT: control target
= control target key end

     0   :  { %s2974_s21 = smov 0   ;;  %s4843_s0 = inlined_call_operand.vmem [shape: f32[2,256,4], index: 0, kind: input, shape index: {}]   ;;  %s4844_s1 = inlined_call_operand.vmem [shape: f32[1,4], index: 1, kind: input, shape index: {}]   ;;  %s4845_s2 = inlined_call_operand.vmem [shape: f32[1,4], index: 2, kind: input, shape index: {}]   ;;  %s4846_s3 = inlined_call_operand.vmem [shape: bf16[36,4], index: 3, kind: input, shape index: {}]   ;;  %s4847_s4 = inlined_call_operand.vmem [shape: f32[2,256,4], index: 4, kind: output, shape index: {0}]   ;;  %s4848_s5 = inlined_call_operand.vmem [shape: f32[2,1,4], index: 5, kind: output, shape index: {1}]   ;;  %s4849_s6 = inlined_call_operand.vmem [shape: f32[2,1,4], index: 6, kind: output, shape index: {2}]  }
   0x1 LB: > { %s2773_s22 = sadd.s32 4294967295, %s2928_s21   ;;  %p2777_p0 = scmp.ge.s32.totalorder %s2928_s21, 1  ;;  %s2928_s21 = sphi %s2974_s21, %s17_s21  }
   0x2   : > { %p217_p1 = scmp.lt.s32.totalorder %s2928_s21, 3 }
   0x4   : > { %p218_p2 = pnand %p2777_p0, %p217_p1 }
   0x6   : > { %221 = sbr.rel (%p218_p2) target bundleno = 1022 (0x3fe), region = 36 }
   0xb   : > { %vm470_vm0 = vcmask 31744   ;;  %vm479_vm1 = vcmask 24576   ;;  %v2930_v0 = vmov 0.0   ;;  %p253_p3 = scmp.lt.s32.totalorder %s2773_s22, 1  ;;  %vm716_vm2 = vcmask 1046528   ;;  %s2931_s24 = smov 4  }
   0xc   : > { %471 = vst.msk [vmem:[#allocation2] sm:$0xff] %vm470_vm0, %v2930_v0  ;;  %v3043_v7 = vld [vmem:[%s4844_s1] ss:$0 sm:$0xff]  ;;  %vm473_vm5 = vcmask 25600   ;;  %s2932_s8 = smov 8   ;;  %s2933_s9 = smov 12  }
   0xd   : > { %472 = vst.msk [vmem:[#allocation2 + $0x8] sm:$0xff] %vm470_vm0, %v2930_v0  ;;  %s5069_s22 = smov (!%p253_p3, %s2773_s22), 1  ;;  %v3059_v11 = vld [vmem:[%s4845_s2] ss:$0 sm:$0xff]  ;;  %s2934_s14 = smov 16  }
   0xe   : > { %480 = vst.msk [vmem:[#allocation2] sm:$0x1] %vm479_vm1, %v2930_v0  ;;  %s2872_s23 = sshll.u32 %s5069_s22, 8  ;;  %s2935_s15 = smov 20  }
   0xf   : > { %476 = vst.msk [vmem:[#allocation2 + $0x198] sm:$0xff] %vm470_vm0, %v2930_v0  ;;  %s3034_s27 = scalar_lea.vmem %s4843_s0, %s2872_s23  ;;  %s2936_s16 = smov 28  }
  0x10   : > { %477 = vst.msk [vmem:[#allocation2 + $0x1a0] sm:$0xff] %vm470_vm0, %v2930_v0  ;;  %v270_v8 = vld [vmem:[%s3034_s27] sm:$0xff]  ;;  %v271_v9 = vld [vmem:[%s3034_s27 + $0x8] sm:$0xff]  ;;  %v276_v15 = vld [vmem:[%s3034_s27 + $0x30] sm:$0xff]  ;;  %s2937_s17 = smov 24   ;;  %s2938_s18 = smov 32  }
  0x11   : > { %481 = vst.msk [vmem:[#allocation2 + $0x18] sm:$0x1] %vm479_vm1, %v2930_v0  ;;  %v306_v10 = vmul.f32 %v3043_v7, %v270_v8  ;;  %v307_v12 = vmul.f32 %v3043_v7, %v271_v9  ;;  %v274_v13 = vld [vmem:[%s3034_s27 + $0x20] sm:$0xff]  ;;  %v275_v14 = vld [vmem:[%s3034_s27 + $0x28] sm:$0xff]  ;;  %v277_v18 = vld [vmem:[%s3034_s27 + $0x38] sm:$0xff]  ;;  %v312_v21 = vmul.f32 %v3043_v7, %v276_v15  ;;  %s4574_s30 = scalar_lea.vmem %s4847_s4, %s2872_s23  ;;  %s268_s11 = scalar_lea.vmem %s4849_s6, %s5069_s22 }
  0x12   : > { %482 = vst.msk [vmem:[#allocation2 + $0x30] sm:$0x1] %vm479_vm1, %v2930_v0  ;;  %v310_v17 = vmul.f32 %v3043_v7, %v274_v13  ;;  %v311_v20 = vmul.f32 %v3043_v7, %v275_v14  ;;  %v280_v22 = vld [vmem:[%s3034_s27 + $0x50] sm:$0xff]  ;;  %v313_v23 = vmul.f32 %v3043_v7, %v277_v18  ;;  %v281_v24 = vld [vmem:[%s3034_s27 + $0x58] sm:$0xff]  ;;  %v278_v34 = vld [vmem:[%s3034_s27 + $0x40] sm:$0xff] }
  0x13   : > { %483 = vst.msk [vmem:[#allocation2 + $0x48] sm:$0x1] %vm479_vm1, %v2930_v0  ;;  %v342_v16 = vadd.f32 %v3059_v11, %v306_v10  ;;  %v343_v19 = vadd.f32 %v3059_v11, %v307_v12  ;;  %v272_v27 = vld [vmem:[%s3034_s27 + $0x10] sm:$0xff]  ;;  %v316_v30 = vmul.f32 %v3043_v7, %v280_v22  ;;  %v273_v31 = vld [vmem:[%s3034_s27 + $0x18] sm:$0xff]  ;;  %v348_v32 = vadd.f32 %v3059_v11, %v312_v21  ;;  %v279_v40 = vld [vmem:[%s3034_s27 + $0x48] sm:$0xff] }
  0x14   : > { %v2998_v1 = vld [vmem:[#allocation2 + $0x8] sm:$0xff]  ;;  %484 = vst.msk [vmem:[#allocation2 + $0x60] sm:$0x1] %vm479_vm1, %v2930_v0  ;;  %v346_v26 = vadd.f32 %v3059_v11, %v310_v17  ;;  %v347_v29 = vadd.f32 %v3059_v11, %v311_v20  ;;  %v317_v33 = vmul.f32 %v3043_v7, %v281_v24  ;;  %v349_v35 = vadd.f32 %v3059_v11, %v313_v23  ;;  %v282_v41 = vld [vmem:[%s3034_s27 + $0x60] sm:$0xff]  ;;  %v284_v13 = vld [vmem:[%s3034_s27 + $0x70] sm:$0xff] }
  0x15   : > { %v3002_v2 = vld [vmem:[#allocation2] sm:$0xff]  ;;  %v718_v3 = vrot.slane %v2998_v1, 1  ;;  %485 = vst.msk [vmem:[#allocation2 + $0x78] sm:$0x1] %vm479_vm1, %v2930_v0  ;;  %v406_v25 = vmul.f32 0.2, %v342_v16  ;;  %v308_v36 = vmul.f32 %v3043_v7, %v272_v27  ;;  %v309_v39 = vmul.f32 %v3043_v7, %v273_v31 }
  0x16   : > { %v717_v4 = vrot.slane %v3002_v2, 1  ;;  %486 = vst.msk [vmem:[#allocation2 + $0x90] sm:$0x1] %vm479_vm1, %v2930_v0  ;;  %vm374_vm3 = vcmp.ge.f32.partialorder %v342_v16, 0.0  ;;  %v407_v28 = vmul.f32 0.2, %v343_v19  ;;  %v352_v44 = vadd.f32 %v3059_v11, %v316_v30 }
  0x17   : > { %487 = vst.msk [vmem:[#allocation2 + $0xa8] sm:$0x1] %vm479_vm1, %v2930_v0  ;;  %vm375_vm4 = vcmp.ge.f32.partialorder %v343_v19, 0.0  ;;  %v438_v37 = vsel %vm374_vm3, %v342_v16, %v406_v25  ;;  %v410_v38 = vmul.f32 0.2, %v346_v26  ;;  %v314_v45 = vmul.f32 %v3043_v7, %v278_v34  ;;  %v283_v46 = vld [vmem:[%s3034_s27 + $0x68] sm:$0xff] }
  0x18   : > { %v719_v5 = vsel %vm716_vm2, %v717_v4, %v718_v3  ;;  %488 = vst.msk [vmem:[#allocation2 + $0xc0] sm:$0x1] %vm479_vm1, %v2930_v0  ;;  %v439_v42 = vsel %vm375_vm4, %v343_v19, %v407_v28  ;;  %v411_v43 = vmul.f32 0.2, %v347_v29  ;;  %vm378_vm6 = vcmp.ge.f32.partialorder %v346_v26, 0.0  ;;  %v286_v59 = vld [vmem:[%s3034_s27 + $0x80] sm:$0xff] }
  0x19   : > { %v829_v6 = vpack.c.bf16 %v719_v5, %v719_v5  ;;  %489 = vst.msk [vmem:[#allocation2 + $0xd8] sm:$0x1] %vm479_vm1, %v2930_v0  ;;  %vm379_vm7 = vcmp.ge.f32.partialorder %v347_v29, 0.0  ;;  %v412_v47 = vmul.f32 0.2, %v348_v32  ;;  %v353_v48 = vadd.f32 %v3059_v11, %v317_v33  ;;  %v287_v60 = vld [vmem:[%s3034_s27 + $0x88] sm:$0xff] }
  0x1a   : > { %490 = vst.msk [vmem:[#allocation2 + $0xf0] sm:$0x1] %vm479_vm1, %v2930_v0  ;;  %v413_v49 = vmul.f32 0.2, %v349_v35  ;;  %v344_v50 = vadd.f32 %v3059_v11, %v308_v36  ;;  %v315_v51 = vmul.f32 %v3043_v7, %v279_v40  ;;  %v318_v52 = vmul.f32 %v3043_v7, %v282_v41  ;;  %v285_v14 = vld [vmem:[%s3034_s27 + $0x78] sm:$0xff]  ;;  %v288_v33 = vld [vmem:[%s3034_s27 + $0x90] sm:$0xff] }
  0x1b   : > { %893 = vrot.lane.b32.xlu0 %v829_v6, %s2931_s24  ;;  %491 = vst.msk [vmem:[#allocation2 + $0x108] sm:$0x1] %vm479_vm1, %v2930_v0  ;;  %vm380_vm8 = vcmp.ge.f32.partialorder %v348_v32, 0.0  ;;  %vm381_vm9 = vcmp.ge.f32.partialorder %v349_v35, 0.0  ;;  %v345_v53 = vadd.f32 %v3059_v11, %v309_v39  ;;  %v319_v54 = vmul.f32 %v3043_v7, %v283_v46  ;;  %v289_v39 = vld [vmem:[%s3034_s27 + $0x98] sm:$0xff] }
  0x1c   : > { %492 = vst.msk [vmem:[#allocation2 + $0x120] sm:$0x1] %vm479_vm1, %v2930_v0  ;;  %v442_v55 = vsel %vm378_vm6, %v346_v26, %v410_v38  ;;  %v443_v56 = vsel %vm379_vm7, %v347_v29, %v411_v43  ;;  %v416_v57 = vmul.f32 0.2, %v352_v44  ;;  %v350_v58 = vadd.f32 %v3059_v11, %v314_v45 }
  0x1d   : > { %493 = vst.msk [vmem:[#allocation2 + $0x138] sm:$0x1] %vm479_vm1, %v2930_v0  ;;  %vm384_vm10 = vcmp.ge.f32.partialorder %v352_v44, 0.0  ;;  %v417_v61 = vmul.f32 0.2, %v353_v48  ;;  %v322_v62 = vmul.f32 %v3043_v7, %v286_v59  ;;  %v323_v63 = vmul.f32 %v3043_v7, %v287_v60 }
  0x1e   : > { %494 = vst.msk [vmem:[#allocation2 + $0x150] sm:$0x1] %vm479_vm1, %v2930_v0  ;;  %vm385_vm11 = vcmp.ge.f32.partialorder %v353_v48, 0.0  ;;  %vm376_vm12 = vcmp.ge.f32.partialorder %v344_v50, 0.0  ;;  %v351_v4 = vadd.f32 %v3059_v11, %v315_v51  ;;  %v354_v5 = vadd.f32 %v3059_v11, %v318_v52 }
  0x1f   : > { %495 = vst.msk [vmem:[#allocation2 + $0x168] sm:$0x1] %vm479_vm1, %v2930_v0  ;;  %vm377_vm13 = vcmp.ge.f32.partialorder %v345_v53, 0.0  ;;  %v408_v6 = vmul.f32 0.2, %v344_v50  ;;  %v355_v9 = vadd.f32 %v3059_v11, %v319_v54  ;;  %v444_v10 = vsel %vm380_vm8, %v348_v32, %v412_v47 }
  0x20   : > { %496 = vst.msk [vmem:[#allocation2 + $0x180] sm:$0x1] %vm479_vm1, %v2930_v0  ;;  %v409_v8 = vmul.f32 0.2, %v345_v53  ;;  %vm382_vm14 = vcmp.ge.f32.partialorder %v350_v58, 0.0  ;;  %v358_v15 = vadd.f32 %v3059_v11, %v322_v62  ;;  %v359_v16 = vadd.f32 %v3059_v11, %v323_v63 }
  0x21   : > { %499 = vst.msk [vmem:[#allocation2 + $0x29] sm:$0x1] %vm479_vm1, %v2930_v0  ;;  %v414_v12 = vmul.f32 0.2, %v350_v58  ;;  %v320_v17 = vmul.f32 %v3043_v7, %v284_v13  ;;  %v321_v18 = vmul.f32 %v3043_v7, %v285_v14  ;;  %v448_v19 = vsel %vm384_vm10, %v352_v44, %v416_v57  ;;  %v292_v14 = vld [vmem:[%s3034_s27 + $0xb0] sm:$0xff] }
  0x22   : > { %500 = vst.msk [vmem:[#allocation2 + $0x41] sm:$0x1] %vm479_vm1, %v2930_v0  ;;  %vm383_vm15 = vcmp.ge.f32.partialorder %v351_v4, 0.0  ;;  %v415_v20 = vmul.f32 0.2, %v351_v4  ;;  %v449_v23 = vsel %vm385_vm11, %v353_v48, %v417_v61  ;;  %vm386_vm3 = vcmp.ge.f32.partialorder %v354_v5, 0.0 }
  0x23   : > { %501 = vst.msk [vmem:[#allocation2 + $0x59] sm:$0x1] %vm479_vm1, %v2930_v0  ;;  %v418_v21 = vmul.f32 0.2, %v354_v5  ;;  %v419_v24 = vmul.f32 0.2, %v355_v9  ;;  %v356_v25 = vadd.f32 %v3059_v11, %v320_v17  ;;  %v440_v27 = vsel %vm376_vm12, %v344_v50, %v408_v6 }
  0x24   : > { %502 = vst.msk [vmem:[#allocation2 + $0x71] sm:$0x1] %vm479_vm1, %v2930_v0  ;;  %vm387_vm4 = vcmp.ge.f32.partialorder %v355_v9, 0.0  ;;  %v357_v28 = vadd.f32 %v3059_v11, %v321_v18  ;;  %v441_v29 = vsel %vm377_vm13, %v345_v53, %v409_v8  ;;  %v446_v30 = vsel %vm382_vm14, %v350_v58, %v414_v12  ;;  %v293_v17 = vld [vmem:[%s3034_s27 + $0xb8] sm:$0xff] }
  0x25   : > { %503 = vst.msk [vmem:[#allocation2 + $0x89] sm:$0x1] %vm479_vm1, %v2930_v0  ;;  %v422_v31 = vmul.f32 0.2, %v358_v15  ;;  %v423_v32 = vmul.f32 0.2, %v359_v16  ;;  %v447_v36 = vsel %vm383_vm15, %v351_v4, %v415_v20  ;;  %v324_v47 = vmul.f32 %v3043_v7, %v288_v33 }
  0x26   : > { %504 = vst.msk [vmem:[#allocation2 + $0xa1] sm:$0x1] %vm479_vm1, %v2930_v0  ;;  %v420_v38 = vmul.f32 0.2, %v356_v25  ;;  %vm391_vm6 = vcmp.ge.f32.partialorder %v359_v16, 0.0  ;;  %vm388_vm7 = vcmp.ge.f32.partialorder %v356_v25, 0.0  ;;  %v325_v50 = vmul.f32 %v3043_v7, %v289_v39 }
  0x27   : > { %505 = vst.msk [vmem:[#allocation2 + $0xb9] sm:$0x1] %vm479_vm1, %v2930_v0  ;;  %v421_v46 = vmul.f32 0.2, %v357_v28  ;;  %vm389_vm8 = vcmp.ge.f32.partialorder %v357_v28, 0.0  ;;  %v455_v58 = vsel %vm391_vm6, %v359_v16, %v423_v32  ;;  %v360_v62 = vadd.f32 %v3059_v11, %v324_v47  ;;  %v291_v47 = vld [vmem:[%s3034_s27 + $0xa8] sm:$0xff] }
  0x28   : > { %506 = vst.msk [vmem:[#allocation2 + $0xd1] sm:$0x1] %vm479_vm1, %v2930_v0  ;;  %v452_v60 = vsel %vm388_vm7, %v356_v25, %v420_v38  ;;  %v361_v8 = vadd.f32 %v3059_v11, %v325_v50 }
  0x29   : > { %507 = vst.msk [vmem:[#allocation2 + $0xe9] sm:$0x1] %vm479_vm1, %v2930_v0  ;;  %v453_v61 = vsel %vm389_vm8, %v357_v28, %v421_v46  ;;  %v424_v25 = vmul.f32 0.2, %v360_v62  ;;  %vm1022_vm8 = vcmask 1045504  }
  0x2a   : > { %508 = vst.msk [vmem:[#allocation2 + $0x101] sm:$0x1] %vm479_vm1, %v2930_v0  ;;  %vm393_vm10 = vcmp.ge.f32.partialorder %v361_v8, 0.0  ;;  %v425_v28 = vmul.f32 0.2, %v361_v8 }
  0x2b   : > { %509 = vst.msk [vmem:[#allocation2 + $0x119] sm:$0x1] %vm479_vm1, %v2930_v0 }
  0x2c   : > { %510 = vst.msk [vmem:[#allocation2 + $0x131] sm:$0x1] %vm479_vm1, %v2930_v0 }
  0x2d   : > { %511 = vst.msk [vmem:[#allocation2 + $0x149] sm:$0x1] %vm479_vm1, %v2930_v0 }
  0x2e   : > { %512 = vst.msk [vmem:[#allocation2 + $0x161] sm:$0x1] %vm479_vm1, %v2930_v0 }
  0x2f   : > { %513 = vst.msk [vmem:[#allocation2 + $0x179] sm:$0x1] %vm479_vm1, %v2930_v0 }
  0x30   : > { %514 = vst.msk [vmem:[#allocation2 + $0x191] sm:$0x1] %vm479_vm1, %v2930_v0 }
  0x31   : > { %474 = vst.msk [vmem:[#allocation2 + $0x10] sm:$0x3] %vm473_vm5, %v2930_v0 }
  0x32   : > { %478 = vst.msk [vmem:[#allocation2 + $0x1a8] sm:$0x3] %vm473_vm5, %v2930_v0  ;;  %vm390_vm5 = vcmp.ge.f32.partialorder %v358_v15, 0.0 }
  0x33   : > { %498 = vst.msk [vmem:[#allocation2 + $0x11] sm:$0x1] %vm479_vm1, %v2930_v0  ;;  %v454_v54 = vsel %vm390_vm5, %v358_v15, %v422_v31 }
  0x34   : > { %497 = vst.msk [vmem:[#allocation2 + $0x198] sm:$0x1] %vm479_vm1, %v2930_v0 }
  0x35   : > { %515 = vst.msk [vmem:[#allocation2 + $0x1a9] sm:$0x1] %vm479_vm1, %v2930_v0  ;;  %v445_v0 = vsel %vm381_vm9, %v349_v35, %v413_v49  ;;  %vm392_vm9 = vcmp.ge.f32.partialorder %v360_v62, 0.0 }
  0x36   : > { %517 = vst.msk [vmem:[#allocation2 + $0x19] sm:$0xff] %vm470_vm0, %v438_v37  ;;  %v450_v37 = vsel %vm386_vm3, %v354_v5, %v418_v21  ;;  %v456_v33 = vsel %vm392_vm9, %v360_v62, %v424_v25  ;;  %v298_v25 = vld [vmem:[%s3034_s27 + $0xe0] sm:$0xff]  ;;  %vm635_vm9 = vcmask 27648  }
  0x37   : > { %518 = vst.msk [vmem:[#allocation2 + $0x21] sm:$0xff] %vm470_vm0, %v439_v42 }
  0x38   : > { %521 = vst.msk [vmem:[#allocation2 + $0x49] sm:$0xff] %vm470_vm0, %v442_v55 }
  0x39   : > { %522 = vst.msk [vmem:[#allocation2 + $0x51] sm:$0xff] %vm470_vm0, %v443_v56 }
  0x3a   : > { %v3155_v22 = vld [vmem:[#allocation2 + $0x10] sm:$0x3]  ;;  %523 = vst.msk [vmem:[#allocation2 + $0x61] sm:$0xff] %vm470_vm0, %v444_v10 }
  0x3b   : > { %v720_v26 = vrot.slane %v3155_v22, 1  ;;  %524 = vst.msk [vmem:[#allocation2 + $0x69] sm:$0xff] %vm470_vm0, %v445_v0 }
  0x3c   : > { %527 = vst.msk [vmem:[#allocation2 + $0x91] sm:$0xff] %vm470_vm0, %v448_v19 }
  0x3d   : > { %v721_v34 = vsel %vm716_vm2, %v718_v3, %v720_v26  ;;  %v3171_v35 = vld [vmem:[#allocation2 + $0x18] sm:$0xff]  ;;  %528 = vst.msk [vmem:[#allocation2 + $0x99] sm:$0xff] %vm470_vm0, %v449_v23  ;;  %v451_v3 = vsel %vm387_vm4, %v355_v9, %v419_v24  ;;  %v328_v26 = vmul.f32 %v3043_v7, %v292_v14 }
  0x3e   : > { %v830_v40 = vpack.c.bf16 %v721_v34, %v721_v34  ;;  %v3177_v41 = vld [vmem:[#allocation2 + $0x20] sm:$0xff]  ;;  %v722_v42 = vrot.slane %v3171_v35, 1  ;;  %v3180_v43 = vld [vmem:[#allocation2 + $0x28] sm:$0x3]  ;;  %519 = vst.msk [vmem:[#allocation2 + $0x31] sm:$0xff] %vm470_vm0, %v440_v27 }
  0x3f   : > { %v723_v44 = vrot.slane %v3177_v41, 1  ;;  %v3185_v45 = vld [vmem:[#allocation2 + $0x48] sm:$0xff]  ;;  %520 = vst.msk [vmem:[#allocation2 + $0x39] sm:$0xff] %vm470_vm0, %v441_v29  ;;  %v725_v53 = vrot.slane %v3180_v43, 1  ;;  %v329_v29 = vmul.f32 %v3043_v7, %v293_v17  ;;  %v290_v34 = vld [vmem:[%s3034_s27 + $0xa0] sm:$0xff] }
  0x40   : > { %895 = vrot.lane.b32.xlu0 %v830_v40, %s2931_s24  ;;  %v3190_v48 = vld [vmem:[#allocation2 + $0x50] sm:$0xff]  ;;  %v732_v49 = vrot.slane %v3185_v45, 1  ;;  %525 = vst.msk [vmem:[#allocation2 + $0x79] sm:$0xff] %vm470_vm0, %v446_v30  ;;  %v3217_v6 = vld [vmem:[#allocation2 + $0x58] sm:$0x3]  ;;  %v457_v40 = vsel %vm393_vm10, %v361_v8, %v425_v28  ;;  %v295_v8 = vld [vmem:[%s3034_s27 + $0xc8] sm:$0xff] }
  0x41   : > { %v724_v51 = vsel %vm716_vm2, %v722_v42, %v723_v44  ;;  %v733_v52 = vrot.slane %v3190_v48, 1  ;;  %526 = vst.msk [vmem:[#allocation2 + $0x81] sm:$0xff] %vm470_vm0, %v447_v36  ;;  %v726_v9 = vsel %vm716_vm2, %v723_v44, %v725_v53  ;;  %v735_v15 = vrot.slane %v3217_v6, 1  ;;  %v3255_v32 = vld [vmem:[#allocation2 + $0x60] sm:$0xff] }
  0x42   : > { %v3200_v55 = vpack.c.bf16 %v724_v51, %v724_v51  ;;  %v3202_v56 = vld [vmem:[#allocation2 + $0x68] sm:$0xff]  ;;  %v3204_v57 = vld [vmem:[#allocation2 + $0x70] sm:$0x3]  ;;  %529 = vst.msk [vmem:[#allocation2 + $0xa9] sm:$0xff] %vm470_vm0, %v450_v37  ;;  %v3238_v18 = vpack.c.bf16 %v726_v9, %v726_v9  ;;  %v365_v44 = vadd.f32 %v3059_v11, %v329_v29  ;;  %v737_v46 = vrot.slane %v3255_v32, 1 }
  0x43   : > { %v734_v59 = vsel %vm716_vm2, %v732_v49, %v733_v52  ;;  %530 = vst.msk [vmem:[#allocation2 + $0xb1] sm:$0xff] %vm470_vm0, %v451_v3  ;;  %v738_v4 = vrot.slane %v3202_v56, 1  ;;  %v740_v5 = vrot.slane %v3204_v57, 1  ;;  %v3243_v20 = vld [vmem:[#allocation2 + $0x90] sm:$0xff]  ;;  %v736_v37 = vsel %vm716_vm2, %v733_v52, %v735_v15 }
  0x44   : > { %897 = vrot.lane.b32.xlu1 %v3200_v55, %s2931_s24  ;;  %v3213_v63 = vpack.c.bf16 %v734_v59, %v734_v59  ;;  %533 = vst.msk [vmem:[#allocation2 + $0xd9] sm:$0xff] %vm470_vm0, %v454_v54  ;;  %v3245_v21 = vld [vmem:[#allocation2 + $0x98] sm:$0xff]  ;;  %v747_v30 = vrot.slane %v3243_v20, 1  ;;  %v364_v3 = vadd.f32 %v3059_v11, %v328_v26  ;;  %v326_v49 = vmul.f32 %v3043_v7, %v290_v34  ;;  %v294_v59 = vld [vmem:[%s3034_s27 + $0xc0] sm:$0xff] }
  0x45   : > { %v3222_v10 = vld [vmem:[#allocation2 + $0x30] sm:$0xff]  ;;  %534 = vst.msk [vmem:[#allocation2 + $0xe1] sm:$0xff] %vm470_vm0, %v455_v58  ;;  %v741_v19 = vsel %vm716_vm2, %v738_v4, %v740_v5  ;;  %v748_v31 = vrot.slane %v3245_v21, 1  ;;  %v3278_v50 = vpack.c.bf16 %v736_v37, %v736_v37  ;;  %vm397_vm12 = vcmp.ge.f32.partialorder %v365_v44, 0.0 }
  0x46   : > { %4943 = vst [vmem:[#allocation4_spill] sm:$0xff] %v3213_v63  ;;  %v3225_v0 = vld [vmem:[#allocation2 + $0x38] sm:$0xff]  ;;  %v727_v12 = vrot.slane %v3222_v10, 1  ;;  %v3228_v13 = vld [vmem:[#allocation2 + $0x40] sm:$0x3]  ;;  %v3260_v36 = vpack.c.bf16 %v741_v19, %v741_v19  ;;  %vm396_vm11 = vcmp.ge.f32.partialorder %v364_v3, 0.0  ;;  %v327_v5 = vmul.f32 %v3043_v7, %v291_v47 }
  0x47   : > { %531 = vst.msk [vmem:[#allocation2 + $0xc1] sm:$0xff] %vm470_vm0, %v452_v60  ;;  %v728_v16 = vrot.slane %v3225_v0, 1  ;;  %v730_v24 = vrot.slane %v3228_v13, 1  ;;  %v3265_v38 = vld [vmem:[#allocation2 + $0x78] sm:$0xff]  ;;  %v749_v51 = vsel %vm716_vm2, %v747_v30, %v748_v31  ;;  %v428_v58 = vmul.f32 0.2, %v364_v3 }
  0x48   : > { %532 = vst.msk [vmem:[#allocation2 + $0xc9] sm:$0xff] %vm470_vm0, %v453_v61  ;;  %905 = vrot.lane.b32.xlu0 %v3213_v63, %s2931_s24  ;;  %v3267_v39 = vld [vmem:[#allocation2 + $0x80] sm:$0xff]  ;;  %v742_v52 = vrot.slane %v3265_v38, 1  ;;  %v429_v62 = vmul.f32 0.2, %v365_v44  ;;  %v3296_v9 = vpack.c.bf16 %v749_v51, %v749_v51  ;;  %v739_v14 = vsel %vm716_vm2, %v737_v46, %v738_v4  ;;  %v299_v30 = vld [vmem:[%s3034_s27 + $0xe8] sm:$0xff] }
  0x49   : > { %4944 = vst [vmem:[#allocation5_spill] sm:$0xff] %v3238_v18  ;;  %v729_v23 = vsel %vm716_vm2, %v727_v12, %v728_v16  ;;  %v731_v42 = vsel %vm716_vm2, %v728_v16, %v730_v24  ;;  %v743_v53 = vrot.slane %v3267_v39, 1  ;;  %v3298_v12 = vld [vmem:[#allocation2 + $0xa0] sm:$0x3]  ;;  %v460_v15 = vsel %vm396_vm11, %v364_v3, %v428_v58  ;;  %v3317_v28 = vld [vmem:[#allocation2 + $0x88] sm:$0x3] }
  0x4a   : > { %v3250_v27 = vpack.c.bf16 %v729_v23, %v729_v23  ;;  %4946 = vst [vmem:[#allocation7_spill] sm:$0xff] %v3260_v36  ;;  %v3287_v54 = vpack.c.bf16 %v731_v42, %v731_v42  ;;  %v3290_v60 = vld [vmem:[#allocation2 + $0xb0] sm:$0xff]  ;;  %v3292_v61 = vld [vmem:[#allocation2 + $0xb8] sm:$0x3]  ;;  %v362_v16 = vadd.f32 %v3059_v11, %v326_v49  ;;  %v461_v19 = vsel %vm397_vm12, %v365_v44, %v429_v62 }
  0x4b   : > { %535 = vst.msk [vmem:[#allocation2 + $0xf1] sm:$0xff] %vm470_vm0, %v456_v33  ;;  %v744_v17 = vsel %vm716_vm2, %v742_v52, %v743_v53  ;;  %v363_v23 = vadd.f32 %v3059_v11, %v327_v5  ;;  %v330_v24 = vmul.f32 %v3043_v7, %v294_v59  ;;  %v753_v4 = vrot.slane %v3290_v60, 1  ;;  %v296_v52 = vld [vmem:[%s3034_s27 + $0xd0] sm:$0xff]  ;;  %v297_v58 = vld [vmem:[%s3034_s27 + $0xd8] sm:$0xff] }
  0x4c   : > { %4945 = vst [vmem:[#allocation6_spill] sm:$0xff] %v3250_v27  ;;  %899 = vrot.lane.b32.xlu1 %v3238_v18, %s2931_s24  ;;  %901 = vrot.lane.b32.xlu2 %v3250_v27, %s2931_s24  ;;  %v755_v26 = vrot.slane %v3292_v61, 1  ;;  %v331_v29 = vmul.f32 %v3043_v7, %v295_v8  ;;  %v334_v33 = vmul.f32 %v3043_v7, %v298_v25  ;;  %v750_v34 = vrot.slane %v3298_v12, 1  ;;  %v3340_v62 = vld [vmem:[#allocation2 + $0xd8] sm:$0xff] }
  0x4d   : > { %536 = vst.msk [vmem:[#allocation2 + $0xf9] sm:$0xff] %vm470_vm0, %v457_v40  ;;  %v3324_v37 = vpack.c.bf16 %v739_v14, %v739_v14  ;;  %vm394_vm13 = vcmp.ge.f32.partialorder %v362_v16, 0.0  ;;  %vm395_vm14 = vcmp.ge.f32.partialorder %v363_v23, 0.0  ;;  %v3326_v40 = vpack.c.bf16 %v744_v17, %v744_v17 }
  0x4e   : > { %4947 = vst [vmem:[#allocation8_spill] sm:$0xff] %v3278_v50  ;;  %v426_v42 = vmul.f32 0.2, %v362_v16  ;;  %v427_v3 = vmul.f32 0.2, %v363_v23  ;;  %v366_v44 = vadd.f32 %v3059_v11, %v330_v24  ;;  %v745_v46 = vrot.slane %v3317_v28, 1 }
  0x4f   : > { %4948 = vst [vmem:[#allocation9_spill] sm:$0xff] %v3296_v9  ;;  %v367_v47 = vadd.f32 %v3059_v11, %v331_v29  ;;  %v335_v49 = vmul.f32 %v3043_v7, %v299_v30  ;;  %v370_v51 = vadd.f32 %v3059_v11, %v334_v33  ;;  %v756_v59 = vsel %vm716_vm2, %v753_v4, %v755_v26  ;;  %v3347_v24 = vld [vmem:[#allocation2 + $0xe0] sm:$0xff] }
  0x50   : > { %911 = vrot.lane.b32.xlu0 %v3260_v36, %s2931_s24  ;;  %539 = vst.msk [vmem:[#allocation2 + $0x121] sm:$0xff] %vm470_vm0, %v460_v15  ;;  %v458_v5 = vsel %vm394_vm13, %v362_v16, %v426_v42  ;;  %v459_v8 = vsel %vm395_vm14, %v363_v23, %v427_v3  ;;  %vm398_vm15 = vcmp.ge.f32.partialorder %v366_v44, 0.0  ;;  %v430_v14 = vmul.f32 0.2, %v366_v44 }
  0x51   : > { %540 = vst.msk [vmem:[#allocation2 + $0x129] sm:$0xff] %vm470_vm0, %v461_v19  ;;  %vm399_vm3 = vcmp.ge.f32.partialorder %v367_v47, 0.0  ;;  %v431_v15 = vmul.f32 0.2, %v367_v47  ;;  %v371_v17 = vadd.f32 %v3059_v11, %v335_v49  ;;  %v751_v19 = vsel %vm716_vm2, %v748_v31, %v750_v34  ;;  %v3371_v49 = vld [vmem:[#allocation2 + $0xa8] sm:$0xff] }
  0x52   : > { %4949 = vst [vmem:[#allocation10_spill] sm:$0xff] %v3324_v37  ;;  %v332_v25 = vmul.f32 %v3043_v7, %v296_v52  ;;  %v333_v16 = vmul.f32 %v3043_v7, %v297_v58  ;;  %v762_v23 = vrot.slane %v3340_v62, 1  ;;  %v462_v26 = vsel %vm398_vm15, %v366_v44, %v430_v14  ;;  %v3367_v44 = vld [vmem:[#allocation2 + $0xc0] sm:$0xff] }
  0x53   : > { %4950 = vst [vmem:[#allocation11_spill] sm:$0xff] %v3326_v40  ;;  %v463_v29 = vsel %vm399_vm3, %v367_v47, %v431_v15  ;;  %vm402_vm4 = vcmp.ge.f32.partialorder %v370_v51, 0.0  ;;  %v3355_v30 = vpack.c.bf16 %v756_v59, %v756_v59  ;;  %vm403_vm5 = vcmp.ge.f32.partialorder %v371_v17, 0.0  ;;  %v3369_v47 = vld [vmem:[#allocation2 + $0xc8] sm:$0xff] }
  0x54   : > { %907 = vrot.lane.b32.xlu1 %v3278_v50, %s2931_s24  ;;  %903 = vrot.lane.b32.xlu2 %v3287_v54, %s2931_s24  ;;  %537 = vst.msk [vmem:[#allocation2 + $0x109] sm:$0xff] %vm470_vm0, %v458_v5  ;;  %v434_v31 = vmul.f32 0.2, %v370_v51  ;;  %v368_v33 = vadd.f32 %v3059_v11, %v332_v25  ;;  %v763_v7 = vrot.slane %v3347_v24, 1  ;;  %v746_v34 = vsel %vm716_vm2, %v743_v53, %v745_v46  ;;  %v3386_v15 = vld [vmem:[#allocation2 + $0xf8] sm:$0xff] }
  0x55   : > { %538 = vst.msk [vmem:[#allocation2 + $0x111] sm:$0xff] %vm470_vm0, %v459_v8  ;;  %v435_v42 = vmul.f32 0.2, %v371_v17  ;;  %v369_v3 = vadd.f32 %v3059_v11, %v333_v16  ;;  %v3377_v53 = vpack.c.bf16 %v751_v19, %v751_v19  ;;  %v3379_v46 = vpack.c.bf16 %v746_v34, %v746_v34  ;;  %v3406_v34 = vld [vmem:[#allocation2 + $0xd0] sm:$0x3] }
  0x56   : > { %4951 = vst [vmem:[#allocation12_spill] sm:$0xff] %v3355_v30  ;;  %v466_v52 = vsel %vm402_vm4, %v370_v51, %v434_v31  ;;  %vm400_vm6 = vcmp.ge.f32.partialorder %v368_v33, 0.0  ;;  %v432_v11 = vmul.f32 0.2, %v368_v33  ;;  %v764_v5 = vsel %vm716_vm2, %v762_v23, %v763_v7 }
  0x57   : > { %541 = vst.msk [vmem:[#allocation2 + $0x139] sm:$0xff] %vm470_vm0, %v462_v26  ;;  %v467_v58 = vsel %vm403_vm5, %v371_v17, %v435_v42  ;;  %vm401_vm7 = vcmp.ge.f32.partialorder %v369_v3, 0.0  ;;  %v433_v59 = vmul.f32 0.2, %v369_v3  ;;  %v757_v51 = vrot.slane %v3367_v44, 1 }
  0x58   : > { %917 = vrot.lane.b32.xlu0 %v3296_v9, %s2931_s24  ;;  %542 = vst.msk [vmem:[#allocation2 + $0x141] sm:$0xff] %vm470_vm0, %v463_v29  ;;  %v758_v8 = vrot.slane %v3369_v47, 1  ;;  %v752_v14 = vrot.slane %v3371_v49, 1  ;;  %v3388_v17 = vld [vmem:[#allocation2 + $0x100] sm:$0x3]  ;;  %v464_v19 = vsel %vm400_vm6, %v368_v33, %v432_v11  ;;  %v3393_v16 = vpack.c.bf16 %v764_v5, %v764_v5 }
  0x59   : > { %545 = vst.msk [vmem:[#allocation2 + $0x169] sm:$0xff] %vm470_vm0, %v466_v52  ;;  %v465_v25 = vsel %vm401_vm7, %v369_v3, %v433_v59  ;;  %v768_v26 = vrot.slane %v3386_v15, 1  ;;  %v770_v29 = vrot.slane %v3388_v17, 1  ;;  %v3404_v33 = vld [vmem:[#allocation2 + $0xe8] sm:$0x3]  ;;  %v760_v11 = vrot.slane %v3406_v34, 1 }
  0x5a   : > { %4952 = vst [vmem:[#allocation13_spill] sm:$0xff] %v3377_v53  ;;  %v759_v23 = vsel %vm716_vm2, %v757_v51, %v758_v8  ;;  %v754_v31 = vsel %vm716_vm2, %v752_v14, %v753_v4  ;;  %v3417_v59 = vld [vmem:[#allocation2 + $0x120] sm:$0xff]  ;;  %v3419_v4 = vld [vmem:[#allocation2 + $0x128] sm:$0xff]  ;;  %vm989_vm10 = vcmask 60448   ;;  %vm1295_vm11 = vcmask 93248  }
  0x5b   : > { %4953 = vst [vmem:[#allocation14_spill] sm:$0xff] %v3379_v46  ;;  %v3410_v42 = vpack.c.bf16 %v759_v23, %v759_v23  ;;  %v3412_v3 = vpack.c.bf16 %v754_v31, %v754_v31  ;;  %v771_v52 = vsel %vm716_vm2, %v768_v26, %v770_v29  ;;  %v777_v14 = vrot.slane %v3417_v59, 1  ;;  %v3431_v23 = vld [vmem:[#allocation2 + $0x108] sm:$0xff]  ;;  %v3435_v31 = vld [vmem:[#allocation2 + $0xf0] sm:$0xff] }
  0x5c   : > { %913 = vrot.lane.b32.xlu1 %v3326_v40, %s2931_s24  ;;  %909 = vrot.lane.b32.xlu2 %v3324_v37, %s2931_s24  ;;  %546 = vst.msk [vmem:[#allocation2 + $0x171] sm:$0xff] %vm470_vm0, %v467_v58  ;;  %v765_v58 = vrot.slane %v3404_v33, 1  ;;  %v3423_v5 = vpack.c.bf16 %v771_v52, %v771_v52  ;;  %v3433_v29 = vld [vmem:[#allocation2 + $0x110] sm:$0xff]  ;;  %v3463_v9 = vld [vmem:[#allocation2 + $0x118] sm:$0x3]  ;;  %vm1458_vm14 = vcmask 126048  }
  0x5d   : > { %543 = vst.msk [vmem:[#allocation2 + $0x151] sm:$0xff] %vm470_vm0, %v464_v19  ;;  %v778_v19 = vrot.slane %v3419_v4, 1  ;;  %v3461_v40 = vld [vmem:[#allocation2 + $0x130] sm:$0x3]  ;;  %vm1601_vm15 = vcmask 158848   ;;  %vm1741_vm3 = vcmask 191648  }
  0x5e   : > { %4954 = vst [vmem:[#allocation15_spill] sm:$0xff] %v3393_v16  ;;  %v766_v51 = vsel %vm716_vm2, %v763_v7, %v765_v58  ;;  %v772_v58 = vrot.slane %v3431_v23, 1  ;;  %v3492_v27 = vld [vmem:[#allocation2 + $0x138] sm:$0xff]  ;;  %vm2371_vm4 = vcmask 1041408   ;;  %vm1874_vm5 = vcmask 224448  }
  0x5f   : > { %544 = vst.msk [vmem:[#allocation2 + $0x159] sm:$0xff] %vm470_vm0, %v465_v25  ;;  %v761_v25 = vsel %vm716_vm2, %v758_v8, %v760_v11  ;;  %v3439_v52 = vpack.c.bf16 %v766_v51, %v766_v51  ;;  %v779_v7 = vsel %vm716_vm2, %v777_v14, %v778_v19  ;;  %v767_v8 = vrot.slane %v3435_v31, 1  ;;  %v3447_v11 = vld [vmem:[#allocation2 + $0x140] sm:$0xff] }
  0x60   : > { %923 = vrot.lane.b32.xlu0 %v3355_v30, %s2931_s24  ;;  %4955 = vst [vmem:[#allocation16_spill] sm:$0xff] %v3410_v42  ;;  %v783_v14 = vrot.slane %v3447_v11, 1  ;;  %v3474_v50 = vld [vmem:[#allocation2 + $0x168] sm:$0xff]  ;;  %vm2017_vm6 = vcmask 257248   ;;  %vm2157_vm7 = vcmask 290048  }
  0x61   : > { %4956 = vst [vmem:[#allocation17_spill] sm:$0xff] %v3412_v3  ;;  %v769_v30 = vsel %vm716_vm2, %v767_v8, %v768_v26 }
  0x62   : > { %4957 = vst [vmem:[#allocation18_spill] sm:$0xff] %v3423_v5 }
  0x63   : > { %4958 = vst [vmem:[#allocation19_spill] sm:$0xff] %v3439_v52  ;;  %v3476_v26 = vld [vmem:[#allocation2 + $0x170] sm:$0xff]  ;;  %v3514_v63 = vld [vmem:[#allocation2 + $0x178] sm:$0x3] }
  0x64   : > { %919 = vrot.lane.b32.xlu1 %v3377_v53, %s2931_s24  ;;  %915 = vrot.lane.b32.xlu2 %v3379_v46, %s2931_s24  ;;  %v3449_v53 = vld [vmem:[#allocation2 + $0x148] sm:$0x3]  ;;  %v3488_v36 = vld [vmem:[#allocation2 + $0x150] sm:$0xff] }
  0x66   : > { %v3490_v46 = vld [vmem:[#allocation2 + $0x158] sm:$0xff]  ;;  %v3516_v37 = vld [vmem:[#allocation2 + $0x160] sm:$0x3] }
  0x68   : > { %929 = vrot.lane.b32.xlu0 %v3393_v16, %s2931_s24  ;;  %v773_v16 = vrot.slane %v3433_v29, 1 }
  0x6a   : > { %v774_v51 = vsel %vm716_vm2, %v772_v58, %v773_v16  ;;  %v780_v58 = vrot.slane %v3461_v40, 1 }
  0x6c   : > { %925 = vrot.lane.b32.xlu1 %v3410_v42, %s2931_s24  ;;  %921 = vrot.lane.b32.xlu2 %v3412_v3, %s2931_s24  ;;  %v3441_v42 = vpack.c.bf16 %v761_v25, %v761_v25  ;;  %v785_v25 = vrot.slane %v3449_v53, 1  ;;  %v775_v3 = vrot.slane %v3463_v9, 1 }
  0x6e   : > { %4959 = vst [vmem:[#allocation20_spill] sm:$0xff] %v3441_v42 }
  0x70   : > { %935 = vrot.lane.b32.xlu0 %v3423_v5, %s2931_s24  ;;  %v3453_v5 = vpack.c.bf16 %v779_v7, %v779_v7  ;;  %v3467_v7 = vpack.c.bf16 %v774_v51, %v774_v51  ;;  %v792_v51 = vrot.slane %v3474_v50, 1 }
  0x72   : > { %4960 = vst [vmem:[#allocation21_spill] sm:$0xff] %v3453_v5 }
  0x73   : > { %4961 = vst [vmem:[#allocation22_spill] sm:$0xff] %v3467_v7 }
  0x74   : > { %931 = vrot.lane.b32.xlu1 %v3439_v52, %s2931_s24  ;;  %927 = vrot.lane.b32.xlu2 %v3441_v42, %s2931_s24  ;;  %v3469_v52 = vpack.c.bf16 %v769_v30, %v769_v30  ;;  %v786_v42 = vsel %vm716_vm2, %v783_v14, %v785_v25  ;;  %v781_v30 = vsel %vm716_vm2, %v778_v19, %v780_v58  ;;  %v793_v25 = vrot.slane %v3476_v26, 1 }
  0x75   : > { %v3480_v8 = vpack.c.bf16 %v786_v42, %v786_v42  ;;  %v3496_v42 = vpack.c.bf16 %v781_v30, %v781_v30  ;;  %v787_v58 = vrot.slane %v3488_v36, 1 }
  0x76   : > { %4962 = vst [vmem:[#allocation23_spill] sm:$0xff] %v3469_v52  ;;  %v794_v19 = vsel %vm716_vm2, %v792_v51, %v793_v25  ;;  %v1026_v51 = vrot.slane %v3155_v22, 2 }
  0x77   : > { %4963 = vst [vmem:[#allocation24_spill] sm:$0xff] %v3480_v8 }
  0x78   : > { %941 = vrot.lane.b32.xlu0 %v3453_v5, %s2931_s24  ;;  %v776_v5 = vsel %vm716_vm2, %v773_v16, %v775_v3  ;;  %4964 = vst [vmem:[#allocation25_spill] sm:$0xff] %v3496_v42  ;;  %v782_v16 = vrot.slane %v3492_v27, 1  ;;  %v3506_v3 = vpack.c.bf16 %v794_v19, %v794_v19 }
  0x7a   : > { %4966 = vst [vmem:[#allocation27_spill] sm:$0xff] %v3506_v3 }
  0x7c   : > { %937 = vrot.lane.b32.xlu1 %v3467_v7, %s2931_s24  ;;  %933 = vrot.lane.b32.xlu2 %v3469_v52, %s2931_s24  ;;  %v3498_v7 = vpack.c.bf16 %v776_v5, %v776_v5  ;;  %v788_v52 = vrot.slane %v3490_v46, 1  ;;  %v1024_v5 = vrot.slane %v2998_v1, 2 }
  0x7e   : > { %4965 = vst [vmem:[#allocation26_spill] sm:$0xff] %v3498_v7  ;;  %v789_v30 = vsel %vm716_vm2, %v787_v58, %v788_v52  ;;  %v603_v58 = vpack.c.bf16 %v3002_v2, %v3002_v2  ;;  %v1027_v22 = vsel %vm1022_vm8, %v1024_v5, %v1026_v51  ;;  %v1034_v51 = vrot.slane %v3225_v0, 2 }
  0x7f   : > { %v3520_v19 = vpack.c.bf16 %v789_v30, %v789_v30  ;;  %v1136_v30 = vpack.c.bf16 %v1027_v22, %v1027_v22 }
  0x80   : > { %947 = vrot.lane.b32.xlu0 %v3480_v8, %s2931_s24  ;;  %v784_v8 = vsel %vm716_vm2, %v782_v16, %v783_v14  ;;  %v795_v14 = vrot.slane %v3514_v63, 1  ;;  %v790_v16 = vrot.slane %v3516_v37, 1  ;;  %636 = vst.msk [vmem:[#allocation3] sm:$0xf] %vm635_vm9, %v603_v58 }
  0x81   : > { %4967 = vst [vmem:[#allocation28_spill] sm:$0xff] %v3520_v19 }
  0x84   : > { %943 = vrot.lane.b32.xlu1 %v3496_v42, %s2931_s24  ;;  %939 = vrot.lane.b32.xlu2 %v3498_v7, %s2931_s24  ;;  %v3522_v42 = vpack.c.bf16 %v784_v8, %v784_v8  ;;  %v796_v8 = vsel %vm716_vm2, %v793_v25, %v795_v14  ;;  %v791_v7 = vsel %vm716_vm2, %v788_v52, %v790_v16  ;;  %v1028_v14 = vrot.slane %v3171_v35, 2 }
  0x85   : > { %v3540_v58 = vpack.c.bf16 %v796_v8, %v796_v8  ;;  %v3542_v22 = vpack.c.bf16 %v791_v7, %v791_v7  ;;  %v1023_v52 = vrot.slane %v3002_v2, 2  ;;  %v1036_v8 = vrot.slane %v3228_v13, 2 }
  0x86   : > { %4968 = vst [vmem:[#allocation29_spill] sm:$0xff] %v3522_v42 }
  0x87   : > { %4969 = vst [vmem:[#allocation30_spill] sm:$0xff] %v3540_v58  ;;  %v1037_v13 = vsel %vm1022_vm8, %v1034_v51, %v1036_v8  ;;  %v3625_v8 = vpack.c.bf16 %v3255_v32, %v3255_v32 }
  0x88   : > { %953 = vrot.lane.b32.xlu0 %v3506_v3, %s2931_s24  ;;  %v1033_v3 = vrot.slane %v3222_v10, 2 }
  0x89   : > { %644 = vst.msk [vmem:[#allocation3 + $0x20] sm:$0xf] %vm635_vm9, %v3625_v8 }
  0x8a   : > { %v1035_v25 = vsel %vm1022_vm8, %v1033_v3, %v1034_v51  ;;  %v1039_v3 = vrot.slane %v3190_v48, 2  ;;  %v3615_v51 = vpack.c.bf16 %v3202_v56, %v3202_v56 }
  0x8b   : > { %v3557_v7 = vpack.c.bf16 %v1035_v25, %v1035_v25  ;;  %v3586_v25 = vpack.c.bf16 %v3225_v0, %v3225_v0  ;;  %v1049_v0 = vrot.slane %v3267_v39, 2 }
  0x8c   : > { %949 = vrot.lane.b32.xlu1 %v3520_v19, %s2931_s24  ;;  %945 = vrot.lane.b32.xlu2 %v3522_v42, %s2931_s24  ;;  %v604_v19 = vpack.c.bf16 %v2998_v1, %v2998_v1  ;;  %v1029_v42 = vrot.slane %v3177_v41, 2  ;;  %v3563_v1 = vpack.c.bf16 %v3171_v35, %v3171_v35  ;;  %645 = vst.msk [vmem:[#allocation3 + $0x24] sm:$0xf] %vm635_vm9, %v3615_v51 }
  0x8d   : > { %v894_v18 = vpop.permute.xlu0 %893  ;;  %641 = vst.msk [vmem:[#allocation3 + $0x14] sm:$0xf] %vm635_vm9, %v3586_v25 }
  0x8e   : > { %990 = vst.msk [vmem:[#allocation3] sm:$0xf] %vm989_vm10, %v894_v18  ;;  %v3553_v18 = vpack.c.bf16 %v3222_v10, %v3222_v10  ;;  %v1030_v2 = vsel %vm1022_vm8, %v1028_v14, %v1029_v42  ;;  %v1025_v10 = vsel %vm1022_vm8, %v1023_v52, %v1024_v5  ;;  %v3582_v5 = vpack.c.bf16 %v3185_v45, %v3185_v45 }
  0x8f   : > { %637 = vst.msk [vmem:[#allocation3 + $0x4] sm:$0xf] %vm635_vm9, %v604_v19  ;;  %v1041_v19 = vrot.slane %v3217_v6, 2  ;;  %v3575_v16 = vpack.c.bf16 %v1030_v2, %v1030_v2  ;;  %v1135_v35 = vpack.c.bf16 %v1025_v10, %v1025_v10  ;;  %v1031_v6 = vrot.slane %v3180_v43, 2 }
  0x90   : > { %1201 = vrot.lane.b32.xlu0 %v1136_v30, %s2932_s8  ;;  %640 = vst.msk [vmem:[#allocation3 + $0x10] sm:$0xf] %vm635_vm9, %v3553_v18  ;;  %v3597_v43 = vpack.c.bf16 %v3177_v41, %v3177_v41  ;;  %v1048_v52 = vrot.slane %v3265_v38, 2 }
  0x91   : > { %638 = vst.msk [vmem:[#allocation3 + $0x8] sm:$0xf] %vm635_vm9, %v3563_v1  ;;  %v1042_v30 = vsel %vm1022_vm8, %v1039_v3, %v1041_v19  ;;  %v1032_v2 = vsel %vm1022_vm8, %v1029_v42, %v1031_v6  ;;  %v3609_v19 = vpack.c.bf16 %v1037_v13, %v1037_v13  ;;  %v1043_v42 = vrot.slane %v3255_v32, 2 }
  0x92   : > { %v3590_v14 = vpack.c.bf16 %v1042_v30, %v1042_v30  ;;  %642 = vst.msk [vmem:[#allocation3 + $0x18] sm:$0xf] %vm635_vm9, %v3582_v5  ;;  %v3611_v41 = vpack.c.bf16 %v1032_v2, %v1032_v2  ;;  %v1050_v10 = vsel %vm1022_vm8, %v1048_v52, %v1049_v0  ;;  %v1038_v30 = vrot.slane %v3185_v45, 2 }
  0x93   : > { %639 = vst.msk [vmem:[#allocation3 + $0xc] sm:$0xf] %vm635_vm9, %v3597_v43  ;;  %v3629_v6 = vpack.c.bf16 %v1050_v10, %v1050_v10  ;;  %v1054_v13 = vrot.slane %v3245_v21, 2  ;;  %v1056_v52 = vrot.slane %v3298_v12, 2  ;;  %v3654_v12 = vpack.c.bf16 %v3243_v20, %v3243_v20 }
  0x94   : > { %955 = vrot.lane.b32.xlu1 %v3540_v58, %s2931_s24  ;;  %951 = vrot.lane.b32.xlu2 %v3542_v22, %s2931_s24  ;;  %v1040_v32 = vsel %vm1022_vm8, %v1038_v30, %v1039_v3  ;;  %v1046_v30 = vrot.slane %v3204_v57, 2 }
  0x95   : > { %4970 = vst [vmem:[#allocation31_spill] sm:$0xff] %v3629_v6  ;;  %v3650_v10 = vpack.c.bf16 %v1040_v32, %v1040_v32  ;;  %v1057_v3 = vsel %vm1022_vm8, %v1054_v13, %v1056_v52  ;;  %v1063_v52 = vrot.slane %v3367_v44, 2  ;;  %v1064_v32 = vrot.slane %v3369_v47, 2 }
  0x96   : > { %648 = vst.msk [vmem:[#allocation3 + $0x30] sm:$0xf] %vm635_vm9, %v3654_v12 }
  0x98   : > { %1207 = vrot.lane.b32.xlu0 %v3557_v7, %s2932_s8 }
  0x9c   : > { %1203 = vrot.lane.b32.xlu1 %v3575_v16, %s2932_s8  ;;  %1199 = vrot.lane.b32.xlu2 %v1135_v35, %s2932_s8  ;;  %v1044_v35 = vrot.slane %v3202_v56, 2  ;;  %v3635_v56 = vpack.c.bf16 %v3190_v48, %v3190_v48 }
  0x9e   : > { %v1045_v45 = vsel %vm1022_vm8, %v1043_v42, %v1044_v35  ;;  %643 = vst.msk [vmem:[#allocation3 + $0x1c] sm:$0xf] %vm635_vm9, %v3635_v56  ;;  %v1051_v42 = vrot.slane %v3317_v28, 2  ;;  %v3673_v28 = vpack.c.bf16 %v3265_v38, %v3265_v38 }
  0x9f   : > { %v3648_v48 = vpack.c.bf16 %v1045_v45, %v1045_v45  ;;  %v3667_v45 = vpack.c.bf16 %v1057_v3, %v1057_v3 }
  0xa0   : > { %1213 = vrot.lane.b32.xlu0 %v3590_v14, %s2932_s8  ;;  %v1052_v57 = vsel %vm1022_vm8, %v1049_v0, %v1051_v42  ;;  %646 = vst.msk [vmem:[#allocation3 + $0x28] sm:$0xf] %vm635_vm9, %v3673_v28  ;;  %v3692_v42 = vpack.c.bf16 %v3290_v60, %v3290_v60 }
  0xa1   : > { %4971 = vst [vmem:[#allocation32_spill] sm:$0xff] %v3648_v48  ;;  %v3686_v38 = vpack.c.bf16 %v1052_v57, %v1052_v57  ;;  %v3703_v57 = vpack.c.bf16 %v3371_v49, %v3371_v49 }
  0xa2   : > { %4973 = vst [vmem:[#allocation34_spill] sm:$0xff] %v3667_v45 }
  0xa3   : > { %4974 = vst [vmem:[#allocation35_spill] sm:$0xff] %v3686_v38 }
  0xa4   : > { %1209 = vrot.lane.b32.xlu1 %v3609_v19, %s2932_s8  ;;  %1205 = vrot.lane.b32.xlu2 %v3611_v41, %s2932_s8  ;;  %651 = vst.msk [vmem:[#allocation3 + $0x3c] sm:$0xf] %vm635_vm9, %v3692_v42 }
  0xa5   : > { %650 = vst.msk [vmem:[#allocation3 + $0x38] sm:$0xf] %vm635_vm9, %v3703_v57 }
  0xa6   : > { %v902_v2 = vpop.permute.xlu2 %901 }
  0xa7   : > { %994 = vst.msk [vmem:[#allocation3 + $0x10] sm:$0xf] %vm989_vm10, %v902_v2  ;;  %v3663_v2 = vpack.c.bf16 %v3267_v39, %v3267_v39  ;;  %v1047_v39 = vsel %vm1022_vm8, %v1044_v35, %v1046_v30  ;;  %v1065_v35 = vsel %vm1022_vm8, %v1063_v52, %v1064_v32  ;;  %v1058_v30 = vrot.slane %v3371_v49, 2 }
  0xa8   : > { %1219 = vrot.lane.b32.xlu0 %v3629_v6, %s2932_s8  ;;  %v3688_v0 = vpack.c.bf16 %v1047_v39, %v1047_v39  ;;  %v1053_v6 = vrot.slane %v3243_v20, 2  ;;  %v3707_v52 = vpack.c.bf16 %v1065_v35, %v1065_v35  ;;  %v3713_v20 = vpack.c.bf16 %v3245_v21, %v3245_v21 }
  0xa9   : > { %4972 = vst [vmem:[#allocation33_spill] sm:$0xff] %v3663_v2  ;;  %v1069_v39 = vrot.slane %v3347_v24, 2 }
  0xaa   : > { %647 = vst.msk [vmem:[#allocation3 + $0x2c] sm:$0xf] %vm635_vm9, %v3663_v2  ;;  %v1055_v49 = vsel %vm1022_vm8, %v1053_v6, %v1054_v13  ;;  %v3733_v6 = vpack.c.bf16 %v3340_v62, %v3340_v62 }
  0xab   : > { %4975 = vst [vmem:[#allocation36_spill] sm:$0xff] %v3707_v52 }
  0xac   : > { %1215 = vrot.lane.b32.xlu1 %v3648_v48, %s2932_s8  ;;  %1211 = vrot.lane.b32.xlu2 %v3650_v10, %s2932_s8  ;;  %v1059_v48 = vrot.slane %v3290_v60, 2  ;;  %649 = vst.msk [vmem:[#allocation3 + $0x34] sm:$0xf] %vm635_vm9, %v3713_v20 }
  0xad   : > { %4977 = vst [vmem:[#allocation38_spill] sm:$0xff] %v3733_v6 }
  0xae   : > { %v904_v3 = vpop.permute.xlu2 %903  ;;  %v1060_v60 = vsel %vm1022_vm8, %v1058_v30, %v1059_v48  ;;  %v1066_v30 = vrot.slane %v3406_v34, 2  ;;  %654 = vst.msk [vmem:[#allocation3 + $0x48] sm:$0xf] %vm635_vm9, %v3733_v6 }
  0xaf   : > { %995 = vst.msk [vmem:[#allocation3 + $0x14] sm:$0xf] %vm989_vm10, %v904_v3  ;;  %v3726_v21 = vpack.c.bf16 %v1060_v60, %v1060_v60 }
  0xb0   : > { %1225 = vrot.lane.b32.xlu0 %v3667_v45, %s2932_s8  ;;  %v1061_v45 = vrot.slane %v3292_v61, 2  ;;  %v3753_v61 = vpack.c.bf16 %v3367_v44, %v3367_v44  ;;  %v1067_v34 = vsel %vm1022_vm8, %v1064_v32, %v1066_v30  ;;  %v1073_v30 = vrot.slane %v3435_v31, 2 }
  0xb1   : > { %4976 = vst [vmem:[#allocation37_spill] sm:$0xff] %v3726_v21  ;;  %v3766_v44 = vpack.c.bf16 %v1067_v34, %v1067_v34  ;;  %v3784_v34 = vpack.c.bf16 %v3435_v31, %v3435_v31 }
  0xb2   : > { %v896_v3 = vpop.permute.xlu0 %895  ;;  %652 = vst.msk [vmem:[#allocation3 + $0x40] sm:$0xf] %vm635_vm9, %v3753_v61 }
  0xb3   : > { %991 = vst.msk [vmem:[#allocation3 + $0x4] sm:$0xf] %vm989_vm10, %v896_v3  ;;  %v1071_v3 = vrot.slane %v3404_v33, 2  ;;  %v3729_v33 = vpack.c.bf16 %v1055_v49, %v1055_v49  ;;  %v1079_v49 = vrot.slane %v3433_v29, 2 }
  0xb4   : > { %1221 = vrot.lane.b32.xlu1 %v3686_v38, %s2932_s8  ;;  %1217 = vrot.lane.b32.xlu2 %v3688_v0, %s2932_s8  ;;  %4980 = vst [vmem:[#allocation41_spill] sm:$0xff] %v3766_v44 }
  0xb5   : > { %v1072_v13 = vsel %vm1022_vm8, %v1069_v39, %v1071_v3  ;;  %v1078_v3 = vrot.slane %v3431_v23, 2  ;;  %656 = vst.msk [vmem:[#allocation3 + $0x50] sm:$0xf] %vm635_vm9, %v3784_v34 }
  0xb6   : > { %v898_v35 = vpop.permute.xlu1 %897  ;;  %v910_v38 = vpop.permute.xlu2 %909  ;;  %v3747_v60 = vpack.c.bf16 %v1072_v13, %v1072_v13 }
  0xb7   : > { %992 = vst.msk [vmem:[#allocation3 + $0x8] sm:$0xf] %vm989_vm10, %v898_v35 }
  0xb8   : > { %1231 = vrot.lane.b32.xlu0 %v3707_v52, %s2932_s8  ;;  %998 = vst.msk [vmem:[#allocation3 + $0x20] sm:$0xf] %vm989_vm10, %v910_v38  ;;  %v3743_v38 = vpack.c.bf16 %v3369_v47, %v3369_v47  ;;  %v1062_v47 = vsel %vm1022_vm8, %v1059_v48, %v1061_v45  ;;  %v3773_v48 = vpack.c.bf16 %v3386_v15, %v3386_v15 }
  0xb9   : > { %4979 = vst [vmem:[#allocation40_spill] sm:$0xff] %v3747_v60  ;;  %v3769_v32 = vpack.c.bf16 %v1062_v47, %v1062_v47  ;;  %v1080_v45 = vsel %vm1022_vm8, %v1078_v3, %v1079_v49  ;;  %v1086_v47 = vrot.slane %v3461_v40, 2 }
  0xba   : > { %v906_v35 = vpop.permute.xlu0 %905  ;;  %4978 = vst [vmem:[#allocation39_spill] sm:$0xff] %v3743_v38  ;;  %v3788_v3 = vpack.c.bf16 %v1080_v45, %v1080_v45 }
  0xbb   : > { %996 = vst.msk [vmem:[#allocation3 + $0x18] sm:$0xf] %vm989_vm10, %v906_v35 }
  0xbc   : > { %1227 = vrot.lane.b32.xlu1 %v3726_v21, %s2932_s8  ;;  %1223 = vrot.lane.b32.xlu2 %v3729_v33, %s2932_s8  ;;  %653 = vst.msk [vmem:[#allocation3 + $0x44] sm:$0xf] %vm635_vm9, %v3743_v38  ;;  %v1074_v21 = vrot.slane %v3386_v15, 2 }
  0xbd   : > { %657 = vst.msk [vmem:[#allocation3 + $0x54] sm:$0xf] %vm635_vm9, %v3773_v48 }
  0xbe   : > { %v900_v13 = vpop.permute.xlu1 %899  ;;  %v916_v35 = vpop.permute.xlu2 %915  ;;  %4981 = vst [vmem:[#allocation42_spill] sm:$0xff] %v3788_v3  ;;  %v1075_v15 = vsel %vm1022_vm8, %v1073_v30, %v1074_v21 }
  0xbf   : > { %993 = vst.msk [vmem:[#allocation3 + $0xc] sm:$0xf] %vm989_vm10, %v900_v13  ;;  %v1068_v13 = vrot.slane %v3340_v62, 2  ;;  %v3794_v62 = vpack.c.bf16 %v3347_v24, %v3347_v24  ;;  %v3807_v24 = vpack.c.bf16 %v1075_v15, %v1075_v15  ;;  %v3824_v15 = vpack.c.bf16 %v3433_v29, %v3433_v29 }
  0xc0   : > { %1237 = vrot.lane.b32.xlu0 %v3747_v60, %s2932_s8  ;;  %1001 = vst.msk [vmem:[#allocation3 + $0x2c] sm:$0xf] %vm989_vm10, %v916_v35 }
  0xc1   : > { %4982 = vst [vmem:[#allocation43_spill] sm:$0xff] %v3794_v62  ;;  %v1070_v31 = vsel %vm1022_vm8, %v1068_v13, %v1069_v39  ;;  %v3814_v39 = vpack.c.bf16 %v3417_v59, %v3417_v59  ;;  %v1081_v13 = vrot.slane %v3463_v9, 2  ;;  %v3834_v9 = vpack.c.bf16 %v3431_v23, %v3431_v23 }
  0xc2   : > { %v912_v52 = vpop.permute.xlu0 %911  ;;  %655 = vst.msk [vmem:[#allocation3 + $0x4c] sm:$0xf] %vm635_vm9, %v3794_v62  ;;  %v3810_v40 = vpack.c.bf16 %v1070_v31, %v1070_v31 }
  0xc3   : > { %999 = vst.msk [vmem:[#allocation3 + $0x24] sm:$0xf] %vm989_vm10, %v912_v52  ;;  %v1084_v52 = vrot.slane %v3419_v4, 2 }
  0xc4   : > { %1233 = vrot.lane.b32.xlu1 %v3766_v44, %s2932_s8  ;;  %1229 = vrot.lane.b32.xlu2 %v3769_v32, %s2932_s8  ;;  %4983 = vst [vmem:[#allocation44_spill] sm:$0xff] %v3807_v24  ;;  %v1076_v44 = vrot.slane %v3388_v17, 2  ;;  %v1082_v17 = vsel %vm1022_vm8, %v1079_v49, %v1081_v13  ;;  %v1088_v13 = vrot.slane %v3492_v27, 2 }
  0xc5   : > { %4984 = vst [vmem:[#allocation45_spill] sm:$0xff] %v3810_v40  ;;  %v1087_v30 = vsel %vm1022_vm8, %v1084_v52, %v1086_v47  ;;  %v1093_v47 = vrot.slane %v3488_v36, 2  ;;  %v3847_v23 = vpack.c.bf16 %v1082_v17, %v1082_v17  ;;  %v3865_v17 = vpack.c.bf16 %v3492_v27, %v3492_v27 }
  0xc6   : > { %v908_v35 = vpop.permute.xlu1 %907  ;;  %v922_v45 = vpop.permute.xlu2 %921  ;;  %4985 = vst [vmem:[#allocation46_spill] sm:$0xff] %v3814_v39  ;;  %v3828_v31 = vpack.c.bf16 %v1087_v30, %v1087_v30  ;;  %v1077_v29 = vsel %vm1022_vm8, %v1074_v21, %v1076_v44  ;;  %v3854_v21 = vpack.c.bf16 %v3447_v11, %v3447_v11 }
  0xc7   : > { %997 = vst.msk [vmem:[#allocation3 + $0x1c] sm:$0xf] %vm989_vm10, %v908_v35  ;;  %v3850_v49 = vpack.c.bf16 %v1077_v29, %v1077_v29  ;;  %v1101_v29 = vrot.slane %v3514_v63, 2 }
  0xc8   : > { %1243 = vrot.lane.b32.xlu0 %v3788_v3, %s2932_s8  ;;  %1004 = vst.msk [vmem:[#allocation3 + $0x38] sm:$0xf] %vm989_vm10, %v922_v45  ;;  %v1094_v45 = vrot.slane %v3490_v46, 2 }
  0xc9   : > { %660 = vst.msk [vmem:[#allocation3 + $0x60] sm:$0xf] %vm635_vm9, %v3814_v39 }
  0xca   : > { %v918_v35 = vpop.permute.xlu0 %917  ;;  %659 = vst.msk [vmem:[#allocation3 + $0x5c] sm:$0xf] %vm635_vm9, %v3824_v15  ;;  %v1095_v44 = vsel %vm1022_vm8, %v1093_v47, %v1094_v45 }
  0xcb   : > { %1002 = vst.msk [vmem:[#allocation3 + $0x30] sm:$0xf] %vm989_vm10, %v918_v35  ;;  %v3869_v47 = vpack.c.bf16 %v1095_v44, %v1095_v44 }
  0xcc   : > { %1239 = vrot.lane.b32.xlu1 %v3807_v24, %s2932_s8  ;;  %1235 = vrot.lane.b32.xlu2 %v3810_v40, %s2932_s8  ;;  %658 = vst.msk [vmem:[#allocation3 + $0x58] sm:$0xf] %vm635_vm9, %v3834_v9  ;;  %v1089_v24 = vrot.slane %v3447_v11, 2 }
  0xcd   : > { %4986 = vst [vmem:[#allocation47_spill] sm:$0xff] %v3847_v23 }
  0xce   : > { %v914_v30 = vpop.permute.xlu1 %913  ;;  %v928_v35 = vpop.permute.xlu2 %927  ;;  %4987 = vst [vmem:[#allocation48_spill] sm:$0xff] %v3854_v21  ;;  %v1090_v11 = vsel %vm1022_vm8, %v1088_v13, %v1089_v24 }
  0xcf   : > { %1000 = vst.msk [vmem:[#allocation3 + $0x28] sm:$0xf] %vm989_vm10, %v914_v30  ;;  %v1083_v30 = vrot.slane %v3417_v59, 2  ;;  %v3875_v59 = vpack.c.bf16 %v3419_v4, %v3419_v4  ;;  %v3888_v4 = vpack.c.bf16 %v1090_v11, %v1090_v11  ;;  %v3905_v11 = vpack.c.bf16 %v3490_v46, %v3490_v46 }
  0xd0   : > { %1249 = vrot.lane.b32.xlu0 %v3828_v31, %s2932_s8  ;;  %1007 = vst.msk [vmem:[#allocation3 + $0x44] sm:$0xf] %vm989_vm10, %v928_v35 }
  0xd1   : > { %663 = vst.msk [vmem:[#allocation3 + $0x6c] sm:$0xf] %vm635_vm9, %v3854_v21  ;;  %v1085_v27 = vsel %vm1022_vm8, %v1083_v30, %v1084_v52  ;;  %v3895_v52 = vpack.c.bf16 %v3474_v50, %v3474_v50  ;;  %v1096_v30 = vrot.slane %v3516_v37, 2  ;;  %v3915_v37 = vpack.c.bf16 %v3488_v36, %v3488_v36 }
  0xd2   : > { %v924_v3 = vpop.permute.xlu0 %923  ;;  %4988 = vst [vmem:[#allocation49_spill] sm:$0xff] %v3865_v17  ;;  %v3891_v63 = vpack.c.bf16 %v1085_v27, %v1085_v27 }
  0xd3   : > { %1005 = vst.msk [vmem:[#allocation3 + $0x3c] sm:$0xf] %vm989_vm10, %v924_v3  ;;  %v1099_v3 = vrot.slane %v3476_v26, 2 }
  0xd4   : > { %1245 = vrot.lane.b32.xlu1 %v3847_v23, %s2932_s8  ;;  %1241 = vrot.lane.b32.xlu2 %v3850_v49, %s2932_s8  ;;  %4989 = vst [vmem:[#allocation50_spill] sm:$0xff] %v3875_v59  ;;  %v1091_v23 = vrot.slane %v3449_v53, 2  ;;  %v1097_v53 = vsel %vm1022_vm8, %v1094_v45, %v1096_v30 }
  0xd5   : > { %662 = vst.msk [vmem:[#allocation3 + $0x68] sm:$0xf] %vm635_vm9, %v3865_v17  ;;  %v1102_v13 = vsel %vm1022_vm8, %v1099_v3, %v1101_v29 }
  0xd6   : > { %v920_v35 = vpop.permute.xlu1 %919  ;;  %v934_v44 = vpop.permute.xlu2 %933  ;;  %661 = vst.msk [vmem:[#allocation3 + $0x64] sm:$0xf] %vm635_vm9, %v3875_v59  ;;  %v3909_v27 = vpack.c.bf16 %v1102_v13, %v1102_v13  ;;  %v1092_v29 = vsel %vm1022_vm8, %v1089_v24, %v1091_v23  ;;  %v3926_v13 = vpack.c.bf16 %v1097_v53, %v1097_v53  ;;  %v1098_v24 = vrot.slane %v3474_v50, 2 }
  0xd7   : > { %1003 = vst.msk [vmem:[#allocation3 + $0x34] sm:$0xf] %vm989_vm10, %v920_v35  ;;  %v3929_v36 = vpack.c.bf16 %v1092_v29, %v1092_v29  ;;  %v3939_v23 = vpack.c.bf16 %v3476_v26, %v3476_v26 }
  0xd8   : > { %1255 = vrot.lane.b32.xlu0 %v3869_v47, %s2932_s8  ;;  %1010 = vst.msk [vmem:[#allocation3 + $0x50] sm:$0xf] %vm989_vm10, %v934_v44  ;;  %v1100_v30 = vsel %vm1022_vm8, %v1098_v24, %v1099_v3 }
  0xd9   : > { %4990 = vst [vmem:[#allocation51_spill] sm:$0xff] %v3895_v52  ;;  %v3948_v50 = vpack.c.bf16 %v1100_v30, %v1100_v30 }
  0xda   : > { %v930_v35 = vpop.permute.xlu0 %929  ;;  %666 = vst.msk [vmem:[#allocation3 + $0x78] sm:$0xf] %vm635_vm9, %v3895_v52 }
  0xdb   : > { %1008 = vst.msk [vmem:[#allocation3 + $0x48] sm:$0xf] %vm989_vm10, %v930_v35 }
  0xdc   : > { %1251 = vrot.lane.b32.xlu1 %v3888_v4, %s2932_s8  ;;  %4991 = vst [vmem:[#allocation52_spill] sm:$0xff] %v3909_v27  ;;  %1247 = vrot.lane.b32.xlu2 %v3891_v63, %s2932_s8 }
  0xdd   : > { %665 = vst.msk [vmem:[#allocation3 + $0x74] sm:$0xf] %vm635_vm9, %v3905_v11 }
  0xde   : > { %v926_v46 = vpop.permute.xlu1 %925  ;;  %v940_v44 = vpop.permute.xlu2 %939  ;;  %664 = vst.msk [vmem:[#allocation3 + $0x70] sm:$0xf] %vm635_vm9, %v3915_v37 }
  0xdf   : > { %1006 = vst.msk [vmem:[#allocation3 + $0x40] sm:$0xf] %vm989_vm10, %v926_v46 }
  0xe0   : > { %1261 = vrot.lane.b32.xlu0 %v3909_v27, %s2932_s8  ;;  %1013 = vst.msk [vmem:[#allocation3 + $0x5c] sm:$0xf] %vm989_vm10, %v940_v44  ;;  %v5008_v27 = vld [vmem:[#allocation12_spill] sm:$0xff] }
  0xe1   : > { %4992 = vst [vmem:[#allocation53_spill] sm:$0xff] %v3939_v23 }
  0xe2   : > { %v936_v45 = vpop.permute.xlu0 %935  ;;  %667 = vst.msk [vmem:[#allocation3 + $0x7c] sm:$0xf] %vm635_vm9, %v3939_v23  ;;  %vm2322_vm9 = vcmask 293888  }
  0xe3   : > { %1011 = vst.msk [vmem:[#allocation3 + $0x54] sm:$0xf] %vm989_vm10, %v936_v45 }
  0xe4   : > { %1257 = vrot.lane.b32.xlu1 %v3926_v13, %s2932_s8  ;;  %1253 = vrot.lane.b32.xlu2 %v3929_v36, %s2932_s8 }
  0xe6   : > { %v932_v35 = vpop.permute.xlu1 %931  ;;  %v946_v53 = vpop.permute.xlu2 %945 }
  0xe7   : > { %1009 = vst.msk [vmem:[#allocation3 + $0x4c] sm:$0xf] %vm989_vm10, %v932_v35 }
  0xe8   : > { %1366 = vrot.lane.b32.xlu0 %v3553_v18, %s2933_s9  ;;  %1016 = vst.msk [vmem:[#allocation3 + $0x68] sm:$0xf] %vm989_vm10, %v946_v53 }
  0xea   : > { %v942_v29 = vpop.permute.xlu0 %941 }
  0xeb   : > { %1014 = vst.msk [vmem:[#allocation3 + $0x60] sm:$0xf] %vm989_vm10, %v942_v29 }
  0xec   : > { %1362 = vrot.lane.b32.xlu1 %v3563_v1, %s2933_s9  ;;  %1259 = vrot.lane.b32.xlu2 %v3948_v50, %s2932_s8  ;;  %s265_s8 = scalar_lea.vmem %s4848_s5, %s5069_s22 }
  0xee   : > { %v938_v26 = vpop.permute.xlu1 %937  ;;  %v952_v3 = vpop.permute.xlu2 %951 }
  0xef   : > { %1012 = vst.msk [vmem:[#allocation3 + $0x58] sm:$0xf] %vm989_vm10, %v938_v26  ;;  %v300_v26 = vld [vmem:[%s3034_s27 + $0xf0] sm:$0xff] }
  0xf0   : > { %1372 = vrot.lane.b32.xlu0 %v3635_v56, %s2933_s9  ;;  %1019 = vst.msk [vmem:[#allocation3 + $0x74] sm:$0xf] %vm989_vm10, %v952_v3  ;;  %v2920_v3 = vld [vmem:[%s4844_s1] ss:$0 sm:$0xff] }
  0xf2   : > { %v948_v46 = vpop.permute.xlu0 %947 }
  0xf3   : > { %1017 = vst.msk [vmem:[#allocation3 + $0x6c] sm:$0xf] %vm989_vm10, %v948_v46  ;;  %v336_v46 = vmul.f32 %v2920_v3, %v300_v26 }
  0xf4   : > { %1368 = vrot.lane.b32.xlu1 %v3586_v25, %s2933_s9  ;;  %1364 = vrot.lane.b32.xlu2 %v3597_v43, %s2933_s9 }
  0xf6   : > { %v944_v1 = vpop.permute.xlu1 %943  ;;  %v1200_v44 = vpop.permute.xlu2 %1199 }
  0xf7   : > { %1015 = vst.msk [vmem:[#allocation3 + $0x64] sm:$0xf] %vm989_vm10, %v944_v1  ;;  %v2921_v1 = vld [vmem:[%s4845_s2] ss:$0 sm:$0xff] }
  0xf8   : > { %1378 = vrot.lane.b32.xlu0 %v3673_v28, %s2933_s9  ;;  %1296 = vst.msk [vmem:[#allocation3] sm:$0xf] %vm1295_vm11, %v1200_v44  ;;  %v372_v44 = vadd.f32 %v2921_v1, %v336_v46 }
  0xfa   : > { %v954_v24 = vpop.permute.xlu0 %953  ;;  %vm404_vm12 = vcmp.ge.f32.partialorder %v372_v44, 0.0 }
  0xfb   : > { %1020 = vst.msk [vmem:[#allocation3 + $0x78] sm:$0xf] %vm989_vm10, %v954_v24 }
  0xfc   : > { %1374 = vrot.lane.b32.xlu1 %v3625_v8, %s2933_s9  ;;  %1370 = vrot.lane.b32.xlu2 %v3582_v5, %s2933_s9 }
  0xfe   : > { %v950_v43 = vpop.permute.xlu1 %949  ;;  %v1206_v45 = vpop.permute.xlu2 %1205 }
  0xff   : > { %1018 = vst.msk [vmem:[#allocation3 + $0x70] sm:$0xf] %vm989_vm10, %v950_v43 }
 0x100   : > { %1384 = vrot.lane.b32.xlu0 %v3713_v20, %s2933_s9  ;;  %1299 = vst.msk [vmem:[#allocation3 + $0xc] sm:$0xf] %vm1295_vm11, %v1206_v45  ;;  %v436_v45 = vmul.f32 0.2, %v372_v44 }
 0x102   : > { %v1202_v30 = vpop.permute.xlu0 %1201 }
 0x103   : > { %1297 = vst.msk [vmem:[#allocation3 + $0x4] sm:$0xf] %vm1295_vm11, %v1202_v30  ;;  %v468_v30 = vsel %vm404_vm12, %v372_v44, %v436_v45 }
 0x104   : > { %1380 = vrot.lane.b32.xlu1 %v3663_v2, %s2933_s9  ;;  %1376 = vrot.lane.b32.xlu2 %v3615_v51, %s2933_s9  ;;  %547 = vst.msk [vmem:[#allocation2 + $0x181] sm:$0xff] %vm470_vm0, %v468_v30 }
 0x106   : > { %v956_v35 = vpop.permute.xlu1 %955  ;;  %v1212_v53 = vpop.permute.xlu2 %1211 }
 0x107   : > { %1021 = vst.msk [vmem:[#allocation3 + $0x7c] sm:$0xf] %vm989_vm10, %v956_v35 }
 0x108   : > { %1390 = vrot.lane.b32.xlu0 %v3753_v61, %s2933_s9  ;;  %1302 = vst.msk [vmem:[#allocation3 + $0x18] sm:$0xf] %vm1295_vm11, %v1212_v53 }
 0x10a   : > { %v1208_v29 = vpop.permute.xlu0 %1207 }
 0x10b   : > { %1300 = vst.msk [vmem:[#allocation3 + $0x10] sm:$0xf] %vm1295_vm11, %v1208_v29 }
 0x10c   : > { %1386 = vrot.lane.b32.xlu1 %v3703_v57, %s2933_s9  ;;  %1382 = vrot.lane.b32.xlu2 %v3654_v12, %s2933_s9 }
 0x10e   : > { %v1204_v24 = vpop.permute.xlu1 %1203  ;;  %v1218_v43 = vpop.permute.xlu2 %1217 }
 0x10f   : > { %1298 = vst.msk [vmem:[#allocation3 + $0x8] sm:$0xf] %vm1295_vm11, %v1204_v24  ;;  %v301_v24 = vld [vmem:[%s3034_s27 + $0xf8] sm:$0xff] }
 0x110   : > { %1396 = vrot.lane.b32.xlu0 %v3794_v62, %s2933_s9  ;;  %1305 = vst.msk [vmem:[#allocation3 + $0x24] sm:$0xf] %vm1295_vm11, %v1218_v43  ;;  %v337_v43 = vmul.f32 %v2920_v3, %v301_v24  ;;  %v4046_v24 = vld [vmem:[#allocation2 + $0x180] sm:$0xff] }
 0x111   : > { %4993 = vst [vmem:[#allocation54_spill] sm:$0xff] %v4046_v24 }
 0x112   : > { %v1214_v35 = vpop.permute.xlu0 %1213  ;;  %v373_v45 = vadd.f32 %v2921_v1, %v337_v43 }
 0x113   : > { %1303 = vst.msk [vmem:[#allocation3 + $0x1c] sm:$0xf] %vm1295_vm11, %v1214_v35 }
 0x114   : > { %1392 = vrot.lane.b32.xlu1 %v3743_v38, %s2933_s9  ;;  %1388 = vrot.lane.b32.xlu2 %v3692_v42, %s2933_s9  ;;  %v437_v35 = vmul.f32 0.2, %v373_v45  ;;  %vm405_vm13 = vcmp.ge.f32.partialorder %v373_v45, 0.0 }
 0x116   : > { %v1210_v53 = vpop.permute.xlu1 %1209  ;;  %v1224_v29 = vpop.permute.xlu2 %1223 }
 0x117   : > { %1301 = vst.msk [vmem:[#allocation3 + $0x14] sm:$0xf] %vm1295_vm11, %v1210_v53  ;;  %v469_v53 = vsel %vm405_vm13, %v373_v45, %v437_v35 }
 0x118   : > { %1402 = vrot.lane.b32.xlu0 %v3834_v9, %s2933_s9  ;;  %1308 = vst.msk [vmem:[#allocation3 + $0x30] sm:$0xf] %vm1295_vm11, %v1224_v29 }
 0x119   : > { %548 = vst.msk [vmem:[#allocation2 + $0x189] sm:$0xff] %vm470_vm0, %v469_v53 }
 0x11a   : > { %v1220_v26 = vpop.permute.xlu0 %1219 }
 0x11b   : > { %1306 = vst.msk [vmem:[#allocation3 + $0x28] sm:$0xf] %vm1295_vm11, %v1220_v26 }
 0x11c   : > { %1398 = vrot.lane.b32.xlu1 %v3784_v34, %s2933_s9  ;;  %1394 = vrot.lane.b32.xlu2 %v3733_v6, %s2933_s9 }
 0x11e   : > { %v1216_v46 = vpop.permute.xlu1 %1215  ;;  %v1230_v44 = vpop.permute.xlu2 %1229 }
 0x11f   : > { %1304 = vst.msk [vmem:[#allocation3 + $0x20] sm:$0xf] %vm1295_vm11, %v1216_v46 }
 0x120   : > { %1408 = vrot.lane.b32.xlu0 %v3875_v59, %s2933_s9  ;;  %1311 = vst.msk [vmem:[#allocation3 + $0x3c] sm:$0xf] %vm1295_vm11, %v1230_v44  ;;  %v4061_v53 = vld [vmem:[#allocation2 + $0x188] sm:$0xff]  ;;  %v5009_v59 = vld [vmem:[#allocation13_spill] sm:$0xff] }
 0x121   : > { %4995 = vst [vmem:[#allocation56_spill] sm:$0xff] %v4061_v53  ;;  %v1495_v6 = vrot.slane %v4061_v53, 1 }
 0x122   : > { %v1226_v30 = vpop.permute.xlu0 %1225 }
 0x123   : > { %1309 = vst.msk [vmem:[#allocation3 + $0x34] sm:$0xf] %vm1295_vm11, %v1226_v30  ;;  %v4053_v30 = vpack.c.bf16 %v4046_v24, %v4046_v24 }
 0x124   : > { %1404 = vrot.lane.b32.xlu1 %v3824_v15, %s2933_s9  ;;  %1400 = vrot.lane.b32.xlu2 %v3773_v48, %s2933_s9 }
 0x125   : > { %4994 = vst [vmem:[#allocation55_spill] sm:$0xff] %v4053_v30 }
 0x126   : > { %v1222_v29 = vpop.permute.xlu1 %1221  ;;  %v1236_v3 = vpop.permute.xlu2 %1235 }
 0x127   : > { %1307 = vst.msk [vmem:[#allocation3 + $0x2c] sm:$0xf] %vm1295_vm11, %v1222_v29 }
 0x128   : > { %1414 = vrot.lane.b32.xlu0 %v3915_v37, %s2933_s9  ;;  %1314 = vst.msk [vmem:[#allocation3 + $0x48] sm:$0xf] %vm1295_vm11, %v1236_v3 }
 0x12a   : > { %v1232_v1 = vpop.permute.xlu0 %1231 }
 0x12b   : > { %1312 = vst.msk [vmem:[#allocation3 + $0x40] sm:$0xf] %vm1295_vm11, %v1232_v1 }
 0x12c   : > { %1410 = vrot.lane.b32.xlu1 %v3865_v17, %s2933_s9  ;;  %1406 = vrot.lane.b32.xlu2 %v3814_v39, %s2933_s9 }
 0x12e   : > { %v1228_v26 = vpop.permute.xlu1 %1227  ;;  %v1242_v46 = vpop.permute.xlu2 %1241 }
 0x12f   : > { %1310 = vst.msk [vmem:[#allocation3 + $0x38] sm:$0xf] %vm1295_vm11, %v1228_v26  ;;  %v4997_v26 = vld [vmem:[#allocation5_spill] sm:$0xff] }
 0x130   : > { %1420 = vrot.lane.b32.xlu0 %v3939_v23, %s2933_s9  ;;  %1317 = vst.msk [vmem:[#allocation3 + $0x54] sm:$0xf] %vm1295_vm11, %v1242_v46 }
 0x132   : > { %v1238_v44 = vpop.permute.xlu0 %1237 }
 0x133   : > { %1315 = vst.msk [vmem:[#allocation3 + $0x4c] sm:$0xf] %vm1295_vm11, %v1238_v44 }
 0x134   : > { %1416 = vrot.lane.b32.xlu1 %v3905_v11, %s2933_s9  ;;  %1412 = vrot.lane.b32.xlu2 %v3854_v21, %s2933_s9 }
 0x136   : > { %v1234_v43 = vpop.permute.xlu1 %1233  ;;  %v1248_v45 = vpop.permute.xlu2 %1247 }
 0x137   : > { %1313 = vst.msk [vmem:[#allocation3 + $0x44] sm:$0xf] %vm1295_vm11, %v1234_v43  ;;  %v4998_v43 = vld [vmem:[#allocation10_spill] sm:$0xff] }
 0x138   : > { %1505 = vrot.lane.b32.xlu0 %v3200_v55, %s2934_s14  ;;  %1320 = vst.msk [vmem:[#allocation3 + $0x60] sm:$0xf] %vm1295_vm11, %v1248_v45  ;;  %v4069_v55 = vpack.c.bf16 %v4061_v53, %v4061_v53 }
 0x13a   : > { %v1244_v35 = vpop.permute.xlu0 %1243  ;;  %4996 = vst [vmem:[#allocation57_spill] sm:$0xff] %v4069_v55 }
 0x13b   : > { %1318 = vst.msk [vmem:[#allocation3 + $0x58] sm:$0xf] %vm1295_vm11, %v1244_v35  ;;  %v4999_v35 = vld [vmem:[#allocation4_spill] sm:$0xff] }
 0x13c   : > { %1422 = vrot.lane.b32.xlu1 %v4053_v30, %s2933_s9  ;;  %1418 = vrot.lane.b32.xlu2 %v3895_v52, %s2933_s9 }
 0x13e   : > { %v1240_v29 = vpop.permute.xlu1 %1239  ;;  %v1254_v3 = vpop.permute.xlu2 %1253 }
 0x13f   : > { %1316 = vst.msk [vmem:[#allocation3 + $0x50] sm:$0xf] %vm1295_vm11, %v1240_v29  ;;  %v5000_v29 = vld [vmem:[#allocation6_spill] sm:$0xff] }
 0x140   : > { %1511 = vrot.lane.b32.xlu0 %v3287_v54, %s2934_s14  ;;  %1323 = vst.msk [vmem:[#allocation3 + $0x6c] sm:$0xf] %vm1295_vm11, %v1254_v3 }
 0x142   : > { %v1250_v1 = vpop.permute.xlu0 %1249 }
 0x143   : > { %1321 = vst.msk [vmem:[#allocation3 + $0x64] sm:$0xf] %vm1295_vm11, %v1250_v1 }
 0x144   : > { %1507 = vrot.lane.b32.xlu1 %v4997_v26, %s2934_s14  ;;  %1424 = vrot.lane.b32.xlu2 %v4069_v55, %s2933_s9  ;;  %v5001_v26 = vld [vmem:[#allocation14_spill] sm:$0xff] }
 0x146   : > { %v1246_v46 = vpop.permute.xlu1 %1245  ;;  %v1260_v44 = vpop.permute.xlu2 %1259 }
 0x147   : > { %1319 = vst.msk [vmem:[#allocation3 + $0x5c] sm:$0xf] %vm1295_vm11, %v1246_v46 }
 0x148   : > { %1517 = vrot.lane.b32.xlu0 %v4998_v43, %s2934_s14  ;;  %1326 = vst.msk [vmem:[#allocation3 + $0x78] sm:$0xf] %vm1295_vm11, %v1260_v44  ;;  %v5002_v44 = vld [vmem:[#allocation7_spill] sm:$0xff] }
 0x14a   : > { %v1256_v45 = vpop.permute.xlu0 %1255 }
 0x14b   : > { %1324 = vst.msk [vmem:[#allocation3 + $0x70] sm:$0xf] %vm1295_vm11, %v1256_v45  ;;  %v5003_v45 = vld [vmem:[#allocation8_spill] sm:$0xff] }
 0x14c   : > { %1513 = vrot.lane.b32.xlu1 %v4999_v35, %s2934_s14  ;;  %1509 = vrot.lane.b32.xlu2 %v5000_v29, %s2934_s14 }
 0x14e   : > { %v1252_v3 = vpop.permute.xlu1 %1251  ;;  %v1365_v1 = vpop.permute.xlu2 %1364 }
 0x14f   : > { %1322 = vst.msk [vmem:[#allocation3 + $0x68] sm:$0xf] %vm1295_vm11, %v1252_v3  ;;  %v5004_v3 = vld [vmem:[#allocation17_spill] sm:$0xff] }
 0x150   : > { %1523 = vrot.lane.b32.xlu0 %v5001_v26, %s2934_s14  ;;  %1460 = vst.msk [vmem:[#allocation3 + $0x4] sm:$0xf] %vm1458_vm14, %v1365_v1  ;;  %v5005_v1 = vld [vmem:[#allocation9_spill] sm:$0xff]  ;;  %v4153_v26 = vld [vmem:[#allocation2 + $0x190] sm:$0x3] }
 0x151   : > { %5022 = vst [vmem:[#allocation10_spill] sm:$0xff] %v4153_v26 }
 0x152   : > { %v1262_v46 = vpop.permute.xlu0 %1261 }
 0x153   : > { %1327 = vst.msk [vmem:[#allocation3 + $0x7c] sm:$0xf] %vm1295_vm11, %v1262_v46  ;;  %v5006_v46 = vld [vmem:[#allocation11_spill] sm:$0xff] }
 0x154   : > { %1519 = vrot.lane.b32.xlu1 %v5002_v44, %s2934_s14  ;;  %1515 = vrot.lane.b32.xlu2 %v5003_v45, %s2934_s14 }
 0x156   : > { %v1258_v55 = vpop.permute.xlu1 %1257  ;;  %v1371_v17 = vpop.permute.xlu2 %1370 }
 0x157   : > { %1325 = vst.msk [vmem:[#allocation3 + $0x74] sm:$0xf] %vm1295_vm11, %v1258_v55  ;;  %v5007_v55 = vld [vmem:[#allocation20_spill] sm:$0xff] }
 0x158   : > { %1529 = vrot.lane.b32.xlu0 %v5004_v3, %s2934_s14  ;;  %1463 = vst.msk [vmem:[#allocation3 + $0x10] sm:$0xf] %vm1458_vm14, %v1371_v17  ;;  %v1494_v17 = vrot.slane %v4046_v24, 1  ;;  %v5012_v24 = vld [vmem:[#allocation16_spill] sm:$0xff] }
 0x15a   : > { %v1367_v30 = vpop.permute.xlu0 %1366 }
 0x15b   : > { %1461 = vst.msk [vmem:[#allocation3 + $0x8] sm:$0xf] %vm1458_vm14, %v1367_v30 }
 0x15c   : > { %1525 = vrot.lane.b32.xlu1 %v5005_v1, %s2934_s14  ;;  %1521 = vrot.lane.b32.xlu2 %v5006_v46, %s2934_s14 }
 0x15e   : > { %v1363_v21 = vpop.permute.xlu1 %1362  ;;  %v1377_v62 = vpop.permute.xlu2 %1376 }
 0x15f   : > { %1459 = vst.msk [vmem:[#allocation3] sm:$0xf] %vm1458_vm14, %v1363_v21  ;;  %v1496_v21 = vsel %vm716_vm2, %v1494_v17, %v1495_v6 }
 0x160   : > { %1535 = vrot.lane.b32.xlu0 %v5007_v55, %s2934_s14  ;;  %1466 = vst.msk [vmem:[#allocation3 + $0x1c] sm:$0xf] %vm1458_vm14, %v1377_v62  ;;  %v5010_v62 = vld [vmem:[#allocation23_spill] sm:$0xff] }
 0x162   : > { %v1373_v30 = vpop.permute.xlu0 %1372 }
 0x163   : > { %1464 = vst.msk [vmem:[#allocation3 + $0x14] sm:$0xf] %vm1458_vm14, %v1373_v30  ;;  %v5011_v30 = vld [vmem:[#allocation15_spill] sm:$0xff] }
 0x164   : > { %1531 = vrot.lane.b32.xlu1 %v5008_v27, %s2934_s14  ;;  %1527 = vrot.lane.b32.xlu2 %v5009_v59, %s2934_s14 }
 0x166   : > { %v1369_v23 = vpop.permute.xlu1 %1368  ;;  %v1383_v39 = vpop.permute.xlu2 %1382 }
 0x167   : > { %1462 = vst.msk [vmem:[#allocation3 + $0xc] sm:$0xf] %vm1458_vm14, %v1369_v23  ;;  %v5013_v23 = vld [vmem:[#allocation26_spill] sm:$0xff] }
 0x168   : > { %1541 = vrot.lane.b32.xlu0 %v5010_v62, %s2934_s14  ;;  %1469 = vst.msk [vmem:[#allocation3 + $0x28] sm:$0xf] %vm1458_vm14, %v1383_v39  ;;  %v5014_v39 = vld [vmem:[#allocation18_spill] sm:$0xff] }
 0x16a   : > { %v1379_v53 = vpop.permute.xlu0 %1378 }
 0x16b   : > { %1467 = vst.msk [vmem:[#allocation3 + $0x20] sm:$0xf] %vm1458_vm14, %v1379_v53  ;;  %v5015_v53 = vld [vmem:[#allocation19_spill] sm:$0xff] }
 0x16c   : > { %1537 = vrot.lane.b32.xlu1 %v5011_v30, %s2934_s14  ;;  %1533 = vrot.lane.b32.xlu2 %v5012_v24, %s2934_s14 }
 0x16e   : > { %v1375_v52 = vpop.permute.xlu1 %1374  ;;  %v1389_v17 = vpop.permute.xlu2 %1388 }
 0x16f   : > { %1465 = vst.msk [vmem:[#allocation3 + $0x18] sm:$0xf] %vm1458_vm14, %v1375_v52  ;;  %v5016_v52 = vld [vmem:[#allocation29_spill] sm:$0xff] }
 0x170   : > { %1547 = vrot.lane.b32.xlu0 %v5013_v23, %s2934_s14  ;;  %1472 = vst.msk [vmem:[#allocation3 + $0x34] sm:$0xf] %vm1458_vm14, %v1389_v17  ;;  %v5018_v17 = vld [vmem:[#allocation22_spill] sm:$0xff] }
 0x172   : > { %v1385_v55 = vpop.permute.xlu0 %1384 }
 0x173   : > { %1470 = vst.msk [vmem:[#allocation3 + $0x2c] sm:$0xf] %vm1458_vm14, %v1385_v55  ;;  %v5017_v55 = vld [vmem:[#allocation21_spill] sm:$0xff] }
 0x174   : > { %1543 = vrot.lane.b32.xlu1 %v5014_v39, %s2934_s14  ;;  %1539 = vrot.lane.b32.xlu2 %v5015_v53, %s2934_s14 }
 0x176   : > { %v1381_v30 = vpop.permute.xlu1 %1380  ;;  %v1395_v46 = vpop.permute.xlu2 %1394 }
 0x177   : > { %1468 = vst.msk [vmem:[#allocation3 + $0x24] sm:$0xf] %vm1458_vm14, %v1381_v30 }
 0x178   : > { %1553 = vrot.lane.b32.xlu0 %v5016_v52, %s2934_s14  ;;  %1475 = vst.msk [vmem:[#allocation3 + $0x40] sm:$0xf] %vm1458_vm14, %v1395_v46  ;;  %v4149_v46 = vpack.c.bf16 %v1496_v21, %v1496_v21  ;;  %v5021_v52 = vld [vmem:[#allocation25_spill] sm:$0xff]  ;;  %v5023_v21 = vld [vmem:[#allocation27_spill] sm:$0xff] }
 0x17a   : > { %v1391_v24 = vpop.permute.xlu0 %1390  ;;  %5020 = vst [vmem:[#allocation5_spill] sm:$0xff] %v4149_v46 }
 0x17b   : > { %1473 = vst.msk [vmem:[#allocation3 + $0x38] sm:$0xf] %vm1458_vm14, %v1391_v24  ;;  %v5019_v24 = vld [vmem:[#allocation24_spill] sm:$0xff] }
 0x17c   : > { %1549 = vrot.lane.b32.xlu1 %v5017_v55, %s2934_s14  ;;  %1545 = vrot.lane.b32.xlu2 %v5018_v17, %s2934_s14 }
 0x17e   : > { %v1387_v2 = vpop.permute.xlu1 %1386  ;;  %v1401_v53 = vpop.permute.xlu2 %1400 }
 0x17f   : > { %1471 = vst.msk [vmem:[#allocation3 + $0x30] sm:$0xf] %vm1458_vm14, %v1387_v2  ;;  %v1497_v2 = vrot.slane %v4153_v26, 1 }
 0x180   : > { %1559 = vrot.lane.b32.xlu0 %v3542_v22, %s2934_s14  ;;  %1478 = vst.msk [vmem:[#allocation3 + $0x4c] sm:$0xf] %vm1458_vm14, %v1401_v53 }
 0x182   : > { %v1397_v30 = vpop.permute.xlu0 %1396 }
 0x183   : > { %1476 = vst.msk [vmem:[#allocation3 + $0x44] sm:$0xf] %vm1458_vm14, %v1397_v30  ;;  %v5024_v30 = vld [vmem:[#allocation28_spill] sm:$0xff] }
 0x184   : > { %1555 = vrot.lane.b32.xlu1 %v5019_v24, %s2934_s14  ;;  %1551 = vrot.lane.b32.xlu2 %v5021_v52, %s2934_s14  ;;  %v1498_v24 = vsel %vm716_vm2, %v1495_v6, %v1497_v2 }
 0x186   : > { %v1393_v55 = vpop.permute.xlu1 %1392  ;;  %v1407_v38 = vpop.permute.xlu2 %1406 }
 0x187   : > { %1474 = vst.msk [vmem:[#allocation3 + $0x3c] sm:$0xf] %vm1458_vm14, %v1393_v55 }
 0x188   : > { %1565 = vrot.lane.b32.xlu0 %v4149_v46, %s2934_s14  ;;  %1481 = vst.msk [vmem:[#allocation3 + $0x58] sm:$0xf] %vm1458_vm14, %v1407_v38  ;;  %v4169_v38 = vpack.c.bf16 %v1498_v24, %v1498_v24 }
 0x18a   : > { %v1403_v53 = vpop.permute.xlu0 %1402  ;;  %5025 = vst [vmem:[#allocation4_spill] sm:$0xff] %v4169_v38 }
 0x18b   : > { %1479 = vst.msk [vmem:[#allocation3 + $0x50] sm:$0xf] %vm1458_vm14, %v1403_v53 }
 0x18c   : > { %1561 = vrot.lane.b32.xlu1 %v5023_v21, %s2934_s14  ;;  %1557 = vrot.lane.b32.xlu2 %v5024_v30, %s2934_s14 }
 0x18e   : > { %v1399_v52 = vpop.permute.xlu1 %1398  ;;  %v1413_v55 = vpop.permute.xlu2 %1412 }
 0x18f   : > { %1477 = vst.msk [vmem:[#allocation3 + $0x48] sm:$0xf] %vm1458_vm14, %v1399_v52 }
 0x190   : > { %1647 = vrot.lane.b32.xlu0 %v3611_v41, %s2935_s15  ;;  %1484 = vst.msk [vmem:[#allocation3 + $0x64] sm:$0xf] %vm1458_vm14, %v1413_v55 }
 0x192   : > { %v1409_v53 = vpop.permute.xlu0 %1408 }
 0x193   : > { %1482 = vst.msk [vmem:[#allocation3 + $0x5c] sm:$0xf] %vm1458_vm14, %v1409_v53 }
 0x194   : > { %1567 = vrot.lane.b32.xlu1 %v4169_v38, %s2934_s14  ;;  %1563 = vrot.lane.b32.xlu2 %v3540_v58, %s2934_s14 }
 0x196   : > { %v1405_v6 = vpop.permute.xlu1 %1404  ;;  %v1419_v2 = vpop.permute.xlu2 %1418 }
 0x197   : > { %1480 = vst.msk [vmem:[#allocation3 + $0x54] sm:$0xf] %vm1458_vm14, %v1405_v6 }
 0x198   : > { %1653 = vrot.lane.b32.xlu0 %v3650_v10, %s2935_s15  ;;  %1487 = vst.msk [vmem:[#allocation3 + $0x70] sm:$0xf] %vm1458_vm14, %v1419_v2  ;;  %v5026_v2 = vld [vmem:[#allocation31_spill] sm:$0xff] }
 0x19a   : > { %v1415_v41 = vpop.permute.xlu0 %1414 }
 0x19b   : > { %1485 = vst.msk [vmem:[#allocation3 + $0x68] sm:$0xf] %vm1458_vm14, %v1415_v41  ;;  %v5027_v41 = vld [vmem:[#allocation32_spill] sm:$0xff] }
 0x19c   : > { %1649 = vrot.lane.b32.xlu1 %v3557_v7, %s2935_s15  ;;  %1645 = vrot.lane.b32.xlu2 %v3575_v16, %s2935_s15 }
 0x19e   : > { %v1411_v52 = vpop.permute.xlu1 %1410  ;;  %v1425_v24 = vpop.permute.xlu2 %1424 }
 0x19f   : > { %1483 = vst.msk [vmem:[#allocation3 + $0x60] sm:$0xf] %vm1458_vm14, %v1411_v52 }
 0x1a0   : > { %1659 = vrot.lane.b32.xlu0 %v3688_v0, %s2935_s15  ;;  %1490 = vst.msk [vmem:[#allocation3 + $0x7c] sm:$0xf] %vm1458_vm14, %v1425_v24 }
 0x1a2   : > { %v1421_v55 = vpop.permute.xlu0 %1420 }
 0x1a3   : > { %1488 = vst.msk [vmem:[#allocation3 + $0x74] sm:$0xf] %vm1458_vm14, %v1421_v55 }
 0x1a4   : > { %1655 = vrot.lane.b32.xlu1 %v3590_v14, %s2935_s15  ;;  %1651 = vrot.lane.b32.xlu2 %v3609_v19, %s2935_s15 }
 0x1a6   : > { %v1417_v53 = vpop.permute.xlu1 %1416  ;;  %v1510_v16 = vpop.permute.xlu2 %1509 }
 0x1a7   : > { %1486 = vst.msk [vmem:[#allocation3 + $0x6c] sm:$0xf] %vm1458_vm14, %v1417_v53  ;;  %v5028_v53 = vld [vmem:[#allocation34_spill] sm:$0xff] }
 0x1a8   : > { %1665 = vrot.lane.b32.xlu0 %v3729_v33, %s2935_s15  ;;  %1604 = vst.msk [vmem:[#allocation3 + $0x8] sm:$0xf] %vm1601_vm15, %v1510_v16  ;;  %v5029_v16 = vld [vmem:[#allocation35_spill] sm:$0xff] }
 0x1aa   : > { %v1506_v6 = vpop.permute.xlu0 %1505 }
 0x1ab   : > { %1602 = vst.msk [vmem:[#allocation3] sm:$0xf] %vm1601_vm15, %v1506_v6 }
 0x1ac   : > { %1661 = vrot.lane.b32.xlu1 %v5026_v2, %s2935_s15  ;;  %1657 = vrot.lane.b32.xlu2 %v5027_v41, %s2935_s15 }
 0x1ae   : > { %v1423_v52 = vpop.permute.xlu1 %1422  ;;  %v1516_v24 = vpop.permute.xlu2 %1515 }
 0x1af   : > { %1489 = vst.msk [vmem:[#allocation3 + $0x78] sm:$0xf] %vm1458_vm14, %v1423_v52 }
 0x1b0   : > { %1671 = vrot.lane.b32.xlu0 %v3769_v32, %s2935_s15  ;;  %1607 = vst.msk [vmem:[#allocation3 + $0x14] sm:$0xf] %vm1601_vm15, %v1516_v24  ;;  %v5030_v24 = vld [vmem:[#allocation36_spill] sm:$0xff] }
 0x1b2   : > { %v1512_v55 = vpop.permute.xlu0 %1511 }
 0x1b3   : > { %1605 = vst.msk [vmem:[#allocation3 + $0xc] sm:$0xf] %vm1601_vm15, %v1512_v55  ;;  %v5031_v55 = vld [vmem:[#allocation37_spill] sm:$0xff] }
 0x1b4   : > { %1667 = vrot.lane.b32.xlu1 %v5028_v53, %s2935_s15  ;;  %1663 = vrot.lane.b32.xlu2 %v5029_v16, %s2935_s15 }
 0x1b6   : > { %v1508_v6 = vpop.permute.xlu1 %1507  ;;  %v1522_v46 = vpop.permute.xlu2 %1521 }
 0x1b7   : > { %1603 = vst.msk [vmem:[#allocation3 + $0x4] sm:$0xf] %vm1601_vm15, %v1508_v6 }
 0x1b8   : > { %1677 = vrot.lane.b32.xlu0 %v3810_v40, %s2935_s15  ;;  %1610 = vst.msk [vmem:[#allocation3 + $0x20] sm:$0xf] %vm1601_vm15, %v1522_v46  ;;  %v5032_v46 = vld [vmem:[#allocation41_spill] sm:$0xff] }
 0x1ba   : > { %v1518_v52 = vpop.permute.xlu0 %1517 }
 0x1bb   : > { %1608 = vst.msk [vmem:[#allocation3 + $0x18] sm:$0xf] %vm1601_vm15, %v1518_v52 }
 0x1bc   : > { %1673 = vrot.lane.b32.xlu1 %v5030_v24, %s2935_s15  ;;  %1669 = vrot.lane.b32.xlu2 %v5031_v55, %s2935_s15 }
 0x1be   : > { %v1514_v38 = vpop.permute.xlu1 %1513  ;;  %v1528_v26 = vpop.permute.xlu2 %1527 }
 0x1bf   : > { %1606 = vst.msk [vmem:[#allocation3 + $0x10] sm:$0xf] %vm1601_vm15, %v1514_v38 }
 0x1c0   : > { %1683 = vrot.lane.b32.xlu0 %v3850_v49, %s2935_s15  ;;  %1613 = vst.msk [vmem:[#allocation3 + $0x2c] sm:$0xf] %vm1601_vm15, %v1528_v26  ;;  %v5033_v26 = vld [vmem:[#allocation42_spill] sm:$0xff] }
 0x1c2   : > { %v1524_v6 = vpop.permute.xlu0 %1523 }
 0x1c3   : > { %1611 = vst.msk [vmem:[#allocation3 + $0x24] sm:$0xf] %vm1601_vm15, %v1524_v6  ;;  %v5034_v6 = vld [vmem:[#allocation44_spill] sm:$0xff] }
 0x1c4   : > { %1679 = vrot.lane.b32.xlu1 %v3747_v60, %s2935_s15  ;;  %1675 = vrot.lane.b32.xlu2 %v5032_v46, %s2935_s15 }
 0x1c6   : > { %v1520_v52 = vpop.permute.xlu1 %1519  ;;  %v1534_v40 = vpop.permute.xlu2 %1533 }
 0x1c7   : > { %1609 = vst.msk [vmem:[#allocation3 + $0x1c] sm:$0xf] %vm1601_vm15, %v1520_v52 }
 0x1c8   : > { %1689 = vrot.lane.b32.xlu0 %v3891_v63, %s2935_s15  ;;  %1616 = vst.msk [vmem:[#allocation3 + $0x38] sm:$0xf] %vm1601_vm15, %v1534_v40  ;;  %v5035_v40 = vld [vmem:[#allocation47_spill] sm:$0xff] }
 0x1ca   : > { %v1530_v38 = vpop.permute.xlu0 %1529 }
 0x1cb   : > { %1614 = vst.msk [vmem:[#allocation3 + $0x30] sm:$0xf] %vm1601_vm15, %v1530_v38 }
 0x1cc   : > { %1685 = vrot.lane.b32.xlu1 %v5033_v26, %s2935_s15  ;;  %1681 = vrot.lane.b32.xlu2 %v5034_v6, %s2935_s15 }
 0x1ce   : > { %v1526_v60 = vpop.permute.xlu1 %1525  ;;  %v1540_v58 = vpop.permute.xlu2 %1539 }
 0x1cf   : > { %1612 = vst.msk [vmem:[#allocation3 + $0x28] sm:$0xf] %vm1601_vm15, %v1526_v60 }
 0x1d0   : > { %1695 = vrot.lane.b32.xlu0 %v3929_v36, %s2935_s15  ;;  %1619 = vst.msk [vmem:[#allocation3 + $0x44] sm:$0xf] %vm1601_vm15, %v1540_v58 }
 0x1d2   : > { %v1536_v52 = vpop.permute.xlu0 %1535 }
 0x1d3   : > { %1617 = vst.msk [vmem:[#allocation3 + $0x3c] sm:$0xf] %vm1601_vm15, %v1536_v52 }
 0x1d4   : > { %1691 = vrot.lane.b32.xlu1 %v3828_v31, %s2935_s15  ;;  %1687 = vrot.lane.b32.xlu2 %v5035_v40, %s2935_s15 }
 0x1d6   : > { %v1532_v38 = vpop.permute.xlu1 %1531  ;;  %v1546_v21 = vpop.permute.xlu2 %1545 }
 0x1d7   : > { %1615 = vst.msk [vmem:[#allocation3 + $0x34] sm:$0xf] %vm1601_vm15, %v1532_v38 }
 0x1d8   : > { %1701 = vrot.lane.b32.xlu0 %v3948_v50, %s2935_s15  ;;  %1622 = vst.msk [vmem:[#allocation3 + $0x50] sm:$0xf] %vm1601_vm15, %v1546_v21 }
 0x1da   : > { %v1542_v60 = vpop.permute.xlu0 %1541 }
 0x1db   : > { %1620 = vst.msk [vmem:[#allocation3 + $0x48] sm:$0xf] %vm1601_vm15, %v1542_v60 }
 0x1dc   : > { %1697 = vrot.lane.b32.xlu1 %v3869_v47, %s2935_s15  ;;  %1693 = vrot.lane.b32.xlu2 %v3888_v4, %s2935_s15 }
 0x1de   : > { %v1538_v58 = vpop.permute.xlu1 %1537  ;;  %v1552_v52 = vpop.permute.xlu2 %1551 }
 0x1df   : > { %1618 = vst.msk [vmem:[#allocation3 + $0x40] sm:$0xf] %vm1601_vm15, %v1538_v58 }
 0x1e0   : > { %1921 = vrot.lane.b32.xlu0 %v5000_v29, %s2936_s16  ;;  %1625 = vst.msk [vmem:[#allocation3 + $0x5c] sm:$0xf] %vm1601_vm15, %v1552_v52 }
 0x1e2   : > { %v1548_v21 = vpop.permute.xlu0 %1547 }
 0x1e3   : > { %1623 = vst.msk [vmem:[#allocation3 + $0x54] sm:$0xf] %vm1601_vm15, %v1548_v21 }
 0x1e4   : > { %1778 = vrot.lane.b32.xlu1 %v3553_v18, %s2937_s17  ;;  %1699 = vrot.lane.b32.xlu2 %v3926_v13, %s2935_s15 }
 0x1e6   : > { %v1544_v38 = vpop.permute.xlu1 %1543  ;;  %v1558_v60 = vpop.permute.xlu2 %1557 }
 0x1e7   : > { %1621 = vst.msk [vmem:[#allocation3 + $0x4c] sm:$0xf] %vm1601_vm15, %v1544_v38 }
 0x1e8   : > { %2063 = vrot.lane.b32.xlu0 %v3609_v19, %s2938_s18  ;;  %1628 = vst.msk [vmem:[#allocation3 + $0x68] sm:$0xf] %vm1601_vm15, %v1558_v60 }
 0x1ea   : > { %v1554_v29 = vpop.permute.xlu0 %1553 }
 0x1eb   : > { %1626 = vst.msk [vmem:[#allocation3 + $0x60] sm:$0xf] %vm1601_vm15, %v1554_v29 }
 0x1ec   : > { %1923 = vrot.lane.b32.xlu1 %v3287_v54, %s2936_s16  ;;  %1780 = vrot.lane.b32.xlu2 %v3586_v25, %s2937_s17 }
 0x1ee   : > { %v1550_v18 = vpop.permute.xlu1 %1549  ;;  %v1564_v58 = vpop.permute.xlu2 %1563 }
 0x1ef   : > { %1624 = vst.msk [vmem:[#allocation3 + $0x58] sm:$0xf] %vm1601_vm15, %v1550_v18 }
 0x1f0   : > { %1794 = vrot.lane.b32.xlu0 %v3654_v12, %s2937_s17  ;;  %1631 = vst.msk [vmem:[#allocation3 + $0x74] sm:$0xf] %vm1601_vm15, %v1564_v58 }
 0x1f2   : > { %v1560_v19 = vpop.permute.xlu0 %1559 }
 0x1f3   : > { %1629 = vst.msk [vmem:[#allocation3 + $0x6c] sm:$0xf] %vm1601_vm15, %v1560_v19  ;;  %v5036_v19 = vld [vmem:[#allocation14_spill] sm:$0xff] }
 0x1f4   : > { %1782 = vrot.lane.b32.xlu1 %v3582_v5, %s2937_s17  ;;  %2061 = vrot.lane.b32.xlu2 %v3557_v7, %s2938_s18 }
 0x1f6   : > { %v1556_v54 = vpop.permute.xlu1 %1555  ;;  %v1646_v25 = vpop.permute.xlu2 %1645 }
 0x1f7   : > { %1627 = vst.msk [vmem:[#allocation3 + $0x64] sm:$0xf] %vm1601_vm15, %v1556_v54 }
 0x1f8   : > { %1927 = vrot.lane.b32.xlu0 %v5003_v45, %s2936_s16  ;;  %1742 = vst.msk [vmem:[#allocation3] sm:$0xf] %vm1741_vm3, %v1646_v25 }
 0x1fa   : > { %v1566_v12 = vpop.permute.xlu0 %1565 }
 0x1fb   : > { %1632 = vst.msk [vmem:[#allocation3 + $0x78] sm:$0xf] %vm1601_vm15, %v1566_v12 }
 0x1fc   : > { %1796 = vrot.lane.b32.xlu1 %v3713_v20, %s2937_s17  ;;  %1784 = vrot.lane.b32.xlu2 %v3635_v56, %s2937_s17 }
 0x1fe   : > { %v1562_v7 = vpop.permute.xlu1 %1561  ;;  %v1652_v5 = vpop.permute.xlu2 %1651 }
 0x1ff   : > { %1630 = vst.msk [vmem:[#allocation3 + $0x70] sm:$0xf] %vm1601_vm15, %v1562_v7  ;;  %v5039_v7 = vld [vmem:[#allocation16_spill] sm:$0xff] }
 0x200   : > { %2065 = vrot.lane.b32.xlu0 %v3650_v10, %s2938_s18  ;;  %1745 = vst.msk [vmem:[#allocation3 + $0xc] sm:$0xf] %vm1741_vm3, %v1652_v5  ;;  %v5040_v5 = vld [vmem:[#allocation11_spill] sm:$0xff] }
 0x202   : > { %v1648_v45 = vpop.permute.xlu0 %1647 }
 0x203   : > { %1743 = vst.msk [vmem:[#allocation3 + $0x4] sm:$0xf] %vm1741_vm3, %v1648_v45 }
 0x204   : > { %1937 = vrot.lane.b32.xlu1 %v5005_v1, %s2936_s16  ;;  %1925 = vrot.lane.b32.xlu2 %v4999_v35, %s2936_s16 }
 0x206   : > { %v1568_v20 = vpop.permute.xlu1 %1567  ;;  %v1658_v56 = vpop.permute.xlu2 %1657 }
 0x207   : > { %1633 = vst.msk [vmem:[#allocation3 + $0x7c] sm:$0xf] %vm1601_vm15, %v1568_v20 }
 0x208   : > { %2079 = vrot.lane.b32.xlu0 %v5028_v53, %s2938_s18  ;;  %1748 = vst.msk [vmem:[#allocation3 + $0x18] sm:$0xf] %vm1741_vm3, %v1658_v56  ;;  %v5041_v56 = vld [vmem:[#allocation20_spill] sm:$0xff] }
 0x20a   : > { %v1654_v10 = vpop.permute.xlu0 %1653 }
 0x20b   : > { %1746 = vst.msk [vmem:[#allocation3 + $0x10] sm:$0xf] %vm1741_vm3, %v1654_v10 }
 0x20c   : > { %2067 = vrot.lane.b32.xlu1 %v3590_v14, %s2938_s18  ;;  %1939 = vrot.lane.b32.xlu2 %v5009_v59, %s2936_s16 }
 0x20e   : > { %v1650_v1 = vpop.permute.xlu1 %1649  ;;  %v1664_v35 = vpop.permute.xlu2 %1663 }
 0x20f   : > { %1744 = vst.msk [vmem:[#allocation3 + $0x8] sm:$0xf] %vm1741_vm3, %v1650_v1 }
 0x210   : > { %1953 = vrot.lane.b32.xlu0 %v5010_v62, %s2936_s16  ;;  %1751 = vst.msk [vmem:[#allocation3 + $0x24] sm:$0xf] %vm1741_vm3, %v1664_v35  ;;  %v5042_v35 = vld [vmem:[#allocation51_spill] sm:$0xff] }
 0x212   : > { %v1660_v53 = vpop.permute.xlu0 %1659 }
 0x213   : > { %1749 = vst.msk [vmem:[#allocation3 + $0x1c] sm:$0xf] %vm1741_vm3, %v1660_v53 }
 0x214   : > { %1810 = vrot.lane.b32.xlu1 %v3784_v34, %s2937_s17  ;;  %2077 = vrot.lane.b32.xlu2 %v3729_v33, %s2938_s18 }
 0x216   : > { %v1656_v14 = vpop.permute.xlu1 %1655  ;;  %v1670_v59 = vpop.permute.xlu2 %1669 }
 0x217   : > { %1747 = vst.msk [vmem:[#allocation3 + $0x14] sm:$0xf] %vm1741_vm3, %v1656_v14  ;;  %v5043_v14 = vld [vmem:[#allocation46_spill] sm:$0xff] }
 0x218   : > { %2095 = vrot.lane.b32.xlu0 %v3850_v49, %s2938_s18  ;;  %1754 = vst.msk [vmem:[#allocation3 + $0x30] sm:$0xf] %vm1741_vm3, %v1670_v59 }
 0x21a   : > { %v1666_v62 = vpop.permute.xlu0 %1665 }
 0x21b   : > { %1752 = vst.msk [vmem:[#allocation3 + $0x28] sm:$0xf] %vm1741_vm3, %v1666_v62 }
 0x21c   : > { %1955 = vrot.lane.b32.xlu1 %v5014_v39, %s2936_s16  ;;  %1812 = vrot.lane.b32.xlu2 %v3773_v48, %s2937_s17 }
 0x21e   : > { %v1662_v34 = vpop.permute.xlu1 %1661  ;;  %v1676_v33 = vpop.permute.xlu2 %1675 }
 0x21f   : > { %1750 = vst.msk [vmem:[#allocation3 + $0x20] sm:$0xf] %vm1741_vm3, %v1662_v34  ;;  %v5044_v34 = vld [vmem:[#allocation25_spill] sm:$0xff] }
 0x220   : > { %1798 = vrot.lane.b32.xlu0 %v3703_v57, %s2937_s17  ;;  %1757 = vst.msk [vmem:[#allocation3 + $0x3c] sm:$0xf] %vm1741_vm3, %v1676_v33 }
 0x222   : > { %v1672_v49 = vpop.permute.xlu0 %1671 }
 0x223   : > { %1755 = vst.msk [vmem:[#allocation3 + $0x34] sm:$0xf] %vm1741_vm3, %v1672_v49  ;;  %v5045_v49 = vld [vmem:[#allocation53_spill] sm:$0xff] }
 0x224   : > { %1786 = vrot.lane.b32.xlu1 %v3625_v8, %s2937_s17  ;;  %2093 = vrot.lane.b32.xlu2 %v5034_v6, %s2938_s18 }
 0x226   : > { %v1668_v39 = vpop.permute.xlu1 %1667  ;;  %v1682_v48 = vpop.permute.xlu2 %1681 }
 0x227   : > { %1753 = vst.msk [vmem:[#allocation3 + $0x2c] sm:$0xf] %vm1741_vm3, %v1668_v39 }
 0x228   : > { %1931 = vrot.lane.b32.xlu0 %v5002_v44, %s2936_s16  ;;  %1760 = vst.msk [vmem:[#allocation3 + $0x48] sm:$0xf] %vm1741_vm3, %v1682_v48 }
 0x22a   : > { %v1678_v57 = vpop.permute.xlu0 %1677 }
 0x22b   : > { %1758 = vst.msk [vmem:[#allocation3 + $0x40] sm:$0xf] %vm1741_vm3, %v1678_v57 }
 0x22c   : > { %1800 = vrot.lane.b32.xlu1 %v3692_v42, %s2937_s17  ;;  %1788 = vrot.lane.b32.xlu2 %v3615_v51, %s2937_s17 }
 0x22e   : > { %v1674_v8 = vpop.permute.xlu1 %1673  ;;  %v1688_v6 = vpop.permute.xlu2 %1687 }
 0x22f   : > { %1756 = vst.msk [vmem:[#allocation3 + $0x38] sm:$0xf] %vm1741_vm3, %v1674_v8  ;;  %v5047_v8 = vld [vmem:[#allocation27_spill] sm:$0xff] }
 0x230   : > { %2069 = vrot.lane.b32.xlu0 %v5027_v41, %s2938_s18  ;;  %1763 = vst.msk [vmem:[#allocation3 + $0x54] sm:$0xf] %vm1741_vm3, %v1688_v6  ;;  %v2226_v41 = vld [vmem:[%s4846_s3 + $0x10] sm:$0x3]  ;;  %v5048_v6 = vld [vmem:[#allocation21_spill] sm:$0xff] }
 0x231   : > { %v2316_v52 = vunpack.c.l.b16 %v2226_v41  ;;  %v5049_v41 = vld [vmem:[#allocation52_spill] sm:$0xff] }
 0x232   : > { %v1684_v44 = vpop.permute.xlu0 %1683 }
 0x233   : > { %1761 = vst.msk [vmem:[#allocation3 + $0x4c] sm:$0xf] %vm1741_vm3, %v1684_v44 }
 0x234   : > { %1941 = vrot.lane.b32.xlu1 %v5004_v3, %s2936_s16  ;;  %1929 = vrot.lane.b32.xlu2 %v4998_v43, %s2936_s16  ;;  %v2319_v3 = vpack.c.b16 %v2316_v52, %v2316_v52  ;;  %v5050_v52 = vld [vmem:[#allocation30_spill] sm:$0xff] }
 0x236   : > { %v1680_v42 = vpop.permute.xlu1 %1679  ;;  %v1694_v51 = vpop.permute.xlu2 %1693  ;;  %v2373_v43 = vsel %vm2371_vm4, %v2319_v3, 0 }
 0x237   : > { %1759 = vst.msk [vmem:[#allocation3 + $0x44] sm:$0xf] %vm1741_vm3, %v1680_v42  ;;  %2380 = vmatpush.bf16.msra.mxu0 %v2373_v43  ;;  %2892 = vmatpush.bf16.msra.mxu1 %v2373_v43 }
 0x238   : > { %2083 = vrot.lane.b32.xlu0 %v3769_v32, %s2938_s18  ;;  %1766 = vst.msk [vmem:[#allocation3 + $0x60] sm:$0xf] %vm1741_vm3, %v1694_v51  ;;  %2893 = vmatpush.bf16.msra.mxu2 %v2373_v43 }
 0x239   : > { %2894 = vmatpush.bf16.msra.mxu3 %v2373_v43  ;;  %v5051_v43 = vld [vmem:[#allocation15_spill] sm:$0xff] }
 0x23a   : > { %v1690_v21 = vpop.permute.xlu0 %1689 }
 0x23b   : > { %1764 = vst.msk [vmem:[#allocation3 + $0x58] sm:$0xf] %vm1741_vm3, %v1690_v21 }
 0x23c   : > { %2071 = vrot.lane.b32.xlu1 %v3688_v0, %s2938_s18  ;;  %1943 = vrot.lane.b32.xlu2 %v5008_v27, %s2936_s16  ;;  %v2891_v0 = vld [vmem:[%s4846_s3 + $0x8] sm:$0xff] }
 0x23d   : > { %2381 = vmatpush.bf16.msra.mxu0 %v2891_v0  ;;  %2895 = vmatpush.bf16.msra.mxu1 %v2891_v0 }
 0x23e   : > { %v1686_v32 = vpop.permute.xlu1 %1685  ;;  %v1700_v38 = vpop.permute.xlu2 %1699  ;;  %2896 = vmatpush.bf16.msra.mxu2 %v2891_v0  ;;  %2897 = vmatpush.bf16.msra.mxu3 %v2891_v0 }
 0x23f   : > { %1762 = vst.msk [vmem:[#allocation3 + $0x50] sm:$0xf] %vm1741_vm3, %v1686_v32 }
 0x240   : > { %1826 = vrot.lane.b32.xlu0 %v3915_v37, %s2937_s17  ;;  %1769 = vst.msk [vmem:[#allocation3 + $0x6c] sm:$0xf] %vm1741_vm3, %v1700_v38  ;;  %v2890_v37 = vld [vmem:[%s4846_s3] sm:$0xff] }
 0x241   : > { %2382 = vmatpush.bf16.msra.mxu0 %v2890_v37  ;;  %2898 = vmatpush.bf16.msra.mxu1 %v2890_v37  ;;  %v5052_v38 = vld [vmem:[#allocation38_spill] sm:$0xff] }
 0x242   : > { %v1696_v27 = vpop.permute.xlu0 %1695  ;;  %2899 = vmatpush.bf16.msra.mxu2 %v2890_v37  ;;  %2900 = vmatpush.bf16.msra.mxu3 %v2890_v37 }
 0x243   : > { %1767 = vst.msk [vmem:[#allocation3 + $0x64] sm:$0xf] %vm1741_vm3, %v1696_v27  ;;  %v5054_v27 = vld [vmem:[#allocation56_spill] sm:$0xff] }
 0x244   : > { %1814 = vrot.lane.b32.xlu1 %v3834_v9, %s2937_s17  ;;  %2081 = vrot.lane.b32.xlu2 %v5031_v55, %s2938_s18  ;;  %v1635_v37 = vrot.slane %v5054_v27, 2 }
 0x246   : > { %v1692_v60 = vpop.permute.xlu1 %1691  ;;  %v1781_v29 = vpop.permute.xlu2 %1780 }
 0x247   : > { %1765 = vst.msk [vmem:[#allocation3 + $0x5c] sm:$0xf] %vm1741_vm3, %v1692_v60 }
 0x248   : > { %1959 = vrot.lane.b32.xlu0 %v5013_v23, %s2936_s16  ;;  %1876 = vst.msk [vmem:[#allocation3 + $0x4] sm:$0xf] %vm1874_vm5, %v1781_v29 }
 0x24a   : > { %v1702_v9 = vpop.permute.xlu0 %1701 }
 0x24b   : > { %1770 = vst.msk [vmem:[#allocation3 + $0x70] sm:$0xf] %vm1741_vm3, %v1702_v9  ;;  %v5055_v9 = vld [vmem:[#allocation40_spill] sm:$0xff] }
 0x24c   : > { %1828 = vrot.lane.b32.xlu1 %v3905_v11, %s2937_s17  ;;  %1816 = vrot.lane.b32.xlu2 %v3824_v15, %s2937_s17 }
 0x24e   : > { %v1698_v55 = vpop.permute.xlu1 %1697  ;;  %v2062_v18 = vpop.permute.xlu2 %2061 }
 0x24f   : > { %1768 = vst.msk [vmem:[#allocation3 + $0x68] sm:$0xf] %vm1741_vm3, %v1698_v55 }
 0x250   : > { %2097 = vrot.lane.b32.xlu0 %v5033_v26, %s2938_s18 }
 0x252   : > { %v1922_v58 = vpop.permute.xlu0 %1921 }
 0x254   : > { %1969 = vrot.lane.b32.xlu1 %v5024_v30, %s2936_s16  ;;  %1957 = vrot.lane.b32.xlu2 %v5018_v17, %s2936_s16 }
 0x256   : > { %v1779_v23 = vpop.permute.xlu1 %1778  ;;  %v1785_v11 = vpop.permute.xlu2 %1784 }
 0x257   : > { %1875 = vst.msk [vmem:[#allocation3] sm:$0xf] %vm1874_vm5, %v1779_v23 }
 0x258   : > { %2111 = vrot.lane.b32.xlu0 %v3926_v13, %s2938_s18  ;;  %2018 = vst.msk [vmem:[#allocation3] sm:$0xf] %vm2017_vm6, %v1922_v58  ;;  %v5057_v58 = vld [vmem:[#allocation10_spill] sm:$0xff] }
 0x259   : > { %2158 = vst.msk [vmem:[#allocation3] sm:$0xf] %vm2157_vm7, %v2062_v18  ;;  %v1637_v23 = vrot.slane %v5057_v58, 2 }
 0x25a   : > { %v2064_v15 = vpop.permute.xlu0 %2063  ;;  %1878 = vst.msk [vmem:[#allocation3 + $0xc] sm:$0xf] %vm1874_vm5, %v1785_v11  ;;  %v5058_v11 = vld [vmem:[#allocation43_spill] sm:$0xff] }
 0x25c   : > { %2099 = vrot.lane.b32.xlu1 %v5035_v40, %s2938_s18  ;;  %1971 = vrot.lane.b32.xlu2 %v3542_v22, %s2936_s16 }
 0x25e   : > { %v1924_v17 = vpop.permute.xlu1 %1923  ;;  %v1926_v30 = vpop.permute.xlu2 %1925 }
 0x25f   : > { %2019 = vst.msk [vmem:[#allocation3 + $0x4] sm:$0xf] %vm2017_vm6, %v1924_v17 }
 0x260   : > { %2159 = vst.msk [vmem:[#allocation3 + $0x4] sm:$0xf] %vm2157_vm7, %v2064_v15  ;;  %1802 = vrot.lane.b32.xlu0 %v3753_v61, %s2937_s17 }
 0x262   : > { %v1795_v13 = vpop.permute.xlu0 %1794 }
 0x263   : > { %1883 = vst.msk [vmem:[#allocation3 + $0x20] sm:$0xf] %vm1874_vm5, %v1795_v13  ;;  %v1638_v13 = vsel %vm1022_vm8, %v1635_v37, %v1637_v23 }
 0x264   : > { %1790 = vrot.lane.b32.xlu1 %v3673_v28, %s2937_s17  ;;  %2109 = vrot.lane.b32.xlu2 %v3869_v47, %s2938_s18  ;;  %v5037_v28 = vld [vmem:[#allocation39_spill] sm:$0xff]  ;;  %v5038_v47 = vld [vmem:[#allocation33_spill] sm:$0xff] }
 0x266   : > { %v1783_v26 = vpop.permute.xlu1 %1782  ;;  %v1940_v22 = vpop.permute.xlu2 %1939 }
 0x267   : > { %1877 = vst.msk [vmem:[#allocation3 + $0x8] sm:$0xf] %vm1874_vm5, %v1783_v26  ;;  %v2874_v40 = vld [vmem:[#allocation3] sm:$0xff] }
 0x268   : > { %1935 = vrot.lane.b32.xlu0 %v5036_v19, %s2936_s16  ;;  %2020 = vst.msk [vmem:[#allocation3 + $0x8] sm:$0xf] %vm2017_vm6, %v1926_v30  ;;  %2854 = vmatmul.msk.bf16.vlgmr.msra.gmra.mxu0 %vm2322_vm9, %v2874_v40  ;;  %v5059_v30 = vld [vmem:[#allocation48_spill] sm:$0xff]  ;;  %v5060_v40 = vld [vmem:[#allocation45_spill] sm:$0xff] }
 0x26a   : > { %v1928_v61 = vpop.permute.xlu0 %1927 }
 0x26b   : > { %2021 = vst.msk [vmem:[#allocation3 + $0xc] sm:$0xf] %vm2017_vm6, %v1928_v61 }
 0x26c   : > { %1804 = vrot.lane.b32.xlu1 %v5037_v28, %s2937_s17  ;;  %1792 = vrot.lane.b32.xlu2 %v5038_v47, %s2937_s17  ;;  %v5061_v47 = vld [vmem:[#allocation29_spill] sm:$0xff] }
 0x26e   : > { %v1797_v54 = vpop.permute.xlu1 %1796  ;;  %v2078_v25 = vpop.permute.xlu2 %2077 }
 0x26f   : > { %1884 = vst.msk [vmem:[#allocation3 + $0x24] sm:$0xf] %vm1874_vm5, %v1797_v54 }
 0x270   : > { %2073 = vrot.lane.b32.xlu0 %v5026_v2, %s2938_s18  ;;  %2027 = vst.msk [vmem:[#allocation3 + $0x24] sm:$0xf] %vm2017_vm6, %v1940_v22 }
 0x272   : > { %v2066_v12 = vpop.permute.xlu0 %2065 }
 0x273   : > { %2160 = vst.msk [vmem:[#allocation3 + $0x8] sm:$0xf] %vm2157_vm7, %v2066_v12  ;;  %v5063_v12 = vld [vmem:[#allocation49_spill] sm:$0xff] }
 0x274   : > { %1945 = vrot.lane.b32.xlu1 %v5039_v7, %s2936_s16  ;;  %1933 = vrot.lane.b32.xlu2 %v5040_v5, %s2936_s16 }
 0x276   : > { %v1938_v45 = vpop.permute.xlu1 %1937  ;;  %v1813_v20 = vpop.permute.xlu2 %1812 }
 0x277   : > { %2026 = vst.msk [vmem:[#allocation3 + $0x20] sm:$0xf] %vm2017_vm6, %v1938_v45  ;;  %v5064_v45 = vld [vmem:[#allocation4_spill] sm:$0xff] }
 0x278   : > { %2087 = vrot.lane.b32.xlu0 %v5032_v46, %s2938_s18  ;;  %2166 = vst.msk [vmem:[#allocation3 + $0x20] sm:$0xf] %vm2157_vm7, %v2078_v25  ;;  %v5062_v25 = vld [vmem:[#allocation55_spill] sm:$0xff] }
 0x279   : > { %1892 = vst.msk [vmem:[#allocation3 + $0x44] sm:$0xf] %vm1874_vm5, %v1813_v20 }
 0x27a   : > { %v2080_v2 = vpop.permute.xlu0 %2079 }
 0x27b   : > { %2167 = vst.msk [vmem:[#allocation3 + $0x24] sm:$0xf] %vm2157_vm7, %v2080_v2  ;;  %v5065_v2 = vld [vmem:[#allocation24_spill] sm:$0xff] }
 0x27c   : > { %2075 = vrot.lane.b32.xlu1 %v5029_v16, %s2938_s18  ;;  %1947 = vrot.lane.b32.xlu2 %v5041_v56, %s2936_s16 }
 0x27e   : > { %v2068_v10 = vpop.permute.xlu1 %2067  ;;  %v2094_v1 = vpop.permute.xlu2 %2093 }
 0x27f   : > { %2161 = vst.msk [vmem:[#allocation3 + $0xc] sm:$0xf] %vm2157_vm7, %v2068_v10  ;;  %v5066_v10 = vld [vmem:[#allocation57_spill] sm:$0xff] }
 0x280   : > { %1830 = vrot.lane.b32.xlu0 %v5042_v35, %s2937_s17 }
 0x282   : > { %v1954_v46 = vpop.permute.xlu0 %1953  ;;  %v2878_v53 = vld [vmem:[#allocation3 + $0x20] sm:$0xff] }
 0x283   : > { %2858 = vmatmul.msk.bf16.vlgmr.msra.gmra.mxu1 %vm2322_vm9, %v2878_v53  ;;  %v600_v53 = vld [vmem:[#allocation2 + $0x198] sm:$0xff] }
 0x284   : > { %1818 = vrot.lane.b32.xlu1 %v5043_v14, %s2937_s17  ;;  %2085 = vrot.lane.b32.xlu2 %v5030_v24, %s2938_s18  ;;  %v5046_v24 = vld [vmem:[#allocation50_spill] sm:$0xff] }
 0x285   : > { %v601_v14 = vld [vmem:[#allocation2 + $0x1a0] sm:$0xff] }
 0x286   : > { %v1811_v16 = vpop.permute.xlu1 %1810  ;;  %v2875_v59 = vld [vmem:[#allocation3 + $0x8] sm:$0xff]  ;;  %v1789_v62 = vpop.permute.xlu2 %1788 }
 0x287   : > { %1891 = vst.msk [vmem:[#allocation3 + $0x40] sm:$0xf] %vm1874_vm5, %v1811_v16  ;;  %2855 = vmatmul.msk.bf16.gmra.mxu0 %vm2322_vm9, %v2875_v59  ;;  %v1642_v16 = vpack.c.bf16 %v1638_v13, %v1638_v13  ;;  %v5067_v59 = vld [vmem:[#allocation5_spill] sm:$0xff] }
 0x288   : > { %2034 = vst.msk [vmem:[#allocation3 + $0x40] sm:$0xf] %vm2017_vm6, %v1954_v46  ;;  %1963 = vrot.lane.b32.xlu0 %v5044_v34, %s2936_s16  ;;  %v1911_v34 = vrot.slane %v601_v14, 1 }
 0x289   : > { %2174 = vst.msk [vmem:[#allocation3 + $0x40] sm:$0xf] %vm2157_vm7, %v2094_v1 }
 0x28a   : > { %v2096_v33 = vpop.permute.xlu0 %2095  ;;  %1880 = vst.msk [vmem:[#allocation3 + $0x14] sm:$0xf] %vm1874_vm5, %v1789_v62  ;;  %v1910_v62 = vrot.slane %v600_v53, 1 }
 0x28c   : > { %1832 = vrot.lane.b32.xlu1 %v5045_v49, %s2937_s17  ;;  %1820 = vrot.lane.b32.xlu2 %v5046_v24, %s2937_s17  ;;  %v1912_v24 = vsel %vm716_vm2, %v1910_v62, %v1911_v34 }
 0x28e   : > { %v1956_v39 = vpop.permute.xlu1 %1955  ;;  %v1930_v48 = vpop.permute.xlu2 %1929 }
 0x28f   : > { %2035 = vst.msk [vmem:[#allocation3 + $0x44] sm:$0xf] %vm2017_vm6, %v1956_v39 }
 0x290   : > { %2175 = vst.msk [vmem:[#allocation3 + $0x44] sm:$0xf] %vm2157_vm7, %v2096_v33  ;;  %2101 = vrot.lane.b32.xlu0 %v3891_v63, %s2938_s18 }
 0x292   : > { %v1799_v57 = vpop.permute.xlu0 %1798 }
 0x293   : > { %1885 = vst.msk [vmem:[#allocation3 + $0x28] sm:$0xf] %vm1874_vm5, %v1799_v57  ;;  %v602_v57 = vld [vmem:[#allocation2 + $0x1a8] sm:$0x3] }
 0x294   : > { %1973 = vrot.lane.b32.xlu1 %v5047_v8, %s2936_s16  ;;  %1961 = vrot.lane.b32.xlu2 %v5048_v6, %s2936_s16  ;;  %v2051_v8 = vrot.slane %v601_v14, 2  ;;  %v2053_v6 = vrot.slane %v602_v57, 2 }
 0x296   : > { %v1787_v44 = vpop.permute.xlu1 %1786  ;;  %v1944_v42 = vpop.permute.xlu2 %1943 }
 0x297   : > { %1879 = vst.msk [vmem:[#allocation3 + $0x10] sm:$0xf] %vm1874_vm5, %v1787_v44  ;;  %v2882_v51 = vld [vmem:[#allocation3 + $0x40] sm:$0xff] }
 0x298   : > { %2115 = vrot.lane.b32.xlu0 %v5049_v41, %s2938_s18  ;;  %2022 = vst.msk [vmem:[#allocation3 + $0x10] sm:$0xf] %vm2017_vm6, %v1930_v48  ;;  %2862 = vmatmul.msk.bf16.vlgmr.msra.gmra.mxu2 %vm2322_vm9, %v2882_v51 }
 0x29a   : > { %v1932_v63 = vpop.permute.xlu0 %1931 }
 0x29b   : > { %2023 = vst.msk [vmem:[#allocation3 + $0x14] sm:$0xf] %vm2017_vm6, %v1932_v63  ;;  %v1913_v63 = vrot.slane %v602_v57, 1 }
 0x29c   : > { %2103 = vrot.lane.b32.xlu1 %v3828_v31, %s2938_s18  ;;  %1975 = vrot.lane.b32.xlu2 %v5050_v52, %s2936_s16  ;;  %v5053_v31 = vld [vmem:[#allocation54_spill] sm:$0xff]  ;;  %v2054_v52 = vsel %vm1022_vm8, %v2051_v8, %v2053_v6 }
 0x29d   : > { %v1634_v0 = vrot.slane %v5053_v31, 2  ;;  %v1775_v31 = vpack.c.bf16 %v601_v14, %v601_v14 }
 0x29e   : > { %v1801_v21 = vpop.permute.xlu1 %1800  ;;  %v2082_v3 = vpop.permute.xlu2 %2081 }
 0x29f   : > { %1886 = vst.msk [vmem:[#allocation3 + $0x2c] sm:$0xf] %vm1874_vm5, %v1801_v21  ;;  %v1636_v18 = vsel %vm1022_vm8, %v1634_v0, %v1635_v37  ;;  %v2050_v0 = vrot.slane %v600_v53, 2 }
 0x2a0   : > { %2029 = vst.msk [vmem:[#allocation3 + $0x2c] sm:$0xf] %vm2017_vm6, %v1944_v42  ;;  %1949 = vrot.lane.b32.xlu0 %v5051_v43, %s2936_s16  ;;  %v1641_v56 = vpack.c.bf16 %v1636_v18, %v1636_v18 }
 0x2a2   : > { %v2070_v32 = vpop.permute.xlu0 %2069 }
 0x2a3   : > { %2162 = vst.msk [vmem:[#allocation3 + $0x10] sm:$0xf] %vm2157_vm7, %v2070_v32 }
 0x2a4   : > { %1806 = vrot.lane.b32.xlu1 %v5052_v38, %s2937_s17  ;;  %2113 = vrot.lane.b32.xlu2 %v3948_v50, %s2938_s18  ;;  %v5056_v50 = vld [vmem:[#allocation19_spill] sm:$0xff] }
 0x2a6   : > { %v1942_v60 = vpop.permute.xlu1 %1941  ;;  %v1817_v29 = vpop.permute.xlu2 %1816 }
 0x2a7   : > { %2028 = vst.msk [vmem:[#allocation3 + $0x28] sm:$0xf] %vm2017_vm6, %v1942_v60 }
 0x2a8   : > { %2168 = vst.msk [vmem:[#allocation3 + $0x28] sm:$0xf] %vm2157_vm7, %v2082_v3  ;;  %2091 = vrot.lane.b32.xlu0 %v5055_v9, %s2938_s18  ;;  %v1914_v3 = vsel %vm716_vm2, %v1911_v34, %v1913_v63 }
 0x2a9   : > { %1894 = vst.msk [vmem:[#allocation3 + $0x4c] sm:$0xf] %vm1874_vm5, %v1817_v29  ;;  %v1918_v38 = vpack.c.bf16 %v1914_v3, %v1914_v3  ;;  %v2052_v29 = vsel %vm1022_vm8, %v2050_v0, %v2051_v8 }
 0x2aa   : > { %v2084_v55 = vpop.permute.xlu0 %2083 }
 0x2ab   : > { %2169 = vst.msk [vmem:[#allocation3 + $0x2c] sm:$0xf] %vm2157_vm7, %v2084_v55  ;;  %v2057_v55 = vpack.c.bf16 %v2052_v29, %v2052_v29 }
 0x2ac   : > { %1951 = vrot.lane.b32.xlu1 %v5056_v50, %s2936_s16  ;;  %1808 = vrot.lane.b32.xlu2 %v5058_v11, %s2937_s17 }
 0x2ae   : > { %v2072_v15 = vpop.permute.xlu1 %2071  ;;  %v1958_v17 = vpop.permute.xlu2 %1957 }
 0x2af   : > { %2163 = vst.msk [vmem:[#allocation3 + $0x14] sm:$0xf] %vm2157_vm7, %v2072_v15 }
 0x2b0   : > { %1824 = vrot.lane.b32.xlu0 %v5059_v30, %s2937_s17 }
 0x2b2   : > { %v1827_v26 = vpop.permute.xlu0 %1826  ;;  %v2879_v22 = vld [vmem:[#allocation3 + $0x28] sm:$0xff] }
 0x2b3   : > { %1899 = vst.msk [vmem:[#allocation3 + $0x60] sm:$0xf] %vm1874_vm5, %v1827_v26  ;;  %2859 = vmatmul.msk.bf16.gmra.mxu1 %vm2322_vm9, %v2879_v22 }
 0x2b4   : > { %1703 = vrot.lane.b32.xlu1 %v5049_v41, %s2935_s15  ;;  %2089 = vrot.lane.b32.xlu2 %v5060_v40, %s2938_s18  ;;  %v1774_v41 = vpack.c.bf16 %v600_v53, %v600_v53 }
 0x2b6   : > { %v1815_v19 = vpop.permute.xlu1 %1814  ;;  %v2876_v61 = vld [vmem:[#allocation3 + $0x10] sm:$0xff]  ;;  %v1972_v28 = vpop.permute.xlu2 %1971 }
 0x2b7   : > { %1893 = vst.msk [vmem:[#allocation3 + $0x48] sm:$0xf] %vm1874_vm5, %v1815_v19  ;;  %2856 = vmatmul.msk.bf16.gmra.mxu0 %vm2322_vm9, %v2876_v61 }
 0x2b8   : > { %2036 = vst.msk [vmem:[#allocation3 + $0x48] sm:$0xf] %vm2017_vm6, %v1958_v17  ;;  %1965 = vrot.lane.b32.xlu0 %v5061_v47, %s2936_s16 }
 0x2ba   : > { %v1960_v54 = vpop.permute.xlu0 %1959 }
 0x2bb   : > { %2037 = vst.msk [vmem:[#allocation3 + $0x4c] sm:$0xf] %vm2017_vm6, %v1960_v54 }
 0x2bc   : > { %1834 = vrot.lane.b32.xlu1 %v5062_v25, %s2937_s17  ;;  %1822 = vrot.lane.b32.xlu2 %v5063_v12, %s2937_s17 }
 0x2be   : > { %v1829_v7 = vpop.permute.xlu1 %1828  ;;  %v2110_v5 = vpop.permute.xlu2 %2109 }
 0x2bf   : > { %1900 = vst.msk [vmem:[#allocation3 + $0x64] sm:$0xf] %vm1874_vm5, %v1829_v7 }
 0x2c0   : > { %2043 = vst.msk [vmem:[#allocation3 + $0x64] sm:$0xf] %vm2017_vm6, %v1972_v28  ;;  %1979 = vrot.lane.b32.xlu0 %v5064_v45, %s2936_s16 }
 0x2c2   : > { %v2098_v20 = vpop.permute.xlu0 %2097 }
 0x2c3   : > { %2176 = vst.msk [vmem:[#allocation3 + $0x48] sm:$0xf] %vm2157_vm7, %v2098_v20 }
 0x2c4   : > { %1967 = vrot.lane.b32.xlu1 %v5065_v2, %s2936_s16  ;;  %1836 = vrot.lane.b32.xlu2 %v5066_v10, %s2937_s17 }
 0x2c6   : > { %v1970_v1 = vpop.permute.xlu1 %1969  ;;  %v1793_v35 = vpop.permute.xlu2 %1792 }
 0x2c7   : > { %2042 = vst.msk [vmem:[#allocation3 + $0x60] sm:$0xf] %vm2017_vm6, %v1970_v1 }
 0x2c8   : > { %2182 = vst.msk [vmem:[#allocation3 + $0x60] sm:$0xf] %vm2157_vm7, %v2110_v5  ;;  %2117 = vrot.lane.b32.xlu0 %v1641_v56, %s2938_s18 }
 0x2c9   : > { %1882 = vst.msk [vmem:[#allocation3 + $0x1c] sm:$0xf] %vm1874_vm5, %v1793_v35 }
 0x2ca   : > { %v2112_v46 = vpop.permute.xlu0 %2111 }
 0x2cb   : > { %2183 = vst.msk [vmem:[#allocation3 + $0x64] sm:$0xf] %vm2157_vm7, %v2112_v46 }
 0x2cc   : > { %2105 = vrot.lane.b32.xlu1 %v3888_v4, %s2938_s18  ;;  %1977 = vrot.lane.b32.xlu2 %v5067_v59, %s2936_s16  ;;  %v1917_v4 = vpack.c.bf16 %v1912_v24, %v1912_v24 }
 0x2ce   : > { %v2100_v33 = vpop.permute.xlu1 %2099  ;;  %v1934_v49 = vpop.permute.xlu2 %1933 }
 0x2cf   : > { %2177 = vst.msk [vmem:[#allocation3 + $0x4c] sm:$0xf] %vm2157_vm7, %v2100_v33 }
 0x2d0   : > { %1707 = vrot.lane.b32.xlu0 %v1642_v16, %s2935_s15 }
 0x2d2   : > { %v1803_v39 = vpop.permute.xlu0 %1802  ;;  %v2886_v48 = vld [vmem:[#allocation3 + $0x60] sm:$0xff] }
 0x2d3   : > { %1887 = vst.msk [vmem:[#allocation3 + $0x30] sm:$0xf] %vm1874_vm5, %v1803_v39  ;;  %2866 = vmatmul.msk.bf16.vlgmr.msra.gmra.mxu3 %vm2322_vm9, %v2886_v48 }
 0x2d4   : > { %2119 = vrot.lane.b32.xlu1 %v1642_v16, %s2938_s18  ;;  %2107 = vrot.lane.b32.xlu2 %v3929_v36, %s2938_s18  ;;  %v2058_v36 = vpack.c.bf16 %v2054_v52, %v2054_v52 }
 0x2d6   : > { %v1791_v44 = vpop.permute.xlu1 %1790  ;;  %v2883_v42 = vld [vmem:[#allocation3 + $0x48] sm:$0xff]  ;;  %v1948_v51 = vpop.permute.xlu2 %1947 }
 0x2d7   : > { %1881 = vst.msk [vmem:[#allocation3 + $0x18] sm:$0xf] %vm1874_vm5, %v1791_v44  ;;  %2863 = vmatmul.msk.bf16.gmra.mxu2 %vm2322_vm9, %v2883_v42 }
 0x2d8   : > { %2024 = vst.msk [vmem:[#allocation3 + $0x18] sm:$0xf] %vm2017_vm6, %v1934_v49  ;;  %1981 = vrot.lane.b32.xlu0 %v1917_v4, %s2936_s16 }
 0x2da   : > { %v1936_v21 = vpop.permute.xlu0 %1935 }
 0x2db   : > { %2025 = vst.msk [vmem:[#allocation3 + $0x1c] sm:$0xf] %vm2017_vm6, %v1936_v21 }
 0x2dc   : > { %1838 = vrot.lane.b32.xlu1 %v1774_v41, %s2937_s17  ;;  %1705 = vrot.lane.b32.xlu2 %v1641_v56, %s2935_s15 }
 0x2de   : > { %v1805_v43 = vpop.permute.xlu1 %1804  ;;  %v2086_v32 = vpop.permute.xlu2 %2085 }
 0x2df   : > { %1888 = vst.msk [vmem:[#allocation3 + $0x34] sm:$0xf] %vm1874_vm5, %v1805_v43 }
 0x2e0   : > { %2031 = vst.msk [vmem:[#allocation3 + $0x34] sm:$0xf] %vm2017_vm6, %v1948_v51  ;;  %2123 = vrot.lane.b32.xlu0 %v2058_v36, %s2938_s18 }
 0x2e2   : > { %v2074_v27 = vpop.permute.xlu0 %2073 }
 0x2e3   : > { %2164 = vst.msk [vmem:[#allocation3 + $0x18] sm:$0xf] %vm2157_vm7, %v2074_v27 }
 0x2e4   : > { %1983 = vrot.lane.b32.xlu1 %v1918_v38, %s2936_s16  ;;  %1840 = vrot.lane.b32.xlu2 %v1775_v31, %s2937_s17 }
 0x2e5   : > { %v2384_v60 = vpop.f32.mrf.mxu0 }
 0x2e6   : > { %v1946_v37 = vpop.permute.xlu1 %1945  ;;  %v1821_v9 = vpop.permute.xlu2 %1820  ;;  %2464 = vst.msk [vmem:[%s4574_s30] sm:$0xff] %vm470_vm0, %v2384_v60  ;;  %v2566_v50 = vmul.f32 %v2384_v60, %v2384_v60  ;;  %v2496_v11 = vsel %vm470_vm0, %v2384_v60, 0.0 }
 0x2e7   : > { %2030 = vst.msk [vmem:[#allocation3 + $0x30] sm:$0xf] %vm2017_vm6, %v1946_v37 }
 0x2e8   : > { %2170 = vst.msk [vmem:[#allocation3 + $0x30] sm:$0xf] %vm2157_vm7, %v2086_v32  ;;  %v2598_v26 = vsel %vm470_vm0, %v2566_v50, 0.0 }
 0x2e9   : > { %1896 = vst.msk [vmem:[#allocation3 + $0x54] sm:$0xf] %vm1874_vm5, %v1821_v9 }
 0x2ea   : > { %v2088_v18 = vpop.permute.xlu0 %2087 }
 0x2eb   : > { %2171 = vst.msk [vmem:[#allocation3 + $0x34] sm:$0xf] %vm2157_vm7, %v2088_v18 }
 0x2ec   : > { %2121 = vrot.lane.b32.xlu2 %v2057_v55, %s2938_s18 }
 0x2ed   : > { %v2386_v23 = vpop.f32.mrf.mxu0 }
 0x2ee   : > { %v2076_v58 = vpop.permute.xlu1 %2075  ;;  %v2497_v15 = vsel %vm470_vm0, %v2386_v23, 0.0  ;;  %v2567_v17 = vmul.f32 %v2386_v23, %v2386_v23  ;;  %v1962_v30 = vpop.permute.xlu2 %1961  ;;  %2465 = vst.msk [vmem:[%s4574_s30 + $0x8] sm:$0xff] %vm470_vm0, %v2386_v23 }
 0x2ef   : > { %2165 = vst.msk [vmem:[#allocation3 + $0x1c] sm:$0xf] %vm2157_vm7, %v2076_v58  ;;  %v2498_v13 = vadd.f32 %v2497_v15, %v2496_v11 }
 0x2f0   : > { %v2599_v22 = vsel %vm470_vm0, %v2567_v17, 0.0 }
 0x2f1   : > { %v2600_v40 = vadd.f32 %v2599_v22, %v2598_v26 }
 0x2f2   : > { %v1831_v19 = vpop.permute.xlu0 %1830  ;;  %v2880_v61 = vld [vmem:[#allocation3 + $0x30] sm:$0xff] }
 0x2f3   : > { %1901 = vst.msk [vmem:[#allocation3 + $0x68] sm:$0xf] %vm1874_vm5, %v1831_v19  ;;  %2860 = vmatmul.msk.bf16.gmra.mxu1 %vm2322_vm9, %v2880_v61 }
 0x2f6   : > { %v1819_v28 = vpop.permute.xlu1 %1818  ;;  %v2877_v47 = vld [vmem:[#allocation3 + $0x18] sm:$0xff]  ;;  %v1976_v54 = vpop.permute.xlu2 %1975 }
 0x2f7   : > { %1895 = vst.msk [vmem:[#allocation3 + $0x50] sm:$0xf] %vm1874_vm5, %v1819_v28  ;;  %2857 = vmatmul.msk.bf16.gmra.mxu0 %vm2322_vm9, %v2877_v47 }
 0x2f8   : > { %2038 = vst.msk [vmem:[#allocation3 + $0x50] sm:$0xf] %vm2017_vm6, %v1962_v30 }
 0x2fa   : > { %v1964_v25 = vpop.permute.xlu0 %1963 }
 0x2fb   : > { %2039 = vst.msk [vmem:[#allocation3 + $0x54] sm:$0xf] %vm2017_vm6, %v1964_v25 }
 0x2fe   : > { %v1833_v12 = vpop.permute.xlu1 %1832  ;;  %v2114_v7 = vpop.permute.xlu2 %2113 }
 0x2ff   : > { %1902 = vst.msk [vmem:[#allocation3 + $0x6c] sm:$0xf] %vm1874_vm5, %v1833_v12 }
 0x300   : > { %2045 = vst.msk [vmem:[#allocation3 + $0x6c] sm:$0xf] %vm2017_vm6, %v1976_v54  ;;  %v4600_v5 = vpop.f32.mrf.mxu1 }
 0x301   : > { %2472 = vst.msk [vmem:[%s4574_s30 + $0x40] sm:$0xff] %vm470_vm0, %v4600_v5 }
 0x302   : > { %v2102_v45 = vpop.permute.xlu0 %2101 }
 0x303   : > { %2178 = vst.msk [vmem:[#allocation3 + $0x50] sm:$0xf] %vm2157_vm7, %v2102_v45 }
 0x304   : > { %v2389_v20 = vpop.f32.mrf.mxu0 }
 0x305   : > { %2466 = vst.msk [vmem:[%s4574_s30 + $0x10] sm:$0xff] %vm470_vm0, %v2389_v20  ;;  %v2499_v56 = vsel %vm470_vm0, %v2389_v20, 0.0  ;;  %v2568_v10 = vmul.f32 %v2389_v20, %v2389_v20 }
 0x306   : > { %v1974_v2 = vpop.permute.xlu1 %1973  ;;  %v2500_v1 = vadd.f32 %v2499_v56, %v2498_v13  ;;  %v1809_v35 = vpop.permute.xlu2 %1808 }
 0x307   : > { %2044 = vst.msk [vmem:[#allocation3 + $0x68] sm:$0xf] %vm2017_vm6, %v1974_v2  ;;  %v2601_v46 = vsel %vm470_vm0, %v2568_v10, 0.0 }
 0x308   : > { %2184 = vst.msk [vmem:[#allocation3 + $0x68] sm:$0xf] %vm2157_vm7, %v2114_v7  ;;  %v2602_v53 = vadd.f32 %v2601_v46, %v2600_v40  ;;  %v4612_v14 = vpop.f32.mrf.mxu1 }
 0x309   : > { %1890 = vst.msk [vmem:[#allocation3 + $0x3c] sm:$0xf] %vm1874_vm5, %v1809_v35 }
 0x30a   : > { %v2116_v16 = vpop.permute.xlu0 %2115  ;;  %2473 = vst.msk [vmem:[%s4574_s30 + $0x48] sm:$0xff] %vm470_vm0, %v4612_v14 }
 0x30b   : > { %2185 = vst.msk [vmem:[#allocation3 + $0x6c] sm:$0xf] %vm2157_vm7, %v2116_v16 }
 0x30c   : > { %v2391_v59 = vpop.f32.mrf.mxu0 }
 0x30d   : > { %2467 = vst.msk [vmem:[%s4574_s30 + $0x18] sm:$0xff] %vm470_vm0, %v2391_v59  ;;  %v2501_v34 = vsel %vm470_vm0, %v2391_v59, 0.0  ;;  %v2569_v33 = vmul.f32 %v2391_v59, %v2391_v59 }
 0x30e   : > { %v2104_v62 = vpop.permute.xlu1 %2103  ;;  %v2502_v49 = vadd.f32 %v2501_v34, %v2500_v1  ;;  %v2090_v24 = vpop.permute.xlu2 %2089 }
 0x30f   : > { %2179 = vst.msk [vmem:[#allocation3 + $0x54] sm:$0xf] %vm2157_vm7, %v2104_v62  ;;  %v2603_v39 = vsel %vm470_vm0, %v2569_v33, 0.0 }
 0x310   : > { %v2604_v48 = vadd.f32 %v2603_v39, %v2602_v53  ;;  %v2574_v39 = vmul.f32 %v4600_v5, %v4600_v5 }
 0x312   : > { %v2887_v57 = vld [vmem:[#allocation3 + $0x68] sm:$0xff]  ;;  %v1950_v4 = vpop.permute.xlu0 %1949 }
 0x313   : > { %2867 = vmatmul.msk.bf16.gmra.mxu3 %vm2322_vm9, %v2887_v57 }
 0x316   : > { %v1807_v8 = vpop.permute.xlu1 %1806  ;;  %v2884_v6 = vld [vmem:[#allocation3 + $0x50] sm:$0xff]  ;;  %v1823_v44 = vpop.permute.xlu2 %1822 }
 0x317   : > { %1889 = vst.msk [vmem:[#allocation3 + $0x38] sm:$0xf] %vm1874_vm5, %v1807_v8  ;;  %2864 = vmatmul.msk.bf16.gmra.mxu2 %vm2322_vm9, %v2884_v6  ;;  %v2511_v8 = vsel %vm470_vm0, %v4600_v5, 0.0  ;;  %v2575_v6 = vmul.f32 %v4612_v14, %v4612_v14 }
 0x318   : > { %2032 = vst.msk [vmem:[#allocation3 + $0x38] sm:$0xf] %vm2017_vm6, %v1950_v4 }
 0x319   : > { %2172 = vst.msk [vmem:[#allocation3 + $0x38] sm:$0xf] %vm2157_vm7, %v2090_v24 }
 0x31a   : > { %v2092_v42 = vpop.permute.xlu0 %2091  ;;  %1897 = vst.msk [vmem:[#allocation3 + $0x58] sm:$0xf] %vm1874_vm5, %v1823_v44 }
 0x31b   : > { %v4630_v51 = vpop.f32.mrf.mxu2 }
 0x31c   : > { %2480 = vst.msk [vmem:[%s4574_s30 + $0x80] sm:$0xff] %vm470_vm0, %v4630_v51 }
 0x31e   : > { %v1952_v41 = vpop.permute.xlu1 %1951  ;;  %v1837_v63 = vpop.permute.xlu2 %1836 }
 0x31f   : > { %2033 = vst.msk [vmem:[#allocation3 + $0x3c] sm:$0xf] %vm2017_vm6, %v1952_v41 }
 0x320   : > { %2173 = vst.msk [vmem:[#allocation3 + $0x3c] sm:$0xf] %vm2157_vm7, %v2092_v42 }
 0x322   : > { %v1825_v52 = vpop.permute.xlu0 %1824 }
 0x323   : > { %1898 = vst.msk [vmem:[#allocation3 + $0x5c] sm:$0xf] %vm1874_vm5, %v1825_v52  ;;  %v4638_v21 = vpop.f32.mrf.mxu2  ;;  %v2513_v52 = vsel %vm470_vm0, %v4612_v14, 0.0 }
 0x324   : > { %2481 = vst.msk [vmem:[%s4574_s30 + $0x88] sm:$0xff] %vm470_vm0, %v4638_v21 }
 0x326   : > { %v1704_v36 = vpop.permute.xlu1 %1703  ;;  %v1978_v43 = vpop.permute.xlu2 %1977 }
 0x327   : > { %1771 = vst.msk [vmem:[#allocation3 + $0x74] sm:$0xf] %vm1741_vm3, %v1704_v36  ;;  %v2881_v3 = vld [vmem:[#allocation3 + $0x38] sm:$0xff] }
 0x328   : > { %1904 = vst.msk [vmem:[#allocation3 + $0x74] sm:$0xf] %vm1874_vm5, %v1837_v63  ;;  %2861 = vmatmul.msk.bf16.gmra.mxu1 %vm2322_vm9, %v2881_v3  ;;  %v2613_v63 = vsel %vm470_vm0, %v2574_v39, 0.0 }
 0x32a   : > { %v1966_v32 = vpop.permute.xlu0 %1965 }
 0x32b   : > { %2040 = vst.msk [vmem:[#allocation3 + $0x58] sm:$0xf] %vm2017_vm6, %v1966_v32  ;;  %v2615_v32 = vsel %vm470_vm0, %v2575_v6, 0.0 }
 0x32e   : > { %v1835_v38 = vpop.permute.xlu1 %1834  ;;  %v2108_v31 = vpop.permute.xlu2 %2107 }
 0x32f   : > { %1903 = vst.msk [vmem:[#allocation3 + $0x70] sm:$0xf] %vm1874_vm5, %v1835_v38 }
 0x330   : > { %2046 = vst.msk [vmem:[#allocation3 + $0x70] sm:$0xf] %vm2017_vm6, %v1978_v43  ;;  %v4649_v0 = vpop.f32.mrf.mxu1 }
 0x331   : > { %2474 = vst.msk [vmem:[%s4574_s30 + $0x50] sm:$0xff] %vm470_vm0, %v4649_v0  ;;  %v2576_v36 = vmul.f32 %v4649_v0, %v4649_v0  ;;  %v2515_v5 = vsel %vm470_vm0, %v4649_v0, 0.0 }
 0x332   : > { %v1980_v27 = vpop.permute.xlu0 %1979 }
 0x333   : > { %2047 = vst.msk [vmem:[#allocation3 + $0x74] sm:$0xf] %vm2017_vm6, %v1980_v27 }
 0x334   : > { %v2394_v37 = vpop.f32.mrf.mxu0 }
 0x335   : > { %2468 = vst.msk [vmem:[%s4574_s30 + $0x20] sm:$0xff] %vm470_vm0, %v2394_v37  ;;  %v2503_v29 = vsel %vm470_vm0, %v2394_v37, 0.0  ;;  %v2570_v9 = vmul.f32 %v2394_v37, %v2394_v37  ;;  %v2617_v37 = vsel %vm470_vm0, %v2576_v36, 0.0 }
 0x336   : > { %v1968_v60 = vpop.permute.xlu1 %1967  ;;  %v2504_v55 = vadd.f32 %v2503_v29, %v2502_v49  ;;  %v1706_v18 = vpop.permute.xlu2 %1705 }
 0x337   : > { %2041 = vst.msk [vmem:[#allocation3 + $0x5c] sm:$0xf] %vm2017_vm6, %v1968_v60  ;;  %v2605_v50 = vsel %vm470_vm0, %v2570_v9, 0.0 }
 0x338   : > { %2181 = vst.msk [vmem:[#allocation3 + $0x5c] sm:$0xf] %vm2157_vm7, %v2108_v31  ;;  %v2606_v58 = vadd.f32 %v2605_v50, %v2604_v48  ;;  %v4661_v23 = vpop.f32.mrf.mxu1 }
 0x339   : > { %1772 = vst.msk [vmem:[#allocation3 + $0x78] sm:$0xf] %vm1741_vm3, %v1706_v18  ;;  %v2577_v38 = vmul.f32 %v4661_v23, %v4661_v23  ;;  %v2517_v14 = vsel %vm470_vm0, %v4661_v23, 0.0 }
 0x33a   : > { %2475 = vst.msk [vmem:[%s4574_s30 + $0x58] sm:$0xff] %vm470_vm0, %v4661_v23  ;;  %v2118_v11 = vpop.permute.xlu0 %2117 }
 0x33b   : > { %2186 = vst.msk [vmem:[#allocation3 + $0x70] sm:$0xf] %vm2157_vm7, %v2118_v11 }
 0x33c   : > { %v2396_v15 = vpop.f32.mrf.mxu0 }
 0x33d   : > { %2469 = vst.msk [vmem:[%s4574_s30 + $0x28] sm:$0xff] %vm470_vm0, %v2396_v15  ;;  %v2505_v30 = vsel %vm470_vm0, %v2396_v15, 0.0  ;;  %v2571_v13 = vmul.f32 %v2396_v15, %v2396_v15 }
 0x33e   : > { %v2106_v17 = vpop.permute.xlu1 %2105  ;;  %v2506_v26 = vadd.f32 %v2505_v30, %v2504_v55  ;;  %v1841_v19 = vpop.permute.xlu2 %1840  ;;  %v2619_v55 = vsel %vm470_vm0, %v2577_v38, 0.0 }
 0x33f   : > { %2180 = vst.msk [vmem:[#allocation3 + $0x58] sm:$0xf] %vm2157_vm7, %v2106_v17  ;;  %v2607_v22 = vsel %vm470_vm0, %v2571_v13, 0.0 }
 0x340   : > { %v2608_v40 = vadd.f32 %v2607_v22, %v2606_v58 }
 0x342   : > { %v1708_v61 = vpop.permute.xlu0 %1707 }
 0x343   : > { %1773 = vst.msk [vmem:[#allocation3 + $0x7c] sm:$0xf] %vm1741_vm3, %v1708_v61 }
 0x344   : > { %1906 = vst.msk [vmem:[#allocation3 + $0x7c] sm:$0xf] %vm1874_vm5, %v1841_v19 }
 0x346   : > { %v2120_v28 = vpop.permute.xlu1 %2119  ;;  %v2885_v47 = vld [vmem:[#allocation3 + $0x58] sm:$0xff]  ;;  %v2122_v7 = vpop.permute.xlu2 %2121 }
 0x347   : > { %2187 = vst.msk [vmem:[#allocation3 + $0x74] sm:$0xf] %vm2157_vm7, %v2120_v28  ;;  %2865 = vmatmul.msk.bf16.gmra.mxu2 %vm2322_vm9, %v2885_v47 }
 0x34a   : > { %v1982_v54 = vpop.permute.xlu0 %1981 }
 0x34e   : > { %v1839_v25 = vpop.permute.xlu1 %1838  ;;  %v2888_v12 = vld [vmem:[#allocation3 + $0x70] sm:$0xff] }
 0x34f   : > { %1905 = vst.msk [vmem:[#allocation3 + $0x78] sm:$0xf] %vm1874_vm5, %v1839_v25  ;;  %2868 = vmatmul.msk.bf16.gmra.mxu3 %vm2322_vm9, %v2888_v12 }
 0x350   : > { %2048 = vst.msk [vmem:[#allocation3 + $0x78] sm:$0xf] %vm2017_vm6, %v1982_v54 }
 0x351   : > { %2188 = vst.msk [vmem:[#allocation3 + $0x78] sm:$0xf] %vm2157_vm7, %v2122_v7  ;;  %v2582_v7 = vmul.f32 %v4630_v51, %v4630_v51 }
 0x352   : > { %v2124_v45 = vpop.permute.xlu0 %2123 }
 0x356   : > { %v1984_v20 = vpop.permute.xlu1 %1983  ;;  %v4682_v2 = vpop.f32.mrf.mxu3 }
 0x357   : > { %2049 = vst.msk [vmem:[#allocation3 + $0x7c] sm:$0xf] %vm2017_vm6, %v1984_v20 }
 0x358   : > { %2189 = vst.msk [vmem:[#allocation3 + $0x7c] sm:$0xf] %vm2157_vm7, %v2124_v45 }
 0x359   : > { %2488 = vst.msk [vmem:[%s4574_s30 + $0xc0] sm:$0xff] %vm470_vm0, %v4682_v2 }
 0x35a   : > { %v4688_v56 = vpop.f32.mrf.mxu2 }
 0x35b   : > { %2482 = vst.msk [vmem:[%s4574_s30 + $0x90] sm:$0xff] %vm470_vm0, %v4688_v56 }
 0x35e   : > { %v4693_v10 = vpop.f32.mrf.mxu3 }
 0x35f   : > { %v2889_v1 = vld [vmem:[#allocation3 + $0x78] sm:$0xff]  ;;  %2489 = vst.msk [vmem:[%s4574_s30 + $0xc8] sm:$0xff] %vm470_vm0, %v4693_v10 }
 0x360   : > { %2869 = vmatmul.msk.bf16.gmra.mxu3 %vm2322_vm9, %v2889_v1 }
 0x362   : > { %v4699_v35 = vpop.f32.mrf.mxu2 }
 0x363   : > { %2483 = vst.msk [vmem:[%s4574_s30 + $0x98] sm:$0xff] %vm470_vm0, %v4699_v35 }
 0x370   : > { %v2414_v46 = vpop.f32.mrf.mxu1 }
 0x371   : > { %2476 = vst.msk [vmem:[%s4574_s30 + $0x60] sm:$0xff] %vm470_vm0, %v2414_v46  ;;  %v2578_v60 = vmul.f32 %v2414_v46, %v2414_v46  ;;  %v2519_v0 = vsel %vm470_vm0, %v2414_v46, 0.0 }
 0x373   : > { %v2621_v11 = vsel %vm470_vm0, %v2578_v60, 0.0 }
 0x374   : > { %v2399_v53 = vpop.f32.mrf.mxu0 }
 0x375   : > { %2470 = vst.msk [vmem:[%s4574_s30 + $0x30] sm:$0xff] %vm470_vm0, %v2399_v53  ;;  %v2507_v16 = vsel %vm470_vm0, %v2399_v53, 0.0  ;;  %v2572_v59 = vmul.f32 %v2399_v53, %v2399_v53  ;;  %v2527_v53 = vsel %vm470_vm0, %v4630_v51, 0.0 }
 0x376   : > { %v2508_v62 = vadd.f32 %v2507_v16, %v2506_v26  ;;  %v2583_v16 = vmul.f32 %v4638_v21, %v4638_v21 }
 0x377   : > { %v2609_v34 = vsel %vm470_vm0, %v2572_v59, 0.0 }
 0x378   : > { %v2610_v33 = vadd.f32 %v2609_v34, %v2608_v40  ;;  %v2416_v49 = vpop.f32.mrf.mxu1  ;;  %v2631_v51 = vsel %vm470_vm0, %v2583_v16, 0.0 }
 0x379   : > { %2477 = vst.msk [vmem:[%s4574_s30 + $0x68] sm:$0xff] %vm470_vm0, %v2416_v49  ;;  %v2579_v18 = vmul.f32 %v2416_v49, %v2416_v49  ;;  %v2521_v15 = vsel %vm470_vm0, %v2416_v49, 0.0  ;;  %v2529_v49 = vsel %vm470_vm0, %v4638_v21, 0.0  ;;  %v2533_v21 = vsel %vm470_vm0, %v4699_v35, 0.0 }
 0x37b   : > { %v2623_v30 = vsel %vm470_vm0, %v2579_v18, 0.0  ;;  %v2590_v18 = vmul.f32 %v4682_v2, %v4682_v2 }
 0x37c   : > { %v2401_v24 = vpop.f32.mrf.mxu0 }
 0x37d   : > { %2471 = vst.msk [vmem:[%s4574_s30 + $0x38] sm:$0xff] %vm470_vm0, %v2401_v24  ;;  %v2509_v48 = vsel %vm470_vm0, %v2401_v24, 0.0  ;;  %v2573_v57 = vmul.f32 %v2401_v24, %v2401_v24  ;;  %v2584_v24 = vmul.f32 %v4688_v56, %v4688_v56 }
 0x37e   : > { %v2510_v4 = vadd.f32 %v2509_v48, %v2508_v62 }
 0x37f   : > { %v2611_v44 = vsel %vm470_vm0, %v2573_v57, 0.0  ;;  %v2531_v57 = vsel %vm470_vm0, %v4688_v56, 0.0 }
 0x380   : > { %v2512_v42 = vadd.f32 %v2511_v8, %v2510_v4  ;;  %v2612_v41 = vadd.f32 %v2611_v44, %v2610_v33  ;;  %v2629_v33 = vsel %vm470_vm0, %v2582_v7, 0.0  ;;  %v2585_v4 = vmul.f32 %v4699_v35, %v4699_v35 }
 0x381   : > { %v2633_v44 = vsel %vm470_vm0, %v2584_v24, 0.0 }
 0x382   : > { %v2514_v3 = vadd.f32 %v2513_v52, %v2512_v42  ;;  %v2614_v43 = vadd.f32 %v2613_v63, %v2612_v41  ;;  %v2635_v63 = vsel %vm470_vm0, %v2585_v4, 0.0 }
 0x384   : > { %v2516_v31 = vadd.f32 %v2515_v5, %v2514_v3  ;;  %v2616_v27 = vadd.f32 %v2615_v32, %v2614_v43 }
 0x386   : > { %v2618_v29 = vadd.f32 %v2617_v37, %v2616_v27  ;;  %v2518_v9 = vadd.f32 %v2517_v14, %v2516_v31 }
 0x388   : > { %v2520_v50 = vadd.f32 %v2519_v0, %v2518_v9  ;;  %v2620_v58 = vadd.f32 %v2619_v55, %v2618_v29 }
 0x38a   : > { %v2522_v23 = vadd.f32 %v2521_v15, %v2520_v50  ;;  %v2622_v17 = vadd.f32 %v2621_v11, %v2620_v58 }
 0x38c   : > { %v2624_v13 = vadd.f32 %v2623_v30, %v2622_v17  ;;  %v2591_v17 = vmul.f32 %v4693_v10, %v4693_v10 }
 0x396   : > { %v4740_v26 = vpop.f32.mrf.mxu3 }
 0x397   : > { %2490 = vst.msk [vmem:[%s4574_s30 + $0xd0] sm:$0xff] %vm470_vm0, %v4740_v26 }
 0x39a   : > { %v2434_v22 = vpop.f32.mrf.mxu2 }
 0x39b   : > { %2484 = vst.msk [vmem:[%s4574_s30 + $0xa0] sm:$0xff] %vm470_vm0, %v2434_v22  ;;  %v2586_v36 = vmul.f32 %v2434_v22, %v2434_v22  ;;  %v2535_v43 = vsel %vm470_vm0, %v2434_v22, 0.0 }
 0x39d   : > { %v2637_v32 = vsel %vm470_vm0, %v2586_v36, 0.0 }
 0x39e   : > { %v4747_v40 = vpop.f32.mrf.mxu3 }
 0x39f   : > { %2491 = vst.msk [vmem:[%s4574_s30 + $0xd8] sm:$0xff] %vm470_vm0, %v4747_v40 }
 0x3a2   : > { %v2436_v19 = vpop.f32.mrf.mxu2 }
 0x3a3   : > { %2485 = vst.msk [vmem:[%s4574_s30 + $0xa8] sm:$0xff] %vm470_vm0, %v2436_v19  ;;  %v2587_v5 = vmul.f32 %v2436_v19, %v2436_v19  ;;  %v2537_v35 = vsel %vm470_vm0, %v2436_v19, 0.0  ;;  %v2645_v19 = vsel %vm470_vm0, %v2590_v18, 0.0 }
 0x3a5   : > { %v2419_v61 = vpop.f32.mrf.mxu1  ;;  %v2639_v14 = vsel %vm470_vm0, %v2587_v5, 0.0 }
 0x3a6   : > { %2478 = vst.msk [vmem:[%s4574_s30 + $0x70] sm:$0xff] %vm470_vm0, %v2419_v61  ;;  %v2580_v28 = vmul.f32 %v2419_v61, %v2419_v61  ;;  %v2523_v47 = vsel %vm470_vm0, %v2419_v61, 0.0  ;;  %v2545_v61 = vsel %vm470_vm0, %v4693_v10, 0.0  ;;  %v2549_v10 = vsel %vm470_vm0, %v4747_v40, 0.0 }
 0x3a7   : > { %v2524_v25 = vadd.f32 %v2523_v47, %v2522_v23  ;;  %v2543_v23 = vsel %vm470_vm0, %v4682_v2, 0.0  ;;  %v2647_v2 = vsel %vm470_vm0, %v2591_v17, 0.0 }
 0x3a8   : > { %v2625_v54 = vsel %vm470_vm0, %v2580_v28, 0.0  ;;  %v2592_v28 = vmul.f32 %v4740_v26, %v4740_v26 }
 0x3a9   : > { %v2626_v1 = vadd.f32 %v2625_v54, %v2624_v13 }
 0x3ad   : > { %v2421_v12 = vpop.f32.mrf.mxu1 }
 0x3ae   : > { %2479 = vst.msk [vmem:[%s4574_s30 + $0x78] sm:$0xff] %vm470_vm0, %v2421_v12  ;;  %v2525_v45 = vsel %vm470_vm0, %v2421_v12, 0.0  ;;  %v2581_v20 = vmul.f32 %v2421_v12, %v2421_v12  ;;  %v2593_v12 = vmul.f32 %v4747_v40, %v4747_v40 }
 0x3af   : > { %v2526_v46 = vadd.f32 %v2525_v45, %v2524_v25  ;;  %v2547_v25 = vsel %vm470_vm0, %v4740_v26, 0.0 }
 0x3b0   : > { %v2627_v59 = vsel %vm470_vm0, %v2581_v20, 0.0  ;;  %v2651_v16 = vsel %vm470_vm0, %v2593_v12, 0.0 }
 0x3b1   : > { %v2528_v62 = vadd.f32 %v2527_v53, %v2526_v46  ;;  %v2628_v34 = vadd.f32 %v2627_v59, %v2626_v1  ;;  %v2649_v1 = vsel %vm470_vm0, %v2592_v28, 0.0 }
 0x3b3   : > { %v2530_v39 = vadd.f32 %v2529_v49, %v2528_v62  ;;  %v2630_v48 = vadd.f32 %v2629_v33, %v2628_v34 }
 0x3b5   : > { %v2532_v8 = vadd.f32 %v2531_v57, %v2530_v39  ;;  %v2632_v6 = vadd.f32 %v2631_v51, %v2630_v48 }
 0x3b7   : > { %v2634_v42 = vadd.f32 %v2633_v44, %v2632_v6  ;;  %v2534_v41 = vadd.f32 %v2533_v21, %v2532_v8 }
 0x3b9   : > { %v2636_v52 = vadd.f32 %v2635_v63, %v2634_v42  ;;  %v2536_v56 = vadd.f32 %v2535_v43, %v2534_v41 }
 0x3bb   : > { %v2638_v31 = vadd.f32 %v2637_v32, %v2636_v52  ;;  %v2538_v37 = vadd.f32 %v2537_v35, %v2536_v56 }
 0x3bd   : > { %v2640_v9 = vadd.f32 %v2639_v14, %v2638_v31 }
 0x3ca   : > { %v2439_v3 = vpop.f32.mrf.mxu2 }
 0x3cb   : > { %2486 = vst.msk [vmem:[%s4574_s30 + $0xb0] sm:$0xff] %vm470_vm0, %v2439_v3  ;;  %v2588_v38 = vmul.f32 %v2439_v3, %v2439_v3  ;;  %v2539_v27 = vsel %vm470_vm0, %v2439_v3, 0.0 }
 0x3cc   : > { %v2540_v29 = vadd.f32 %v2539_v27, %v2538_v37 }
 0x3cd   : > { %v2641_v60 = vsel %vm470_vm0, %v2588_v38, 0.0 }
 0x3ce   : > { %v2642_v11 = vadd.f32 %v2641_v60, %v2640_v9 }
 0x3d2   : > { %v2441_v55 = vpop.f32.mrf.mxu2  ;;  %v2454_v0 = vpop.f32.mrf.mxu3 }
 0x3d3   : > { %2487 = vst.msk [vmem:[%s4574_s30 + $0xb8] sm:$0xff] %vm470_vm0, %v2441_v55  ;;  %v2541_v50 = vsel %vm470_vm0, %v2441_v55, 0.0  ;;  %v2589_v58 = vmul.f32 %v2441_v55, %v2441_v55  ;;  %v2594_v62 = vmul.f32 %v2454_v0, %v2454_v0  ;;  %v2551_v34 = vsel %vm470_vm0, %v2454_v0, 0.0 }
 0x3d4   : > { %v2542_v15 = vadd.f32 %v2541_v50, %v2540_v29  ;;  %2492 = vst.msk [vmem:[%s4574_s30 + $0xe0] sm:$0xff] %vm470_vm0, %v2454_v0 }
 0x3d5   : > { %v2643_v30 = vsel %vm470_vm0, %v2589_v58, 0.0  ;;  %v2653_v49 = vsel %vm470_vm0, %v2594_v62, 0.0 }
 0x3d6   : > { %v2544_v13 = vadd.f32 %v2543_v23, %v2542_v15  ;;  %v2644_v22 = vadd.f32 %v2643_v30, %v2642_v11 }
 0x3d8   : > { %v2546_v47 = vadd.f32 %v2545_v61, %v2544_v13  ;;  %v2646_v54 = vadd.f32 %v2645_v19, %v2644_v22 }
 0x3da   : > { %v2648_v7 = vadd.f32 %v2647_v2, %v2646_v54  ;;  %v2548_v45 = vadd.f32 %v2547_v25, %v2546_v47  ;;  %v2456_v20 = vpop.f32.mrf.mxu3 }
 0x3db   : > { %2493 = vst.msk [vmem:[%s4574_s30 + $0xe8] sm:$0xff] %vm470_vm0, %v2456_v20  ;;  %v2595_v24 = vmul.f32 %v2456_v20, %v2456_v20  ;;  %v2553_v48 = vsel %vm470_vm0, %v2456_v20, 0.0 }
 0x3dc   : > { %v2550_v46 = vadd.f32 %v2549_v10, %v2548_v45  ;;  %v2650_v53 = vadd.f32 %v2649_v1, %v2648_v7 }
 0x3dd   : > { %v2655_v4 = vsel %vm470_vm0, %v2595_v24, 0.0 }
 0x3de   : > { %v2652_v59 = vadd.f32 %v2651_v16, %v2650_v53  ;;  %v2552_v33 = vadd.f32 %v2551_v34, %v2550_v46 }
 0x3e0   : > { %v2654_v40 = vadd.f32 %v2653_v49, %v2652_v59  ;;  %v2554_v57 = vadd.f32 %v2553_v48, %v2552_v33 }
 0x3e2   : > { %v2656_v6 = vadd.f32 %v2655_v4, %v2654_v40 }
 0x3e3   : > { %v2459_v26 = vpop.f32.mrf.mxu3 }
 0x3e4   : > { %2494 = vst.msk [vmem:[%s4574_s30 + $0xf0] sm:$0xff] %vm470_vm0, %v2459_v26  ;;  %v2596_v39 = vmul.f32 %v2459_v26, %v2459_v26  ;;  %v2555_v51 = vsel %vm470_vm0, %v2459_v26, 0.0 }
 0x3e5   : > { %v2556_v44 = vadd.f32 %v2555_v51, %v2554_v57 }
 0x3e6   : > { %v2657_v8 = vsel %vm470_vm0, %v2596_v39, 0.0 }
 0x3e7   : > { %v2658_v63 = vadd.f32 %v2657_v8, %v2656_v6 }
 0x3eb   : > { %v2461_v21 = vpop.f32.mrf.mxu3 }
 0x3ec   : > { %2495 = vst.msk [vmem:[%s4574_s30 + $0xf8] sm:$0xff] %vm470_vm0, %v2461_v21  ;;  %v2557_v42 = vsel %vm470_vm0, %v2461_v21, 0.0  ;;  %v2597_v41 = vmul.f32 %v2461_v21, %v2461_v21 }
 0x3ed   : > { %v2558_v52 = vadd.f32 %v2557_v42, %v2556_v44 }
 0x3ee   : > { %v2659_v36 = vsel %vm470_vm0, %v2597_v41, 0.0 }
 0x3ef   : > { %v2559_v3 = vrot.slane %v2558_v52, 4  ;;  %v2660_v43 = vadd.f32 %v2659_v36, %v2658_v63 }
 0x3f1   : > { %v2560_v56 = vadd.f32 %v2559_v3, %v2558_v52  ;;  %v2661_v32 = vrot.slane %v2660_v43, 4 }
 0x3f3   : > { %v2561_v5 = vrot.slane %v2560_v56, 2  ;;  %v2662_v38 = vadd.f32 %v2661_v32, %v2660_v43 }
 0x3f5   : > { %v2562_v31 = vadd.f32 %v2561_v5, %v2560_v56  ;;  %v2663_v35 = vrot.slane %v2662_v38, 2 }
 0x3f7   : > { %v2563_v27 = vrot.slane %v2562_v31, 1  ;;  %v2664_v37 = vadd.f32 %v2663_v35, %v2662_v38 }
 0x3f9   : > { %v2564_v14 = vadd.f32 %v2563_v27, %v2562_v31  ;;  %v2665_v60 = vrot.slane %v2664_v37, 1 }
 0x3fb   : > { %2565 = vst.msk [vmem:[%s265_s8] sm:$0x1] %vm479_vm1, %v2564_v14  ;;  %v2666_v29 = vadd.f32 %v2665_v60, %v2664_v37 }
 0x3fd   : > { %2667 = vst.msk [vmem:[%s268_s11] sm:$0x1] %vm479_vm1, %v2666_v29 }
 0x3fe PF: > { %s17_s21 = sadd.s32 1, %s2928_s21  }
 0x3ff   : > { %p14_p4 = scmp.ge.s32.totalorder %s17_s21, 4  }
 0x401   :  { %16 = sbr.rel (!%p14_p4) target bundleno = 1 (0x1), region = 92 }

// kernel: residual_block.3
= control target key start
LH: loop header
LB: loop body
LE: loop exit
PB: predicated region body
PF: predicated region fallthrough
CT: control target
= control target key end

     0   :  { %s2741_s15 = smov 0   ;;  %s4397_s0 = inlined_call_operand.vmem [shape: bf16[2,18,18,4], index: 0, kind: input, shape index: {}]   ;;  %s4398_s1 = inlined_call_operand.vmem [shape: bf16[36,4], index: 1, kind: input, shape index: {}]   ;;  %s4399_s2 = inlined_call_operand.vmem [shape: f32[2,256,4], index: 2, kind: output, shape index: {0}]   ;;  %s4400_s3 = inlined_call_operand.vmem [shape: f32[2,1,4], index: 3, kind: output, shape index: {1}]   ;;  %s4401_s4 = inlined_call_operand.vmem [shape: f32[2,1,4], index: 4, kind: output, shape index: {2}]  }
   0x1 LB: > { %s2538_s16 = sadd.s32 4294967295, %s2706_s15   ;;  %p2542_p0 = scmp.ge.s32.totalorder %s2706_s15, 1  ;;  %s2706_s15 = sphi %s2741_s15, %s15_s15  }
   0x2   : > { %p167_p1 = scmp.lt.s32.totalorder %s2706_s15, 3 }
   0x4   : > { %p168_p2 = pnand %p2542_p0, %p167_p1 }
   0x6   : > { %171 = sbr.rel (%p168_p2) target bundleno = 989 (0x3dd), region = 28 }
   0xb   : > { %p199_p3 = scmp.lt.s32.totalorder %s2538_s16, 1  ;;  %vm303_vm0 = vsmask.f32 3328  ;;  %vm304_vm1 = vsmask.f32 7440  ;;  %v4512_v27 = vmov 0 }
   0xc   : > { %vm2791_vm2 = vmor %vm303_vm0, %vm304_vm1  ;;  %s2708_s21 = smov 4   ;;  %vm867_vm3 = vcmask 1042432   ;;  %vm868_vm4 = vcmask 1046532   ;;  %vm270_vm5 = vcmask 27648   ;;  %s2709_s22 = smov 8   ;;  %vm786_vm7 = vcmask 60448  }
   0xd   : > { %s4664_s16 = smov (!%p199_p3, %s2538_s16), 1  ;;  %v4513_v27 = vsel %vm2791_vm2, 4294967295, %v4512_v27  ;;  %vm3178_vm6 = vmor %vm867_vm3, %vm868_vm4  ;;  %s2710_s23 = smov 12   ;;  %vm1078_vm8 = vcmask 93248   ;;  %vm1209_vm9 = vcmask 126048   ;;  %vm1362_vm10 = vcmask 158848  }
   0xe   : > { %s2682_s17 = smul.u32 216, %s4664_s16  ;;  %4514 = vst [vmem:[#allocation3_spill] sm:$0xff] %v4513_v27  ;;  %s2711_s24 = smov 16   ;;  %vm1499_vm11 = vcmask 191648   ;;  %vm2134_vm12 = vcmask 1041408   ;;  %vm1630_vm13 = vcmask 224448  }
   0xf   : > { %s2712_s25 = smov 20   ;;  %s2713_s26 = smov 24   ;;  %vm1783_vm14 = vcmask 257248   ;;  %vm1920_vm15 = vcmask 290048   ;;  %vm2085_vm0 = vcmask 293888   ;;  %vm2227_vm1 = vcmask 31744  }
  0x10   : > { %s2755_s20 = scalar_lea.vmem %s4397_s0, %s2682_s17  ;;  %s2714_s27 = smov 28  }
  0x11   : > { %v2758_v0 = vld [vmem:[%s2755_s20 + $0xc] sm:$0xf]  ;;  %v2761_v1 = vld [vmem:[%s2755_s20 + $0x10] sm:$0xf]  ;;  %v2764_v2 = vld [vmem:[%s2755_s20] sm:$0xf]  ;;  %s211_s17 = scalar_lea.vmem %s4400_s3, %s4664_s16 }
  0x12   : > { %v331_v3 = vshrl.u32 %v2758_v0, 16  ;;  %v334_v4 = vshll.u32 %v2758_v0, 16  ;;  %v340_v5 = vshll.u32 %v2761_v1, 16  ;;  %v2770_v6 = vld [vmem:[%s2755_s20 + $0x4] sm:$0xf]  ;;  %v307_v7 = vshrl.u32 %v2764_v2, 16 }
  0x13   : > { %v310_v8 = vshll.u32 %v2764_v2, 16  ;;  %v316_v9 = vshll.u32 %v2770_v6, 16  ;;  %v2776_v10 = vld [vmem:[%s2755_s20 + $0x14] sm:$0x1]  ;;  %v344_v11 = vshrl.u32 %v2761_v1, 16  ;;  %v320_v12 = vshrl.u32 %v2770_v6, 16 }
  0x14   : > { %v333_v13 = vrot.slane %v331_v3, 4  ;;  %v336_v14 = vrot.slane %v334_v4, 5  ;;  %v342_v15 = vrot.slane %v340_v5, 5  ;;  %v309_v16 = vrot.slane %v307_v7, 4  ;;  %v2781_v17 = vld [vmem:[%s2755_s20 + $0x8] sm:$0x1] }
  0x15   : > { %v312_v18 = vrot.slane %v310_v8, 5  ;;  %v318_v19 = vrot.slane %v316_v9, 5  ;;  %v346_v20 = vrot.slane %v344_v11, 4  ;;  %v350_v21 = vshll.u32 %v2776_v10, 16  ;;  %v2785_v22 = vld [vmem:[%s2755_s20 + $0x28] sm:$0xf] }
  0x16   : > { %v337_v23 = vor.u32 %v336_v14, %v333_v13  ;;  %v322_v24 = vrot.slane %v320_v12, 4  ;;  %v326_v25 = vshll.u32 %v2781_v17, 16  ;;  %v388_v26 = vshll.u32 %v2785_v22, 16  ;;  %v2797_v31 = vld [vmem:[%s2755_s20 + $0x24] sm:$0xf]  ;;  %s2715_s28 = smov 32  }
  0x17   : > { %v313_v28 = vor.u32 %v312_v18, %v309_v16  ;;  %v347_v29 = vor.u32 %v346_v20, %v342_v15  ;;  %v392_v30 = vshrl.u32 %v2785_v22, 16  ;;  %v352_v35 = vrot.slane %v350_v21, 5  ;;  %v2800_v37 = vld [vmem:[%s2755_s20 + $0x18] sm:$0xf]  ;;  %v2811_v42 = vld [vmem:[%s2755_s20 + $0x1c] sm:$0xf] }
  0x18   : > { %v338_v32 = vrot.slane %v337_v23, 4  ;;  %v323_v33 = vor.u32 %v322_v24, %v318_v19  ;;  %v328_v36 = vrot.slane %v326_v25, 5  ;;  %v2806_v39 = vrot.slane %v388_v26, 5  ;;  %v2818_v46 = vld [vmem:[%s2755_s20 + $0x2c] sm:$0x1]  ;;  %s2654_s9 = sshll.u32 %s4664_s16, 8 }
  0x19   : > { %v314_v34 = vrot.slane %v313_v28, 4  ;;  %v379_v40 = vshrl.u32 %v2797_v31, 16  ;;  %v382_v41 = vshll.u32 %v2797_v31, 16  ;;  %v348_v44 = vrot.slane %v347_v29, 4  ;;  %v2825_v53 = vld [vmem:[%s2755_s20 + $0x3c] sm:$0xf]  ;;  %s4134_s12 = scalar_lea.vmem %s4399_s2, %s2654_s9 }
  0x1a   : > { %v2804_v38 = vsel %vm2791_vm2, %v338_v32, %v342_v15  ;;  %v324_v45 = vrot.slane %v323_v33, 4  ;;  %v394_v47 = vrot.slane %v392_v30, 4  ;;  %v355_v50 = vshrl.u32 %v2800_v37, 16  ;;  %4516 = vst [vmem:[#allocation5_spill] sm:$0xff] %v2825_v53  ;;  %v2829_v56 = vld [vmem:[%s2755_s20 + $0x34] sm:$0xf] }
  0x1b   : > { %4515 = vst [vmem:[#allocation4_spill] sm:$0xff] %v2804_v38  ;;  %694 = vrot.lane.b32.xlu1 %v2804_v38, %s2708_s21  ;;  %v319_v43 = vsel %vm2791_vm2, %v314_v34, %v318_v19  ;;  %v381_v48 = vrot.slane %v379_v40, 4  ;;  %v384_v49 = vrot.slane %v382_v41, 5  ;;  %v358_v51 = vshll.u32 %v2800_v37, 16  ;;  %v2841_v4 = vld [vmem:[%s2755_s20 + $0x20] sm:$0x1] }
  0x1c   : > { %690 = vrot.lane.b32.xlu0 %v319_v43, %s2708_s21  ;;  %v364_v52 = vshll.u32 %v2811_v42, 16  ;;  %v398_v54 = vshll.u32 %v2818_v46, 16  ;;  %v357_v55 = vrot.slane %v355_v50, 4  ;;  %v2833_v57 = vsel %vm2791_vm2, %v348_v44, %v352_v35  ;;  %v2850_v16 = vld [vmem:[%s2755_s20 + $0x4c] sm:$0xf] }
  0x1d   : > { %4517 = vst [vmem:[#allocation6_spill] sm:$0xff] %v2833_v57  ;;  %v329_v58 = vsel %vm2791_vm2, %v324_v45, %v328_v36  ;;  %v395_v59 = vor.u32 %v394_v47, %v2806_v39  ;;  %v360_v60 = vrot.slane %v358_v51, 5  ;;  %v385_v61 = vor.u32 %v384_v49, %v381_v48  ;;  %v2854_v19 = vld [vmem:[%s2755_s20 + $0x40] sm:$0xf]  ;;  %v2861_v24 = vld [vmem:[%s2755_s20 + $0x38] sm:$0x1] }
  0x1e   : > { %v366_v62 = vrot.slane %v364_v52, 5  ;;  %v427_v63 = vshrl.u32 %v2825_v53, 16  ;;  %v430_v3 = vshll.u32 %v2825_v53, 16  ;;  %v412_v7 = vshll.u32 %v2829_v56, 16  ;;  %4518 = vst [vmem:[#allocation7_spill] sm:$0xff] %v2854_v19 }
  0x1f   : > { %v361_v5 = vor.u32 %v360_v60, %v357_v55  ;;  %v416_v8 = vshrl.u32 %v2829_v56, 16  ;;  %v368_v9 = vshrl.u32 %v2811_v42, 16  ;;  %v400_v11 = vrot.slane %v398_v54, 5  ;;  %v2864_v29 = vld [vmem:[%s2755_s20 + $0x30] sm:$0xf] }
  0x20   : > { %v396_v12 = vrot.slane %v395_v59, 4  ;;  %v374_v15 = vshll.u32 %v2841_v4, 16  ;;  %v386_v18 = vrot.slane %v385_v61, 4  ;;  %v429_v20 = vrot.slane %v427_v63, 4  ;;  %v2871_v33 = vld [vmem:[%s2755_s20 + $0x48] sm:$0xf] }
  0x21   : > { %v362_v13 = vrot.slane %v361_v5, 4  ;;  %v370_v14 = vrot.slane %v368_v9, 4  ;;  %v432_v21 = vrot.slane %v430_v3, 5  ;;  %v414_v25 = vrot.slane %v412_v7, 5  ;;  %v2900_v7 = vld [vmem:[%s2755_s20 + $0x60] sm:$0xf] }
  0x22   : > { %v418_v26 = vrot.slane %v416_v8, 4  ;;  %v460_v30 = vshll.u32 %v2850_v16, 16  ;;  %v464_v32 = vshrl.u32 %v2850_v16, 16  ;;  %v2875_v34 = vsel %vm2791_vm2, %v396_v12, %v400_v11  ;;  %4524 = vst [vmem:[#allocation13_spill] sm:$0xff] %v2900_v7  ;;  %v2906_v11 = vld [vmem:[%s2755_s20 + $0x58] sm:$0xf] }
  0x23   : > { %696 = vrot.lane.b32.xlu1 %v2833_v57, %s2708_s21  ;;  %v2858_v23 = vsel %vm2791_vm2, %v362_v13, %v366_v62  ;;  %v371_v28 = vor.u32 %v370_v14, %v366_v62  ;;  %4520 = vst [vmem:[#allocation9_spill] sm:$0xff] %v2875_v34  ;;  %v436_v35 = vshll.u32 %v2854_v19, 16  ;;  %v376_v40 = vrot.slane %v374_v15, 5  ;;  %v2910_v14 = vld [vmem:[%s2755_s20 + $0x44] sm:$0x1] }
  0x24   : > { %692 = vrot.lane.b32.xlu0 %v329_v58, %s2708_s21  ;;  %4519 = vst [vmem:[#allocation8_spill] sm:$0xff] %v2858_v23  ;;  %698 = vrot.lane.b32.xlu2 %v2858_v23, %s2708_s21  ;;  %v433_v41 = vor.u32 %v432_v21, %v429_v20  ;;  %v422_v43 = vshll.u32 %v2861_v24, 16  ;;  %v403_v44 = vshrl.u32 %v2864_v29, 16  ;;  %v406_v45 = vshll.u32 %v2864_v29, 16  ;;  %v3057_v38 = vld [vmem:[%s2755_s20 + $0xa8] sm:$0xf] }
  0x25   : > { %v372_v36 = vrot.slane %v371_v28, 4  ;;  %v2884_v47 = vsel %vm2791_vm2, %v386_v18, %v2806_v39  ;;  %v419_v48 = vor.u32 %v418_v26, %v414_v25  ;;  %v451_v49 = vshrl.u32 %v2871_v33, 16  ;;  %v2895_v39 = vld [vmem:[%s2755_s20 + $0x50] sm:$0x1]  ;;  %v2919_v26 = vld [vmem:[%s2755_s20 + $0x54] sm:$0xf] }
  0x26   : > { %4521 = vst [vmem:[#allocation10_spill] sm:$0xff] %v2884_v47  ;;  %v454_v50 = vshll.u32 %v2871_v33, 16  ;;  %v462_v51 = vrot.slane %v460_v30, 5  ;;  %v466_v52 = vrot.slane %v464_v32, 4  ;;  %v405_v54 = vrot.slane %v403_v44, 4 }
  0x27   : > { %v408_v55 = vrot.slane %v406_v45, 5  ;;  %v2892_v58 = vsel %vm2791_vm2, %v372_v36, %v376_v40  ;;  %4523 = vst [vmem:[#allocation12_spill] sm:$0xff] %v2895_v39  ;;  %v434_v59 = vrot.slane %v433_v41, 4  ;;  %v438_v60 = vrot.slane %v436_v35, 5 }
  0x28   : > { %4522 = vst [vmem:[#allocation11_spill] sm:$0xff] %v2892_v58  ;;  %v420_v62 = vrot.slane %v419_v48, 4  ;;  %v424_v63 = vrot.slane %v422_v43, 5  ;;  %v453_v3 = vrot.slane %v451_v49, 4  ;;  %v456_v5 = vrot.slane %v454_v50, 5 }
  0x29   : > { %v409_v61 = vor.u32 %v408_v55, %v405_v54  ;;  %v467_v8 = vor.u32 %v466_v52, %v462_v51  ;;  %v470_v9 = vshll.u32 %v2895_v39, 16  ;;  %v440_v12 = vshrl.u32 %v2854_v19, 16  ;;  %v2934_v43 = vld [vmem:[%s2755_s20 + $0x64] sm:$0xf]  ;;  %v2941_v52 = vld [vmem:[%s2755_s20 + $0x5c] sm:$0x1] }
  0x2a   : > { %v2914_v15 = vsel %vm2791_vm2, %v434_v59, %v438_v60  ;;  %v499_v18 = vshrl.u32 %v2900_v7, 16  ;;  %v502_v20 = vshll.u32 %v2900_v7, 16  ;;  %v2923_v28 = vsel %vm2791_vm2, %v420_v62, %v424_v63  ;;  %4528 = vst [vmem:[#allocation17_spill] sm:$0xff] %v2934_v43  ;;  %v2955_v63 = vld [vmem:[%s2755_s20 + $0x6c] sm:$0xf] }
  0x2b   : > { %704 = vrot.lane.b32.xlu1 %v2875_v34, %s2708_s21  ;;  %v410_v13 = vrot.slane %v409_v61, 4  ;;  %4525 = vst [vmem:[#allocation14_spill] sm:$0xff] %v2914_v15  ;;  %v442_v21 = vrot.slane %v440_v12, 4  ;;  %v457_v30 = vor.u32 %v456_v5, %v453_v3  ;;  %v484_v32 = vshll.u32 %v2906_v11, 16  ;;  %v2945_v61 = vld [vmem:[%s2755_s20 + $0x70] sm:$0xf] }
  0x2c   : > { %702 = vrot.lane.b32.xlu0 %v2884_v47, %s2708_s21  ;;  %700 = vrot.lane.b32.xlu2 %v2892_v58, %s2708_s21  ;;  %4526 = vst [vmem:[#allocation15_spill] sm:$0xff] %v2923_v28  ;;  %v488_v35 = vshrl.u32 %v2906_v11, 16  ;;  %v468_v36 = vrot.slane %v467_v8, 4  ;;  %v472_v40 = vrot.slane %v470_v9, 5  ;;  %v446_v45 = vshll.u32 %v2910_v14, 16 }
  0x2d   : > { %v2931_v41 = vsel %vm2791_vm2, %v410_v13, %v414_v25  ;;  %v443_v44 = vor.u32 %v442_v21, %v438_v60  ;;  %v475_v48 = vshrl.u32 %v2919_v26, 16  ;;  %v501_v49 = vrot.slane %v499_v18, 4  ;;  %4529 = vst [vmem:[#allocation18_spill] sm:$0xff] %v2941_v52  ;;  %v3020_v34 = vld [vmem:[%s2755_s20 + $0x88] sm:$0xf] }
  0x2e   : > { %4527 = vst [vmem:[#allocation16_spill] sm:$0xff] %v2931_v41  ;;  %v504_v50 = vrot.slane %v502_v20, 5  ;;  %v478_v54 = vshll.u32 %v2919_v26, 16  ;;  %v458_v55 = vrot.slane %v457_v30, 4  ;;  %v486_v25 = vrot.slane %v484_v32, 5 }
  0x2f   : > { %v490_v59 = vrot.slane %v488_v35, 4  ;;  %4530 = vst [vmem:[#allocation19_spill] sm:$0xff] %v2945_v61  ;;  %v2949_v60 = vsel %vm2791_vm2, %v468_v36, %v472_v40  ;;  %v508_v62 = vshll.u32 %v2934_v43, 16  ;;  %v444_v3 = vrot.slane %v443_v44, 4  ;;  %v3030_v58 = vld [vmem:[%s2755_s20 + $0x90] sm:$0xf] }
  0x30   : > { %4531 = vst [vmem:[#allocation20_spill] sm:$0xff] %v2949_v60  ;;  %v448_v5 = vrot.slane %v446_v45, 5  ;;  %v477_v8 = vrot.slane %v475_v48, 4  ;;  %v480_v9 = vrot.slane %v478_v54, 5  ;;  %v505_v12 = vor.u32 %v504_v50, %v501_v49  ;;  %v2976_v48 = vld [vmem:[%s2755_s20 + $0x74] sm:$0x1] }
  0x31   : > { %4532 = vst [vmem:[#allocation21_spill] sm:$0xff] %v2955_v63  ;;  %v494_v13 = vshll.u32 %v2941_v52, 16  ;;  %v532_v18 = vshll.u32 %v2945_v61, 16  ;;  %v536_v20 = vshrl.u32 %v2945_v61, 16  ;;  %v2962_v21 = vsel %vm2791_vm2, %v458_v55, %v462_v51  ;;  %v3132_v39 = vld [vmem:[%s2755_s20 + $0xbc] sm:$0x1] }
  0x32   : > { %4533 = vst [vmem:[#allocation22_spill] sm:$0xff] %v2962_v21  ;;  %v491_v30 = vor.u32 %v490_v59, %v486_v25  ;;  %v523_v32 = vshrl.u32 %v2955_v63, 16  ;;  %v526_v35 = vshll.u32 %v2955_v63, 16  ;;  %v2970_v36 = vsel %vm2791_vm2, %v444_v3, %v448_v5  ;;  %v2979_v3 = vld [vmem:[%s2755_s20 + $0x84] sm:$0xf] }
  0x33   : > { %710 = vrot.lane.b32.xlu1 %v2914_v15, %s2708_s21  ;;  %4534 = vst [vmem:[#allocation23_spill] sm:$0xff] %v2970_v36  ;;  %v481_v40 = vor.u32 %v480_v9, %v477_v8  ;;  %v512_v44 = vshrl.u32 %v2934_v43, 16  ;;  %v506_v51 = vrot.slane %v505_v12, 4  ;;  %v510_v45 = vrot.slane %v508_v62, 5  ;;  %v2984_v5 = vld [vmem:[%s2755_s20 + $0x7c] sm:$0xf] }
  0x34   : > { %708 = vrot.lane.b32.xlu0 %v2923_v28, %s2708_s21  ;;  %706 = vrot.lane.b32.xlu2 %v2931_v41, %s2708_s21  ;;  %4535 = vst [vmem:[#allocation24_spill] sm:$0xff] %v2976_v48  ;;  %v534_v49 = vrot.slane %v532_v18, 5  ;;  %v538_v50 = vrot.slane %v536_v20, 4  ;;  %v492_v54 = vrot.slane %v491_v30, 4  ;;  %v496_v55 = vrot.slane %v494_v13, 5 }
  0x35   : > { %v525_v59 = vrot.slane %v523_v32, 4  ;;  %v542_v8 = vshll.u32 %v2976_v48, 16  ;;  %v482_v9 = vrot.slane %v481_v40, 4  ;;  %v2988_v62 = vld [vmem:[%s2755_s20 + $0x68] sm:$0x1]  ;;  %v514_v12 = vrot.slane %v512_v44, 4 }
  0x36   : > { %4536 = vst [vmem:[#allocation25_spill] sm:$0xff] %v2988_v62  ;;  %v2992_v18 = vsel %vm2791_vm2, %v506_v51, %v510_v45  ;;  %v539_v13 = vor.u32 %v538_v50, %v534_v49  ;;  %v571_v20 = vshrl.u32 %v2979_v3, 16  ;;  %v574_v30 = vshll.u32 %v2979_v3, 16  ;;  %v2997_v32 = vld [vmem:[%s2755_s20 + $0x78] sm:$0xf] }
  0x37   : > { %4537 = vst [vmem:[#allocation26_spill] sm:$0xff] %v2992_v18  ;;  %v556_v15 = vshll.u32 %v2984_v5, 16  ;;  %v560_v44 = vshrl.u32 %v2984_v5, 16  ;;  %v518_v51 = vshll.u32 %v2988_v62, 16  ;;  %v3010_v50 = vsel %vm2791_vm2, %v482_v9, %v486_v25  ;;  %v3023_v25 = vld [vmem:[%s2755_s20 + $0x80] sm:$0x1] }
  0x38   : > { %4539 = vst [vmem:[#allocation28_spill] sm:$0xff] %v3010_v50  ;;  %v576_v41 = vrot.slane %v574_v30, 5 }
  0x39   : > { %4541 = vst [vmem:[#allocation30_spill] sm:$0xff] %v3023_v25  ;;  %v562_v9 = vrot.slane %v560_v44, 4  ;;  %v566_v44 = vshll.u32 %v3023_v25, 16  ;;  %v3098_v25 = vld [vmem:[%s2755_s20 + $0xa4] sm:$0x1] }
  0x3a   : > { %4542 = vst [vmem:[#allocation31_spill] sm:$0xff] %v3030_v58 }
  0x3b   : > { %716 = vrot.lane.b32.xlu1 %v2949_v60, %s2708_s21  ;;  %v528_v60 = vrot.slane %v526_v35, 5  ;;  %v3001_v35 = vsel %vm2791_vm2, %v492_v54, %v496_v55  ;;  %v550_v54 = vshll.u32 %v2997_v32, 16  ;;  %v540_v55 = vrot.slane %v539_v13, 4  ;;  %4553 = vst [vmem:[#allocation42_spill] sm:$0xff] %v3098_v25 }
  0x3c   : > { %714 = vrot.lane.b32.xlu0 %v2962_v21, %s2708_s21  ;;  %712 = vrot.lane.b32.xlu2 %v2970_v36, %s2708_s21  ;;  %4538 = vst [vmem:[#allocation27_spill] sm:$0xff] %v3001_v35  ;;  %v515_v36 = vor.u32 %v514_v12, %v510_v45  ;;  %v3013_v21 = vld [vmem:[%s2755_s20 + $0x94] sm:$0xf]  ;;  %v558_v45 = vrot.slane %v556_v15, 5 }
  0x3d   : > { %v529_v40 = vor.u32 %v528_v60, %v525_v59  ;;  %4540 = vst [vmem:[#allocation29_spill] sm:$0xff] %v3013_v21  ;;  %v547_v60 = vshrl.u32 %v2997_v32, 16  ;;  %v544_v59 = vrot.slane %v542_v8, 5  ;;  %v604_v12 = vshll.u32 %v3013_v21, 16 }
  0x3e   : > { %v608_v23 = vshrl.u32 %v3013_v21, 16  ;;  %v516_v13 = vrot.slane %v515_v36, 4  ;;  %v520_v8 = vrot.slane %v518_v51, 5  ;;  %v563_v47 = vor.u32 %v562_v9, %v558_v45  ;;  %275 = vst.msk [vmem:[#allocation2 + $0x10] sm:$0xf] %vm270_vm5, %v2800_v37 }
  0x3f   : > { %v530_v28 = vrot.slane %v529_v40, 4  ;;  %v3034_v30 = vsel %vm2791_vm2, %v540_v55, %v544_v59  ;;  %v580_v40 = vshll.u32 %v3020_v34, 16  ;;  %v595_v36 = vshrl.u32 %v3030_v58, 16  ;;  %271 = vst.msk [vmem:[#allocation2] sm:$0xf] %vm270_vm5, %v2764_v2 }
  0x40   : > { %4543 = vst [vmem:[#allocation32_spill] sm:$0xff] %v3034_v30  ;;  %v598_v51 = vshll.u32 %v3030_v58, 16  ;;  %v568_v9 = vrot.slane %v566_v44, 5  ;;  %v646_v44 = vshll.u32 %v3057_v38, 16 }
  0x41   : > { %v582_v59 = vrot.slane %v580_v40, 5  ;;  %v643_v40 = vshrl.u32 %v3057_v38, 16  ;;  %272 = vst.msk [vmem:[#allocation2 + $0x4] sm:$0xf] %vm270_vm5, %v2770_v6 }
  0x42   : > { %273 = vst.msk [vmem:[#allocation2 + $0x8] sm:$0xf] %vm270_vm5, %v2758_v0 }
  0x43   : > { %722 = vrot.lane.b32.xlu1 %v2992_v18, %s2708_s21  ;;  %v573_v18 = vrot.slane %v571_v20, 4  ;;  %v552_v20 = vrot.slane %v550_v54, 5  ;;  %v610_v54 = vrot.slane %v608_v23, 4  ;;  %v564_v23 = vrot.slane %v563_v47, 4  ;;  %274 = vst.msk [vmem:[#allocation2 + $0xc] sm:$0xf] %vm270_vm5, %v2761_v1 }
  0x44   : > { %720 = vrot.lane.b32.xlu0 %v3001_v35, %s2708_s21  ;;  %718 = vrot.lane.b32.xlu2 %v3010_v50, %s2708_s21  ;;  %v549_v35 = vrot.slane %v547_v60, 4  ;;  %v3040_v50 = vsel %vm2791_vm2, %v530_v28, %v534_v49  ;;  %v606_v60 = vrot.slane %v604_v12, 5  ;;  %v584_v49 = vshrl.u32 %v3020_v34, 16  ;;  %276 = vst.msk [vmem:[#allocation2 + $0x14] sm:$0xf] %vm270_vm5, %v2811_v42 }
  0x45   : > { %v577_v15 = vor.u32 %v576_v41, %v573_v18  ;;  %4544 = vst [vmem:[#allocation33_spill] sm:$0xff] %v3040_v50  ;;  %v3048_v41 = vsel %vm2791_vm2, %v516_v13, %v520_v8  ;;  %v3051_v18 = vld [vmem:[%s2755_s20 + $0x98] sm:$0x1]  ;;  %v597_v12 = vrot.slane %v595_v36, 4  ;;  %v3063_v8 = vld [vmem:[%s2755_s20 + $0xa0] sm:$0xf] }
  0x46   : > { %4545 = vst [vmem:[#allocation34_spill] sm:$0xff] %v3048_v41  ;;  %v553_v28 = vor.u32 %v552_v20, %v549_v35  ;;  %v611_v13 = vor.u32 %v610_v54, %v606_v60  ;;  %v614_v35 = vshll.u32 %v3051_v18, 16  ;;  %v3075_v36 = vld [vmem:[%s2755_s20 + $0x9c] sm:$0xf] }
  0x47   : > { %4546 = vst [vmem:[#allocation35_spill] sm:$0xff] %v3051_v18  ;;  %v578_v55 = vrot.slane %v577_v15, 4  ;;  %v586_v15 = vrot.slane %v584_v49, 4  ;;  %v632_v49 = vshrl.u32 %v3063_v8, 16 }
  0x48   : > { %4547 = vst [vmem:[#allocation36_spill] sm:$0xff] %v3063_v8  ;;  %v554_v20 = vrot.slane %v553_v28, 4  ;;  %v628_v28 = vshll.u32 %v3063_v8, 16 }
  0x49   : > { %v3070_v47 = vsel %vm2791_vm2, %v578_v55, %v582_v59  ;;  %4550 = vst [vmem:[#allocation39_spill] sm:$0xff] %v3075_v36  ;;  %v616_v55 = vrot.slane %v614_v35, 5  ;;  %v648_v35 = vrot.slane %v646_v44, 5  ;;  %v634_v48 = vrot.slane %v632_v49, 4 }
  0x4a   : > { %4549 = vst [vmem:[#allocation38_spill] sm:$0xff] %v3070_v47  ;;  %v3088_v18 = vsel %vm2791_vm2, %v554_v20, %v558_v45  ;;  %v3101_v45 = vld [vmem:[%s2755_s20 + $0xb8] sm:$0xf] }
  0x4b   : > { %728 = vrot.lane.b32.xlu1 %v3034_v30, %s2708_s21  ;;  %v600_v30 = vrot.slane %v598_v51, 5  ;;  %v3079_v51 = vsel %vm2791_vm2, %v564_v23, %v568_v9  ;;  %4552 = vst [vmem:[#allocation41_spill] sm:$0xff] %v3088_v18  ;;  %v3091_v23 = vld [vmem:[%s2755_s20 + $0xac] sm:$0xf]  ;;  %v619_v9 = vshrl.u32 %v3075_v36, 16  ;;  %v676_v49 = vshll.u32 %v3101_v45, 16 }
  0x4c   : > { %726 = vrot.lane.b32.xlu0 %v3040_v50, %s2708_s21  ;;  %724 = vrot.lane.b32.xlu2 %v3048_v41, %s2708_s21  ;;  %v3066_v50 = vld [vmem:[%s2755_s20 + $0x8c] sm:$0x1]  ;;  %4551 = vst [vmem:[#allocation40_spill] sm:$0xff] %v3079_v51  ;;  %v612_v41 = vrot.slane %v611_v13, 4  ;;  %v645_v13 = vrot.slane %v643_v40, 4  ;;  %v680_v62 = vshrl.u32 %v3101_v45, 16 }
  0x4d   : > { %4548 = vst [vmem:[#allocation37_spill] sm:$0xff] %v3066_v50  ;;  %v601_v54 = vor.u32 %v600_v30, %v597_v12  ;;  %v590_v57 = vshll.u32 %v3066_v50, 16  ;;  %v587_v30 = vor.u32 %v586_v15, %v582_v59  ;;  %v622_v12 = vshll.u32 %v3075_v36, 16  ;;  %v3111_v15 = vld [vmem:[%s2755_s20 + $0xb4] sm:$0xf] }
  0x4e   : > { %v630_v50 = vrot.slane %v628_v28, 5  ;;  %4554 = vst [vmem:[#allocation43_spill] sm:$0xff] %v3101_v45  ;;  %v3105_v20 = vsel %vm2791_vm2, %v612_v41, %v616_v55  ;;  %v652_v59 = vshll.u32 %v3091_v23, 16  ;;  %v638_v28 = vshll.u32 %v3098_v25, 16 }
  0x4f   : > { %4555 = vst [vmem:[#allocation44_spill] sm:$0xff] %v3105_v20  ;;  %v588_v40 = vrot.slane %v587_v30, 4  ;;  %v592_v44 = vrot.slane %v590_v57, 5  ;;  %v624_v52 = vrot.slane %v622_v12, 5  ;;  %v670_v30 = vshll.u32 %v3111_v15, 16 }
  0x50   : > { %4556 = vst [vmem:[#allocation45_spill] sm:$0xff] %v3111_v15  ;;  %v635_v55 = vor.u32 %v634_v48, %v630_v50  ;;  %v656_v12 = vshrl.u32 %v3091_v23, 16  ;;  %v654_v48 = vrot.slane %v652_v59, 5  ;;  %v640_v25 = vrot.slane %v638_v28, 5 }
  0x51   : > { %v3126_v57 = vsel %vm2791_vm2, %v588_v40, %v592_v44  ;;  %v672_v45 = vrot.slane %v670_v30, 5  ;;  %v686_v59 = vshll.u32 %v3132_v39, 16  ;;  %277 = vst.msk [vmem:[#allocation2 + $0x18] sm:$0xf] %vm270_vm5, %v2797_v31 }
  0x52   : > { %278 = vst.msk [vmem:[#allocation2 + $0x1c] sm:$0xf] %vm270_vm5, %v2785_v22 }
  0x53   : > { %734 = vrot.lane.b32.xlu1 %v3070_v47, %s2708_s21  ;;  %v602_v47 = vrot.slane %v601_v54, 4  ;;  %v649_v54 = vor.u32 %v648_v35, %v645_v13  ;;  %v682_v13 = vrot.slane %v680_v62, 4  ;;  %v636_v35 = vrot.slane %v635_v55, 4  ;;  %279 = vst.msk [vmem:[#allocation2 + $0x20] sm:$0xf] %vm270_vm5, %v2864_v29 }
  0x54   : > { %732 = vrot.lane.b32.xlu0 %v3079_v51, %s2708_s21  ;;  %730 = vrot.lane.b32.xlu2 %v3088_v18, %s2708_s21  ;;  %v621_v51 = vrot.slane %v619_v9, 4  ;;  %v667_v18 = vshrl.u32 %v3111_v15, 16  ;;  %280 = vst.msk [vmem:[#allocation2 + $0x24] sm:$0xf] %vm270_vm5, %v2829_v56 }
  0x55   : > { %v3118_v41 = vsel %vm2791_vm2, %v602_v47, %v606_v60  ;;  %v650_v60 = vrot.slane %v649_v54, 4  ;;  %v678_v47 = vrot.slane %v676_v49, 5  ;;  %v3142_v54 = vld [vmem:[%s2755_s20 + $0xb0] sm:$0x1]  ;;  %v3146_v62 = vsel %vm2791_vm2, %v636_v35, %v640_v25  ;;  %281 = vst.msk [vmem:[#allocation2 + $0x28] sm:$0xf] %vm270_vm5, %v2825_v53 }
  0x56   : > { %4557 = vst [vmem:[#allocation46_spill] sm:$0xff] %v3118_v41  ;;  %v625_v9 = vor.u32 %v624_v52, %v621_v51  ;;  %v658_v51 = vrot.slane %v656_v12, 4  ;;  %v662_v55 = vshll.u32 %v3142_v54, 16  ;;  %v879_v35 = vrot.slane %v2761_v1, 5 }
  0x57   : > { %v3138_v40 = vsel %vm2791_vm2, %v650_v60, %v654_v48  ;;  %v683_v44 = vor.u32 %v682_v13, %v678_v47  ;;  %4558 = vst [vmem:[#allocation47_spill] sm:$0xff] %v3146_v62  ;;  %v872_v60 = vrot.slane %v2770_v6, 5  ;;  %v2547_v13 = vrot.slane %v2758_v0, 9 }
  0x58   : > { %v626_v52 = vrot.slane %v625_v9, 4  ;;  %v659_v49 = vor.u32 %v658_v51, %v654_v48  ;;  %v688_v9 = vrot.slane %v686_v59, 5  ;;  %v875_v51 = vrot.slane %v2781_v17, 5  ;;  %282 = vst.msk [vmem:[#allocation2 + $0x2c] sm:$0xf] %vm270_vm5, %v2854_v19 }
  0x59   : > { %v684_v30 = vrot.slane %v683_v44, 4  ;;  %v2546_v44 = vrot.slane %v2764_v2, 9  ;;  %v3194_v59 = vsel %vm3178_vm6, %v2547_v13, %v879_v35  ;;  %v886_v17 = vrot.slane %v2811_v42, 5  ;;  %283 = vst.msk [vmem:[#allocation2 + $0x30] sm:$0xf] %vm270_vm5, %v2871_v33 }
  0x5a   : > { %v3152_v28 = vsel %vm2791_vm2, %v626_v52, %v630_v50  ;;  %v660_v25 = vrot.slane %v659_v49, 4  ;;  %v874_v52 = vrot.slane %v872_v60, 4  ;;  %v889_v49 = vrot.slane %v2841_v4, 5  ;;  %284 = vst.msk [vmem:[#allocation2 + $0x34] sm:$0xf] %vm270_vm5, %v2850_v16 }
  0x5b   : > { %740 = vrot.lane.b32.xlu1 %v3105_v20, %s2708_s21  ;;  %v669_v20 = vrot.slane %v667_v18, 4  ;;  %4559 = vst [vmem:[#allocation48_spill] sm:$0xff] %v3152_v28  ;;  %v873_v2 = vsel %vm3178_vm6, %v2546_v44, %v872_v60  ;;  %v888_v6 = vrot.slane %v886_v17, 4  ;;  %v900_v60 = vrot.slane %v2829_v56, 5 }
  0x5c   : > { %738 = vrot.lane.b32.xlu0 %v3118_v41, %s2708_s21  ;;  %736 = vrot.lane.b32.xlu2 %v3126_v57, %s2708_s21  ;;  %285 = vst.msk [vmem:[#allocation2 + $0x38] sm:$0xf] %vm270_vm5, %v2919_v26 }
  0x5d   : > { %v673_v18 = vor.u32 %v672_v45, %v669_v20  ;;  %v664_v45 = vrot.slane %v662_v55, 5  ;;  %v3161_v20 = vsel %vm2791_vm2, %v684_v30, %v688_v9  ;;  %v2548_v55 = vrot.slane %v2800_v37, 9  ;;  %286 = vst.msk [vmem:[#allocation2 + $0x3c] sm:$0xf] %vm270_vm5, %v2906_v11 }
  0x5e   : > { %v881_v30 = vrot.slane %v879_v35, 4  ;;  %v882_v9 = vrot.slane %v2776_v10, 5  ;;  %v3226_v4 = vsel %vm3178_vm6, %v888_v6, %v889_v49  ;;  %v896_v35 = vrot.slane %v2818_v46, 5  ;;  %287 = vst.msk [vmem:[#allocation2 + $0x40] sm:$0xf] %vm270_vm5, %v2900_v7 }
  0x5f   : > { %v674_v12 = vrot.slane %v673_v18, 4  ;;  %v3172_v48 = vsel %vm2791_vm2, %v660_v25, %v664_v45  ;;  %v876_v18 = vsel %vm3178_vm6, %v874_v52, %v875_v51  ;;  %v893_v25 = vrot.slane %v2785_v22, 5  ;;  %288 = vst.msk [vmem:[#allocation2 + $0x44] sm:$0xf] %vm270_vm5, %v2934_v43 }
  0x60   : > { %v3243_v10 = vsel %vm3178_vm6, %v881_v30, %v882_v9  ;;  %v2550_v45 = vrot.slane %v2864_v29, 9  ;;  %289 = vst.msk [vmem:[#allocation2 + $0x48] sm:$0xf] %vm270_vm5, %v2955_v63  ;;  %v2549_v52 = vrot.slane %v2797_v31, 9  ;;  %v907_v46 = vrot.slane %v2854_v19, 5 }
  0x61   : > { %v3165_v50 = vsel %vm2791_vm2, %v674_v12, %v678_v47  ;;  %v4560_v47 = vmov 0  ;;  %v3232_v12 = vsel %vm3178_vm6, %v2548_v55, %v886_v17  ;;  %v895_v13 = vrot.slane %v893_v25, 4  ;;  %290 = vst.msk [vmem:[#allocation2 + $0x4c] sm:$0xf] %vm270_vm5, %v2945_v61 }
  0x62   : > { %v4561_v47 = vsel %vm3178_vm6, 4294967295, %v4560_v47  ;;  %v3265_v51 = vsel %vm3178_vm6, %v2550_v45, %v900_v60  ;;  %291 = vst.msk [vmem:[#allocation2 + $0x50] sm:$0xf] %vm270_vm5, %v2997_v32  ;;  %v910_v6 = vrot.slane %v2910_v14, 5  ;;  %v2551_v49 = vrot.slane %v2825_v53, 9 }
  0x63   : > { %746 = vrot.lane.b32.xlu1 %v3138_v40, %s2708_s21  ;;  %4562 = vst [vmem:[#allocation49_spill] sm:$0xff] %v4561_v47  ;;  %v3272_v17 = vsel %vm3178_vm6, %v895_v13, %v896_v35  ;;  %v902_v55 = vrot.slane %v900_v60, 4  ;;  %v903_v14 = vrot.slane %v2861_v24, 5  ;;  %v914_v45 = vrot.slane %v2850_v16, 5  ;;  %v4566_v35 = vld [vmem:[#allocation43_spill] sm:$0xff]  ;;  %v4598_v47 = vld [vmem:[#allocation9_spill] sm:$0xff] }
  0x64   : > { %744 = vrot.lane.b32.xlu0 %v3146_v62, %s2708_s21  ;;  %742 = vrot.lane.b32.xlu2 %v3152_v28, %s2708_s21  ;;  %4563 = vst [vmem:[#allocation50_spill] sm:$0xff] %v3265_v51  ;;  %v2553_v60 = vrot.slane %v2919_v26, 9  ;;  %v921_v13 = vrot.slane %v2906_v11, 5 }
  0x65   : > { %292 = vst.msk [vmem:[#allocation2 + $0x54] sm:$0xf] %vm270_vm5, %v2984_v5  ;;  %v3321_v24 = vsel %vm3178_vm6, %v902_v55, %v903_v14  ;;  %v928_v14 = vrot.slane %v2934_v43, 5 }
  0x66   : > { %293 = vst.msk [vmem:[#allocation2 + $0x58] sm:$0xf] %vm270_vm5, %v2979_v3  ;;  %v3339_v55 = vsel %vm3178_vm6, %v2553_v60, %v921_v13  ;;  %v4571_v60 = vld [vmem:[#allocation25_spill] sm:$0xff] }
  0x67   : > { %294 = vst.msk [vmem:[#allocation2 + $0x5c] sm:$0xf] %vm270_vm5, %v3020_v34 }
  0x68   : > { %295 = vst.msk [vmem:[#allocation2 + $0x60] sm:$0xf] %vm270_vm5, %v3030_v58 }
  0x69   : > { %296 = vst.msk [vmem:[#allocation2 + $0x64] sm:$0xf] %vm270_vm5, %v3013_v21 }
  0x6a   : > { %297 = vst.msk [vmem:[#allocation2 + $0x68] sm:$0xf] %vm270_vm5, %v3075_v36 }
  0x6b   : > { %752 = vrot.lane.b32.xlu1 %v3161_v20, %s2708_s21  ;;  %298 = vst.msk [vmem:[#allocation2 + $0x6c] sm:$0xf] %vm270_vm5, %v3063_v8 }
  0x6c   : > { %750 = vrot.lane.b32.xlu0 %v3165_v50, %s2708_s21  ;;  %748 = vrot.lane.b32.xlu2 %v3172_v48, %s2708_s21  ;;  %299 = vst.msk [vmem:[#allocation2 + $0x70] sm:$0xf] %vm270_vm5, %v3057_v38 }
  0x6d   : > { %300 = vst.msk [vmem:[#allocation2 + $0x74] sm:$0xf] %vm270_vm5, %v3091_v23 }
  0x6e   : > { %4565 = vst [vmem:[#allocation52_spill] sm:$0xff] %v3321_v24 }
  0x6f   : > { %301 = vst.msk [vmem:[#allocation2 + $0x78] sm:$0xf] %vm270_vm5, %v3111_v15 }
  0x70   : > { %302 = vst.msk [vmem:[#allocation2 + $0x7c] sm:$0xf] %vm270_vm5, %v4566_v35 }
  0x73   : > { %986 = vrot.lane.b32.xlu1 %v3194_v59, %s2709_s22 }
  0x74   : > { %984 = vrot.lane.b32.xlu0 %v876_v18, %s2709_s22  ;;  %982 = vrot.lane.b32.xlu2 %v873_v2, %s2709_s22  ;;  %v3283_v18 = vsel %vm3178_vm6, %v2549_v52, %v893_v25  ;;  %v909_v2 = vrot.slane %v907_v46, 4  ;;  %v3308_v25 = vsel %vm3178_vm6, %v2551_v49, %v907_v46  ;;  %v916_v46 = vrot.slane %v914_v45, 4 }
  0x75   : > { %v2552_v49 = vrot.slane %v2871_v33, 9 }
  0x76   : > { %v3302_v30 = vsel %vm3178_vm6, %v909_v2, %v910_v6 }
  0x77   : > { %4564 = vst [vmem:[#allocation51_spill] sm:$0xff] %v3302_v30 }
  0x7b   : > { %992 = vrot.lane.b32.xlu1 %v3226_v4, %s2709_s22 }
  0x7c   : > { %990 = vrot.lane.b32.xlu0 %v3232_v12, %s2709_s22  ;;  %988 = vrot.lane.b32.xlu2 %v3243_v10, %s2709_s22 }
  0x7e   : > { %v699_v44 = vpop.permute.xlu2 %698 }
  0x7f   : > { %791 = vst.msk [vmem:[#allocation2 + $0x10] sm:$0xf] %vm786_vm7, %v699_v44  ;;  %v4567_v44 = vld [vmem:[#allocation12_spill] sm:$0xff] }
  0x80   : > { %v917_v2 = vrot.slane %v4567_v44, 5  ;;  %4568 = vst [vmem:[#allocation12_spill] sm:$0xff] %v3339_v55  ;;  %v3352_v44 = vsel %vm3178_vm6, %v2552_v49, %v914_v45  ;;  %v4572_v45 = vld [vmem:[#allocation18_spill] sm:$0xff] }
  0x81   : > { %4570 = vst [vmem:[#allocation54_spill] sm:$0xff] %v3352_v44 }
  0x83   : > { %998 = vrot.lane.b32.xlu1 %v3265_v51, %s2709_s22 }
  0x84   : > { %996 = vrot.lane.b32.xlu0 %v3272_v17, %s2709_s22  ;;  %994 = vrot.lane.b32.xlu2 %v3283_v18, %s2709_s22 }
  0x86   : > { %v701_v9 = vpop.permute.xlu2 %700 }
  0x87   : > { %792 = vst.msk [vmem:[#allocation2 + $0x14] sm:$0xf] %vm786_vm7, %v701_v9  ;;  %v930_v9 = vrot.slane %v928_v14, 4 }
  0x8b   : > { %1004 = vrot.lane.b32.xlu1 %v3302_v30, %s2709_s22 }
  0x8c   : > { %1002 = vrot.lane.b32.xlu0 %v3308_v25, %s2709_s22  ;;  %1000 = vrot.lane.b32.xlu2 %v3321_v24, %s2709_s22  ;;  %v2554_v24 = vrot.slane %v2900_v7, 9 }
  0x8d   : > { %v695_v52 = vpop.permute.xlu1 %694 }
  0x8e   : > { %789 = vst.msk [vmem:[#allocation2 + $0x8] sm:$0xf] %vm786_vm7, %v695_v52  ;;  %v691_v6 = vpop.permute.xlu0 %690  ;;  %v707_v30 = vpop.permute.xlu2 %706  ;;  %v3345_v52 = vsel %vm3178_vm6, %v916_v46, %v917_v2  ;;  %v924_v2 = vrot.slane %v4572_v45, 5 }
  0x8f   : > { %787 = vst.msk [vmem:[#allocation2] sm:$0xf] %vm786_vm7, %v691_v6  ;;  %v931_v6 = vrot.slane %v4571_v60, 5  ;;  %v3369_v60 = vsel %vm3178_vm6, %v2554_v24, %v928_v14 }
  0x90   : > { %4569 = vst [vmem:[#allocation53_spill] sm:$0xff] %v3345_v52 }
  0x91   : > { %795 = vst.msk [vmem:[#allocation2 + $0x20] sm:$0xf] %vm786_vm7, %v707_v30  ;;  %v923_v30 = vrot.slane %v921_v13, 4  ;;  %v3365_v49 = vsel %vm3178_vm6, %v930_v9, %v931_v6  ;;  %v2556_v9 = vrot.slane %v2997_v32, 9  ;;  %v942_v6 = vrot.slane %v2984_v5, 5 }
  0x92   : > { %4573 = vst [vmem:[#allocation25_spill] sm:$0xff] %v3365_v49 }
  0x93   : > { %1010 = vrot.lane.b32.xlu1 %v3339_v55, %s2709_s22  ;;  %4574 = vst [vmem:[#allocation18_spill] sm:$0xff] %v3369_v60  ;;  %v3377_v13 = vsel %vm3178_vm6, %v923_v30, %v924_v2  ;;  %v2555_v30 = vrot.slane %v2955_v63, 9  ;;  %v3391_v2 = vsel %vm3178_vm6, %v2556_v9, %v942_v6 }
  0x94   : > { %1008 = vrot.lane.b32.xlu0 %v3345_v52, %s2709_s22  ;;  %1006 = vrot.lane.b32.xlu2 %v3352_v44, %s2709_s22  ;;  %4575 = vst [vmem:[#allocation55_spill] sm:$0xff] %v3377_v13  ;;  %v2557_v52 = vrot.slane %v2979_v3, 9 }
  0x95   : > { %v697_v51 = vpop.permute.xlu1 %696 }
  0x96   : > { %790 = vst.msk [vmem:[#allocation2 + $0xc] sm:$0xf] %vm786_vm7, %v697_v51  ;;  %v693_v46 = vpop.permute.xlu0 %692  ;;  %v713_v55 = vpop.permute.xlu2 %712  ;;  %v935_v51 = vrot.slane %v2945_v61, 5 }
  0x97   : > { %788 = vst.msk [vmem:[#allocation2 + $0x4] sm:$0xf] %vm786_vm7, %v693_v46  ;;  %v4576_v46 = vld [vmem:[#allocation24_spill] sm:$0xff] }
  0x98   : > { %798 = vst.msk [vmem:[#allocation2 + $0x2c] sm:$0xf] %vm786_vm7, %v713_v55  ;;  %v937_v14 = vrot.slane %v935_v51, 4  ;;  %v938_v45 = vrot.slane %v4576_v46, 5 }
  0x99   : > { %4577 = vst [vmem:[#allocation24_spill] sm:$0xff] %v3391_v2 }
  0x9a   : > { %v3396_v46 = vsel %vm3178_vm6, %v937_v14, %v938_v45 }
  0x9b   : > { %1016 = vrot.lane.b32.xlu1 %v3365_v49, %s2709_s22  ;;  %v949_v49 = vrot.slane %v3020_v34, 5  ;;  %4578 = vst [vmem:[#allocation56_spill] sm:$0xff] %v3396_v46 }
  0x9c   : > { %1014 = vrot.lane.b32.xlu0 %v3369_v60, %s2709_s22  ;;  %1012 = vrot.lane.b32.xlu2 %v3377_v13, %s2709_s22 }
  0x9d   : > { %v705_v24 = vpop.permute.xlu1 %704  ;;  %v951_v9 = vrot.slane %v949_v49, 4 }
  0x9e   : > { %794 = vst.msk [vmem:[#allocation2 + $0x1c] sm:$0xf] %vm786_vm7, %v705_v24  ;;  %v703_v55 = vpop.permute.xlu0 %702  ;;  %v719_v60 = vpop.permute.xlu2 %718  ;;  %v3403_v24 = vsel %vm3178_vm6, %v2555_v30, %v935_v51  ;;  %v4581_v51 = vld [vmem:[#allocation30_spill] sm:$0xff] }
  0x9f   : > { %793 = vst.msk [vmem:[#allocation2 + $0x18] sm:$0xf] %vm786_vm7, %v703_v55  ;;  %v4580_v55 = vld [vmem:[#allocation37_spill] sm:$0xff]  ;;  %v945_v45 = vrot.slane %v4581_v51, 5 }
  0xa0   : > { %801 = vst.msk [vmem:[#allocation2 + $0x38] sm:$0xf] %vm786_vm7, %v719_v60  ;;  %v952_v13 = vrot.slane %v4580_v55, 5  ;;  %v944_v60 = vrot.slane %v942_v6, 4  ;;  %v3420_v55 = vsel %vm3178_vm6, %v2557_v52, %v949_v49 }
  0xa1   : > { %4579 = vst [vmem:[#allocation57_spill] sm:$0xff] %v3403_v24 }
  0xa2   : > { %v3416_v30 = vsel %vm3178_vm6, %v951_v9, %v952_v13  ;;  %4583 = vst [vmem:[#allocation30_spill] sm:$0xff] %v3420_v55  ;;  %v3428_v6 = vsel %vm3178_vm6, %v944_v60, %v945_v45  ;;  %v2559_v13 = vrot.slane %v3075_v36, 9  ;;  %v963_v9 = vrot.slane %v3063_v8, 5 }
  0xa3   : > { %1022 = vrot.lane.b32.xlu1 %v3391_v2, %s2709_s22  ;;  %4582 = vst [vmem:[#allocation37_spill] sm:$0xff] %v3416_v30  ;;  %v2558_v60 = vrot.slane %v3030_v58, 9 }
  0xa4   : > { %1020 = vrot.lane.b32.xlu0 %v3396_v46, %s2709_s22  ;;  %1018 = vrot.lane.b32.xlu2 %v3403_v24, %s2709_s22  ;;  %4584 = vst [vmem:[#allocation58_spill] sm:$0xff] %v3428_v6  ;;  %v3442_v45 = vsel %vm3178_vm6, %v2559_v13, %v963_v9  ;;  %v2560_v24 = vrot.slane %v3057_v38, 9 }
  0xa5   : > { %v711_v44 = vpop.permute.xlu1 %710 }
  0xa6   : > { %797 = vst.msk [vmem:[#allocation2 + $0x28] sm:$0xf] %vm786_vm7, %v711_v44  ;;  %v709_v14 = vpop.permute.xlu0 %708  ;;  %v725_v2 = vpop.permute.xlu2 %724  ;;  %v956_v44 = vrot.slane %v3013_v21, 5 }
  0xa7   : > { %796 = vst.msk [vmem:[#allocation2 + $0x24] sm:$0xf] %vm786_vm7, %v709_v14  ;;  %v4585_v14 = vld [vmem:[#allocation35_spill] sm:$0xff] }
  0xa8   : > { %804 = vst.msk [vmem:[#allocation2 + $0x44] sm:$0xf] %vm786_vm7, %v725_v2  ;;  %v958_v49 = vrot.slane %v956_v44, 4  ;;  %v959_v51 = vrot.slane %v4585_v14, 5 }
  0xa9   : > { %4586 = vst [vmem:[#allocation35_spill] sm:$0xff] %v3442_v45 }
  0xaa   : > { %v3447_v14 = vsel %vm3178_vm6, %v958_v49, %v959_v51 }
  0xab   : > { %1028 = vrot.lane.b32.xlu1 %v3416_v30, %s2709_s22  ;;  %v970_v30 = vrot.slane %v3091_v23, 5 }
  0xac   : > { %1026 = vrot.lane.b32.xlu0 %v3420_v55, %s2709_s22  ;;  %1024 = vrot.lane.b32.xlu2 %v3428_v6, %s2709_s22 }
  0xad   : > { %v717_v52 = vpop.permute.xlu1 %716  ;;  %v972_v13 = vrot.slane %v970_v30, 4 }
  0xae   : > { %800 = vst.msk [vmem:[#allocation2 + $0x34] sm:$0xf] %vm786_vm7, %v717_v52  ;;  %v715_v2 = vpop.permute.xlu0 %714  ;;  %v731_v55 = vpop.permute.xlu2 %730  ;;  %v3454_v52 = vsel %vm3178_vm6, %v2558_v60, %v956_v44  ;;  %v4587_v44 = vld [vmem:[#allocation42_spill] sm:$0xff] }
  0xaf   : > { %799 = vst.msk [vmem:[#allocation2 + $0x30] sm:$0xf] %vm786_vm7, %v715_v2  ;;  %v973_v2 = vrot.slane %v3142_v54, 5  ;;  %v966_v51 = vrot.slane %v4587_v44, 5  ;;  %v3471_v54 = vsel %vm3178_vm6, %v2560_v24, %v970_v30  ;;  %v2561_v30 = vrot.slane %v3111_v15, 9 }
  0xb0   : > { %807 = vst.msk [vmem:[#allocation2 + $0x50] sm:$0xf] %vm786_vm7, %v731_v55  ;;  %v965_v55 = vrot.slane %v963_v9, 4 }
  0xb1   : > { %v3467_v60 = vsel %vm3178_vm6, %v972_v13, %v973_v2 }
  0xb2   : > { %v3479_v9 = vsel %vm3178_vm6, %v965_v55, %v966_v51 }
  0xb3   : > { %1034 = vrot.lane.b32.xlu1 %v3442_v45, %s2709_s22 }
  0xb4   : > { %1032 = vrot.lane.b32.xlu0 %v3447_v14, %s2709_s22  ;;  %1030 = vrot.lane.b32.xlu2 %v3454_v52, %s2709_s22 }
  0xb5   : > { %v723_v6 = vpop.permute.xlu1 %722 }
  0xb6   : > { %803 = vst.msk [vmem:[#allocation2 + $0x40] sm:$0xf] %vm786_vm7, %v723_v6  ;;  %v721_v49 = vpop.permute.xlu0 %720  ;;  %v737_v45 = vpop.permute.xlu2 %736  ;;  %v977_v6 = vrot.slane %v4566_v35, 5 }
  0xb7   : > { %802 = vst.msk [vmem:[#allocation2 + $0x3c] sm:$0xf] %vm786_vm7, %v721_v49  ;;  %v980_v49 = vrot.slane %v3132_v39, 5 }
  0xb8   : > { %810 = vst.msk [vmem:[#allocation2 + $0x5c] sm:$0xf] %vm786_vm7, %v737_v45  ;;  %v979_v2 = vrot.slane %v977_v6, 4  ;;  %v3498_v39 = vsel %vm3178_vm6, %v2561_v30, %v977_v6 }
  0xba   : > { %v3491_v55 = vsel %vm3178_vm6, %v979_v2, %v980_v49 }
  0xbb   : > { %1040 = vrot.lane.b32.xlu1 %v3467_v60, %s2709_s22  ;;  %4588 = vst [vmem:[#allocation42_spill] sm:$0xff] %v3491_v55 }
  0xbc   : > { %1038 = vrot.lane.b32.xlu0 %v3471_v54, %s2709_s22  ;;  %1036 = vrot.lane.b32.xlu2 %v3479_v9, %s2709_s22 }
  0xbd   : > { %v729_v13 = vpop.permute.xlu1 %728 }
  0xbe   : > { %806 = vst.msk [vmem:[#allocation2 + $0x4c] sm:$0xf] %vm786_vm7, %v729_v13  ;;  %v727_v24 = vpop.permute.xlu0 %726  ;;  %v743_v45 = vpop.permute.xlu2 %742 }
  0xbf   : > { %805 = vst.msk [vmem:[#allocation2 + $0x48] sm:$0xf] %vm786_vm7, %v727_v24 }
  0xc0   : > { %813 = vst.msk [vmem:[#allocation2 + $0x68] sm:$0xf] %vm786_vm7, %v743_v45 }
  0xc3   : > { %1113 = vrot.lane.b32.xlu1 %v2758_v0, %s2710_s23 }
  0xc4   : > { %1044 = vrot.lane.b32.xlu0 %v3491_v55, %s2709_s22  ;;  %1042 = vrot.lane.b32.xlu2 %v3498_v39, %s2709_s22 }
  0xc5   : > { %v735_v44 = vpop.permute.xlu1 %734 }
  0xc6   : > { %809 = vst.msk [vmem:[#allocation2 + $0x58] sm:$0xf] %vm786_vm7, %v735_v44  ;;  %v733_v51 = vpop.permute.xlu0 %732  ;;  %v749_v13 = vpop.permute.xlu2 %748 }
  0xc7   : > { %808 = vst.msk [vmem:[#allocation2 + $0x54] sm:$0xf] %vm786_vm7, %v733_v51 }
  0xc8   : > { %816 = vst.msk [vmem:[#allocation2 + $0x74] sm:$0xf] %vm786_vm7, %v749_v13 }
  0xcb   : > { %1119 = vrot.lane.b32.xlu1 %v2811_v42, %s2710_s23 }
  0xcc   : > { %1117 = vrot.lane.b32.xlu0 %v2800_v37, %s2710_s23  ;;  %1115 = vrot.lane.b32.xlu2 %v2761_v1, %s2710_s23 }
  0xcd   : > { %v741_v0 = vpop.permute.xlu1 %740 }
  0xce   : > { %812 = vst.msk [vmem:[#allocation2 + $0x64] sm:$0xf] %vm786_vm7, %v741_v0  ;;  %v739_v6 = vpop.permute.xlu0 %738  ;;  %v983_v2 = vpop.permute.xlu2 %982 }
  0xcf   : > { %811 = vst.msk [vmem:[#allocation2 + $0x60] sm:$0xf] %vm786_vm7, %v739_v6 }
  0xd0   : > { %1079 = vst.msk [vmem:[#allocation2] sm:$0xf] %vm1078_vm8, %v983_v2 }
  0xd3   : > { %1125 = vrot.lane.b32.xlu1 %v2864_v29, %s2710_s23 }
  0xd4   : > { %1123 = vrot.lane.b32.xlu0 %v2785_v22, %s2710_s23  ;;  %1121 = vrot.lane.b32.xlu2 %v2797_v31, %s2710_s23 }
  0xd5   : > { %v747_v49 = vpop.permute.xlu1 %746 }
  0xd6   : > { %815 = vst.msk [vmem:[#allocation2 + $0x70] sm:$0xf] %vm786_vm7, %v747_v49  ;;  %v745_v24 = vpop.permute.xlu0 %744  ;;  %v989_v1 = vpop.permute.xlu2 %988 }
  0xd7   : > { %814 = vst.msk [vmem:[#allocation2 + $0x6c] sm:$0xf] %vm786_vm7, %v745_v24 }
  0xd8   : > { %1082 = vst.msk [vmem:[#allocation2 + $0xc] sm:$0xf] %vm1078_vm8, %v989_v1 }
  0xdb   : > { %1131 = vrot.lane.b32.xlu1 %v2854_v19, %s2710_s23 }
  0xdc   : > { %1129 = vrot.lane.b32.xlu0 %v2825_v53, %s2710_s23  ;;  %1127 = vrot.lane.b32.xlu2 %v2829_v56, %s2710_s23 }
  0xdd   : > { %v753_v30 = vpop.permute.xlu1 %752 }
  0xde   : > { %818 = vst.msk [vmem:[#allocation2 + $0x7c] sm:$0xf] %vm786_vm7, %v753_v30  ;;  %v751_v45 = vpop.permute.xlu0 %750  ;;  %v995_v44 = vpop.permute.xlu2 %994 }
  0xdf   : > { %817 = vst.msk [vmem:[#allocation2 + $0x78] sm:$0xf] %vm786_vm7, %v751_v45 }
  0xe0   : > { %1085 = vst.msk [vmem:[#allocation2 + $0x18] sm:$0xf] %vm1078_vm8, %v995_v44 }
  0xe3   : > { %1137 = vrot.lane.b32.xlu1 %v2919_v26, %s2710_s23 }
  0xe4   : > { %1135 = vrot.lane.b32.xlu0 %v2850_v16, %s2710_s23  ;;  %1133 = vrot.lane.b32.xlu2 %v2871_v33, %s2710_s23 }
  0xe5   : > { %v987_v51 = vpop.permute.xlu1 %986 }
  0xe6   : > { %1081 = vst.msk [vmem:[#allocation2 + $0x8] sm:$0xf] %vm1078_vm8, %v987_v51  ;;  %v985_v13 = vpop.permute.xlu0 %984  ;;  %v1001_v0 = vpop.permute.xlu2 %1000 }
  0xe7   : > { %1080 = vst.msk [vmem:[#allocation2 + $0x4] sm:$0xf] %vm1078_vm8, %v985_v13 }
  0xe8   : > { %1088 = vst.msk [vmem:[#allocation2 + $0x24] sm:$0xf] %vm1078_vm8, %v1001_v0 }
  0xeb   : > { %1143 = vrot.lane.b32.xlu1 %v2934_v43, %s2710_s23 }
  0xec   : > { %1141 = vrot.lane.b32.xlu0 %v2900_v7, %s2710_s23  ;;  %1139 = vrot.lane.b32.xlu2 %v2906_v11, %s2710_s23  ;;  %v3684_v7 = vld [vmem:[%s2755_s20 + $0xc8] sm:$0x1] }
  0xed   : > { %v993_v6 = vpop.permute.xlu1 %992 }
  0xee   : > { %1084 = vst.msk [vmem:[#allocation2 + $0x14] sm:$0xf] %vm1078_vm8, %v993_v6  ;;  %v991_v2 = vpop.permute.xlu0 %990  ;;  %v1007_v49 = vpop.permute.xlu2 %1006 }
  0xef   : > { %1083 = vst.msk [vmem:[#allocation2 + $0x10] sm:$0xf] %vm1078_vm8, %v991_v2 }
  0xf0   : > { %1091 = vst.msk [vmem:[#allocation2 + $0x30] sm:$0xf] %vm1078_vm8, %v1007_v49 }
  0xf3   : > { %1149 = vrot.lane.b32.xlu1 %v2997_v32, %s2710_s23 }
  0xf4   : > { %1147 = vrot.lane.b32.xlu0 %v2945_v61, %s2710_s23  ;;  %1145 = vrot.lane.b32.xlu2 %v2955_v63, %s2710_s23 }
  0xf5   : > { %v999_v24 = vpop.permute.xlu1 %998 }
  0xf6   : > { %1087 = vst.msk [vmem:[#allocation2 + $0x20] sm:$0xf] %vm1078_vm8, %v999_v24  ;;  %v997_v1 = vpop.permute.xlu0 %996  ;;  %v1013_v30 = vpop.permute.xlu2 %1012  ;;  %v3588_v24 = vld [vmem:[%s2755_s20 + $0xc0] sm:$0xf] }
  0xf7   : > { %1086 = vst.msk [vmem:[#allocation2 + $0x1c] sm:$0xf] %vm1078_vm8, %v997_v1 }
  0xf8   : > { %1094 = vst.msk [vmem:[#allocation2 + $0x3c] sm:$0xf] %vm1078_vm8, %v1013_v30 }
  0xf9   : > { %4589 = vst [vmem:[#allocation59_spill] sm:$0xff] %v3588_v24 }
  0xfb   : > { %1155 = vrot.lane.b32.xlu1 %v3020_v34, %s2710_s23 }
  0xfc   : > { %1153 = vrot.lane.b32.xlu0 %v2979_v3, %s2710_s23  ;;  %1151 = vrot.lane.b32.xlu2 %v2984_v5, %s2710_s23 }
  0xfd   : > { %v1005_v45 = vpop.permute.xlu1 %1004 }
  0xfe   : > { %1090 = vst.msk [vmem:[#allocation2 + $0x2c] sm:$0xf] %vm1078_vm8, %v1005_v45  ;;  %v1003_v44 = vpop.permute.xlu0 %1002  ;;  %v1019_v51 = vpop.permute.xlu2 %1018 }
  0xff   : > { %1089 = vst.msk [vmem:[#allocation2 + $0x28] sm:$0xf] %vm1078_vm8, %v1003_v44 }
 0x100   : > { %1097 = vst.msk [vmem:[#allocation2 + $0x48] sm:$0xf] %vm1078_vm8, %v1019_v51  ;;  %v4590_v51 = vld [vmem:[#allocation6_spill] sm:$0xff] }
 0x103   : > { %1161 = vrot.lane.b32.xlu1 %v3075_v36, %s2710_s23 }
 0x104   : > { %1159 = vrot.lane.b32.xlu0 %v3013_v21, %s2710_s23  ;;  %1157 = vrot.lane.b32.xlu2 %v3030_v58, %s2710_s23 }
 0x105   : > { %v1011_v13 = vpop.permute.xlu1 %1010 }
 0x106   : > { %1093 = vst.msk [vmem:[#allocation2 + $0x38] sm:$0xf] %vm1078_vm8, %v1011_v13  ;;  %v1009_v0 = vpop.permute.xlu0 %1008  ;;  %v1025_v6 = vpop.permute.xlu2 %1024  ;;  %v3603_v13 = vld [vmem:[%s2755_s20 + $0xc4] sm:$0xf] }
 0x107   : > { %1092 = vst.msk [vmem:[#allocation2 + $0x34] sm:$0xf] %vm1078_vm8, %v1009_v0  ;;  %v4592_v0 = vld [vmem:[#allocation4_spill] sm:$0xff] }
 0x108   : > { %1100 = vst.msk [vmem:[#allocation2 + $0x54] sm:$0xf] %vm1078_vm8, %v1025_v6 }
 0x109   : > { %4591 = vst [vmem:[#allocation6_spill] sm:$0xff] %v3603_v13 }
 0x10a   : > { %4612 = vst [vmem:[#allocation4_spill] sm:$0xff] %v3684_v7 }
 0x10b   : > { %1167 = vrot.lane.b32.xlu1 %v3091_v23, %s2710_s23 }
 0x10c   : > { %1165 = vrot.lane.b32.xlu0 %v3057_v38, %s2710_s23  ;;  %1163 = vrot.lane.b32.xlu2 %v3063_v8, %s2710_s23 }
 0x10d   : > { %v1017_v2 = vpop.permute.xlu1 %1016 }
 0x10e   : > { %1096 = vst.msk [vmem:[#allocation2 + $0x44] sm:$0xf] %vm1078_vm8, %v1017_v2  ;;  %v1015_v49 = vpop.permute.xlu0 %1014  ;;  %v1031_v1 = vpop.permute.xlu2 %1030 }
 0x10f   : > { %1095 = vst.msk [vmem:[#allocation2 + $0x40] sm:$0xf] %vm1078_vm8, %v1015_v49 }
 0x110   : > { %1103 = vst.msk [vmem:[#allocation2 + $0x60] sm:$0xf] %vm1078_vm8, %v1031_v1  ;;  %v4593_v1 = vld [vmem:[#allocation10_spill] sm:$0xff] }
 0x113   : > { %1173 = vrot.lane.b32.xlu1 %v3588_v24, %s2710_s23 }
 0x114   : > { %1171 = vrot.lane.b32.xlu0 %v4566_v35, %s2710_s23  ;;  %1169 = vrot.lane.b32.xlu2 %v3111_v15, %s2710_s23 }
 0x115   : > { %v1023_v30 = vpop.permute.xlu1 %1022 }
 0x116   : > { %1099 = vst.msk [vmem:[#allocation2 + $0x50] sm:$0xf] %vm1078_vm8, %v1023_v30  ;;  %v1021_v45 = vpop.permute.xlu0 %1020  ;;  %v1037_v44 = vpop.permute.xlu2 %1036  ;;  %v4594_v30 = vld [vmem:[#allocation11_spill] sm:$0xff] }
 0x117   : > { %1098 = vst.msk [vmem:[#allocation2 + $0x4c] sm:$0xf] %vm1078_vm8, %v1021_v45 }
 0x118   : > { %1106 = vst.msk [vmem:[#allocation2 + $0x6c] sm:$0xf] %vm1078_vm8, %v1037_v44 }
 0x11b   : > { %1268 = vrot.lane.b32.xlu1 %v4590_v51, %s2711_s24  ;;  %v4595_v51 = vld [vmem:[#allocation8_spill] sm:$0xff] }
 0x11c   : > { %1266 = vrot.lane.b32.xlu0 %v4592_v0, %s2711_s24  ;;  %1175 = vrot.lane.b32.xlu2 %v3603_v13, %s2710_s23 }
 0x11d   : > { %v1029_v6 = vpop.permute.xlu1 %1028 }
 0x11e   : > { %1102 = vst.msk [vmem:[#allocation2 + $0x5c] sm:$0xf] %vm1078_vm8, %v1029_v6  ;;  %v1027_v2 = vpop.permute.xlu0 %1026  ;;  %v1043_v49 = vpop.permute.xlu2 %1042  ;;  %v4596_v6 = vld [vmem:[#allocation15_spill] sm:$0xff] }
 0x11f   : > { %1101 = vst.msk [vmem:[#allocation2 + $0x58] sm:$0xf] %vm1078_vm8, %v1027_v2  ;;  %v4597_v2 = vld [vmem:[#allocation16_spill] sm:$0xff] }
 0x120   : > { %1109 = vst.msk [vmem:[#allocation2 + $0x78] sm:$0xf] %vm1078_vm8, %v1043_v49 }
 0x123   : > { %1274 = vrot.lane.b32.xlu1 %v4593_v1, %s2711_s24 }
 0x124   : > { %1272 = vrot.lane.b32.xlu0 %v4594_v30, %s2711_s24  ;;  %1270 = vrot.lane.b32.xlu2 %v4595_v51, %s2711_s24 }
 0x125   : > { %v1035_v45 = vpop.permute.xlu1 %1034 }
 0x126   : > { %1105 = vst.msk [vmem:[#allocation2 + $0x68] sm:$0xf] %vm1078_vm8, %v1035_v45  ;;  %v1033_v44 = vpop.permute.xlu0 %1032  ;;  %v1116_v0 = vpop.permute.xlu2 %1115 }
 0x127   : > { %1104 = vst.msk [vmem:[#allocation2 + $0x64] sm:$0xf] %vm1078_vm8, %v1033_v44  ;;  %v4599_v44 = vld [vmem:[#allocation22_spill] sm:$0xff] }
 0x128   : > { %1211 = vst.msk [vmem:[#allocation2 + $0x4] sm:$0xf] %vm1209_vm9, %v1116_v0  ;;  %v4600_v0 = vld [vmem:[#allocation23_spill] sm:$0xff] }
 0x12b   : > { %1280 = vrot.lane.b32.xlu1 %v4596_v6, %s2711_s24 }
 0x12c   : > { %1278 = vrot.lane.b32.xlu0 %v4597_v2, %s2711_s24  ;;  %1276 = vrot.lane.b32.xlu2 %v4598_v47, %s2711_s24 }
 0x12d   : > { %v1041_v49 = vpop.permute.xlu1 %1040 }
 0x12e   : > { %1108 = vst.msk [vmem:[#allocation2 + $0x74] sm:$0xf] %vm1078_vm8, %v1041_v49  ;;  %v1039_v45 = vpop.permute.xlu0 %1038  ;;  %v1122_v36 = vpop.permute.xlu2 %1121  ;;  %v4601_v49 = vld [vmem:[#allocation14_spill] sm:$0xff] }
 0x12f   : > { %1107 = vst.msk [vmem:[#allocation2 + $0x70] sm:$0xf] %vm1078_vm8, %v1039_v45  ;;  %v4603_v45 = vld [vmem:[#allocation28_spill] sm:$0xff] }
 0x130   : > { %1214 = vst.msk [vmem:[#allocation2 + $0x10] sm:$0xf] %vm1209_vm9, %v1122_v36  ;;  %v4602_v36 = vld [vmem:[#allocation27_spill] sm:$0xff] }
 0x133   : > { %1286 = vrot.lane.b32.xlu1 %v4599_v44, %s2711_s24 }
 0x134   : > { %1284 = vrot.lane.b32.xlu0 %v4600_v0, %s2711_s24  ;;  %1282 = vrot.lane.b32.xlu2 %v4601_v49, %s2711_s24 }
 0x135   : > { %v1114_v8 = vpop.permute.xlu1 %1113 }
 0x136   : > { %1210 = vst.msk [vmem:[#allocation2] sm:$0xf] %vm1209_vm9, %v1114_v8  ;;  %v1045_v61 = vpop.permute.xlu0 %1044  ;;  %v1128_v55 = vpop.permute.xlu2 %1127  ;;  %v4604_v8 = vld [vmem:[#allocation20_spill] sm:$0xff] }
 0x137   : > { %1110 = vst.msk [vmem:[#allocation2 + $0x7c] sm:$0xf] %vm1078_vm8, %v1045_v61  ;;  %v4605_v61 = vld [vmem:[#allocation33_spill] sm:$0xff] }
 0x138   : > { %1217 = vst.msk [vmem:[#allocation2 + $0x1c] sm:$0xf] %vm1209_vm9, %v1128_v55  ;;  %v4606_v55 = vld [vmem:[#allocation34_spill] sm:$0xff] }
 0x13b   : > { %1292 = vrot.lane.b32.xlu1 %v4602_v36, %s2711_s24 }
 0x13c   : > { %1290 = vrot.lane.b32.xlu0 %v4603_v45, %s2711_s24  ;;  %1288 = vrot.lane.b32.xlu2 %v4604_v8, %s2711_s24 }
 0x13d   : > { %v1120_v63 = vpop.permute.xlu1 %1119 }
 0x13e   : > { %1213 = vst.msk [vmem:[#allocation2 + $0xc] sm:$0xf] %vm1209_vm9, %v1120_v63  ;;  %v1118_v21 = vpop.permute.xlu0 %1117  ;;  %v1134_v15 = vpop.permute.xlu2 %1133  ;;  %v4607_v63 = vld [vmem:[#allocation26_spill] sm:$0xff] }
 0x13f   : > { %1212 = vst.msk [vmem:[#allocation2 + $0x8] sm:$0xf] %vm1209_vm9, %v1118_v21  ;;  %v4608_v21 = vld [vmem:[#allocation40_spill] sm:$0xff] }
 0x140   : > { %1220 = vst.msk [vmem:[#allocation2 + $0x28] sm:$0xf] %vm1209_vm9, %v1134_v15  ;;  %v4609_v15 = vld [vmem:[#allocation41_spill] sm:$0xff] }
 0x143   : > { %1298 = vrot.lane.b32.xlu1 %v4605_v61, %s2711_s24 }
 0x144   : > { %1296 = vrot.lane.b32.xlu0 %v4606_v55, %s2711_s24  ;;  %1294 = vrot.lane.b32.xlu2 %v4607_v63, %s2711_s24  ;;  %v1246_v63 = vshll.u32 %v3588_v24, 16 }
 0x145   : > { %v1126_v35 = vpop.permute.xlu1 %1125 }
 0x146   : > { %1216 = vst.msk [vmem:[#allocation2 + $0x18] sm:$0xf] %vm1209_vm9, %v1126_v35  ;;  %v1124_v58 = vpop.permute.xlu0 %1123  ;;  %v1140_v49 = vpop.permute.xlu2 %1139  ;;  %v4610_v35 = vld [vmem:[#allocation32_spill] sm:$0xff]  ;;  %v1248_v53 = vrot.slane %v1246_v63, 5 }
 0x147   : > { %1215 = vst.msk [vmem:[#allocation2 + $0x14] sm:$0xf] %vm1209_vm9, %v1124_v58 }
 0x148   : > { %1223 = vst.msk [vmem:[#allocation2 + $0x34] sm:$0xf] %vm1209_vm9, %v1140_v49 }
 0x14b   : > { %1304 = vrot.lane.b32.xlu1 %v4608_v21, %s2711_s24 }
 0x14c   : > { %1302 = vrot.lane.b32.xlu0 %v4609_v15, %s2711_s24  ;;  %1300 = vrot.lane.b32.xlu2 %v4610_v35, %s2711_s24  ;;  %v1252_v35 = vshll.u32 %v3603_v13, 16 }
 0x14d   : > { %v1132_v61 = vpop.permute.xlu1 %1131 }
 0x14e   : > { %1219 = vst.msk [vmem:[#allocation2 + $0x24] sm:$0xf] %vm1209_vm9, %v1132_v61  ;;  %v1130_v55 = vpop.permute.xlu0 %1129  ;;  %v1146_v0 = vpop.permute.xlu2 %1145  ;;  %v4611_v61 = vld [vmem:[#allocation38_spill] sm:$0xff] }
 0x14f   : > { %1218 = vst.msk [vmem:[#allocation2 + $0x20] sm:$0xf] %vm1209_vm9, %v1130_v55 }
 0x150   : > { %1226 = vst.msk [vmem:[#allocation2 + $0x40] sm:$0xf] %vm1209_vm9, %v1146_v0  ;;  %v1256_v0 = vshrl.u32 %v3603_v13, 16  ;;  %v4613_v13 = vld [vmem:[#allocation44_spill] sm:$0xff] }
 0x152   : > { %v1258_v19 = vrot.slane %v1256_v0, 4 }
 0x153   : > { %1310 = vrot.lane.b32.xlu1 %v3118_v41, %s2711_s24  ;;  %v1243_v41 = vshrl.u32 %v3588_v24, 16 }
 0x154   : > { %1308 = vrot.lane.b32.xlu0 %v3126_v57, %s2711_s24  ;;  %1306 = vrot.lane.b32.xlu2 %v4611_v61, %s2711_s24 }
 0x155   : > { %v1138_v58 = vpop.permute.xlu1 %1137  ;;  %v1245_v43 = vrot.slane %v1243_v41, 4 }
 0x156   : > { %1222 = vst.msk [vmem:[#allocation2 + $0x30] sm:$0xf] %vm1209_vm9, %v1138_v58  ;;  %v1136_v49 = vpop.permute.xlu0 %1135  ;;  %v1152_v55 = vpop.permute.xlu2 %1151  ;;  %v1254_v58 = vrot.slane %v1252_v35, 5 }
 0x157   : > { %1221 = vst.msk [vmem:[#allocation2 + $0x2c] sm:$0xf] %vm1209_vm9, %v1136_v49 }
 0x158   : > { %1229 = vst.msk [vmem:[#allocation2 + $0x4c] sm:$0xf] %vm1209_vm9, %v1152_v55  ;;  %v1259_v24 = vor.u32 %v1258_v19, %v1254_v58 }
 0x15a   : > { %v1260_v41 = vrot.slane %v1259_v24, 4 }
 0x15b   : > { %1316 = vrot.lane.b32.xlu1 %v3146_v62, %s2711_s24  ;;  %v1262_v62 = vshll.u32 %v3684_v7, 16 }
 0x15c   : > { %1314 = vrot.lane.b32.xlu0 %v3152_v28, %s2711_s24  ;;  %1312 = vrot.lane.b32.xlu2 %v4613_v13, %s2711_s24  ;;  %v1249_v28 = vor.u32 %v1248_v53, %v1245_v43 }
 0x15d   : > { %v1144_v49 = vpop.permute.xlu1 %1143  ;;  %v1264_v63 = vrot.slane %v1262_v62, 5 }
 0x15e   : > { %1225 = vst.msk [vmem:[#allocation2 + $0x3c] sm:$0xf] %vm1209_vm9, %v1144_v49  ;;  %v1142_v55 = vpop.permute.xlu0 %1141  ;;  %v1158_v61 = vpop.permute.xlu2 %1157  ;;  %v1250_v0 = vrot.slane %v1249_v28, 4 }
 0x15f   : > { %1224 = vst.msk [vmem:[#allocation2 + $0x38] sm:$0xf] %vm1209_vm9, %v1142_v55  ;;  %v3702_v53 = vsel %vm2791_vm2, %v1260_v41, %v1264_v63  ;;  %v4616_v63 = vld [vmem:[#allocation52_spill] sm:$0xff] }
 0x160   : > { %1232 = vst.msk [vmem:[#allocation2 + $0x58] sm:$0xf] %vm1209_vm9, %v1158_v61  ;;  %v3706_v43 = vsel %vm2791_vm2, %v1250_v0, %v1254_v58 }
 0x161   : > { %4614 = vst [vmem:[#allocation10_spill] sm:$0xff] %v3702_v53 }
 0x162   : > { %4615 = vst [vmem:[#allocation11_spill] sm:$0xff] %v3706_v43 }
 0x163   : > { %1322 = vrot.lane.b32.xlu1 %v3165_v50, %s2711_s24 }
 0x164   : > { %1320 = vrot.lane.b32.xlu0 %v3172_v48, %s2711_s24  ;;  %1318 = vrot.lane.b32.xlu2 %v3138_v40, %s2711_s24 }
 0x165   : > { %v1150_v35 = vpop.permute.xlu1 %1149 }
 0x166   : > { %1228 = vst.msk [vmem:[#allocation2 + $0x48] sm:$0xf] %vm1209_vm9, %v1150_v35  ;;  %v1148_v49 = vpop.permute.xlu0 %1147  ;;  %v1164_v19 = vpop.permute.xlu2 %1163 }
 0x167   : > { %1227 = vst.msk [vmem:[#allocation2 + $0x44] sm:$0xf] %vm1209_vm9, %v1148_v49  ;;  %v4617_v49 = vld [vmem:[#allocation50_spill] sm:$0xff] }
 0x168   : > { %1235 = vst.msk [vmem:[#allocation2 + $0x64] sm:$0xf] %vm1209_vm9, %v1164_v19 }
 0x16b   : > { %1328 = vrot.lane.b32.xlu1 %v3702_v53, %s2711_s24 }
 0x16c   : > { %1326 = vrot.lane.b32.xlu0 %v3706_v43, %s2711_s24  ;;  %1324 = vrot.lane.b32.xlu2 %v3161_v20, %s2711_s24 }
 0x16d   : > { %v1156_v62 = vpop.permute.xlu1 %1155 }
 0x16e   : > { %1231 = vst.msk [vmem:[#allocation2 + $0x54] sm:$0xf] %vm1209_vm9, %v1156_v62  ;;  %v1154_v28 = vpop.permute.xlu0 %1153  ;;  %v1170_v24 = vpop.permute.xlu2 %1169  ;;  %v4618_v62 = vld [vmem:[#allocation53_spill] sm:$0xff] }
 0x16f   : > { %1230 = vst.msk [vmem:[#allocation2 + $0x50] sm:$0xf] %vm1209_vm9, %v1154_v28  ;;  %v4619_v28 = vld [vmem:[#allocation54_spill] sm:$0xff] }
 0x170   : > { %1238 = vst.msk [vmem:[#allocation2 + $0x70] sm:$0xf] %vm1209_vm9, %v1170_v24 }
 0x173   : > { %1407 = vrot.lane.b32.xlu1 %v3232_v12, %s2712_s25 }
 0x174   : > { %1405 = vrot.lane.b32.xlu0 %v3243_v10, %s2712_s25  ;;  %1403 = vrot.lane.b32.xlu2 %v3194_v59, %s2712_s25 }
 0x175   : > { %v1162_v61 = vpop.permute.xlu1 %1161 }
 0x176   : > { %1234 = vst.msk [vmem:[#allocation2 + $0x60] sm:$0xf] %vm1209_vm9, %v1162_v61  ;;  %v1160_v58 = vpop.permute.xlu0 %1159  ;;  %v1176_v55 = vpop.permute.xlu2 %1175 }
 0x177   : > { %1233 = vst.msk [vmem:[#allocation2 + $0x5c] sm:$0xf] %vm1209_vm9, %v1160_v58  ;;  %v4620_v58 = vld [vmem:[#allocation51_spill] sm:$0xff] }
 0x178   : > { %1241 = vst.msk [vmem:[#allocation2 + $0x7c] sm:$0xf] %vm1209_vm9, %v1176_v55 }
 0x17b   : > { %1413 = vrot.lane.b32.xlu1 %v3272_v17, %s2712_s25 }
 0x17c   : > { %1411 = vrot.lane.b32.xlu0 %v3283_v18, %s2712_s25  ;;  %1409 = vrot.lane.b32.xlu2 %v3226_v4, %s2712_s25 }
 0x17d   : > { %v1168_v41 = vpop.permute.xlu1 %1167 }
 0x17e   : > { %1237 = vst.msk [vmem:[#allocation2 + $0x6c] sm:$0xf] %vm1209_vm9, %v1168_v41  ;;  %v1166_v10 = vpop.permute.xlu0 %1165  ;;  %v1271_v59 = vpop.permute.xlu2 %1270  ;;  %v4621_v41 = vld [vmem:[#allocation18_spill] sm:$0xff] }
 0x17f   : > { %1236 = vst.msk [vmem:[#allocation2 + $0x68] sm:$0xf] %vm1209_vm9, %v1166_v10  ;;  %v4622_v10 = vld [vmem:[#allocation55_spill] sm:$0xff] }
 0x180   : > { %1365 = vst.msk [vmem:[#allocation2 + $0x8] sm:$0xf] %vm1362_vm10, %v1271_v59 }
 0x183   : > { %1419 = vrot.lane.b32.xlu1 %v3308_v25, %s2712_s25 }
 0x184   : > { %1417 = vrot.lane.b32.xlu0 %v4616_v63, %s2712_s25  ;;  %1415 = vrot.lane.b32.xlu2 %v4617_v49, %s2712_s25 }
 0x185   : > { %v1174_v35 = vpop.permute.xlu1 %1173 }
 0x186   : > { %1240 = vst.msk [vmem:[#allocation2 + $0x78] sm:$0xf] %vm1209_vm9, %v1174_v35  ;;  %v1172_v0 = vpop.permute.xlu0 %1171  ;;  %v1277_v19 = vpop.permute.xlu2 %1276 }
 0x187   : > { %1239 = vst.msk [vmem:[#allocation2 + $0x74] sm:$0xf] %vm1209_vm9, %v1172_v0  ;;  %v4623_v0 = vld [vmem:[#allocation12_spill] sm:$0xff] }
 0x188   : > { %1368 = vst.msk [vmem:[#allocation2 + $0x14] sm:$0xf] %vm1362_vm10, %v1277_v19 }
 0x18b   : > { %1425 = vrot.lane.b32.xlu1 %v4618_v62, %s2712_s25 }
 0x18c   : > { %1423 = vrot.lane.b32.xlu0 %v4619_v28, %s2712_s25  ;;  %1421 = vrot.lane.b32.xlu2 %v4620_v58, %s2712_s25 }
 0x18d   : > { %v1269_v24 = vpop.permute.xlu1 %1268 }
 0x18e   : > { %1364 = vst.msk [vmem:[#allocation2 + $0x4] sm:$0xf] %vm1362_vm10, %v1269_v24  ;;  %v1267_v61 = vpop.permute.xlu0 %1266  ;;  %v1283_v55 = vpop.permute.xlu2 %1282  ;;  %v4624_v24 = vld [vmem:[#allocation57_spill] sm:$0xff] }
 0x18f   : > { %1363 = vst.msk [vmem:[#allocation2] sm:$0xf] %vm1362_vm10, %v1267_v61 }
 0x190   : > { %1371 = vst.msk [vmem:[#allocation2 + $0x20] sm:$0xf] %vm1362_vm10, %v1283_v55 }
 0x193   : > { %1431 = vrot.lane.b32.xlu1 %v4621_v41, %s2712_s25 }
 0x194   : > { %1429 = vrot.lane.b32.xlu0 %v4622_v10, %s2712_s25  ;;  %1427 = vrot.lane.b32.xlu2 %v4623_v0, %s2712_s25 }
 0x195   : > { %v1275_v59 = vpop.permute.xlu1 %1274 }
 0x196   : > { %1367 = vst.msk [vmem:[#allocation2 + $0x10] sm:$0xf] %vm1362_vm10, %v1275_v59  ;;  %v1273_v35 = vpop.permute.xlu0 %1272  ;;  %v1289_v19 = vpop.permute.xlu2 %1288  ;;  %v4625_v59 = vld [vmem:[#allocation25_spill] sm:$0xff] }
 0x197   : > { %1366 = vst.msk [vmem:[#allocation2 + $0xc] sm:$0xf] %vm1362_vm10, %v1273_v35  ;;  %v4626_v35 = vld [vmem:[#allocation30_spill] sm:$0xff] }
 0x198   : > { %1374 = vst.msk [vmem:[#allocation2 + $0x2c] sm:$0xf] %vm1362_vm10, %v1289_v19  ;;  %v4627_v19 = vld [vmem:[#allocation58_spill] sm:$0xff] }
 0x19b   : > { %1437 = vrot.lane.b32.xlu1 %v3396_v46, %s2712_s25 }
 0x19c   : > { %1435 = vrot.lane.b32.xlu0 %v4624_v24, %s2712_s25  ;;  %1433 = vrot.lane.b32.xlu2 %v4625_v59, %s2712_s25 }
 0x19d   : > { %v1281_v61 = vpop.permute.xlu1 %1280 }
 0x19e   : > { %1370 = vst.msk [vmem:[#allocation2 + $0x1c] sm:$0xf] %vm1362_vm10, %v1281_v61  ;;  %v1279_v55 = vpop.permute.xlu0 %1278  ;;  %v1295_v27 = vpop.permute.xlu2 %1294  ;;  %v4628_v61 = vld [vmem:[#allocation24_spill] sm:$0xff] }
 0x19f   : > { %1369 = vst.msk [vmem:[#allocation2 + $0x18] sm:$0xf] %vm1362_vm10, %v1279_v55 }
 0x1a0   : > { %1377 = vst.msk [vmem:[#allocation2 + $0x38] sm:$0xf] %vm1362_vm10, %v1295_v27 }
 0x1a3   : > { %1443 = vrot.lane.b32.xlu1 %v4626_v35, %s2712_s25 }
 0x1a4   : > { %1441 = vrot.lane.b32.xlu0 %v4627_v19, %s2712_s25  ;;  %1439 = vrot.lane.b32.xlu2 %v4628_v61, %s2712_s25 }
 0x1a5   : > { %v1287_v43 = vpop.permute.xlu1 %1286 }
 0x1a6   : > { %1373 = vst.msk [vmem:[#allocation2 + $0x28] sm:$0xf] %vm1362_vm10, %v1287_v43  ;;  %v1285_v7 = vpop.permute.xlu0 %1284  ;;  %v1301_v53 = vpop.permute.xlu2 %1300  ;;  %v4629_v43 = vld [vmem:[#allocation37_spill] sm:$0xff] }
 0x1a7   : > { %1372 = vst.msk [vmem:[#allocation2 + $0x24] sm:$0xf] %vm1362_vm10, %v1285_v7 }
 0x1a8   : > { %1380 = vst.msk [vmem:[#allocation2 + $0x44] sm:$0xf] %vm1362_vm10, %v1301_v53 }
 0x1ab   : > { %1449 = vrot.lane.b32.xlu1 %v3447_v14, %s2712_s25 }
 0x1ac   : > { %1447 = vrot.lane.b32.xlu0 %v3454_v52, %s2712_s25  ;;  %1445 = vrot.lane.b32.xlu2 %v4629_v43, %s2712_s25 }
 0x1ad   : > { %v1293_v27 = vpop.permute.xlu1 %1292 }
 0x1ae   : > { %1376 = vst.msk [vmem:[#allocation2 + $0x34] sm:$0xf] %vm1362_vm10, %v1293_v27  ;;  %v1291_v55 = vpop.permute.xlu0 %1290  ;;  %v1307_v24 = vpop.permute.xlu2 %1306  ;;  %v4630_v27 = vld [vmem:[#allocation35_spill] sm:$0xff] }
 0x1af   : > { %1375 = vst.msk [vmem:[#allocation2 + $0x30] sm:$0xf] %vm1362_vm10, %v1291_v55 }
 0x1b0   : > { %1383 = vst.msk [vmem:[#allocation2 + $0x50] sm:$0xf] %vm1362_vm10, %v1307_v24 }
 0x1b3   : > { %1455 = vrot.lane.b32.xlu1 %v3471_v54, %s2712_s25 }
 0x1b4   : > { %1453 = vrot.lane.b32.xlu0 %v3479_v9, %s2712_s25  ;;  %1451 = vrot.lane.b32.xlu2 %v4630_v27, %s2712_s25 }
 0x1b5   : > { %v1299_v7 = vpop.permute.xlu1 %1298 }
 0x1b6   : > { %1379 = vst.msk [vmem:[#allocation2 + $0x40] sm:$0xf] %vm1362_vm10, %v1299_v7  ;;  %v1297_v53 = vpop.permute.xlu0 %1296  ;;  %v1313_v46 = vpop.permute.xlu2 %1312 }
 0x1b7   : > { %1378 = vst.msk [vmem:[#allocation2 + $0x3c] sm:$0xf] %vm1362_vm10, %v1297_v53 }
 0x1b8   : > { %1386 = vst.msk [vmem:[#allocation2 + $0x5c] sm:$0xf] %vm1362_vm10, %v1313_v46 }
 0x1bb   : > { %1534 = vrot.lane.b32.xlu1 %v2800_v37, %s2713_s26 }
 0x1bc   : > { %1459 = vrot.lane.b32.xlu0 %v3498_v39, %s2712_s25  ;;  %1457 = vrot.lane.b32.xlu2 %v3467_v60, %s2712_s25 }
 0x1bd   : > { %v1305_v24 = vpop.permute.xlu1 %1304 }
 0x1be   : > { %1382 = vst.msk [vmem:[#allocation2 + $0x4c] sm:$0xf] %vm1362_vm10, %v1305_v24  ;;  %v1303_v55 = vpop.permute.xlu0 %1302  ;;  %v1319_v7 = vpop.permute.xlu2 %1318 }
 0x1bf   : > { %1381 = vst.msk [vmem:[#allocation2 + $0x48] sm:$0xf] %vm1362_vm10, %v1303_v55 }
 0x1c0   : > { %1389 = vst.msk [vmem:[#allocation2 + $0x68] sm:$0xf] %vm1362_vm10, %v1319_v7 }
 0x1c3   : > { %1689 = vrot.lane.b32.xlu1 %v4594_v30, %s2714_s27 }
 0x1c4   : > { %1687 = vrot.lane.b32.xlu0 %v4595_v51, %s2714_s27  ;;  %1536 = vrot.lane.b32.xlu2 %v2811_v42, %s2713_s26 }
 0x1c5   : > { %v1311_v37 = vpop.permute.xlu1 %1310 }
 0x1c6   : > { %1385 = vst.msk [vmem:[#allocation2 + $0x58] sm:$0xf] %vm1362_vm10, %v1311_v37  ;;  %v1309_v46 = vpop.permute.xlu0 %1308  ;;  %v1325_v53 = vpop.permute.xlu2 %1324 }
 0x1c7   : > { %1384 = vst.msk [vmem:[#allocation2 + $0x54] sm:$0xf] %vm1362_vm10, %v1309_v46 }
 0x1c8   : > { %1392 = vst.msk [vmem:[#allocation2 + $0x74] sm:$0xf] %vm1362_vm10, %v1325_v53 }
 0x1cb   : > { %1538 = vrot.lane.b32.xlu1 %v2797_v31, %s2713_s26 }
 0x1cc   : > { %1826 = vrot.lane.b32.xlu0 %v3226_v4, %s2715_s28  ;;  %1824 = vrot.lane.b32.xlu2 %v3232_v12, %s2715_s28 }
 0x1cd   : > { %v1317_v30 = vpop.permute.xlu1 %1316 }
 0x1ce   : > { %1388 = vst.msk [vmem:[#allocation2 + $0x64] sm:$0xf] %vm1362_vm10, %v1317_v30  ;;  %v1315_v51 = vpop.permute.xlu0 %1314  ;;  %v1404_v42 = vpop.permute.xlu2 %1403  ;;  %v4631_v30 = vld [vmem:[#allocation38_spill] sm:$0xff] }
 0x1cf   : > { %1387 = vst.msk [vmem:[#allocation2 + $0x60] sm:$0xf] %vm1362_vm10, %v1315_v51 }
 0x1d0   : > { %1500 = vst.msk [vmem:[#allocation2] sm:$0xf] %vm1499_vm11, %v1404_v42  ;;  %v4632_v42 = vld [vmem:[#allocation5_spill] sm:$0xff] }
 0x1d3   : > { %1552 = vrot.lane.b32.xlu1 %v2850_v16, %s2713_s26 }
 0x1d4   : > { %1550 = vrot.lane.b32.xlu0 %v2871_v33, %s2713_s26  ;;  %1540 = vrot.lane.b32.xlu2 %v2785_v22, %s2713_s26 }
 0x1d5   : > { %v1323_v31 = vpop.permute.xlu1 %1322 }
 0x1d6   : > { %1391 = vst.msk [vmem:[#allocation2 + $0x70] sm:$0xf] %vm1362_vm10, %v1323_v31  ;;  %v1321_v4 = vpop.permute.xlu0 %1320  ;;  %v1410_v12 = vpop.permute.xlu2 %1409  ;;  %v4633_v31 = vld [vmem:[#allocation17_spill] sm:$0xff] }
 0x1d7   : > { %1390 = vst.msk [vmem:[#allocation2 + $0x6c] sm:$0xf] %vm1362_vm10, %v1321_v4  ;;  %v4634_v4 = vld [vmem:[#allocation13_spill] sm:$0xff] }
 0x1d8   : > { %1503 = vst.msk [vmem:[#allocation2 + $0xc] sm:$0xf] %vm1499_vm11, %v1410_v12 }
 0x1db   : > { %1703 = vrot.lane.b32.xlu1 %v4599_v44, %s2714_s27 }
 0x1dc   : > { %1693 = vrot.lane.b32.xlu0 %v4598_v47, %s2714_s27  ;;  %1691 = vrot.lane.b32.xlu2 %v4593_v1, %s2714_s27 }
 0x1dd   : > { %v1329_v16 = vpop.permute.xlu1 %1328 }
 0x1de   : > { %1394 = vst.msk [vmem:[#allocation2 + $0x7c] sm:$0xf] %vm1362_vm10, %v1329_v16  ;;  %v1327_v33 = vpop.permute.xlu0 %1326  ;;  %v1416_v22 = vpop.permute.xlu2 %1415 }
 0x1df   : > { %1393 = vst.msk [vmem:[#allocation2 + $0x78] sm:$0xf] %vm1362_vm10, %v1327_v33  ;;  %v4635_v33 = vld [vmem:[#allocation7_spill] sm:$0xff] }
 0x1e0   : > { %1506 = vst.msk [vmem:[#allocation2 + $0x18] sm:$0xf] %vm1499_vm11, %v1416_v22  ;;  %v4636_v22 = vld [vmem:[#allocation26_spill] sm:$0xff] }
 0x1e3   : > { %1830 = vrot.lane.b32.xlu1 %v3272_v17, %s2715_s28 }
 0x1e4   : > { %1828 = vrot.lane.b32.xlu0 %v3283_v18, %s2715_s28  ;;  %1705 = vrot.lane.b32.xlu2 %v4604_v8, %s2714_s27 }
 0x1e5   : > { %v1408_v44 = vpop.permute.xlu1 %1407 }
 0x1e6   : > { %1502 = vst.msk [vmem:[#allocation2 + $0x8] sm:$0xf] %vm1499_vm11, %v1408_v44  ;;  %v1406_v47 = vpop.permute.xlu0 %1405  ;;  %v1422_v1 = vpop.permute.xlu2 %1421  ;;  %v4637_v44 = vld [vmem:[#allocation23_spill] sm:$0xff] }
 0x1e7   : > { %1501 = vst.msk [vmem:[#allocation2 + $0x4] sm:$0xf] %vm1499_vm11, %v1406_v47 }
 0x1e8   : > { %1509 = vst.msk [vmem:[#allocation2 + $0x24] sm:$0xf] %vm1499_vm11, %v1422_v1 }
 0x1eb   : > { %1566 = vrot.lane.b32.xlu1 %v2997_v32, %s2713_s26 }
 0x1ec   : > { %1842 = vrot.lane.b32.xlu0 %v4618_v62, %s2715_s28  ;;  %1840 = vrot.lane.b32.xlu2 %v4619_v28, %s2715_s28 }
 0x1ed   : > { %v1414_v17 = vpop.permute.xlu1 %1413 }
 0x1ee   : > { %1505 = vst.msk [vmem:[#allocation2 + $0x14] sm:$0xf] %vm1499_vm11, %v1414_v17  ;;  %v1412_v18 = vpop.permute.xlu0 %1411  ;;  %v1428_v8 = vpop.permute.xlu2 %1427  ;;  %v4638_v17 = vld [vmem:[#allocation14_spill] sm:$0xff] }
 0x1ef   : > { %1504 = vst.msk [vmem:[#allocation2 + $0x10] sm:$0xf] %vm1499_vm11, %v1412_v18 }
 0x1f0   : > { %1512 = vst.msk [vmem:[#allocation2 + $0x30] sm:$0xf] %vm1499_vm11, %v1428_v8 }
 0x1f3   : > { %1721 = vrot.lane.b32.xlu1 %v4608_v21, %s2714_s27 }
 0x1f4   : > { %1719 = vrot.lane.b32.xlu0 %v4609_v15, %s2714_s27  ;;  %1568 = vrot.lane.b32.xlu2 %v2984_v5, %s2713_s26 }
 0x1f5   : > { %v1420_v32 = vpop.permute.xlu1 %1419 }
 0x1f6   : > { %1508 = vst.msk [vmem:[#allocation2 + $0x20] sm:$0xf] %vm1499_vm11, %v1420_v32  ;;  %v1418_v62 = vpop.permute.xlu0 %1417  ;;  %v1434_v28 = vpop.permute.xlu2 %1433 }
 0x1f7   : > { %1507 = vst.msk [vmem:[#allocation2 + $0x1c] sm:$0xf] %vm1499_vm11, %v1418_v62  ;;  %v4639_v62 = vld [vmem:[#allocation34_spill] sm:$0xff] }
 0x1f8   : > { %1515 = vst.msk [vmem:[#allocation2 + $0x3c] sm:$0xf] %vm1499_vm11, %v1434_v28 }
 0x1fb   : > { %1542 = vrot.lane.b32.xlu1 %v2864_v29, %s2713_s26 }
 0x1fc   : > { %1858 = vrot.lane.b32.xlu0 %v4627_v19, %s2715_s28  ;;  %1856 = vrot.lane.b32.xlu2 %v4628_v61, %s2715_s28 }
 0x1fd   : > { %v1426_v21 = vpop.permute.xlu1 %1425 }
 0x1fe   : > { %1511 = vst.msk [vmem:[#allocation2 + $0x2c] sm:$0xf] %vm1499_vm11, %v1426_v21  ;;  %v1424_v15 = vpop.permute.xlu0 %1423  ;;  %v1440_v5 = vpop.permute.xlu2 %1439  ;;  %v4640_v21 = vld [vmem:[#allocation31_spill] sm:$0xff] }
 0x1ff   : > { %1510 = vst.msk [vmem:[#allocation2 + $0x28] sm:$0xf] %vm1499_vm11, %v1424_v15 }
 0x200   : > { %1518 = vst.msk [vmem:[#allocation2 + $0x48] sm:$0xf] %vm1499_vm11, %v1440_v5 }
 0x203   : > { %1556 = vrot.lane.b32.xlu1 %v2906_v11, %s2713_s26 }
 0x204   : > { %1554 = vrot.lane.b32.xlu0 %v2919_v26, %s2713_s26  ;;  %1544 = vrot.lane.b32.xlu2 %v2829_v56, %s2713_s26 }
 0x205   : > { %v1432_v29 = vpop.permute.xlu1 %1431 }
 0x206   : > { %1514 = vst.msk [vmem:[#allocation2 + $0x38] sm:$0xf] %vm1499_vm11, %v1432_v29  ;;  %v1430_v19 = vpop.permute.xlu0 %1429  ;;  %v1446_v61 = vpop.permute.xlu2 %1445  ;;  %v4641_v29 = vld [vmem:[#allocation43_spill] sm:$0xff] }
 0x207   : > { %1513 = vst.msk [vmem:[#allocation2 + $0x34] sm:$0xf] %vm1499_vm11, %v1430_v19 }
 0x208   : > { %1521 = vst.msk [vmem:[#allocation2 + $0x54] sm:$0xf] %vm1499_vm11, %v1446_v61 }
 0x20b   : > { %1707 = vrot.lane.b32.xlu1 %v4603_v45, %s2714_s27 }
 0x20c   : > { %1697 = vrot.lane.b32.xlu0 %v4596_v6, %s2714_s27  ;;  %1695 = vrot.lane.b32.xlu2 %v4597_v2, %s2714_s27  ;;  %v1989_v2 = vld [vmem:[%s4398_s1 + $0x10] sm:$0x3] }
 0x20d   : > { %v1438_v11 = vpop.permute.xlu1 %1437  ;;  %v2079_v55 = vunpack.c.l.b16 %v1989_v2 }
 0x20e   : > { %1517 = vst.msk [vmem:[#allocation2 + $0x44] sm:$0xf] %vm1499_vm11, %v1438_v11  ;;  %v1436_v26 = vpop.permute.xlu0 %1435  ;;  %v1452_v56 = vpop.permute.xlu2 %1451 }
 0x20f   : > { %1516 = vst.msk [vmem:[#allocation2 + $0x40] sm:$0xf] %vm1499_vm11, %v1436_v26 }
 0x210   : > { %1524 = vst.msk [vmem:[#allocation2 + $0x60] sm:$0xf] %vm1499_vm11, %v1452_v56 }
 0x213   : > { %1834 = vrot.lane.b32.xlu1 %v4616_v63, %s2715_s28  ;;  %v2082_v63 = vpack.c.b16 %v2079_v55, %v2079_v55 }
 0x214   : > { %1832 = vrot.lane.b32.xlu0 %v4617_v49, %s2715_s28  ;;  %1709 = vrot.lane.b32.xlu2 %v4602_v36, %s2714_s27 }
 0x215   : > { %v1444_v45 = vpop.permute.xlu1 %1443  ;;  %v2136_v49 = vsel %vm2134_vm12, %v2082_v63, 0 }
 0x216   : > { %1520 = vst.msk [vmem:[#allocation2 + $0x50] sm:$0xf] %vm1499_vm11, %v1444_v45  ;;  %v1442_v6 = vpop.permute.xlu0 %1441  ;;  %v1458_v24 = vpop.permute.xlu2 %1457  ;;  %2143 = vmatpush.bf16.msra.mxu0 %v2136_v49  ;;  %2673 = vmatpush.bf16.msra.mxu1 %v2136_v49 }
 0x217   : > { %1519 = vst.msk [vmem:[#allocation2 + $0x4c] sm:$0xf] %vm1499_vm11, %v1442_v6  ;;  %2674 = vmatpush.bf16.msra.mxu2 %v2136_v49  ;;  %2675 = vmatpush.bf16.msra.mxu3 %v2136_v49  ;;  %v4644_v6 = vld [vmem:[#allocation46_spill] sm:$0xff] }
 0x218   : > { %1527 = vst.msk [vmem:[#allocation2 + $0x6c] sm:$0xf] %vm1499_vm11, %v1458_v24 }
 0x21b   : > { %1570 = vrot.lane.b32.xlu1 %v2979_v3, %s2713_s26  ;;  %v2672_v3 = vld [vmem:[%s4398_s1 + $0x8] sm:$0xff] }
 0x21c   : > { %1846 = vrot.lane.b32.xlu0 %v4622_v10, %s2715_s28  ;;  %1844 = vrot.lane.b32.xlu2 %v4623_v0, %s2715_s28  ;;  %v2671_v0 = vld [vmem:[%s4398_s1] sm:$0xff] }
 0x21d   : > { %v1450_v36 = vpop.permute.xlu1 %1449  ;;  %2144 = vmatpush.bf16.msra.mxu0 %v2672_v3  ;;  %2676 = vmatpush.bf16.msra.mxu1 %v2672_v3 }
 0x21e   : > { %1523 = vst.msk [vmem:[#allocation2 + $0x5c] sm:$0xf] %vm1499_vm11, %v1450_v36  ;;  %v1448_v7 = vpop.permute.xlu0 %1447  ;;  %v1537_v10 = vpop.permute.xlu2 %1536  ;;  %2677 = vmatpush.bf16.msra.mxu2 %v2672_v3  ;;  %2678 = vmatpush.bf16.msra.mxu3 %v2672_v3  ;;  %v4647_v36 = vld [vmem:[#allocation32_spill] sm:$0xff] }
 0x21f   : > { %1522 = vst.msk [vmem:[#allocation2 + $0x58] sm:$0xf] %vm1499_vm11, %v1448_v7  ;;  %v4648_v7 = vld [vmem:[#allocation33_spill] sm:$0xff] }
 0x220   : > { %1632 = vst.msk [vmem:[#allocation2 + $0x4] sm:$0xf] %vm1630_vm13, %v1537_v10 }
 0x221   : > { %2145 = vmatpush.bf16.msra.mxu0 %v2671_v0  ;;  %2679 = vmatpush.bf16.msra.mxu1 %v2671_v0 }
 0x222   : > { %2680 = vmatpush.bf16.msra.mxu2 %v2671_v0  ;;  %2681 = vmatpush.bf16.msra.mxu3 %v2671_v0  ;;  %v4649_v0 = vld [vmem:[#allocation19_spill] sm:$0xff] }
 0x223   : > { %1584 = vrot.lane.b32.xlu1 %v3091_v23, %s2713_s26 }
 0x224   : > { %1582 = vrot.lane.b32.xlu0 %v3057_v38, %s2713_s26  ;;  %1572 = vrot.lane.b32.xlu2 %v3020_v34, %s2713_s26 }
 0x225   : > { %v1456_v37 = vpop.permute.xlu1 %1455 }
 0x226   : > { %1526 = vst.msk [vmem:[#allocation2 + $0x68] sm:$0xf] %vm1499_vm11, %v1456_v37  ;;  %v1454_v46 = vpop.permute.xlu0 %1453  ;;  %v1825_v23 = vpop.permute.xlu2 %1824  ;;  %v4650_v37 = vld [vmem:[#allocation56_spill] sm:$0xff] }
 0x227   : > { %1525 = vst.msk [vmem:[#allocation2 + $0x64] sm:$0xf] %vm1499_vm11, %v1454_v46 }
 0x22b   : > { %1735 = vrot.lane.b32.xlu1 %v3138_v40, %s2714_s27 }
 0x22c   : > { %1725 = vrot.lane.b32.xlu0 %v3126_v57, %s2714_s27  ;;  %1723 = vrot.lane.b32.xlu2 %v4631_v30, %s2714_s27 }
 0x22d   : > { %v1535_v38 = vpop.permute.xlu1 %1534 }
 0x22e   : > { %1631 = vst.msk [vmem:[#allocation2] sm:$0xf] %vm1630_vm13, %v1535_v38  ;;  %v1460_v53 = vpop.permute.xlu0 %1459  ;;  %v1541_v34 = vpop.permute.xlu2 %1540 }
 0x22f   : > { %1528 = vst.msk [vmem:[#allocation2 + $0x70] sm:$0xf] %vm1499_vm11, %v1460_v53  ;;  %v4651_v53 = vld [vmem:[#allocation57_spill] sm:$0xff] }
 0x230   : > { %1634 = vst.msk [vmem:[#allocation2 + $0xc] sm:$0xf] %vm1630_vm13, %v1541_v34  ;;  %v4652_v34 = vld [vmem:[#allocation59_spill] sm:$0xff] }
 0x233   : > { %1862 = vrot.lane.b32.xlu1 %v4629_v43, %s2715_s28 }
 0x234   : > { %1860 = vrot.lane.b32.xlu0 %v4626_v35, %s2715_s28  ;;  %1737 = vrot.lane.b32.xlu2 %v3172_v48, %s2714_s27 }
 0x235   : > { %v1690_v57 = vpop.permute.xlu1 %1689 }
 0x236   : > { %1785 = vst.msk [vmem:[#allocation2 + $0x4] sm:$0xf] %vm1783_vm14, %v1690_v57  ;;  %v1688_v40 = vpop.permute.xlu0 %1687  ;;  %v1692_v51 = vpop.permute.xlu2 %1691  ;;  %v4653_v57 = vld [vmem:[#allocation36_spill] sm:$0xff] }
 0x237   : > { %1784 = vst.msk [vmem:[#allocation2] sm:$0xf] %vm1783_vm14, %v1688_v40 }
 0x238   : > { %1921 = vst.msk [vmem:[#allocation2] sm:$0xf] %vm1920_vm15, %v1825_v23 }
 0x23b   : > { %1546 = vrot.lane.b32.xlu1 %v4632_v42, %s2713_s26 }
 0x23c   : > { %1874 = vrot.lane.b32.xlu0 %v3467_v60, %s2715_s28  ;;  %1872 = vrot.lane.b32.xlu2 %v3471_v54, %s2715_s28 }
 0x23d   : > { %v1539_v35 = vpop.permute.xlu1 %1538 }
 0x23e   : > { %1633 = vst.msk [vmem:[#allocation2 + $0x8] sm:$0xf] %vm1630_vm13, %v1539_v35  ;;  %v1827_v43 = vpop.permute.xlu0 %1826  ;;  %v1706_v48 = vpop.permute.xlu2 %1705  ;;  %v4654_v35 = vld [vmem:[#allocation39_spill] sm:$0xff] }
 0x23f   : > { %1922 = vst.msk [vmem:[#allocation2 + $0x4] sm:$0xf] %vm1920_vm15, %v1827_v43 }
 0x240   : > { %1786 = vst.msk [vmem:[#allocation2 + $0x8] sm:$0xf] %vm1783_vm14, %v1692_v51 }
 0x243   : > { %1560 = vrot.lane.b32.xlu1 %v4633_v31, %s2713_s26  ;;  %v4656_v31 = vld [vmem:[#allocation48_spill] sm:$0xff] }
 0x244   : > { %1558 = vrot.lane.b32.xlu0 %v4634_v4, %s2713_s26  ;;  %1548 = vrot.lane.b32.xlu2 %v4635_v33, %s2713_s26 }
 0x245   : > { %v1553_v12 = vpop.permute.xlu1 %1552 }
 0x246   : > { %1640 = vst.msk [vmem:[#allocation2 + $0x24] sm:$0xf] %vm1630_vm13, %v1553_v12  ;;  %v1551_v60 = vpop.permute.xlu0 %1550  ;;  %v2655_v16 = vld [vmem:[#allocation2] sm:$0xff]  ;;  %v1841_v54 = vpop.permute.xlu2 %1840 }
 0x247   : > { %1639 = vst.msk [vmem:[#allocation2 + $0x20] sm:$0xf] %vm1630_vm13, %v1551_v60  ;;  %2636 = vmatmul.msk.bf16.vlgmr.msra.gmra.mxu0 %vm2085_vm0, %v2655_v16  ;;  %v4657_v60 = vld [vmem:[#allocation6_spill] sm:$0xff] }
 0x248   : > { %1793 = vst.msk [vmem:[#allocation2 + $0x24] sm:$0xf] %vm1783_vm14, %v1706_v48  ;;  %v4655_v48 = vld [vmem:[#allocation47_spill] sm:$0xff]  ;;  %v1398_v16 = vrot.slane %v4657_v60, 5 }
 0x24b   : > { %1711 = vrot.lane.b32.xlu1 %v4636_v22, %s2714_s27  ;;  %v1400_v22 = vrot.slane %v1398_v16, 4 }
 0x24c   : > { %1701 = vrot.lane.b32.xlu0 %v4637_v44, %s2714_s27  ;;  %1699 = vrot.lane.b32.xlu2 %v4638_v17, %s2714_s27  ;;  %v4659_v44 = vld [vmem:[#allocation4_spill] sm:$0xff]  ;;  %v2699_v17 = vld [vmem:[%s2755_s20 + $0xc0] sm:$0xf] }
 0x24d   : > { %v1704_v47 = vpop.permute.xlu1 %1703 }
 0x24e   : > { %1792 = vst.msk [vmem:[#allocation2 + $0x20] sm:$0xf] %vm1783_vm14, %v1704_v47  ;;  %v1694_v1 = vpop.permute.xlu0 %1693  ;;  %v1569_v18 = vpop.permute.xlu2 %1568  ;;  %v1401_v47 = vrot.slane %v4659_v44, 5 }
 0x24f   : > { %1787 = vst.msk [vmem:[#allocation2 + $0xc] sm:$0xf] %vm1783_vm14, %v1694_v1 }
 0x250   : > { %1929 = vst.msk [vmem:[#allocation2 + $0x20] sm:$0xf] %vm1920_vm15, %v1841_v54  ;;  %v4658_v54 = vld [vmem:[#allocation10_spill] sm:$0xff] }
 0x251   : > { %1648 = vst.msk [vmem:[#allocation2 + $0x44] sm:$0xf] %vm1630_vm13, %v1569_v18  ;;  %v2562_v18 = vrot.slane %v2699_v17, 9 }
 0x253   : > { %1838 = vrot.lane.b32.xlu1 %v4620_v58, %s2715_s28 }
 0x254   : > { %1836 = vrot.lane.b32.xlu0 %v3308_v25, %s2715_s28  ;;  %1713 = vrot.lane.b32.xlu2 %v4639_v62, %s2714_s27  ;;  %v4086_v62 = vld [vmem:[%s2755_s20 + $0xcc] sm:$0xf] }
 0x255   : > { %v1831_v8 = vpop.permute.xlu1 %1830 }
 0x256   : > { %1924 = vst.msk [vmem:[#allocation2 + $0xc] sm:$0xf] %vm1920_vm15, %v1831_v8  ;;  %v1829_v32 = vpop.permute.xlu0 %1828  ;;  %v1857_v28 = vpop.permute.xlu2 %1856 }
 0x257   : > { %1923 = vst.msk [vmem:[#allocation2 + $0x8] sm:$0xf] %vm1920_vm15, %v1829_v32  ;;  %v4660_v32 = vld [vmem:[#allocation11_spill] sm:$0xff] }
 0x25b   : > { %1574 = vrot.lane.b32.xlu1 %v4640_v21, %s2713_s26  ;;  %v1402_v21 = vsel %vm3178_vm6, %v1400_v22, %v1401_v47 }
 0x25c   : > { %1850 = vrot.lane.b32.xlu0 %v4625_v59, %s2715_s28  ;;  %1848 = vrot.lane.b32.xlu2 %v4621_v41, %s2715_s28  ;;  %v4642_v59 = vld [vmem:[#allocation45_spill] sm:$0xff] }
 0x25d   : > { %v1567_v58 = vpop.permute.xlu1 %1566  ;;  %v4643_v41 = vld [vmem:[#allocation29_spill] sm:$0xff] }
 0x25e   : > { %1647 = vst.msk [vmem:[#allocation2 + $0x40] sm:$0xf] %vm1630_vm13, %v1567_v58  ;;  %v1843_v25 = vpop.permute.xlu0 %1842  ;;  %v2656_v15 = vld [vmem:[#allocation2 + $0x8] sm:$0xff]  ;;  %v1545_v5 = vpop.permute.xlu2 %1544 }
 0x25f   : > { %1930 = vst.msk [vmem:[#allocation2 + $0x24] sm:$0xf] %vm1920_vm15, %v1843_v25  ;;  %2637 = vmatmul.msk.bf16.gmra.mxu0 %vm2085_vm0, %v2656_v15  ;;  %v1399_v15 = vsel %vm3178_vm6, %v2562_v18, %v1398_v16 }
 0x260   : > { %1636 = vst.msk [vmem:[#allocation2 + $0x14] sm:$0xf] %vm1630_vm13, %v1545_v5  ;;  %v1664_v5 = vshrl.u32 %v4086_v62, 16 }
 0x263   : > { %1588 = vrot.lane.b32.xlu1 %v4641_v29, %s2713_s26  ;;  %v1667_v29 = vshll.u32 %v4086_v62, 16 }
 0x264   : > { %1586 = vrot.lane.b32.xlu0 %v4642_v59, %s2713_s26  ;;  %1576 = vrot.lane.b32.xlu2 %v4643_v41, %s2713_s26 }
 0x265   : > { %v1722_v19 = vpop.permute.xlu1 %1721  ;;  %v1669_v41 = vrot.slane %v1667_v29, 5 }
 0x266   : > { %1801 = vst.msk [vmem:[#allocation2 + $0x44] sm:$0xf] %vm1783_vm14, %v1722_v19  ;;  %v1720_v61 = vpop.permute.xlu0 %1719  ;;  %v2659_v11 = vld [vmem:[#allocation2 + $0x20] sm:$0xff]  ;;  %v1696_v26 = vpop.permute.xlu2 %1695 }
 0x267   : > { %1800 = vst.msk [vmem:[#allocation2 + $0x40] sm:$0xf] %vm1783_vm14, %v1720_v61  ;;  %2640 = vmatmul.msk.bf16.vlgmr.msra.gmra.mxu1 %vm2085_vm0, %v2659_v11  ;;  %v1666_v11 = vrot.slane %v1664_v5, 4 }
 0x268   : > { %1937 = vst.msk [vmem:[#allocation2 + $0x40] sm:$0xf] %vm1920_vm15, %v1857_v28 }
 0x26b   : > { %1739 = vrot.lane.b32.xlu1 %v3165_v50, %s2714_s27 }
 0x26c   : > { %1729 = vrot.lane.b32.xlu0 %v4613_v13, %s2714_s27  ;;  %1727 = vrot.lane.b32.xlu2 %v4644_v6, %s2714_s27 }
 0x26d   : > { %v1543_v56 = vpop.permute.xlu1 %1542 }
 0x26e   : > { %1635 = vst.msk [vmem:[#allocation2 + $0x10] sm:$0xf] %vm1630_vm13, %v1543_v56  ;;  %v1859_v45 = vpop.permute.xlu0 %1858  ;;  %v1710_v2 = vpop.permute.xlu2 %1709 }
 0x26f   : > { %1938 = vst.msk [vmem:[#allocation2 + $0x44] sm:$0xf] %vm1920_vm15, %v1859_v45 }
 0x270   : > { %1788 = vst.msk [vmem:[#allocation2 + $0x10] sm:$0xf] %vm1783_vm14, %v1696_v26  ;;  %v269_v26 = vld [vmem:[%s2755_s20 + $0xd4] sm:$0x1] }
 0x273   : > { %1866 = vrot.lane.b32.xlu1 %v3447_v14, %s2715_s28  ;;  %v4645_v14 = vld [vmem:[#allocation21_spill] sm:$0xff] }
 0x274   : > { %1864 = vrot.lane.b32.xlu0 %v3454_v52, %s2715_s28  ;;  %1741 = vrot.lane.b32.xlu2 %v3161_v20, %s2714_s27  ;;  %v4646_v52 = vld [vmem:[#allocation42_spill] sm:$0xff] }
 0x275   : > { %v1557_v50 = vpop.permute.xlu1 %1556 }
 0x276   : > { %1642 = vst.msk [vmem:[#allocation2 + $0x2c] sm:$0xf] %vm1630_vm13, %v1557_v50  ;;  %v1555_v13 = vpop.permute.xlu0 %1554  ;;  %v2663_v24 = vld [vmem:[#allocation2 + $0x40] sm:$0xff]  ;;  %v1845_v55 = vpop.permute.xlu2 %1844 }
 0x277   : > { %1641 = vst.msk [vmem:[#allocation2 + $0x28] sm:$0xf] %vm1630_vm13, %v1555_v13  ;;  %2644 = vmatmul.msk.bf16.vlgmr.msra.gmra.mxu2 %vm2085_vm0, %v2663_v24  ;;  %v1683_v13 = vshll.u32 %v269_v26, 16  ;;  %v1670_v24 = vor.u32 %v1669_v41, %v1666_v11 }
 0x278   : > { %1795 = vst.msk [vmem:[#allocation2 + $0x2c] sm:$0xf] %vm1783_vm14, %v1710_v2 }
 0x27b   : > { %1562 = vrot.lane.b32.xlu1 %v4645_v14, %s2713_s26  ;;  %v1685_v14 = vrot.slane %v1683_v13, 5 }
 0x27c   : > { %1878 = vrot.lane.b32.xlu0 %v4646_v52, %s2715_s28  ;;  %1876 = vrot.lane.b32.xlu2 %v3498_v39, %s2715_s28 }
 0x27d   : > { %v1708_v63 = vpop.permute.xlu1 %1707 }
 0x27e   : > { %1794 = vst.msk [vmem:[#allocation2 + $0x28] sm:$0xf] %vm1783_vm14, %v1708_v63  ;;  %v1698_v49 = vpop.permute.xlu0 %1697  ;;  %v1573_v20 = vpop.permute.xlu2 %1572 }
 0x27f   : > { %1789 = vst.msk [vmem:[#allocation2 + $0x14] sm:$0xf] %vm1783_vm14, %v1698_v49 }
 0x280   : > { %1931 = vst.msk [vmem:[#allocation2 + $0x28] sm:$0xf] %vm1920_vm15, %v1845_v55 }
 0x281   : > { %1650 = vst.msk [vmem:[#allocation2 + $0x4c] sm:$0xf] %vm1630_vm13, %v1573_v20 }
 0x283   : > { %1717 = vrot.lane.b32.xlu1 %v4647_v36, %s2714_s27 }
 0x284   : > { %1715 = vrot.lane.b32.xlu0 %v4648_v7, %s2714_s27  ;;  %1564 = vrot.lane.b32.xlu2 %v4649_v0, %s2713_s26 }
 0x285   : > { %v1835_v3 = vpop.permute.xlu1 %1834 }
 0x286   : > { %1926 = vst.msk [vmem:[#allocation2 + $0x14] sm:$0xf] %vm1920_vm15, %v1835_v3  ;;  %v1833_v10 = vpop.permute.xlu0 %1832  ;;  %v1724_v39 = vpop.permute.xlu2 %1723 }
 0x287   : > { %1925 = vst.msk [vmem:[#allocation2 + $0x10] sm:$0xf] %vm1920_vm15, %v1833_v10 }
 0x28b   : > { %1461 = vrot.lane.b32.xlu1 %v4646_v52, %s2712_s25 }
 0x28c   : > { %1854 = vrot.lane.b32.xlu0 %v4650_v37, %s2715_s28  ;;  %1852 = vrot.lane.b32.xlu2 %v4651_v53, %s2715_s28  ;;  %v1822_v37 = vrot.slane %v269_v26, 5 }
 0x28d   : > { %v1571_v46 = vpop.permute.xlu1 %1570 }
 0x28e   : > { %1649 = vst.msk [vmem:[#allocation2 + $0x48] sm:$0xf] %vm1630_vm13, %v1571_v46  ;;  %v1847_v23 = vpop.permute.xlu0 %1846  ;;  %v2657_v38 = vld [vmem:[#allocation2 + $0x10] sm:$0xff]  ;;  %v1738_v30 = vpop.permute.xlu2 %1737 }
 0x28f   : > { %1932 = vst.msk [vmem:[#allocation2 + $0x2c] sm:$0xf] %vm1920_vm15, %v1847_v23  ;;  %2638 = vmatmul.msk.bf16.gmra.mxu0 %vm2085_vm0, %v2657_v38  ;;  %v2563_v23 = vrot.slane %v4086_v62, 9 }
 0x290   : > { %1802 = vst.msk [vmem:[#allocation2 + $0x48] sm:$0xf] %vm1783_vm14, %v1724_v39 }
 0x293   : > { %1590 = vrot.lane.b32.xlu1 %v4652_v34, %s2713_s26 }
 0x294   : > { %1580 = vrot.lane.b32.xlu0 %v4653_v57, %s2713_s26  ;;  %1578 = vrot.lane.b32.xlu2 %v4654_v35, %s2713_s26 }
 0x295   : > { %v1585_v40 = vpop.permute.xlu1 %1584 }
 0x296   : > { %1656 = vst.msk [vmem:[#allocation2 + $0x64] sm:$0xf] %vm1630_vm13, %v1585_v40  ;;  %v1583_v51 = vpop.permute.xlu0 %1582  ;;  %v2660_v42 = vld [vmem:[#allocation2 + $0x28] sm:$0xff]  ;;  %v1873_v43 = vpop.permute.xlu2 %1872 }
 0x297   : > { %1655 = vst.msk [vmem:[#allocation2 + $0x60] sm:$0xf] %vm1630_vm13, %v1583_v51  ;;  %2641 = vmatmul.msk.bf16.gmra.mxu1 %vm2085_vm0, %v2660_v42 }
 0x298   : > { %1809 = vst.msk [vmem:[#allocation2 + $0x64] sm:$0xf] %vm1783_vm14, %v1738_v30 }
 0x29b   : > { %1733 = vrot.lane.b32.xlu1 %v4655_v48, %s2714_s27 }
 0x29c   : > { %1731 = vrot.lane.b32.xlu0 %v4656_v31, %s2714_s27  ;;  %1592 = vrot.lane.b32.xlu2 %v4657_v60, %s2713_s26 }
 0x29d   : > { %v1736_v4 = vpop.permute.xlu1 %1735 }
 0x29e   : > { %1808 = vst.msk [vmem:[#allocation2 + $0x60] sm:$0xf] %vm1783_vm14, %v1736_v4  ;;  %v1726_v12 = vpop.permute.xlu0 %1725  ;;  %v1549_v33 = vpop.permute.xlu2 %1548 }
 0x29f   : > { %1803 = vst.msk [vmem:[#allocation2 + $0x4c] sm:$0xf] %vm1783_vm14, %v1726_v12 }
 0x2a0   : > { %1945 = vst.msk [vmem:[#allocation2 + $0x60] sm:$0xf] %vm1920_vm15, %v1873_v43 }
 0x2a1   : > { %1638 = vst.msk [vmem:[#allocation2 + $0x1c] sm:$0xf] %vm1630_vm13, %v1549_v33 }
 0x2a3   : > { %1868 = vrot.lane.b32.xlu1 %v4630_v27, %s2715_s28  ;;  %v268_v27 = vld [vmem:[%s2755_s20 + $0xd0] sm:$0xf]  ;;  %s214_s20 = scalar_lea.vmem %s4401_s4, %s4664_s16 }
 0x2a4   : > { %1745 = vrot.lane.b32.xlu0 %v4658_v54, %s2714_s27  ;;  %1743 = vrot.lane.b32.xlu2 %v4660_v32, %s2714_s27  ;;  %v1677_v25 = vshrl.u32 %v268_v27, 16  ;;  %v1673_v59 = vshll.u32 %v268_v27, 16  ;;  %v1819_v10 = vrot.slane %v268_v27, 5 }
 0x2a5   : > { %v1863_v1 = vpop.permute.xlu1 %1862 }
 0x2a6   : > { %1940 = vst.msk [vmem:[#allocation2 + $0x4c] sm:$0xf] %vm1920_vm15, %v1863_v1  ;;  %v1861_v8 = vpop.permute.xlu0 %1860  ;;  %v1700_v58 = vpop.permute.xlu2 %1699  ;;  %v1679_v19 = vrot.slane %v1677_v25, 4  ;;  %v1675_v6 = vrot.slane %v1673_v59, 5  ;;  %v1821_v39 = vrot.slane %v1819_v10, 4  ;;  %v1820_v30 = vsel %vm3178_vm6, %v2563_v23, %v1819_v10 }
 0x2a7   : > { %1939 = vst.msk [vmem:[#allocation2 + $0x48] sm:$0xf] %vm1920_vm15, %v1861_v8 }
 0x2a8   : > { %v1680_v50 = vor.u32 %v1679_v19, %v1675_v6  ;;  %v1823_v53 = vsel %vm3178_vm6, %v1821_v39, %v1822_v37 }
 0x2aa   : > { %v1681_v55 = vrot.slane %v1680_v50, 4 }
 0x2ab   : > { %1882 = vrot.lane.b32.xlu1 %v1402_v21, %s2715_s28 }
 0x2ac   : > { %1880 = vrot.lane.b32.xlu0 %v1399_v15, %s2715_s28  ;;  %1870 = vrot.lane.b32.xlu2 %v3479_v9, %s2715_s28  ;;  %v1671_v9 = vrot.slane %v1670_v24, 4  ;;  %v1686_v36 = vsel %vm2791_vm2, %v1681_v55, %v1685_v14 }
 0x2ad   : > { %v1547_v61 = vpop.permute.xlu1 %1546 }
 0x2ae   : > { %1637 = vst.msk [vmem:[#allocation2 + $0x18] sm:$0xf] %vm1630_vm13, %v1547_v61  ;;  %v1875_v56 = vpop.permute.xlu0 %1874  ;;  %v2664_v45 = vld [vmem:[#allocation2 + $0x48] sm:$0xff]  ;;  %v1714_v2 = vpop.permute.xlu2 %1713  ;;  %v1676_v3 = vsel %vm2791_vm2, %v1671_v9, %v1675_v6  ;;  %vm2329_vm2 = vcmask 24576  }
 0x2af   : > { %1946 = vst.msk [vmem:[#allocation2 + $0x64] sm:$0xf] %vm1920_vm15, %v1875_v56  ;;  %2645 = vmatmul.msk.bf16.gmra.mxu2 %vm2085_vm0, %v2664_v45 }
 0x2b0   : > { %1790 = vst.msk [vmem:[#allocation2 + $0x18] sm:$0xf] %vm1783_vm14, %v1700_v58 }
 0x2b3   : > { %1594 = vrot.lane.b32.xlu1 %v4086_v62, %s2713_s26 }
 0x2b4   : > { %1465 = vrot.lane.b32.xlu0 %v1402_v21, %s2712_s25  ;;  %1463 = vrot.lane.b32.xlu2 %v1399_v15, %s2712_s25 }
 0x2b5   : > { %v1561_v52 = vpop.permute.xlu1 %1560 }
 0x2b6   : > { %1644 = vst.msk [vmem:[#allocation2 + $0x34] sm:$0xf] %vm1630_vm13, %v1561_v52  ;;  %v1559_v63 = vpop.permute.xlu0 %1558  ;;  %v2667_v49 = vld [vmem:[#allocation2 + $0x60] sm:$0xff]  ;;  %v1849_v7 = vpop.permute.xlu2 %1848 }
 0x2b7   : > { %1643 = vst.msk [vmem:[#allocation2 + $0x30] sm:$0xf] %vm1630_vm13, %v1559_v63  ;;  %2648 = vmatmul.msk.bf16.vlgmr.msra.gmra.mxu3 %vm2085_vm0, %v2667_v49 }
 0x2b8   : > { %1797 = vst.msk [vmem:[#allocation2 + $0x34] sm:$0xf] %vm1783_vm14, %v1714_v2 }
 0x2bb   : > { %1749 = vrot.lane.b32.xlu1 %v1686_v36, %s2714_s27 }
 0x2bc   : > { %1747 = vrot.lane.b32.xlu0 %v1676_v3, %s2714_s27  ;;  %1596 = vrot.lane.b32.xlu2 %v268_v27, %s2713_s26 }
 0x2bd   : > { %v1712_v0 = vpop.permute.xlu1 %1711 }
 0x2be   : > { %1796 = vst.msk [vmem:[#allocation2 + $0x30] sm:$0xf] %vm1783_vm14, %v1712_v0  ;;  %v1702_v46 = vpop.permute.xlu0 %1701  ;;  %v1577_v38 = vpop.permute.xlu2 %1576 }
 0x2bf   : > { %1791 = vst.msk [vmem:[#allocation2 + $0x1c] sm:$0xf] %vm1783_vm14, %v1702_v46 }
 0x2c0   : > { %1933 = vst.msk [vmem:[#allocation2 + $0x30] sm:$0xf] %vm1920_vm15, %v1849_v7 }
 0x2c1   : > { %1652 = vst.msk [vmem:[#allocation2 + $0x54] sm:$0xf] %vm1630_vm13, %v1577_v38 }
 0x2c4   : > { %1886 = vrot.lane.b32.xlu0 %v1823_v53, %s2715_s28  ;;  %v2147_v57 = vpop.f32.mrf.mxu0  ;;  %1884 = vrot.lane.b32.xlu2 %v1820_v30, %s2715_s28 }
 0x2c5   : > { %v1839_v34 = vpop.permute.xlu1 %1838  ;;  %2228 = vst.msk [vmem:[%s4134_s12] sm:$0xff] %vm2227_vm1, %v2147_v57  ;;  %v2331_v42 = vmul.f32 %v2147_v57, %v2147_v57  ;;  %v2260_v48 = vsel %vm2227_vm1, %v2147_v57, 0.0 }
 0x2c6   : > { %1928 = vst.msk [vmem:[#allocation2 + $0x1c] sm:$0xf] %vm1920_vm15, %v1839_v34  ;;  %v1837_v40 = vpop.permute.xlu0 %1836  ;;  %v1728_v51 = vpop.permute.xlu2 %1727 }
 0x2c7   : > { %1927 = vst.msk [vmem:[#allocation2 + $0x18] sm:$0xf] %vm1920_vm15, %v1837_v40  ;;  %v2363_v33 = vsel %vm2227_vm1, %v2331_v42, 0.0 }
 0x2cc   : > { %v2149_v43 = vpop.f32.mrf.mxu0 }
 0x2cd   : > { %v1575_v35 = vpop.permute.xlu1 %1574  ;;  %v2261_v4 = vsel %vm2227_vm1, %v2149_v43, 0.0  ;;  %v2332_v12 = vmul.f32 %v2149_v43, %v2149_v43  ;;  %2229 = vst.msk [vmem:[%s4134_s12 + $0x8] sm:$0xff] %vm2227_vm1, %v2149_v43 }
 0x2ce   : > { %1651 = vst.msk [vmem:[#allocation2 + $0x50] sm:$0xf] %vm1630_vm13, %v1575_v35  ;;  %v1851_v31 = vpop.permute.xlu0 %1850  ;;  %v2658_v60 = vld [vmem:[#allocation2 + $0x18] sm:$0xff]  ;;  %v2262_v16 = vadd.f32 %v2261_v4, %v2260_v48  ;;  %v1742_v22 = vpop.permute.xlu2 %1741 }
 0x2cf   : > { %1934 = vst.msk [vmem:[#allocation2 + $0x34] sm:$0xf] %vm1920_vm15, %v1851_v31  ;;  %v2364_v54 = vsel %vm2227_vm1, %v2332_v12, 0.0  ;;  %2639 = vmatmul.msk.bf16.gmra.mxu0 %vm2085_vm0, %v2658_v60 }
 0x2d0   : > { %v2365_v44 = vadd.f32 %v2364_v54, %v2363_v33  ;;  %1804 = vst.msk [vmem:[#allocation2 + $0x50] sm:$0xf] %vm1783_vm14, %v1728_v51 }
 0x2d5   : > { %v1589_v47 = vpop.permute.xlu1 %1588 }
 0x2d6   : > { %1658 = vst.msk [vmem:[#allocation2 + $0x6c] sm:$0xf] %vm1630_vm13, %v1589_v47  ;;  %v1587_v1 = vpop.permute.xlu0 %1586  ;;  %v2661_v17 = vld [vmem:[#allocation2 + $0x30] sm:$0xff]  ;;  %v1877_v18 = vpop.permute.xlu2 %1876 }
 0x2d7   : > { %1657 = vst.msk [vmem:[#allocation2 + $0x68] sm:$0xf] %vm1630_vm13, %v1587_v1  ;;  %2642 = vmatmul.msk.bf16.gmra.mxu1 %vm2085_vm0, %v2661_v17 }
 0x2d8   : > { %1811 = vst.msk [vmem:[#allocation2 + $0x6c] sm:$0xf] %vm1783_vm14, %v1742_v22 }
 0x2dc   : > { %v2152_v32 = vpop.f32.mrf.mxu0 }
 0x2dd   : > { %v1740_v8 = vpop.permute.xlu1 %1739  ;;  %v2263_v27 = vsel %vm2227_vm1, %v2152_v32, 0.0  ;;  %v2333_v28 = vmul.f32 %v2152_v32, %v2152_v32  ;;  %2230 = vst.msk [vmem:[%s4134_s12 + $0x10] sm:$0xff] %vm2227_vm1, %v2152_v32 }
 0x2de   : > { %1810 = vst.msk [vmem:[#allocation2 + $0x68] sm:$0xf] %vm1783_vm14, %v1740_v8  ;;  %v1730_v62 = vpop.permute.xlu0 %1729  ;;  %v2264_v21 = vadd.f32 %v2263_v27, %v2262_v16  ;;  %v1565_v25 = vpop.permute.xlu2 %1564 }
 0x2df   : > { %1805 = vst.msk [vmem:[#allocation2 + $0x54] sm:$0xf] %vm1783_vm14, %v1730_v62  ;;  %v2366_v58 = vsel %vm2227_vm1, %v2333_v28, 0.0 }
 0x2e0   : > { %v2367_v15 = vadd.f32 %v2366_v58, %v2365_v44  ;;  %1947 = vst.msk [vmem:[#allocation2 + $0x68] sm:$0xf] %vm1920_vm15, %v1877_v18 }
 0x2e1   : > { %1646 = vst.msk [vmem:[#allocation2 + $0x3c] sm:$0xf] %vm1630_vm13, %v1565_v25 }
 0x2e4   : > { %v4163_v29 = vpop.f32.mrf.mxu1  ;;  %v2154_v19 = vpop.f32.mrf.mxu0 }
 0x2e5   : > { %v1867_v5 = vpop.permute.xlu1 %1866  ;;  %2236 = vst.msk [vmem:[%s4134_s12 + $0x40] sm:$0xff] %vm2227_vm1, %v4163_v29  ;;  %v2265_v61 = vsel %vm2227_vm1, %v2154_v19, 0.0  ;;  %v2334_v11 = vmul.f32 %v2154_v19, %v2154_v19 }
 0x2e6   : > { %1942 = vst.msk [vmem:[#allocation2 + $0x54] sm:$0xf] %vm1920_vm15, %v1867_v5  ;;  %v1865_v59 = vpop.permute.xlu0 %1864  ;;  %v2266_v41 = vadd.f32 %v2265_v61, %v2264_v21  ;;  %v1853_v26 = vpop.permute.xlu2 %1852 }
 0x2e7   : > { %1941 = vst.msk [vmem:[#allocation2 + $0x50] sm:$0xf] %vm1920_vm15, %v1865_v59  ;;  %v2368_v56 = vsel %vm2227_vm1, %v2334_v11, 0.0 }
 0x2e8   : > { %2231 = vst.msk [vmem:[%s4134_s12 + $0x18] sm:$0xff] %vm2227_vm1, %v2154_v19  ;;  %v2369_v45 = vadd.f32 %v2368_v56, %v2367_v15  ;;  %v2339_v56 = vmul.f32 %v4163_v29, %v4163_v29 }
 0x2ec   : > { %v4174_v2 = vpop.f32.mrf.mxu1 }
 0x2ed   : > { %v1563_v6 = vpop.permute.xlu1 %1562  ;;  %2237 = vst.msk [vmem:[%s4134_s12 + $0x48] sm:$0xff] %vm2227_vm1, %v4174_v2 }
 0x2ee   : > { %1645 = vst.msk [vmem:[#allocation2 + $0x38] sm:$0xf] %vm1630_vm13, %v1563_v6  ;;  %v1879_v50 = vpop.permute.xlu0 %1878  ;;  %v2665_v13 = vld [vmem:[#allocation2 + $0x50] sm:$0xff]  ;;  %v1579_v24 = vpop.permute.xlu2 %1578 }
 0x2ef   : > { %1948 = vst.msk [vmem:[#allocation2 + $0x6c] sm:$0xf] %vm1920_vm15, %v1879_v50  ;;  %2646 = vmatmul.msk.bf16.gmra.mxu2 %vm2085_vm0, %v2665_v13  ;;  %v2275_v13 = vsel %vm2227_vm1, %v4163_v29, 0.0 }
 0x2f0   : > { %1653 = vst.msk [vmem:[#allocation2 + $0x58] sm:$0xf] %vm1630_vm13, %v1579_v24  ;;  %v2340_v24 = vmul.f32 %v4174_v2, %v4174_v2 }
 0x2f2   : > { %v2380_v29 = vsel %vm2227_vm1, %v2340_v24, 0.0 }
 0x2f5   : > { %v1718_v55 = vpop.permute.xlu1 %1717 }
 0x2f6   : > { %1799 = vst.msk [vmem:[#allocation2 + $0x3c] sm:$0xf] %vm1783_vm14, %v1718_v55  ;;  %v1716_v14 = vpop.permute.xlu0 %1715  ;;  %v2668_v52 = vld [vmem:[#allocation2 + $0x68] sm:$0xff]  ;;  %v1593_v9 = vpop.permute.xlu2 %1592 }
 0x2f7   : > { %1798 = vst.msk [vmem:[#allocation2 + $0x38] sm:$0xf] %vm1783_vm14, %v1716_v14  ;;  %2649 = vmatmul.msk.bf16.gmra.mxu3 %vm2085_vm0, %v2668_v52 }
 0x2f8   : > { %1935 = vst.msk [vmem:[#allocation2 + $0x38] sm:$0xf] %vm1920_vm15, %v1853_v26 }
 0x2fa   : > { %v4187_v63 = vpop.f32.mrf.mxu2 }
 0x2fb   : > { %2244 = vst.msk [vmem:[%s4134_s12 + $0x80] sm:$0xff] %vm2227_vm1, %v4187_v63 }
 0x2fd   : > { %v1462_v49 = vpop.permute.xlu1 %1461 }
 0x2fe   : > { %1529 = vst.msk [vmem:[#allocation2 + $0x74] sm:$0xf] %vm1499_vm11, %v1462_v49  ;;  %v1855_v20 = vpop.permute.xlu0 %1854  ;;  %v1744_v36 = vpop.permute.xlu2 %1743  ;;  %v2277_v49 = vsel %vm2227_vm1, %v4174_v2, 0.0 }
 0x2ff   : > { %1936 = vst.msk [vmem:[#allocation2 + $0x3c] sm:$0xf] %vm1920_vm15, %v1855_v20 }
 0x300   : > { %1660 = vst.msk [vmem:[#allocation2 + $0x74] sm:$0xf] %vm1630_vm13, %v1593_v9  ;;  %v2378_v9 = vsel %vm2227_vm1, %v2339_v56, 0.0 }
 0x302   : > { %v4195_v7 = vpop.f32.mrf.mxu2 }
 0x303   : > { %2245 = vst.msk [vmem:[%s4134_s12 + $0x88] sm:$0xff] %vm2227_vm1, %v4195_v7 }
 0x305   : > { %v1591_v3 = vpop.permute.xlu1 %1590 }
 0x306   : > { %1659 = vst.msk [vmem:[#allocation2 + $0x70] sm:$0xf] %vm1630_vm13, %v1591_v3  ;;  %v1581_v10 = vpop.permute.xlu0 %1580  ;;  %v2662_v0 = vld [vmem:[#allocation2 + $0x38] sm:$0xff]  ;;  %v1871_v39 = vpop.permute.xlu2 %1870 }
 0x307   : > { %1654 = vst.msk [vmem:[#allocation2 + $0x5c] sm:$0xf] %vm1630_vm13, %v1581_v10  ;;  %2643 = vmatmul.msk.bf16.gmra.mxu1 %vm2085_vm0, %v2662_v0 }
 0x308   : > { %1812 = vst.msk [vmem:[#allocation2 + $0x70] sm:$0xf] %vm1783_vm14, %v1744_v36 }
 0x30c   : > { %v2157_v46 = vpop.f32.mrf.mxu0 }
 0x30d   : > { %v1734_v37 = vpop.permute.xlu1 %1733  ;;  %v2267_v38 = vsel %vm2227_vm1, %v2157_v46, 0.0  ;;  %v2335_v53 = vmul.f32 %v2157_v46, %v2157_v46  ;;  %2232 = vst.msk [vmem:[%s4134_s12 + $0x20] sm:$0xff] %vm2227_vm1, %v2157_v46 }
 0x30e   : > { %1807 = vst.msk [vmem:[#allocation2 + $0x5c] sm:$0xf] %vm1783_vm14, %v1734_v37  ;;  %v1732_v23 = vpop.permute.xlu0 %1731  ;;  %v2268_v30 = vadd.f32 %v2267_v38, %v2266_v41  ;;  %v1464_v57 = vpop.permute.xlu2 %1463 }
 0x30f   : > { %1806 = vst.msk [vmem:[#allocation2 + $0x58] sm:$0xf] %vm1783_vm14, %v1732_v23  ;;  %v2370_v34 = vsel %vm2227_vm1, %v2335_v53, 0.0 }
 0x310   : > { %v2371_v40 = vadd.f32 %v2370_v34, %v2369_v45  ;;  %1944 = vst.msk [vmem:[#allocation2 + $0x5c] sm:$0xf] %vm1920_vm15, %v1871_v39 }
 0x311   : > { %1530 = vst.msk [vmem:[#allocation2 + $0x78] sm:$0xf] %vm1499_vm11, %v1464_v57 }
 0x314   : > { %v4212_v42 = vpop.f32.mrf.mxu1  ;;  %v2159_v43 = vpop.f32.mrf.mxu0 }
 0x315   : > { %v1869_v51 = vpop.permute.xlu1 %1868  ;;  %2238 = vst.msk [vmem:[%s4134_s12 + $0x50] sm:$0xff] %vm2227_vm1, %v4212_v42  ;;  %v2269_v48 = vsel %vm2227_vm1, %v2159_v43, 0.0  ;;  %v2336_v31 = vmul.f32 %v2159_v43, %v2159_v43  ;;  %v2341_v20 = vmul.f32 %v4212_v42, %v4212_v42  ;;  %v2279_v10 = vsel %vm2227_vm1, %v4212_v42, 0.0 }
 0x316   : > { %1943 = vst.msk [vmem:[#allocation2 + $0x58] sm:$0xf] %vm1920_vm15, %v1869_v51  ;;  %v1746_v35 = vpop.permute.xlu0 %1745  ;;  %v2270_v4 = vadd.f32 %v2269_v48, %v2268_v30  ;;  %v1597_v44 = vpop.permute.xlu2 %1596 }
 0x317   : > { %1813 = vst.msk [vmem:[#allocation2 + $0x74] sm:$0xf] %vm1783_vm14, %v1746_v35  ;;  %v2372_v12 = vsel %vm2227_vm1, %v2336_v31, 0.0  ;;  %v2382_v23 = vsel %vm2227_vm1, %v2341_v20, 0.0 }
 0x318   : > { %2233 = vst.msk [vmem:[%s4134_s12 + $0x28] sm:$0xff] %vm2227_vm1, %v2159_v43  ;;  %v2373_v60 = vadd.f32 %v2372_v12, %v2371_v40 }
 0x31c   : > { %v4223_v33 = vpop.f32.mrf.mxu1 }
 0x31d   : > { %v1883_v16 = vpop.permute.xlu1 %1882  ;;  %v2666_v54 = vld [vmem:[#allocation2 + $0x58] sm:$0xff]  ;;  %2239 = vst.msk [vmem:[%s4134_s12 + $0x58] sm:$0xff] %vm2227_vm1, %v4223_v33  ;;  %v2342_v0 = vmul.f32 %v4223_v33, %v4223_v33  ;;  %v2281_v2 = vsel %vm2227_vm1, %v4223_v33, 0.0 }
 0x31e   : > { %1950 = vst.msk [vmem:[#allocation2 + $0x74] sm:$0xf] %vm1920_vm15, %v1883_v16  ;;  %v1881_v22 = vpop.permute.xlu0 %1880  ;;  %2647 = vmatmul.msk.bf16.gmra.mxu2 %vm2085_vm0, %v2666_v54  ;;  %v1885_v8 = vpop.permute.xlu2 %1884 }
 0x31f   : > { %1949 = vst.msk [vmem:[#allocation2 + $0x70] sm:$0xf] %vm1920_vm15, %v1881_v22  ;;  %v2384_v34 = vsel %vm2227_vm1, %v2342_v0, 0.0 }
 0x325   : > { %v1595_v47 = vpop.permute.xlu1 %1594 }
 0x326   : > { %v1466_v1 = vpop.permute.xlu0 %1465  ;;  %1661 = vst.msk [vmem:[#allocation2 + $0x78] sm:$0xf] %vm1630_vm13, %v1595_v47  ;;  %v2669_v17 = vld [vmem:[#allocation2 + $0x70] sm:$0xff] }
 0x327   : > { %1531 = vst.msk [vmem:[#allocation2 + $0x7c] sm:$0xf] %vm1499_vm11, %v1466_v1  ;;  %2650 = vmatmul.msk.bf16.gmra.mxu3 %vm2085_vm0, %v2669_v17 }
 0x328   : > { %1662 = vst.msk [vmem:[#allocation2 + $0x7c] sm:$0xf] %vm1630_vm13, %v1597_v44 }
 0x32d   : > { %v1750_v18 = vpop.permute.xlu1 %1749 }
 0x32e   : > { %v1748_v32 = vpop.permute.xlu0 %1747  ;;  %1815 = vst.msk [vmem:[#allocation2 + $0x7c] sm:$0xf] %vm1783_vm14, %v1750_v18 }
 0x32f   : > { %1814 = vst.msk [vmem:[#allocation2 + $0x78] sm:$0xf] %vm1783_vm14, %v1748_v32 }
 0x330   : > { %1951 = vst.msk [vmem:[#allocation2 + $0x78] sm:$0xf] %vm1920_vm15, %v1885_v8  ;;  %v2347_v8 = vmul.f32 %v4187_v63, %v4187_v63 }
 0x332   : > { %v4238_v62 = vpop.f32.mrf.mxu2 }
 0x333   : > { %2246 = vst.msk [vmem:[%s4134_s12 + $0x90] sm:$0xff] %vm2227_vm1, %v4238_v62  ;;  %v2349_v56 = vmul.f32 %v4238_v62, %v4238_v62 }
 0x336   : > { %v1887_v27 = vpop.permute.xlu0 %1886 }
 0x337   : > { %1952 = vst.msk [vmem:[#allocation2 + $0x7c] sm:$0xf] %vm1920_vm15, %v1887_v27 }
 0x33a   : > { %v4244_v28 = vpop.f32.mrf.mxu2  ;;  %v4246_v21 = vpop.f32.mrf.mxu3 }
 0x33b   : > { %2247 = vst.msk [vmem:[%s4134_s12 + $0x98] sm:$0xff] %vm2227_vm1, %v4244_v28 }
 0x33c   : > { %2252 = vst.msk [vmem:[%s4134_s12 + $0xc0] sm:$0xff] %vm2227_vm1, %v4246_v21 }
 0x33e   : > { %v2670_v58 = vld [vmem:[#allocation2 + $0x78] sm:$0xff] }
 0x33f   : > { %2651 = vmatmul.msk.bf16.gmra.mxu3 %vm2085_vm0, %v2670_v58 }
 0x342   : > { %v4255_v25 = vpop.f32.mrf.mxu3 }
 0x343   : > { %2253 = vst.msk [vmem:[%s4134_s12 + $0xc8] sm:$0xff] %vm2227_vm1, %v4255_v25 }
 0x34c   : > { %v2162_v15 = vpop.f32.mrf.mxu0 }
 0x34d   : > { %2234 = vst.msk [vmem:[%s4134_s12 + $0x30] sm:$0xff] %vm2227_vm1, %v2162_v15  ;;  %v2271_v5 = vsel %vm2227_vm1, %v2162_v15, 0.0  ;;  %v2337_v59 = vmul.f32 %v2162_v15, %v2162_v15 }
 0x34e   : > { %v2272_v19 = vadd.f32 %v2271_v5, %v2270_v4  ;;  %v2291_v5 = vsel %vm2227_vm1, %v4187_v63, 0.0  ;;  %v2295_v63 = vsel %vm2227_vm1, %v4238_v62, 0.0 }
 0x34f   : > { %v2374_v61 = vsel %vm2227_vm1, %v2337_v59, 0.0  ;;  %v2348_v59 = vmul.f32 %v4195_v7, %v4195_v7 }
 0x350   : > { %v2375_v11 = vadd.f32 %v2374_v61, %v2373_v60 }
 0x354   : > { %v2164_v41 = vpop.f32.mrf.mxu0  ;;  %v2177_v26 = vpop.f32.mrf.mxu1 }
 0x355   : > { %2235 = vst.msk [vmem:[%s4134_s12 + $0x38] sm:$0xff] %vm2227_vm1, %v2164_v41  ;;  %v2273_v45 = vsel %vm2227_vm1, %v2164_v41, 0.0  ;;  %v2338_v6 = vmul.f32 %v2164_v41, %v2164_v41  ;;  %v2343_v38 = vmul.f32 %v2177_v26, %v2177_v26  ;;  %v2283_v57 = vsel %vm2227_vm1, %v2177_v26, 0.0 }
 0x356   : > { %v2274_v50 = vadd.f32 %v2273_v45, %v2272_v19  ;;  %2240 = vst.msk [vmem:[%s4134_s12 + $0x60] sm:$0xff] %vm2227_vm1, %v2177_v26  ;;  %v2394_v41 = vsel %vm2227_vm1, %v2347_v8, 0.0  ;;  %v2293_v26 = vsel %vm2227_vm1, %v4195_v7, 0.0  ;;  %v2297_v7 = vsel %vm2227_vm1, %v4244_v28, 0.0 }
 0x357   : > { %v2376_v55 = vsel %vm2227_vm1, %v2338_v6, 0.0  ;;  %v2386_v35 = vsel %vm2227_vm1, %v2343_v38, 0.0 }
 0x358   : > { %v2276_v14 = vadd.f32 %v2275_v13, %v2274_v50  ;;  %v2377_v52 = vadd.f32 %v2376_v55, %v2375_v11  ;;  %v2396_v50 = vsel %vm2227_vm1, %v2348_v59, 0.0  ;;  %v2350_v13 = vmul.f32 %v4244_v28, %v4244_v28 }
 0x35a   : > { %v2278_v36 = vadd.f32 %v2277_v49, %v2276_v14  ;;  %v2379_v3 = vadd.f32 %v2378_v9, %v2377_v52  ;;  %v2398_v14 = vsel %vm2227_vm1, %v2349_v56, 0.0  ;;  %v2400_v20 = vsel %vm2227_vm1, %v2350_v13, 0.0 }
 0x35c   : > { %v2381_v39 = vadd.f32 %v2380_v29, %v2379_v3  ;;  %v2280_v37 = vadd.f32 %v2279_v10, %v2278_v36  ;;  %v2179_v46 = vpop.f32.mrf.mxu1 }
 0x35d   : > { %2241 = vst.msk [vmem:[%s4134_s12 + $0x68] sm:$0xff] %vm2227_vm1, %v2179_v46  ;;  %v2344_v40 = vmul.f32 %v2179_v46, %v2179_v46  ;;  %v2285_v43 = vsel %vm2227_vm1, %v2179_v46, 0.0 }
 0x35e   : > { %v2282_v53 = vadd.f32 %v2281_v2, %v2280_v37  ;;  %v2383_v30 = vadd.f32 %v2382_v23, %v2381_v39 }
 0x35f   : > { %v2388_v4 = vsel %vm2227_vm1, %v2344_v40, 0.0 }
 0x360   : > { %v2284_v51 = vadd.f32 %v2283_v57, %v2282_v53  ;;  %v2385_v42 = vadd.f32 %v2384_v34, %v2383_v30  ;;  %v2355_v57 = vmul.f32 %v4246_v21, %v4246_v21 }
 0x362   : > { %v2387_v48 = vadd.f32 %v2386_v35, %v2385_v42  ;;  %v2286_v31 = vadd.f32 %v2285_v43, %v2284_v51 }
 0x364   : > { %v2389_v12 = vadd.f32 %v2388_v4, %v2387_v48  ;;  %v2307_v48 = vsel %vm2227_vm1, %v4246_v21, 0.0 }
 0x372   : > { %v2197_v60 = vpop.f32.mrf.mxu2 }
 0x373   : > { %2248 = vst.msk [vmem:[%s4134_s12 + $0xa0] sm:$0xff] %vm2227_vm1, %v2197_v60  ;;  %v2351_v52 = vmul.f32 %v2197_v60, %v2197_v60  ;;  %v2299_v36 = vsel %vm2227_vm1, %v2197_v60, 0.0 }
 0x375   : > { %v2402_v29 = vsel %vm2227_vm1, %v2351_v52, 0.0 }
 0x37a   : > { %v2199_v16 = vpop.f32.mrf.mxu2  ;;  %v4298_v33 = vpop.f32.mrf.mxu3 }
 0x37b   : > { %2249 = vst.msk [vmem:[%s4134_s12 + $0xa8] sm:$0xff] %vm2227_vm1, %v2199_v16  ;;  %v2352_v39 = vmul.f32 %v2199_v16, %v2199_v16  ;;  %v2301_v28 = vsel %vm2227_vm1, %v2199_v16, 0.0  ;;  %v2410_v16 = vsel %vm2227_vm1, %v2355_v57, 0.0 }
 0x37c   : > { %2254 = vst.msk [vmem:[%s4134_s12 + $0xd0] sm:$0xff] %vm2227_vm1, %v4298_v33 }
 0x37d   : > { %v2404_v2 = vsel %vm2227_vm1, %v2352_v39, 0.0 }
 0x382   : > { %v4305_v54 = vpop.f32.mrf.mxu3 }
 0x383   : > { %2255 = vst.msk [vmem:[%s4134_s12 + $0xd8] sm:$0xff] %vm2227_vm1, %v4305_v54 }
 0x384   : > { %v2182_v22 = vpop.f32.mrf.mxu1 }
 0x385   : > { %2242 = vst.msk [vmem:[%s4134_s12 + $0x70] sm:$0xff] %vm2227_vm1, %v2182_v22  ;;  %v2345_v44 = vmul.f32 %v2182_v22, %v2182_v22  ;;  %v2287_v47 = vsel %vm2227_vm1, %v2182_v22, 0.0  ;;  %v2309_v22 = vsel %vm2227_vm1, %v4255_v25, 0.0 }
 0x386   : > { %v2288_v17 = vadd.f32 %v2287_v47, %v2286_v31  ;;  %v2356_v31 = vmul.f32 %v4255_v25, %v4255_v25  ;;  %v2358_v25 = vmul.f32 %v4305_v54, %v4305_v54 }
 0x387   : > { %v2390_v1 = vsel %vm2227_vm1, %v2345_v44, 0.0  ;;  %v2357_v44 = vmul.f32 %v4298_v33, %v4298_v33 }
 0x388   : > { %v2391_v58 = vadd.f32 %v2390_v1, %v2389_v12  ;;  %v2412_v1 = vsel %vm2227_vm1, %v2356_v31, 0.0  ;;  %v2416_v59 = vsel %vm2227_vm1, %v2358_v25, 0.0 }
 0x38c   : > { %v2184_v18 = vpop.f32.mrf.mxu1 }
 0x38d   : > { %2243 = vst.msk [vmem:[%s4134_s12 + $0x78] sm:$0xff] %vm2227_vm1, %v2184_v18  ;;  %v2289_v32 = vsel %vm2227_vm1, %v2184_v18, 0.0  ;;  %v2346_v27 = vmul.f32 %v2184_v18, %v2184_v18 }
 0x38e   : > { %v2290_v15 = vadd.f32 %v2289_v32, %v2288_v17  ;;  %v2311_v17 = vsel %vm2227_vm1, %v4298_v33, 0.0  ;;  %v2414_v32 = vsel %vm2227_vm1, %v2357_v44, 0.0 }
 0x38f   : > { %v2392_v19 = vsel %vm2227_vm1, %v2346_v27, 0.0 }
 0x390   : > { %v2292_v61 = vadd.f32 %v2291_v5, %v2290_v15  ;;  %v2393_v11 = vadd.f32 %v2392_v19, %v2391_v58  ;;  %v2313_v15 = vsel %vm2227_vm1, %v4305_v54, 0.0 }
 0x392   : > { %v2294_v45 = vadd.f32 %v2293_v26, %v2292_v61  ;;  %v2395_v6 = vadd.f32 %v2394_v41, %v2393_v11 }
 0x394   : > { %v2296_v24 = vadd.f32 %v2295_v63, %v2294_v45  ;;  %v2397_v55 = vadd.f32 %v2396_v50, %v2395_v6 }
 0x396   : > { %v2399_v9 = vadd.f32 %v2398_v14, %v2397_v55  ;;  %v2298_v49 = vadd.f32 %v2297_v7, %v2296_v24 }
 0x398   : > { %v2300_v3 = vadd.f32 %v2299_v36, %v2298_v49  ;;  %v2401_v62 = vadd.f32 %v2400_v20, %v2399_v9 }
 0x39a   : > { %v2403_v10 = vadd.f32 %v2402_v29, %v2401_v62  ;;  %v2302_v23 = vadd.f32 %v2301_v28, %v2300_v3 }
 0x39c   : > { %v2405_v30 = vadd.f32 %v2404_v2, %v2403_v10 }
 0x3a1   : > { %v2202_v0 = vpop.f32.mrf.mxu2 }
 0x3a2   : > { %2250 = vst.msk [vmem:[%s4134_s12 + $0xb0] sm:$0xff] %vm2227_vm1, %v2202_v0  ;;  %v2353_v37 = vmul.f32 %v2202_v0, %v2202_v0  ;;  %v2303_v46 = vsel %vm2227_vm1, %v2202_v0, 0.0 }
 0x3a3   : > { %v2304_v53 = vadd.f32 %v2303_v46, %v2302_v23 }
 0x3a4   : > { %v2406_v38 = vsel %vm2227_vm1, %v2353_v37, 0.0 }
 0x3a5   : > { %v2407_v42 = vadd.f32 %v2406_v38, %v2405_v30 }
 0x3a9   : > { %v2204_v34 = vpop.f32.mrf.mxu2 }
 0x3aa   : > { %2251 = vst.msk [vmem:[%s4134_s12 + $0xb8] sm:$0xff] %vm2227_vm1, %v2204_v34  ;;  %v2305_v40 = vsel %vm2227_vm1, %v2204_v34, 0.0  ;;  %v2354_v51 = vmul.f32 %v2204_v34, %v2204_v34  ;;  %v2217_v43 = vpop.f32.mrf.mxu3 }
 0x3ab   : > { %v2306_v35 = vadd.f32 %v2305_v40, %v2304_v53  ;;  %2256 = vst.msk [vmem:[%s4134_s12 + $0xe0] sm:$0xff] %vm2227_vm1, %v2217_v43  ;;  %v2359_v19 = vmul.f32 %v2217_v43, %v2217_v43  ;;  %v2315_v11 = vsel %vm2227_vm1, %v2217_v43, 0.0 }
 0x3ac   : > { %v2408_v4 = vsel %vm2227_vm1, %v2354_v51, 0.0 }
 0x3ad   : > { %v2308_v12 = vadd.f32 %v2307_v48, %v2306_v35  ;;  %v2409_v60 = vadd.f32 %v2408_v4, %v2407_v42  ;;  %v2418_v26 = vsel %vm2227_vm1, %v2359_v19, 0.0 }
 0x3af   : > { %v2310_v47 = vadd.f32 %v2309_v22, %v2308_v12  ;;  %v2411_v21 = vadd.f32 %v2410_v16, %v2409_v60 }
 0x3b1   : > { %v2413_v18 = vadd.f32 %v2412_v1, %v2411_v21  ;;  %v2312_v8 = vadd.f32 %v2311_v17, %v2310_v47 }
 0x3b2   : > { %v2219_v58 = vpop.f32.mrf.mxu3 }
 0x3b3   : > { %v2415_v27 = vadd.f32 %v2414_v32, %v2413_v18  ;;  %2257 = vst.msk [vmem:[%s4134_s12 + $0xe8] sm:$0xff] %vm2227_vm1, %v2219_v58  ;;  %v2314_v5 = vadd.f32 %v2313_v15, %v2312_v8  ;;  %v2360_v56 = vmul.f32 %v2219_v58, %v2219_v58  ;;  %v2317_v50 = vsel %vm2227_vm1, %v2219_v58, 0.0 }
 0x3b5   : > { %v2417_v61 = vadd.f32 %v2416_v59, %v2415_v27  ;;  %v2316_v41 = vadd.f32 %v2315_v11, %v2314_v5  ;;  %v2420_v13 = vsel %vm2227_vm1, %v2360_v56, 0.0 }
 0x3b7   : > { %v2419_v6 = vadd.f32 %v2418_v26, %v2417_v61  ;;  %v2318_v63 = vadd.f32 %v2317_v50, %v2316_v41 }
 0x3b9   : > { %v2421_v55 = vadd.f32 %v2420_v13, %v2419_v6 }
 0x3c2   : > { %v2222_v33 = vpop.f32.mrf.mxu3 }
 0x3c3   : > { %2258 = vst.msk [vmem:[%s4134_s12 + $0xf0] sm:$0xff] %vm2227_vm1, %v2222_v33  ;;  %v2361_v45 = vmul.f32 %v2222_v33, %v2222_v33  ;;  %v2319_v54 = vsel %vm2227_vm1, %v2222_v33, 0.0 }
 0x3c4   : > { %v2320_v14 = vadd.f32 %v2319_v54, %v2318_v63 }
 0x3c5   : > { %v2422_v24 = vsel %vm2227_vm1, %v2361_v45, 0.0 }
 0x3c6   : > { %v2423_v49 = vadd.f32 %v2422_v24, %v2421_v55 }
 0x3ca   : > { %v2224_v7 = vpop.f32.mrf.mxu3 }
 0x3cb   : > { %2259 = vst.msk [vmem:[%s4134_s12 + $0xf8] sm:$0xff] %vm2227_vm1, %v2224_v7  ;;  %v2321_v52 = vsel %vm2227_vm1, %v2224_v7, 0.0  ;;  %v2362_v9 = vmul.f32 %v2224_v7, %v2224_v7 }
 0x3cc   : > { %v2322_v20 = vadd.f32 %v2321_v52, %v2320_v14 }
 0x3cd   : > { %v2424_v36 = vsel %vm2227_vm1, %v2362_v9, 0.0 }
 0x3ce   : > { %v2323_v3 = vrot.slane %v2322_v20, 4  ;;  %v2425_v62 = vadd.f32 %v2424_v36, %v2423_v49 }
 0x3d0   : > { %v2324_v29 = vadd.f32 %v2323_v3, %v2322_v20  ;;  %v2426_v10 = vrot.slane %v2425_v62, 4 }
 0x3d2   : > { %v2325_v0 = vrot.slane %v2324_v29, 2  ;;  %v2427_v39 = vadd.f32 %v2426_v10, %v2425_v62 }
 0x3d4   : > { %v2326_v37 = vadd.f32 %v2325_v0, %v2324_v29  ;;  %v2428_v28 = vrot.slane %v2427_v39, 2 }
 0x3d6   : > { %v2327_v46 = vrot.slane %v2326_v37, 1  ;;  %v2429_v23 = vadd.f32 %v2428_v28, %v2427_v39 }
 0x3d8   : > { %v2328_v2 = vadd.f32 %v2327_v46, %v2326_v37  ;;  %v2430_v38 = vrot.slane %v2429_v23, 1 }
 0x3da   : > { %2330 = vst.msk [vmem:[%s211_s17] sm:$0x1] %vm2329_vm2, %v2328_v2  ;;  %v2431_v53 = vadd.f32 %v2430_v38, %v2429_v23 }
 0x3dc   : > { %2432 = vst.msk [vmem:[%s214_s20] sm:$0x1] %vm2329_vm2, %v2431_v53 }
 0x3dd PF: > { %s15_s15 = sadd.s32 1, %s2706_s15  }
 0x3de   : > { %p12_p4 = scmp.ge.s32.totalorder %s15_s15, 4  }
 0x3e0   :  { %14 = sbr.rel (!%p12_p4) target bundleno = 1 (0x1), region = 82 }

</bundles_post_ra>
